<compile_context>
chip_gen: v7x
topology: tpu7x:2x2x1
jax: 0.10.0
libtpu: 0.0.40
codegen_flags: <defaults>
</compile_context>

<pallas_src>
import jax
import jax.numpy as jnp
from jax.experimental import pallas as pl
from jax.experimental.pallas import tpu as pltpu


def _sigmoid(v):
    return 1.0 / (1.0 + jnp.exp(-v))


def _leaky_relu(v, slope=0.01):      # nn.LeakyReLU() default negative_slope
    return jnp.where(v > 0, v, slope * v)


_SMALL_PARAM_NAMES = ('fc_w1', 'fc_b1', 'fc_w2', 'fc_b2', 'fc_w3', 'fc_b3',
                      'fc1_w1', 'fc1_b1', 'fc1_w2', 'fc1_b2', 'fc1_w3', 'fc1_b3',
                      'ga_w', 'ga_b', 'weights1')


def _pack_small_params(params):
    """Flatten every tiny parameter into one 1-D f32 table (goes to SMEM)."""
    flats, offs, cur = [], {}, 0
    for name in _SMALL_PARAM_NAMES:
        a = jnp.asarray(params[name], jnp.float32).reshape(-1)
        offs[name] = cur
        cur += a.shape[0]
        flats.append(a)
    return jnp.concatenate(flats, axis=0), offs


def _vmem_limit_bytes():
    # Generation-aware budget: ~48 MiB on a 64 MiB v7x TC, 96 MiB on 128 MiB chips.
    try:
        cap = int(pltpu.get_tpu_info().vmem_capacity_bytes)
    except Exception:
        cap = 64 * 1024 * 1024
    return int(min(max(cap - 16 * 1024 * 1024, 32 * 1024 * 1024), 96 * 1024 * 1024))


def dcnn_forward(params, x, node_embeddings, speed, occupy):
    ne0, ne1 = node_embeddings
    B, N, Din = x.shape
    E = ne0.shape[-1]
    F_steps = params['weights_pool'].shape[1]
    Dout = params['weights_pool'].shape[-1]
    HY = params['fc_w1'].shape[1]      # hyperGNN_dim (16)
    MID = params['fc_w2'].shape[1]     # middle_dim (2)
    FD = F_steps * Dout

    # ----------------- batch-independent parameter glue (plain JAX) ---------
    alpha = params['alpha'].reshape(())
    beta = params['beta'].reshape(())
    # node-specific weights, alpha/beta folded in, re-laid out lane-dense in N:
    #   wslab[dir*F*Dout + f*Dout + o, i, n] = {alpha,beta} * w[n, f, i, o]
    wf = jnp.einsum('nd,dfio->nfio', ne1, params['weights_pool'])            # (N,F,Din,Dout)
    wb = jnp.einsum('nd,dfio->nfio', ne1, params['backward_weights_pool'])
    wslab = jnp.concatenate(
        [jnp.transpose(alpha * wf, (1, 3, 2, 0)).reshape(FD, Din, N),
         jnp.transpose(beta * wb, (1, 3, 2, 0)).reshape(FD, Din, N)], axis=0)  # (2FD,Din,N)
    bias_t = (ne1 @ params['bias_pool']).T                                    # (Dout, N)

    pslab, offs = _pack_small_params(params)                                  # (~250,) SMEM

    # channel-major / N-in-lanes data layout (lane-dense at realistic N).
    # TODO(synk): produce this layout upstream of dcnn_forward to avoid the
    # transpose round-trips through HBM entirely.
    x_t = jnp.transpose(x, (0, 2, 1))                                         # (B, Din, N)
    ne0_t = jnp.transpose(ne0, (0, 2, 1))                                     # (B, E, N)
    sp_t = speed[..., 0]                                                      # (B, N)
    oc_t = occupy[..., 0]                                                     # (B, N)

    # Batch-aware grid: one step for small B; chunks of 8/16 rows for large B
    # (keeps (8,128) block legality, lets the pipeline prefetch, and gives each
    # v7x TensorCore several steps of the "parallel" axis).
    if B >= 32 and B % 16 == 0:
        G = B // 16
    elif B >= 16 and B % 8 == 0:
        G = B // 8
    else:
        G = 1
    Bh = B // G

    # bf16 MXU inputs only once N is large enough for MXU throughput to matter;
    # f32 otherwise (keeps the 2e-3 validation tolerance at small sizes).
    cdt = jnp.bfloat16 if N >= 128 else jnp.float32

    def kernel(p_ref, x_ref, ne0_ref, sp_ref, oc_ref, w_ref, b_ref, out_ref):
        # ---- scalar parameter table (SMEM): read each scalar exactly once ----
        def sm(off, n):
            return [p_ref[off + t] for t in range(n)]

        fw1 = sm(offs['fc_w1'], Din * HY); fb1 = sm(offs['fc_b1'], HY)
        fw2 = sm(offs['fc_w2'], HY * MID); fb2 = sm(offs['fc_b2'], MID)
        fw3 = sm(offs['fc_w3'], MID * E);  fb3 = sm(offs['fc_b3'], E)
        gw1 = sm(offs['fc1_w1'], HY);      gb1 = sm(offs['fc1_b1'], HY)
        gw2 = sm(offs['fc1_w2'], HY * MID); gb2 = sm(offs['fc1_b2'], MID)
        gw3 = sm(offs['fc1_w3'], MID * E);  gb3 = sm(offs['fc1_b3'], E)
        gaw = sm(offs['ga_w'], Din)
        gab = p_ref[offs['ga_b']]
        w1s = sm(offs['weights1'], Din * Dout)

        # hyper-net MLP: Linear(k1,HY)->sig->Linear(HY,MID)->sig->Linear(MID,E)
        # as scalar-broadcast FMAs on (Bh, N) slabs (N lane-dense, no MXU slivers).
        def mlp(vs, w1, b1, w2, b2, w3, b3):
            k1 = len(vs)
            h1 = []
            for h in range(HY):
                a = b1[h]
                for i in range(k1):
                    a = a + w1[i * HY + h] * vs[i]
                h1.append(_sigmoid(a))
            c = []
            for j in range(MID):
                a = b2[j]
                for h in range(HY):
                    a = a + w2[h * MID + j] * h1[h]
                c.append(_sigmoid(a))
            outs = []
            for e in range(E):
                a = b3[e]
                for j in range(MID):
                    a = a + w3[j * E + e] * c[j]
                outs.append(a)
            return outs                                     # E x (Bh, N)

        x_ch = [x_ref[:, i, :] for i in range(Din)]         # Din x (Bh, N)
        filt = mlp(x_ch, fw1, fb1, fw2, fb2, fw3, fb3)
        filt1 = mlp([sp_ref[...]], gw1, gb1, gw2, gb2, gw3, gb3)
        filt2 = mlp([oc_ref[...]], gw1, gb1, gw2, gb2, gw3, gb3)

        nv = []
        for e in range(E):
            v = jnp.tanh(ne0_ref[:, e, :] * filt[e])
            v = jnp.tanh(v * filt1[e])
            v = jnp.tanh(v * filt2[e])
            nv.append(v)
        nvT = jnp.swapaxes(jnp.stack(nv, axis=1), 1, 2).astype(cdt)   # (Bh, N, E)

        # adaptive adjacency: supports2 = relu(V V^T)   (MXU, canonical pattern)
        s2 = jnp.maximum(
            jnp.einsum('bne,bme->bnm', nvT, nvT,
                       preferred_element_type=jnp.float32), 0.0)      # (Bh, N, N)
        s2c = s2.astype(cdt)

        # forward / backward diffusion chains; channel-major states (Bh, Din, N)
        # -> the matmuls have N (lane-dense) output columns.
        xg = [x_ref[...]]
        for _ in range(1, F_steps):
            nxt = jnp.einsum('bim,bnm->bin', xg[-1].astype(cdt), s2c,
                             preferred_element_type=jnp.float32)
            xg.append(_leaky_relu(nxt))
        xgb = [xg[-1]]
        for _ in range(1, F_steps):
            nxt = jnp.einsum('bim,bmn->bin', xgb[-1].astype(cdt), s2c,
                             preferred_element_type=jnp.float32)
            xgb.append(_leaky_relu(nxt))

        def global_feat(xlist):
            nf = xlist[0]
            for t in range(1, F_steps):
                nf = nf + xlist[t]
            nf = nf * (1.0 / float(F_steps))                # (Bh, Din, N)
            s = gaw[0] * nf[:, 0, :]
            for i in range(1, Din):
                s = s + gaw[i] * nf[:, i, :]
            s = s + gab                                     # (Bh, N) scores
            m = jnp.max(s, axis=-1, keepdims=True)
            ex = jnp.exp(s - m)
            aw = ex * pl.reciprocal(jnp.sum(ex, axis=-1, keepdims=True),
                                    approx=True)            # softmax over N
            gv = jnp.sum(nf * aw[:, None, :], axis=-1)       # (Bh, Din)
            outs = []
            for oo in range(Dout):
                a = w1s[oo] * gv[:, 0:1]
                for i in range(1, Din):
                    a = a + w1s[i * Dout + oo] * gv[:, i:i + 1]
                outs.append(a)                               # (Bh, 1)
            return outs

        gfwd = global_feat(xg)
        gbwd = global_feat(xgb)

        # einsum('bnfi,nfio->bno') for both directions; weights come from the
        # leading-indexed slab (alpha/beta already folded in), stores are
        # per-o lane-dense (Bh, N) sub-blocks.
        # TODO(synk): if F_steps*Din grows large, switch this unrolled loop to
        # lax.fori_loop over ref-indexed wslab rows to bound live ranges.
        for oo in range(Dout):
            acc = gfwd[oo] + gbwd[oo] + b_ref[oo:oo + 1, :]          # (Bh, N)
            for f in range(F_steps):
                acc = acc + jnp.sum(xg[f] * w_ref[f * Dout + oo][None, :, :], axis=1)
                acc = acc + jnp.sum(xgb[f] * w_ref[FD + f * Dout + oo][None, :, :], axis=1)
            out_ref[oo] = acc.astype(out_ref.dtype)

    # TODO(synk): for very large graphs, supports2 (Bh,N,N) plus the diffusion
    # states need an N tile to respect v7x's 64 MiB VMEM; at these sizes the
    # monolithic body is far below the budget set here.
    out_t = pl.pallas_call(
        kernel,
        out_shape=jax.ShapeDtypeStruct((Dout, B, N), jnp.float32),
        grid=(G,),
        in_specs=[
            pl.BlockSpec(memory_space=pltpu.MemorySpace.SMEM),        # scalar table
            pl.BlockSpec((Bh, Din, N), lambda g: (g, 0, 0)),          # x
            pl.BlockSpec((Bh, E, N), lambda g: (g, 0, 0)),            # ne0
            pl.BlockSpec((Bh, N), lambda g: (g, 0)),                  # speed
            pl.BlockSpec((Bh, N), lambda g: (g, 0)),                  # occupy
            # grid-invariant (single-buffering via pl.Buffered(1) would shave a
            # duplicate VMEM buffer; kept default for robustness):
            pl.BlockSpec((2 * FD, Din, N), lambda g: (0, 0, 0)),      # wslab
            pl.BlockSpec((Dout, N), lambda g: (0, 0)),                # bias
        ],
        out_specs=pl.BlockSpec((Dout, Bh, N), lambda g: (0, g, 0)),
        compiler_params=pltpu.CompilerParams(
            dimension_semantics=("parallel",),
            vmem_limit_bytes=_vmem_limit_bytes()),
    )(pslab, x_t, ne0_t, sp_t, oc_t, wslab, bias_t)

    return jnp.transpose(out_t, (1, 2, 0))                            # (B, N, Dout)


def _init_params(key, dim_in, dim_out, F_steps, embed_dim):
    hyper, mid = 16, 2
    names_shapes = [
        ('fc_w1', (dim_in, hyper)), ('fc_b1', (1, hyper)),
        ('fc_w2', (hyper, mid)), ('fc_b2', (1, mid)),
        ('fc_w3', (mid, embed_dim)), ('fc_b3', (1, embed_dim)),
        ('fc1_w1', (1, hyper)), ('fc1_b1', (1, hyper)),
        ('fc1_w2', (hyper, mid)), ('fc1_b2', (1, mid)),
        ('fc1_w3', (mid, embed_dim)), ('fc1_b3', (1, embed_dim)),
        ('ga_w', (1, dim_in)), ('ga_b', (1, 1)),
        ('weights1', (dim_in, dim_out)),
        ('weights_pool', (embed_dim, F_steps, dim_in, dim_out)),
        ('backward_weights_pool', (embed_dim, F_steps, dim_in, dim_out)),
        ('bias_pool', (embed_dim, dim_out)),
    ]
    keys = jax.random.split(key, len(names_shapes))
    params = {n: 0.3 * jax.random.normal(k, s, jnp.float32)
              for (n, s), k in zip(names_shapes, keys)}
    params['alpha'] = jnp.full((1, 1), 0.6, jnp.float32)
    params['beta'] = jnp.full((1, 1), 0.4, jnp.float32)
    # TODO(synk): self.back, self.weights, self.backward_weights, self.bias and
    # supports1 (eye) are defined in __init__ but never used in forward();
    # intentionally omitted.
    return params


def dcnn_reference(params, x, node_embeddings, speed, occupy):
    """Pure-JAX replica of the PyTorch forward, used only for validation."""
    ne0, ne1 = node_embeddings
    F_steps = params['weights_pool'].shape[1]
    sig = lambda v: 1.0 / (1.0 + jnp.exp(-v))
    lrelu = lambda v: jnp.where(v > 0, v, 0.01 * v)

    h = sig(x @ params['fc_w1'] + params['fc_b1'])
    h = sig(h @ params['fc_w2'] + params['fc_b2'])
    filt = h @ params['fc_w3'] + params['fc_b3']

    def fc1(v):
        h1 = sig(v @ params['fc1_w1'] + params['fc1_b1'])
        h1 = sig(h1 @ params['fc1_w2'] + params['fc1_b2'])
        return h1 @ params['fc1_w3'] + params['fc1_b3']

    nodevec = jnp.tanh(ne0 * filt)
    nodevec = jnp.tanh(nodevec * fc1(speed))
    nodevec = jnp.tanh(nodevec * fc1(occupy))
    s2 = jax.nn.relu(jnp.einsum('bne,bme->bnm', nodevec, nodevec))

    xg = [x]
    for _ in range(1, F_steps):
        xg.append(lrelu(jnp.einsum('bnm,bmi->bni', s2, xg[-1])))
    xgb = [xg[-1]]
    for _ in range(1, F_steps):
        xgb.append(lrelu(jnp.einsum('bmn,bmi->bni', s2, xgb[-1])))

    def gfeat(xlist):
        nf = sum(xlist) / float(F_steps)
        scores = nf @ params['ga_w'].T + params['ga_b']
        aw = jax.nn.softmax(scores, axis=1)
        gv = jnp.sum(nf * aw, axis=1, keepdims=True)
        return gv @ params['weights1']

    g1, g2 = gfeat(xg), gfeat(xgb)
    wf = jnp.einsum('nd,dfio->nfio', ne1, params['weights_pool'])
    wb = jnp.einsum('nd,dfio->nfio', ne1, params['backward_weights_pool'])
    bias_n = ne1 @ params['bias_pool']
    xg1 = jnp.stack(xg, axis=2)
    xg2 = jnp.stack(xgb, axis=2)
    d1 = jnp.einsum('bnfi,nfio->bno', xg1, wf)
    d2 = jnp.einsum('bnfi,nfio->bno', xg2, wb)
    return params['alpha'] * d1 + params['beta'] * d2 + bias_n + g1 + g2


if __name__ == "__main__":
    B, N, Din, Dout, E, F_steps = 2, 16, 4, 4, 8, 3
    key = jax.random.PRNGKey(0)
    k_x, k_ne0, k_ne1, k_sp, k_oc, k_p = jax.random.split(key, 6)
    x = jax.random.normal(k_x, (B, N, Din), jnp.float32)
    ne0 = jax.random.normal(k_ne0, (B, N, E), jnp.float32)
    ne1 = jax.random.normal(k_ne1, (N, E), jnp.float32)
    speed = jax.random.uniform(k_sp, (B, N, 1), jnp.float32)
    occupy = jax.random.uniform(k_oc, (B, N, 1), jnp.float32)
    params = _init_params(k_p, Din, Dout, F_steps, E)

    fwd = jax.jit(dcnn_forward)
    out = jax.block_until_ready(fwd(params, x, (ne0, ne1), speed, occupy))
    ref = dcnn_reference(params, x, (ne0, ne1), speed, occupy)

    assert out.shape == (B, N, Dout)
    assert jnp.allclose(out, ref, atol=2e-3, rtol=2e-3)
    print("KERNEL_OK")
</pallas_src>

<mosaic_0001>
module attributes {stable_mosaic.version = 11 : i64} {
  func.func @kernel(%arg0: i32, %arg1: memref<249xf32, #tpu.memory_space<smem>>, %arg2: memref<2x4x16xf32, #tpu.memory_space<vmem>>, %arg3: memref<2x8x16xf32, #tpu.memory_space<vmem>>, %arg4: memref<2x16xf32, #tpu.memory_space<vmem>>, %arg5: memref<2x16xf32, #tpu.memory_space<vmem>>, %arg6: memref<24x4x16xf32, #tpu.memory_space<vmem>>, %arg7: memref<4x16xf32, #tpu.memory_space<vmem>>, %arg8: memref<4x2x16xf32, #tpu.memory_space<vmem>>) attributes {dimension_semantics = [#tpu.dimension_semantics<parallel>], iteration_bounds = array<i64: 1>, scalar_prefetch = 0 : i64, scratch_operands = 0 : i64, tpu.core_type = #tpu.core_type<tc>, window_params = [{transform_indices = @transform_0, window_bounds = array<i64: 249>}, {transform_indices = @transform_1, window_bounds = array<i64: 2, 4, 16>}, {transform_indices = @transform_2, window_bounds = array<i64: 2, 8, 16>}, {transform_indices = @transform_3, window_bounds = array<i64: 2, 16>}, {transform_indices = @transform_4, window_bounds = array<i64: 2, 16>}, {pipeline_mode = #tpu.pipeline_mode<synchronous>, transform_indices = @transform_5, window_bounds = array<i64: 24, 4, 16>}, {pipeline_mode = #tpu.pipeline_mode<synchronous>, transform_indices = @transform_6, window_bounds = array<i64: 4, 16>}, {transform_indices = @transform_7, window_bounds = array<i64: 4, 2, 16>}]} {
    %c0 = arith.constant 0 : index
    %0 = memref.load %arg1[%c0] : memref<249xf32, #tpu.memory_space<smem>>
    %c1 = arith.constant 1 : index
    %1 = memref.load %arg1[%c1] : memref<249xf32, #tpu.memory_space<smem>>
    %c2 = arith.constant 2 : index
    %2 = memref.load %arg1[%c2] : memref<249xf32, #tpu.memory_space<smem>>
    %c3 = arith.constant 3 : index
    %3 = memref.load %arg1[%c3] : memref<249xf32, #tpu.memory_space<smem>>
    %c4 = arith.constant 4 : index
    %4 = memref.load %arg1[%c4] : memref<249xf32, #tpu.memory_space<smem>>
    %c5 = arith.constant 5 : index
    %5 = memref.load %arg1[%c5] : memref<249xf32, #tpu.memory_space<smem>>
    %c6 = arith.constant 6 : index
    %6 = memref.load %arg1[%c6] : memref<249xf32, #tpu.memory_space<smem>>
    %c7 = arith.constant 7 : index
    %7 = memref.load %arg1[%c7] : memref<249xf32, #tpu.memory_space<smem>>
    %c8 = arith.constant 8 : index
    %8 = memref.load %arg1[%c8] : memref<249xf32, #tpu.memory_space<smem>>
    %c9 = arith.constant 9 : index
    %9 = memref.load %arg1[%c9] : memref<249xf32, #tpu.memory_space<smem>>
    %c10 = arith.constant 10 : index
    %10 = memref.load %arg1[%c10] : memref<249xf32, #tpu.memory_space<smem>>
    %c11 = arith.constant 11 : index
    %11 = memref.load %arg1[%c11] : memref<249xf32, #tpu.memory_space<smem>>
    %c12 = arith.constant 12 : index
    %12 = memref.load %arg1[%c12] : memref<249xf32, #tpu.memory_space<smem>>
    %c13 = arith.constant 13 : index
    %13 = memref.load %arg1[%c13] : memref<249xf32, #tpu.memory_space<smem>>
    %c14 = arith.constant 14 : index
    %14 = memref.load %arg1[%c14] : memref<249xf32, #tpu.memory_space<smem>>
    %c15 = arith.constant 15 : index
    %15 = memref.load %arg1[%c15] : memref<249xf32, #tpu.memory_space<smem>>
    %c16 = arith.constant 16 : index
    %16 = memref.load %arg1[%c16] : memref<249xf32, #tpu.memory_space<smem>>
    %c17 = arith.constant 17 : index
    %17 = memref.load %arg1[%c17] : memref<249xf32, #tpu.memory_space<smem>>
    %c18 = arith.constant 18 : index
    %18 = memref.load %arg1[%c18] : memref<249xf32, #tpu.memory_space<smem>>
    %c19 = arith.constant 19 : index
    %19 = memref.load %arg1[%c19] : memref<249xf32, #tpu.memory_space<smem>>
    %c20 = arith.constant 20 : index
    %20 = memref.load %arg1[%c20] : memref<249xf32, #tpu.memory_space<smem>>
    %c21 = arith.constant 21 : index
    %21 = memref.load %arg1[%c21] : memref<249xf32, #tpu.memory_space<smem>>
    %c22 = arith.constant 22 : index
    %22 = memref.load %arg1[%c22] : memref<249xf32, #tpu.memory_space<smem>>
    %c23 = arith.constant 23 : index
    %23 = memref.load %arg1[%c23] : memref<249xf32, #tpu.memory_space<smem>>
    %c24 = arith.constant 24 : index
    %24 = memref.load %arg1[%c24] : memref<249xf32, #tpu.memory_space<smem>>
    %c25 = arith.constant 25 : index
    %25 = memref.load %arg1[%c25] : memref<249xf32, #tpu.memory_space<smem>>
    %c26 = arith.constant 26 : index
    %26 = memref.load %arg1[%c26] : memref<249xf32, #tpu.memory_space<smem>>
    %c27 = arith.constant 27 : index
    %27 = memref.load %arg1[%c27] : memref<249xf32, #tpu.memory_space<smem>>
    %c28 = arith.constant 28 : index
    %28 = memref.load %arg1[%c28] : memref<249xf32, #tpu.memory_space<smem>>
    %c29 = arith.constant 29 : index
    %29 = memref.load %arg1[%c29] : memref<249xf32, #tpu.memory_space<smem>>
    %c30 = arith.constant 30 : index
    %30 = memref.load %arg1[%c30] : memref<249xf32, #tpu.memory_space<smem>>
    %c31 = arith.constant 31 : index
    %31 = memref.load %arg1[%c31] : memref<249xf32, #tpu.memory_space<smem>>
    %c32 = arith.constant 32 : index
    %32 = memref.load %arg1[%c32] : memref<249xf32, #tpu.memory_space<smem>>
    %c33 = arith.constant 33 : index
    %33 = memref.load %arg1[%c33] : memref<249xf32, #tpu.memory_space<smem>>
    %c34 = arith.constant 34 : index
    %34 = memref.load %arg1[%c34] : memref<249xf32, #tpu.memory_space<smem>>
    %c35 = arith.constant 35 : index
    %35 = memref.load %arg1[%c35] : memref<249xf32, #tpu.memory_space<smem>>
    %c36 = arith.constant 36 : index
    %36 = memref.load %arg1[%c36] : memref<249xf32, #tpu.memory_space<smem>>
    %c37 = arith.constant 37 : index
    %37 = memref.load %arg1[%c37] : memref<249xf32, #tpu.memory_space<smem>>
    %c38 = arith.constant 38 : index
    %38 = memref.load %arg1[%c38] : memref<249xf32, #tpu.memory_space<smem>>
    %c39 = arith.constant 39 : index
    %39 = memref.load %arg1[%c39] : memref<249xf32, #tpu.memory_space<smem>>
    %c40 = arith.constant 40 : index
    %40 = memref.load %arg1[%c40] : memref<249xf32, #tpu.memory_space<smem>>
    %c41 = arith.constant 41 : index
    %41 = memref.load %arg1[%c41] : memref<249xf32, #tpu.memory_space<smem>>
    %c42 = arith.constant 42 : index
    %42 = memref.load %arg1[%c42] : memref<249xf32, #tpu.memory_space<smem>>
    %c43 = arith.constant 43 : index
    %43 = memref.load %arg1[%c43] : memref<249xf32, #tpu.memory_space<smem>>
    %c44 = arith.constant 44 : index
    %44 = memref.load %arg1[%c44] : memref<249xf32, #tpu.memory_space<smem>>
    %c45 = arith.constant 45 : index
    %45 = memref.load %arg1[%c45] : memref<249xf32, #tpu.memory_space<smem>>
    %c46 = arith.constant 46 : index
    %46 = memref.load %arg1[%c46] : memref<249xf32, #tpu.memory_space<smem>>
    %c47 = arith.constant 47 : index
    %47 = memref.load %arg1[%c47] : memref<249xf32, #tpu.memory_space<smem>>
    %c48 = arith.constant 48 : index
    %48 = memref.load %arg1[%c48] : memref<249xf32, #tpu.memory_space<smem>>
    %c49 = arith.constant 49 : index
    %49 = memref.load %arg1[%c49] : memref<249xf32, #tpu.memory_space<smem>>
    %c50 = arith.constant 50 : index
    %50 = memref.load %arg1[%c50] : memref<249xf32, #tpu.memory_space<smem>>
    %c51 = arith.constant 51 : index
    %51 = memref.load %arg1[%c51] : memref<249xf32, #tpu.memory_space<smem>>
    %c52 = arith.constant 52 : index
    %52 = memref.load %arg1[%c52] : memref<249xf32, #tpu.memory_space<smem>>
    %c53 = arith.constant 53 : index
    %53 = memref.load %arg1[%c53] : memref<249xf32, #tpu.memory_space<smem>>
    %c54 = arith.constant 54 : index
    %54 = memref.load %arg1[%c54] : memref<249xf32, #tpu.memory_space<smem>>
    %c55 = arith.constant 55 : index
    %55 = memref.load %arg1[%c55] : memref<249xf32, #tpu.memory_space<smem>>
    %c56 = arith.constant 56 : index
    %56 = memref.load %arg1[%c56] : memref<249xf32, #tpu.memory_space<smem>>
    %c57 = arith.constant 57 : index
    %57 = memref.load %arg1[%c57] : memref<249xf32, #tpu.memory_space<smem>>
    %c58 = arith.constant 58 : index
    %58 = memref.load %arg1[%c58] : memref<249xf32, #tpu.memory_space<smem>>
    %c59 = arith.constant 59 : index
    %59 = memref.load %arg1[%c59] : memref<249xf32, #tpu.memory_space<smem>>
    %c60 = arith.constant 60 : index
    %60 = memref.load %arg1[%c60] : memref<249xf32, #tpu.memory_space<smem>>
    %c61 = arith.constant 61 : index
    %61 = memref.load %arg1[%c61] : memref<249xf32, #tpu.memory_space<smem>>
    %c62 = arith.constant 62 : index
    %62 = memref.load %arg1[%c62] : memref<249xf32, #tpu.memory_space<smem>>
    %c63 = arith.constant 63 : index
    %63 = memref.load %arg1[%c63] : memref<249xf32, #tpu.memory_space<smem>>
    %c64 = arith.constant 64 : index
    %64 = memref.load %arg1[%c64] : memref<249xf32, #tpu.memory_space<smem>>
    %c65 = arith.constant 65 : index
    %65 = memref.load %arg1[%c65] : memref<249xf32, #tpu.memory_space<smem>>
    %c66 = arith.constant 66 : index
    %66 = memref.load %arg1[%c66] : memref<249xf32, #tpu.memory_space<smem>>
    %c67 = arith.constant 67 : index
    %67 = memref.load %arg1[%c67] : memref<249xf32, #tpu.memory_space<smem>>
    %c68 = arith.constant 68 : index
    %68 = memref.load %arg1[%c68] : memref<249xf32, #tpu.memory_space<smem>>
    %c69 = arith.constant 69 : index
    %69 = memref.load %arg1[%c69] : memref<249xf32, #tpu.memory_space<smem>>
    %c70 = arith.constant 70 : index
    %70 = memref.load %arg1[%c70] : memref<249xf32, #tpu.memory_space<smem>>
    %c71 = arith.constant 71 : index
    %71 = memref.load %arg1[%c71] : memref<249xf32, #tpu.memory_space<smem>>
    %c72 = arith.constant 72 : index
    %72 = memref.load %arg1[%c72] : memref<249xf32, #tpu.memory_space<smem>>
    %c73 = arith.constant 73 : index
    %73 = memref.load %arg1[%c73] : memref<249xf32, #tpu.memory_space<smem>>
    %c74 = arith.constant 74 : index
    %74 = memref.load %arg1[%c74] : memref<249xf32, #tpu.memory_space<smem>>
    %c75 = arith.constant 75 : index
    %75 = memref.load %arg1[%c75] : memref<249xf32, #tpu.memory_space<smem>>
    %c76 = arith.constant 76 : index
    %76 = memref.load %arg1[%c76] : memref<249xf32, #tpu.memory_space<smem>>
    %c77 = arith.constant 77 : index
    %77 = memref.load %arg1[%c77] : memref<249xf32, #tpu.memory_space<smem>>
    %c78 = arith.constant 78 : index
    %78 = memref.load %arg1[%c78] : memref<249xf32, #tpu.memory_space<smem>>
    %c79 = arith.constant 79 : index
    %79 = memref.load %arg1[%c79] : memref<249xf32, #tpu.memory_space<smem>>
    %c80 = arith.constant 80 : index
    %80 = memref.load %arg1[%c80] : memref<249xf32, #tpu.memory_space<smem>>
    %c81 = arith.constant 81 : index
    %81 = memref.load %arg1[%c81] : memref<249xf32, #tpu.memory_space<smem>>
    %c82 = arith.constant 82 : index
    %82 = memref.load %arg1[%c82] : memref<249xf32, #tpu.memory_space<smem>>
    %c83 = arith.constant 83 : index
    %83 = memref.load %arg1[%c83] : memref<249xf32, #tpu.memory_space<smem>>
    %c84 = arith.constant 84 : index
    %84 = memref.load %arg1[%c84] : memref<249xf32, #tpu.memory_space<smem>>
    %c85 = arith.constant 85 : index
    %85 = memref.load %arg1[%c85] : memref<249xf32, #tpu.memory_space<smem>>
    %c86 = arith.constant 86 : index
    %86 = memref.load %arg1[%c86] : memref<249xf32, #tpu.memory_space<smem>>
    %c87 = arith.constant 87 : index
    %87 = memref.load %arg1[%c87] : memref<249xf32, #tpu.memory_space<smem>>
    %c88 = arith.constant 88 : index
    %88 = memref.load %arg1[%c88] : memref<249xf32, #tpu.memory_space<smem>>
    %c89 = arith.constant 89 : index
    %89 = memref.load %arg1[%c89] : memref<249xf32, #tpu.memory_space<smem>>
    %c90 = arith.constant 90 : index
    %90 = memref.load %arg1[%c90] : memref<249xf32, #tpu.memory_space<smem>>
    %c91 = arith.constant 91 : index
    %91 = memref.load %arg1[%c91] : memref<249xf32, #tpu.memory_space<smem>>
    %c92 = arith.constant 92 : index
    %92 = memref.load %arg1[%c92] : memref<249xf32, #tpu.memory_space<smem>>
    %c93 = arith.constant 93 : index
    %93 = memref.load %arg1[%c93] : memref<249xf32, #tpu.memory_space<smem>>
    %c94 = arith.constant 94 : index
    %94 = memref.load %arg1[%c94] : memref<249xf32, #tpu.memory_space<smem>>
    %c95 = arith.constant 95 : index
    %95 = memref.load %arg1[%c95] : memref<249xf32, #tpu.memory_space<smem>>
    %c96 = arith.constant 96 : index
    %96 = memref.load %arg1[%c96] : memref<249xf32, #tpu.memory_space<smem>>
    %c97 = arith.constant 97 : index
    %97 = memref.load %arg1[%c97] : memref<249xf32, #tpu.memory_space<smem>>
    %c98 = arith.constant 98 : index
    %98 = memref.load %arg1[%c98] : memref<249xf32, #tpu.memory_space<smem>>
    %c99 = arith.constant 99 : index
    %99 = memref.load %arg1[%c99] : memref<249xf32, #tpu.memory_space<smem>>
    %c100 = arith.constant 100 : index
    %100 = memref.load %arg1[%c100] : memref<249xf32, #tpu.memory_space<smem>>
    %c101 = arith.constant 101 : index
    %101 = memref.load %arg1[%c101] : memref<249xf32, #tpu.memory_space<smem>>
    %c102 = arith.constant 102 : index
    %102 = memref.load %arg1[%c102] : memref<249xf32, #tpu.memory_space<smem>>
    %c103 = arith.constant 103 : index
    %103 = memref.load %arg1[%c103] : memref<249xf32, #tpu.memory_space<smem>>
    %c104 = arith.constant 104 : index
    %104 = memref.load %arg1[%c104] : memref<249xf32, #tpu.memory_space<smem>>
    %c105 = arith.constant 105 : index
    %105 = memref.load %arg1[%c105] : memref<249xf32, #tpu.memory_space<smem>>
    %c106 = arith.constant 106 : index
    %106 = memref.load %arg1[%c106] : memref<249xf32, #tpu.memory_space<smem>>
    %c107 = arith.constant 107 : index
    %107 = memref.load %arg1[%c107] : memref<249xf32, #tpu.memory_space<smem>>
    %c108 = arith.constant 108 : index
    %108 = memref.load %arg1[%c108] : memref<249xf32, #tpu.memory_space<smem>>
    %c109 = arith.constant 109 : index
    %109 = memref.load %arg1[%c109] : memref<249xf32, #tpu.memory_space<smem>>
    %c110 = arith.constant 110 : index
    %110 = memref.load %arg1[%c110] : memref<249xf32, #tpu.memory_space<smem>>
    %c111 = arith.constant 111 : index
    %111 = memref.load %arg1[%c111] : memref<249xf32, #tpu.memory_space<smem>>
    %c112 = arith.constant 112 : index
    %112 = memref.load %arg1[%c112] : memref<249xf32, #tpu.memory_space<smem>>
    %c113 = arith.constant 113 : index
    %113 = memref.load %arg1[%c113] : memref<249xf32, #tpu.memory_space<smem>>
    %c114 = arith.constant 114 : index
    %114 = memref.load %arg1[%c114] : memref<249xf32, #tpu.memory_space<smem>>
    %c115 = arith.constant 115 : index
    %115 = memref.load %arg1[%c115] : memref<249xf32, #tpu.memory_space<smem>>
    %c116 = arith.constant 116 : index
    %116 = memref.load %arg1[%c116] : memref<249xf32, #tpu.memory_space<smem>>
    %c117 = arith.constant 117 : index
    %117 = memref.load %arg1[%c117] : memref<249xf32, #tpu.memory_space<smem>>
    %c118 = arith.constant 118 : index
    %118 = memref.load %arg1[%c118] : memref<249xf32, #tpu.memory_space<smem>>
    %c119 = arith.constant 119 : index
    %119 = memref.load %arg1[%c119] : memref<249xf32, #tpu.memory_space<smem>>
    %c120 = arith.constant 120 : index
    %120 = memref.load %arg1[%c120] : memref<249xf32, #tpu.memory_space<smem>>
    %c121 = arith.constant 121 : index
    %121 = memref.load %arg1[%c121] : memref<249xf32, #tpu.memory_space<smem>>
    %c122 = arith.constant 122 : index
    %122 = memref.load %arg1[%c122] : memref<249xf32, #tpu.memory_space<smem>>
    %c123 = arith.constant 123 : index
    %123 = memref.load %arg1[%c123] : memref<249xf32, #tpu.memory_space<smem>>
    %c124 = arith.constant 124 : index
    %124 = memref.load %arg1[%c124] : memref<249xf32, #tpu.memory_space<smem>>
    %c125 = arith.constant 125 : index
    %125 = memref.load %arg1[%c125] : memref<249xf32, #tpu.memory_space<smem>>
    %c126 = arith.constant 126 : index
    %126 = memref.load %arg1[%c126] : memref<249xf32, #tpu.memory_space<smem>>
    %c127 = arith.constant 127 : index
    %127 = memref.load %arg1[%c127] : memref<249xf32, #tpu.memory_space<smem>>
    %c128 = arith.constant 128 : index
    %128 = memref.load %arg1[%c128] : memref<249xf32, #tpu.memory_space<smem>>
    %c129 = arith.constant 129 : index
    %129 = memref.load %arg1[%c129] : memref<249xf32, #tpu.memory_space<smem>>
    %c130 = arith.constant 130 : index
    %130 = memref.load %arg1[%c130] : memref<249xf32, #tpu.memory_space<smem>>
    %c131 = arith.constant 131 : index
    %131 = memref.load %arg1[%c131] : memref<249xf32, #tpu.memory_space<smem>>
    %c132 = arith.constant 132 : index
    %132 = memref.load %arg1[%c132] : memref<249xf32, #tpu.memory_space<smem>>
    %c133 = arith.constant 133 : index
    %133 = memref.load %arg1[%c133] : memref<249xf32, #tpu.memory_space<smem>>
    %c134 = arith.constant 134 : index
    %134 = memref.load %arg1[%c134] : memref<249xf32, #tpu.memory_space<smem>>
    %c135 = arith.constant 135 : index
    %135 = memref.load %arg1[%c135] : memref<249xf32, #tpu.memory_space<smem>>
    %c136 = arith.constant 136 : index
    %136 = memref.load %arg1[%c136] : memref<249xf32, #tpu.memory_space<smem>>
    %c137 = arith.constant 137 : index
    %137 = memref.load %arg1[%c137] : memref<249xf32, #tpu.memory_space<smem>>
    %c138 = arith.constant 138 : index
    %138 = memref.load %arg1[%c138] : memref<249xf32, #tpu.memory_space<smem>>
    %c139 = arith.constant 139 : index
    %139 = memref.load %arg1[%c139] : memref<249xf32, #tpu.memory_space<smem>>
    %c140 = arith.constant 140 : index
    %140 = memref.load %arg1[%c140] : memref<249xf32, #tpu.memory_space<smem>>
    %c141 = arith.constant 141 : index
    %141 = memref.load %arg1[%c141] : memref<249xf32, #tpu.memory_space<smem>>
    %c142 = arith.constant 142 : index
    %142 = memref.load %arg1[%c142] : memref<249xf32, #tpu.memory_space<smem>>
    %c143 = arith.constant 143 : index
    %143 = memref.load %arg1[%c143] : memref<249xf32, #tpu.memory_space<smem>>
    %c144 = arith.constant 144 : index
    %144 = memref.load %arg1[%c144] : memref<249xf32, #tpu.memory_space<smem>>
    %c145 = arith.constant 145 : index
    %145 = memref.load %arg1[%c145] : memref<249xf32, #tpu.memory_space<smem>>
    %c146 = arith.constant 146 : index
    %146 = memref.load %arg1[%c146] : memref<249xf32, #tpu.memory_space<smem>>
    %c147 = arith.constant 147 : index
    %147 = memref.load %arg1[%c147] : memref<249xf32, #tpu.memory_space<smem>>
    %c148 = arith.constant 148 : index
    %148 = memref.load %arg1[%c148] : memref<249xf32, #tpu.memory_space<smem>>
    %c149 = arith.constant 149 : index
    %149 = memref.load %arg1[%c149] : memref<249xf32, #tpu.memory_space<smem>>
    %c150 = arith.constant 150 : index
    %150 = memref.load %arg1[%c150] : memref<249xf32, #tpu.memory_space<smem>>
    %c151 = arith.constant 151 : index
    %151 = memref.load %arg1[%c151] : memref<249xf32, #tpu.memory_space<smem>>
    %c152 = arith.constant 152 : index
    %152 = memref.load %arg1[%c152] : memref<249xf32, #tpu.memory_space<smem>>
    %c153 = arith.constant 153 : index
    %153 = memref.load %arg1[%c153] : memref<249xf32, #tpu.memory_space<smem>>
    %c154 = arith.constant 154 : index
    %154 = memref.load %arg1[%c154] : memref<249xf32, #tpu.memory_space<smem>>
    %c155 = arith.constant 155 : index
    %155 = memref.load %arg1[%c155] : memref<249xf32, #tpu.memory_space<smem>>
    %c156 = arith.constant 156 : index
    %156 = memref.load %arg1[%c156] : memref<249xf32, #tpu.memory_space<smem>>
    %c157 = arith.constant 157 : index
    %157 = memref.load %arg1[%c157] : memref<249xf32, #tpu.memory_space<smem>>
    %c158 = arith.constant 158 : index
    %158 = memref.load %arg1[%c158] : memref<249xf32, #tpu.memory_space<smem>>
    %c159 = arith.constant 159 : index
    %159 = memref.load %arg1[%c159] : memref<249xf32, #tpu.memory_space<smem>>
    %c160 = arith.constant 160 : index
    %160 = memref.load %arg1[%c160] : memref<249xf32, #tpu.memory_space<smem>>
    %c161 = arith.constant 161 : index
    %161 = memref.load %arg1[%c161] : memref<249xf32, #tpu.memory_space<smem>>
    %c162 = arith.constant 162 : index
    %162 = memref.load %arg1[%c162] : memref<249xf32, #tpu.memory_space<smem>>
    %c163 = arith.constant 163 : index
    %163 = memref.load %arg1[%c163] : memref<249xf32, #tpu.memory_space<smem>>
    %c164 = arith.constant 164 : index
    %164 = memref.load %arg1[%c164] : memref<249xf32, #tpu.memory_space<smem>>
    %c165 = arith.constant 165 : index
    %165 = memref.load %arg1[%c165] : memref<249xf32, #tpu.memory_space<smem>>
    %c166 = arith.constant 166 : index
    %166 = memref.load %arg1[%c166] : memref<249xf32, #tpu.memory_space<smem>>
    %c167 = arith.constant 167 : index
    %167 = memref.load %arg1[%c167] : memref<249xf32, #tpu.memory_space<smem>>
    %c168 = arith.constant 168 : index
    %168 = memref.load %arg1[%c168] : memref<249xf32, #tpu.memory_space<smem>>
    %c169 = arith.constant 169 : index
    %169 = memref.load %arg1[%c169] : memref<249xf32, #tpu.memory_space<smem>>
    %c170 = arith.constant 170 : index
    %170 = memref.load %arg1[%c170] : memref<249xf32, #tpu.memory_space<smem>>
    %c171 = arith.constant 171 : index
    %171 = memref.load %arg1[%c171] : memref<249xf32, #tpu.memory_space<smem>>
    %c172 = arith.constant 172 : index
    %172 = memref.load %arg1[%c172] : memref<249xf32, #tpu.memory_space<smem>>
    %c173 = arith.constant 173 : index
    %173 = memref.load %arg1[%c173] : memref<249xf32, #tpu.memory_space<smem>>
    %c174 = arith.constant 174 : index
    %174 = memref.load %arg1[%c174] : memref<249xf32, #tpu.memory_space<smem>>
    %c175 = arith.constant 175 : index
    %175 = memref.load %arg1[%c175] : memref<249xf32, #tpu.memory_space<smem>>
    %c176 = arith.constant 176 : index
    %176 = memref.load %arg1[%c176] : memref<249xf32, #tpu.memory_space<smem>>
    %c177 = arith.constant 177 : index
    %177 = memref.load %arg1[%c177] : memref<249xf32, #tpu.memory_space<smem>>
    %c178 = arith.constant 178 : index
    %178 = memref.load %arg1[%c178] : memref<249xf32, #tpu.memory_space<smem>>
    %c179 = arith.constant 179 : index
    %179 = memref.load %arg1[%c179] : memref<249xf32, #tpu.memory_space<smem>>
    %c180 = arith.constant 180 : index
    %180 = memref.load %arg1[%c180] : memref<249xf32, #tpu.memory_space<smem>>
    %c181 = arith.constant 181 : index
    %181 = memref.load %arg1[%c181] : memref<249xf32, #tpu.memory_space<smem>>
    %c182 = arith.constant 182 : index
    %182 = memref.load %arg1[%c182] : memref<249xf32, #tpu.memory_space<smem>>
    %c183 = arith.constant 183 : index
    %183 = memref.load %arg1[%c183] : memref<249xf32, #tpu.memory_space<smem>>
    %c184 = arith.constant 184 : index
    %184 = memref.load %arg1[%c184] : memref<249xf32, #tpu.memory_space<smem>>
    %c185 = arith.constant 185 : index
    %185 = memref.load %arg1[%c185] : memref<249xf32, #tpu.memory_space<smem>>
    %c186 = arith.constant 186 : index
    %186 = memref.load %arg1[%c186] : memref<249xf32, #tpu.memory_space<smem>>
    %c187 = arith.constant 187 : index
    %187 = memref.load %arg1[%c187] : memref<249xf32, #tpu.memory_space<smem>>
    %c188 = arith.constant 188 : index
    %188 = memref.load %arg1[%c188] : memref<249xf32, #tpu.memory_space<smem>>
    %c189 = arith.constant 189 : index
    %189 = memref.load %arg1[%c189] : memref<249xf32, #tpu.memory_space<smem>>
    %c190 = arith.constant 190 : index
    %190 = memref.load %arg1[%c190] : memref<249xf32, #tpu.memory_space<smem>>
    %c191 = arith.constant 191 : index
    %191 = memref.load %arg1[%c191] : memref<249xf32, #tpu.memory_space<smem>>
    %c192 = arith.constant 192 : index
    %192 = memref.load %arg1[%c192] : memref<249xf32, #tpu.memory_space<smem>>
    %c193 = arith.constant 193 : index
    %193 = memref.load %arg1[%c193] : memref<249xf32, #tpu.memory_space<smem>>
    %c194 = arith.constant 194 : index
    %194 = memref.load %arg1[%c194] : memref<249xf32, #tpu.memory_space<smem>>
    %c195 = arith.constant 195 : index
    %195 = memref.load %arg1[%c195] : memref<249xf32, #tpu.memory_space<smem>>
    %c196 = arith.constant 196 : index
    %196 = memref.load %arg1[%c196] : memref<249xf32, #tpu.memory_space<smem>>
    %c197 = arith.constant 197 : index
    %197 = memref.load %arg1[%c197] : memref<249xf32, #tpu.memory_space<smem>>
    %c198 = arith.constant 198 : index
    %198 = memref.load %arg1[%c198] : memref<249xf32, #tpu.memory_space<smem>>
    %c199 = arith.constant 199 : index
    %199 = memref.load %arg1[%c199] : memref<249xf32, #tpu.memory_space<smem>>
    %c200 = arith.constant 200 : index
    %200 = memref.load %arg1[%c200] : memref<249xf32, #tpu.memory_space<smem>>
    %c201 = arith.constant 201 : index
    %201 = memref.load %arg1[%c201] : memref<249xf32, #tpu.memory_space<smem>>
    %c202 = arith.constant 202 : index
    %202 = memref.load %arg1[%c202] : memref<249xf32, #tpu.memory_space<smem>>
    %c203 = arith.constant 203 : index
    %203 = memref.load %arg1[%c203] : memref<249xf32, #tpu.memory_space<smem>>
    %c204 = arith.constant 204 : index
    %204 = memref.load %arg1[%c204] : memref<249xf32, #tpu.memory_space<smem>>
    %c205 = arith.constant 205 : index
    %205 = memref.load %arg1[%c205] : memref<249xf32, #tpu.memory_space<smem>>
    %c206 = arith.constant 206 : index
    %206 = memref.load %arg1[%c206] : memref<249xf32, #tpu.memory_space<smem>>
    %c207 = arith.constant 207 : index
    %207 = memref.load %arg1[%c207] : memref<249xf32, #tpu.memory_space<smem>>
    %c208 = arith.constant 208 : index
    %208 = memref.load %arg1[%c208] : memref<249xf32, #tpu.memory_space<smem>>
    %c209 = arith.constant 209 : index
    %209 = memref.load %arg1[%c209] : memref<249xf32, #tpu.memory_space<smem>>
    %c210 = arith.constant 210 : index
    %210 = memref.load %arg1[%c210] : memref<249xf32, #tpu.memory_space<smem>>
    %c211 = arith.constant 211 : index
    %211 = memref.load %arg1[%c211] : memref<249xf32, #tpu.memory_space<smem>>
    %c212 = arith.constant 212 : index
    %212 = memref.load %arg1[%c212] : memref<249xf32, #tpu.memory_space<smem>>
    %c213 = arith.constant 213 : index
    %213 = memref.load %arg1[%c213] : memref<249xf32, #tpu.memory_space<smem>>
    %c214 = arith.constant 214 : index
    %214 = memref.load %arg1[%c214] : memref<249xf32, #tpu.memory_space<smem>>
    %c215 = arith.constant 215 : index
    %215 = memref.load %arg1[%c215] : memref<249xf32, #tpu.memory_space<smem>>
    %c216 = arith.constant 216 : index
    %216 = memref.load %arg1[%c216] : memref<249xf32, #tpu.memory_space<smem>>
    %c217 = arith.constant 217 : index
    %217 = memref.load %arg1[%c217] : memref<249xf32, #tpu.memory_space<smem>>
    %c218 = arith.constant 218 : index
    %218 = memref.load %arg1[%c218] : memref<249xf32, #tpu.memory_space<smem>>
    %c219 = arith.constant 219 : index
    %219 = memref.load %arg1[%c219] : memref<249xf32, #tpu.memory_space<smem>>
    %c220 = arith.constant 220 : index
    %220 = memref.load %arg1[%c220] : memref<249xf32, #tpu.memory_space<smem>>
    %c221 = arith.constant 221 : index
    %221 = memref.load %arg1[%c221] : memref<249xf32, #tpu.memory_space<smem>>
    %c222 = arith.constant 222 : index
    %222 = memref.load %arg1[%c222] : memref<249xf32, #tpu.memory_space<smem>>
    %c223 = arith.constant 223 : index
    %223 = memref.load %arg1[%c223] : memref<249xf32, #tpu.memory_space<smem>>
    %c224 = arith.constant 224 : index
    %224 = memref.load %arg1[%c224] : memref<249xf32, #tpu.memory_space<smem>>
    %c225 = arith.constant 225 : index
    %225 = memref.load %arg1[%c225] : memref<249xf32, #tpu.memory_space<smem>>
    %c226 = arith.constant 226 : index
    %226 = memref.load %arg1[%c226] : memref<249xf32, #tpu.memory_space<smem>>
    %c227 = arith.constant 227 : index
    %227 = memref.load %arg1[%c227] : memref<249xf32, #tpu.memory_space<smem>>
    %c228 = arith.constant 228 : index
    %228 = memref.load %arg1[%c228] : memref<249xf32, #tpu.memory_space<smem>>
    %c229 = arith.constant 229 : index
    %229 = memref.load %arg1[%c229] : memref<249xf32, #tpu.memory_space<smem>>
    %c230 = arith.constant 230 : index
    %230 = memref.load %arg1[%c230] : memref<249xf32, #tpu.memory_space<smem>>
    %c231 = arith.constant 231 : index
    %231 = memref.load %arg1[%c231] : memref<249xf32, #tpu.memory_space<smem>>
    %c232 = arith.constant 232 : index
    %232 = memref.load %arg1[%c232] : memref<249xf32, #tpu.memory_space<smem>>
    %c233 = arith.constant 233 : index
    %233 = memref.load %arg1[%c233] : memref<249xf32, #tpu.memory_space<smem>>
    %c234 = arith.constant 234 : index
    %234 = memref.load %arg1[%c234] : memref<249xf32, #tpu.memory_space<smem>>
    %c235 = arith.constant 235 : index
    %235 = memref.load %arg1[%c235] : memref<249xf32, #tpu.memory_space<smem>>
    %c236 = arith.constant 236 : index
    %236 = memref.load %arg1[%c236] : memref<249xf32, #tpu.memory_space<smem>>
    %c237 = arith.constant 237 : index
    %237 = memref.load %arg1[%c237] : memref<249xf32, #tpu.memory_space<smem>>
    %c238 = arith.constant 238 : index
    %238 = memref.load %arg1[%c238] : memref<249xf32, #tpu.memory_space<smem>>
    %c239 = arith.constant 239 : index
    %239 = memref.load %arg1[%c239] : memref<249xf32, #tpu.memory_space<smem>>
    %c240 = arith.constant 240 : index
    %240 = memref.load %arg1[%c240] : memref<249xf32, #tpu.memory_space<smem>>
    %c241 = arith.constant 241 : index
    %241 = memref.load %arg1[%c241] : memref<249xf32, #tpu.memory_space<smem>>
    %c242 = arith.constant 242 : index
    %242 = memref.load %arg1[%c242] : memref<249xf32, #tpu.memory_space<smem>>
    %c243 = arith.constant 243 : index
    %243 = memref.load %arg1[%c243] : memref<249xf32, #tpu.memory_space<smem>>
    %c244 = arith.constant 244 : index
    %244 = memref.load %arg1[%c244] : memref<249xf32, #tpu.memory_space<smem>>
    %c245 = arith.constant 245 : index
    %245 = memref.load %arg1[%c245] : memref<249xf32, #tpu.memory_space<smem>>
    %c246 = arith.constant 246 : index
    %246 = memref.load %arg1[%c246] : memref<249xf32, #tpu.memory_space<smem>>
    %c247 = arith.constant 247 : index
    %247 = memref.load %arg1[%c247] : memref<249xf32, #tpu.memory_space<smem>>
    %c248 = arith.constant 248 : index
    %248 = memref.load %arg1[%c248] : memref<249xf32, #tpu.memory_space<smem>>
    %c0_0 = arith.constant 0 : index
    %c0_1 = arith.constant 0 : index
    %c0_2 = arith.constant 0 : index
    %249 = vector.load %arg2[%c0_0, %c0_1, %c0_2] : memref<2x4x16xf32, #tpu.memory_space<vmem>>, vector<2x1x16xf32>
    %250 = vector.shape_cast %249 : vector<2x1x16xf32> to vector<2x16xf32>
    %c0_3 = arith.constant 0 : index
    %c1_4 = arith.constant 1 : index
    %c0_5 = arith.constant 0 : index
    %251 = vector.load %arg2[%c0_3, %c1_4, %c0_5] : memref<2x4x16xf32, #tpu.memory_space<vmem>>, vector<2x1x16xf32>
    %252 = vector.shape_cast %251 : vector<2x1x16xf32> to vector<2x16xf32>
    %c0_6 = arith.constant 0 : index
    %c2_7 = arith.constant 2 : index
    %c0_8 = arith.constant 0 : index
    %253 = vector.load %arg2[%c0_6, %c2_7, %c0_8] : memref<2x4x16xf32, #tpu.memory_space<vmem>>, vector<2x1x16xf32>
    %254 = vector.shape_cast %253 : vector<2x1x16xf32> to vector<2x16xf32>
    %c0_9 = arith.constant 0 : index
    %c3_10 = arith.constant 3 : index
    %c0_11 = arith.constant 0 : index
    %255 = vector.load %arg2[%c0_9, %c3_10, %c0_11] : memref<2x4x16xf32, #tpu.memory_space<vmem>>, vector<2x1x16xf32>
    %256 = vector.shape_cast %255 : vector<2x1x16xf32> to vector<2x16xf32>
    %257 = vector.broadcast %0 : f32 to vector<2x16xf32>
    %258 = arith.mulf %257, %250 : vector<2x16xf32>
    %259 = vector.broadcast %64 : f32 to vector<2x16xf32>
    %260 = arith.addf %259, %258 : vector<2x16xf32>
    %261 = vector.broadcast %16 : f32 to vector<2x16xf32>
    %262 = arith.mulf %261, %252 : vector<2x16xf32>
    %263 = arith.addf %260, %262 : vector<2x16xf32>
    %264 = vector.broadcast %32 : f32 to vector<2x16xf32>
    %265 = arith.mulf %264, %254 : vector<2x16xf32>
    %266 = arith.addf %263, %265 : vector<2x16xf32>
    %267 = vector.broadcast %48 : f32 to vector<2x16xf32>
    %268 = arith.mulf %267, %256 : vector<2x16xf32>
    %269 = arith.addf %266, %268 : vector<2x16xf32>
    %cst = arith.constant 0.000000e+00 : f32
    %270 = vector.broadcast %cst : f32 to vector<2x16xf32>
    %271 = arith.subf %270, %269 : vector<2x16xf32>
    %272 = math.exp %271 : vector<2x16xf32>
    %cst_12 = arith.constant 1.000000e+00 : f32
    %273 = vector.broadcast %cst_12 : f32 to vector<2x16xf32>
    %274 = arith.addf %273, %272 : vector<2x16xf32>
    %cst_13 = arith.constant 1.000000e+00 : f32
    %275 = vector.broadcast %cst_13 : f32 to vector<2x16xf32>
    %276 = arith.divf %275, %274 : vector<2x16xf32>
    %277 = vector.broadcast %1 : f32 to vector<2x16xf32>
    %278 = arith.mulf %277, %250 : vector<2x16xf32>
    %279 = vector.broadcast %65 : f32 to vector<2x16xf32>
    %280 = arith.addf %279, %278 : vector<2x16xf32>
    %281 = vector.broadcast %17 : f32 to vector<2x16xf32>
    %282 = arith.mulf %281, %252 : vector<2x16xf32>
    %283 = arith.addf %280, %282 : vector<2x16xf32>
    %284 = vector.broadcast %33 : f32 to vector<2x16xf32>
    %285 = arith.mulf %284, %254 : vector<2x16xf32>
    %286 = arith.addf %283, %285 : vector<2x16xf32>
    %287 = vector.broadcast %49 : f32 to vector<2x16xf32>
    %288 = arith.mulf %287, %256 : vector<2x16xf32>
    %289 = arith.addf %286, %288 : vector<2x16xf32>
    %cst_14 = arith.constant 0.000000e+00 : f32
    %290 = vector.broadcast %cst_14 : f32 to vector<2x16xf32>
    %291 = arith.subf %290, %289 : vector<2x16xf32>
    %292 = math.exp %291 : vector<2x16xf32>
    %cst_15 = arith.constant 1.000000e+00 : f32
    %293 = vector.broadcast %cst_15 : f32 to vector<2x16xf32>
    %294 = arith.addf %293, %292 : vector<2x16xf32>
    %cst_16 = arith.constant 1.000000e+00 : f32
    %295 = vector.broadcast %cst_16 : f32 to vector<2x16xf32>
    %296 = arith.divf %295, %294 : vector<2x16xf32>
    %297 = vector.broadcast %2 : f32 to vector<2x16xf32>
    %298 = arith.mulf %297, %250 : vector<2x16xf32>
    %299 = vector.broadcast %66 : f32 to vector<2x16xf32>
    %300 = arith.addf %299, %298 : vector<2x16xf32>
    %301 = vector.broadcast %18 : f32 to vector<2x16xf32>
    %302 = arith.mulf %301, %252 : vector<2x16xf32>
    %303 = arith.addf %300, %302 : vector<2x16xf32>
    %304 = vector.broadcast %34 : f32 to vector<2x16xf32>
    %305 = arith.mulf %304, %254 : vector<2x16xf32>
    %306 = arith.addf %303, %305 : vector<2x16xf32>
    %307 = vector.broadcast %50 : f32 to vector<2x16xf32>
    %308 = arith.mulf %307, %256 : vector<2x16xf32>
    %309 = arith.addf %306, %308 : vector<2x16xf32>
    %cst_17 = arith.constant 0.000000e+00 : f32
    %310 = vector.broadcast %cst_17 : f32 to vector<2x16xf32>
    %311 = arith.subf %310, %309 : vector<2x16xf32>
    %312 = math.exp %311 : vector<2x16xf32>
    %cst_18 = arith.constant 1.000000e+00 : f32
    %313 = vector.broadcast %cst_18 : f32 to vector<2x16xf32>
    %314 = arith.addf %313, %312 : vector<2x16xf32>
    %cst_19 = arith.constant 1.000000e+00 : f32
    %315 = vector.broadcast %cst_19 : f32 to vector<2x16xf32>
    %316 = arith.divf %315, %314 : vector<2x16xf32>
    %317 = vector.broadcast %3 : f32 to vector<2x16xf32>
    %318 = arith.mulf %317, %250 : vector<2x16xf32>
    %319 = vector.broadcast %67 : f32 to vector<2x16xf32>
    %320 = arith.addf %319, %318 : vector<2x16xf32>
    %321 = vector.broadcast %19 : f32 to vector<2x16xf32>
    %322 = arith.mulf %321, %252 : vector<2x16xf32>
    %323 = arith.addf %320, %322 : vector<2x16xf32>
    %324 = vector.broadcast %35 : f32 to vector<2x16xf32>
    %325 = arith.mulf %324, %254 : vector<2x16xf32>
    %326 = arith.addf %323, %325 : vector<2x16xf32>
    %327 = vector.broadcast %51 : f32 to vector<2x16xf32>
    %328 = arith.mulf %327, %256 : vector<2x16xf32>
    %329 = arith.addf %326, %328 : vector<2x16xf32>
    %cst_20 = arith.constant 0.000000e+00 : f32
    %330 = vector.broadcast %cst_20 : f32 to vector<2x16xf32>
    %331 = arith.subf %330, %329 : vector<2x16xf32>
    %332 = math.exp %331 : vector<2x16xf32>
    %cst_21 = arith.constant 1.000000e+00 : f32
    %333 = vector.broadcast %cst_21 : f32 to vector<2x16xf32>
    %334 = arith.addf %333, %332 : vector<2x16xf32>
    %cst_22 = arith.constant 1.000000e+00 : f32
    %335 = vector.broadcast %cst_22 : f32 to vector<2x16xf32>
    %336 = arith.divf %335, %334 : vector<2x16xf32>
    %337 = vector.broadcast %4 : f32 to vector<2x16xf32>
    %338 = arith.mulf %337, %250 : vector<2x16xf32>
    %339 = vector.broadcast %68 : f32 to vector<2x16xf32>
    %340 = arith.addf %339, %338 : vector<2x16xf32>
    %341 = vector.broadcast %20 : f32 to vector<2x16xf32>
    %342 = arith.mulf %341, %252 : vector<2x16xf32>
    %343 = arith.addf %340, %342 : vector<2x16xf32>
    %344 = vector.broadcast %36 : f32 to vector<2x16xf32>
    %345 = arith.mulf %344, %254 : vector<2x16xf32>
    %346 = arith.addf %343, %345 : vector<2x16xf32>
    %347 = vector.broadcast %52 : f32 to vector<2x16xf32>
    %348 = arith.mulf %347, %256 : vector<2x16xf32>
    %349 = arith.addf %346, %348 : vector<2x16xf32>
    %cst_23 = arith.constant 0.000000e+00 : f32
    %350 = vector.broadcast %cst_23 : f32 to vector<2x16xf32>
    %351 = arith.subf %350, %349 : vector<2x16xf32>
    %352 = math.exp %351 : vector<2x16xf32>
    %cst_24 = arith.constant 1.000000e+00 : f32
    %353 = vector.broadcast %cst_24 : f32 to vector<2x16xf32>
    %354 = arith.addf %353, %352 : vector<2x16xf32>
    %cst_25 = arith.constant 1.000000e+00 : f32
    %355 = vector.broadcast %cst_25 : f32 to vector<2x16xf32>
    %356 = arith.divf %355, %354 : vector<2x16xf32>
    %357 = vector.broadcast %5 : f32 to vector<2x16xf32>
    %358 = arith.mulf %357, %250 : vector<2x16xf32>
    %359 = vector.broadcast %69 : f32 to vector<2x16xf32>
    %360 = arith.addf %359, %358 : vector<2x16xf32>
    %361 = vector.broadcast %21 : f32 to vector<2x16xf32>
    %362 = arith.mulf %361, %252 : vector<2x16xf32>
    %363 = arith.addf %360, %362 : vector<2x16xf32>
    %364 = vector.broadcast %37 : f32 to vector<2x16xf32>
    %365 = arith.mulf %364, %254 : vector<2x16xf32>
    %366 = arith.addf %363, %365 : vector<2x16xf32>
    %367 = vector.broadcast %53 : f32 to vector<2x16xf32>
    %368 = arith.mulf %367, %256 : vector<2x16xf32>
    %369 = arith.addf %366, %368 : vector<2x16xf32>
    %cst_26 = arith.constant 0.000000e+00 : f32
    %370 = vector.broadcast %cst_26 : f32 to vector<2x16xf32>
    %371 = arith.subf %370, %369 : vector<2x16xf32>
    %372 = math.exp %371 : vector<2x16xf32>
    %cst_27 = arith.constant 1.000000e+00 : f32
    %373 = vector.broadcast %cst_27 : f32 to vector<2x16xf32>
    %374 = arith.addf %373, %372 : vector<2x16xf32>
    %cst_28 = arith.constant 1.000000e+00 : f32
    %375 = vector.broadcast %cst_28 : f32 to vector<2x16xf32>
    %376 = arith.divf %375, %374 : vector<2x16xf32>
    %377 = vector.broadcast %6 : f32 to vector<2x16xf32>
    %378 = arith.mulf %377, %250 : vector<2x16xf32>
    %379 = vector.broadcast %70 : f32 to vector<2x16xf32>
    %380 = arith.addf %379, %378 : vector<2x16xf32>
    %381 = vector.broadcast %22 : f32 to vector<2x16xf32>
    %382 = arith.mulf %381, %252 : vector<2x16xf32>
    %383 = arith.addf %380, %382 : vector<2x16xf32>
    %384 = vector.broadcast %38 : f32 to vector<2x16xf32>
    %385 = arith.mulf %384, %254 : vector<2x16xf32>
    %386 = arith.addf %383, %385 : vector<2x16xf32>
    %387 = vector.broadcast %54 : f32 to vector<2x16xf32>
    %388 = arith.mulf %387, %256 : vector<2x16xf32>
    %389 = arith.addf %386, %388 : vector<2x16xf32>
    %cst_29 = arith.constant 0.000000e+00 : f32
    %390 = vector.broadcast %cst_29 : f32 to vector<2x16xf32>
    %391 = arith.subf %390, %389 : vector<2x16xf32>
    %392 = math.exp %391 : vector<2x16xf32>
    %cst_30 = arith.constant 1.000000e+00 : f32
    %393 = vector.broadcast %cst_30 : f32 to vector<2x16xf32>
    %394 = arith.addf %393, %392 : vector<2x16xf32>
    %cst_31 = arith.constant 1.000000e+00 : f32
    %395 = vector.broadcast %cst_31 : f32 to vector<2x16xf32>
    %396 = arith.divf %395, %394 : vector<2x16xf32>
    %397 = vector.broadcast %7 : f32 to vector<2x16xf32>
    %398 = arith.mulf %397, %250 : vector<2x16xf32>
    %399 = vector.broadcast %71 : f32 to vector<2x16xf32>
    %400 = arith.addf %399, %398 : vector<2x16xf32>
    %401 = vector.broadcast %23 : f32 to vector<2x16xf32>
    %402 = arith.mulf %401, %252 : vector<2x16xf32>
    %403 = arith.addf %400, %402 : vector<2x16xf32>
    %404 = vector.broadcast %39 : f32 to vector<2x16xf32>
    %405 = arith.mulf %404, %254 : vector<2x16xf32>
    %406 = arith.addf %403, %405 : vector<2x16xf32>
    %407 = vector.broadcast %55 : f32 to vector<2x16xf32>
    %408 = arith.mulf %407, %256 : vector<2x16xf32>
    %409 = arith.addf %406, %408 : vector<2x16xf32>
    %cst_32 = arith.constant 0.000000e+00 : f32
    %410 = vector.broadcast %cst_32 : f32 to vector<2x16xf32>
    %411 = arith.subf %410, %409 : vector<2x16xf32>
    %412 = math.exp %411 : vector<2x16xf32>
    %cst_33 = arith.constant 1.000000e+00 : f32
    %413 = vector.broadcast %cst_33 : f32 to vector<2x16xf32>
    %414 = arith.addf %413, %412 : vector<2x16xf32>
    %cst_34 = arith.constant 1.000000e+00 : f32
    %415 = vector.broadcast %cst_34 : f32 to vector<2x16xf32>
    %416 = arith.divf %415, %414 : vector<2x16xf32>
    %417 = vector.broadcast %8 : f32 to vector<2x16xf32>
    %418 = arith.mulf %417, %250 : vector<2x16xf32>
    %419 = vector.broadcast %72 : f32 to vector<2x16xf32>
    %420 = arith.addf %419, %418 : vector<2x16xf32>
    %421 = vector.broadcast %24 : f32 to vector<2x16xf32>
    %422 = arith.mulf %421, %252 : vector<2x16xf32>
    %423 = arith.addf %420, %422 : vector<2x16xf32>
    %424 = vector.broadcast %40 : f32 to vector<2x16xf32>
    %425 = arith.mulf %424, %254 : vector<2x16xf32>
    %426 = arith.addf %423, %425 : vector<2x16xf32>
    %427 = vector.broadcast %56 : f32 to vector<2x16xf32>
    %428 = arith.mulf %427, %256 : vector<2x16xf32>
    %429 = arith.addf %426, %428 : vector<2x16xf32>
    %cst_35 = arith.constant 0.000000e+00 : f32
    %430 = vector.broadcast %cst_35 : f32 to vector<2x16xf32>
    %431 = arith.subf %430, %429 : vector<2x16xf32>
    %432 = math.exp %431 : vector<2x16xf32>
    %cst_36 = arith.constant 1.000000e+00 : f32
    %433 = vector.broadcast %cst_36 : f32 to vector<2x16xf32>
    %434 = arith.addf %433, %432 : vector<2x16xf32>
    %cst_37 = arith.constant 1.000000e+00 : f32
    %435 = vector.broadcast %cst_37 : f32 to vector<2x16xf32>
    %436 = arith.divf %435, %434 : vector<2x16xf32>
    %437 = vector.broadcast %9 : f32 to vector<2x16xf32>
    %438 = arith.mulf %437, %250 : vector<2x16xf32>
    %439 = vector.broadcast %73 : f32 to vector<2x16xf32>
    %440 = arith.addf %439, %438 : vector<2x16xf32>
    %441 = vector.broadcast %25 : f32 to vector<2x16xf32>
    %442 = arith.mulf %441, %252 : vector<2x16xf32>
    %443 = arith.addf %440, %442 : vector<2x16xf32>
    %444 = vector.broadcast %41 : f32 to vector<2x16xf32>
    %445 = arith.mulf %444, %254 : vector<2x16xf32>
    %446 = arith.addf %443, %445 : vector<2x16xf32>
    %447 = vector.broadcast %57 : f32 to vector<2x16xf32>
    %448 = arith.mulf %447, %256 : vector<2x16xf32>
    %449 = arith.addf %446, %448 : vector<2x16xf32>
    %cst_38 = arith.constant 0.000000e+00 : f32
    %450 = vector.broadcast %cst_38 : f32 to vector<2x16xf32>
    %451 = arith.subf %450, %449 : vector<2x16xf32>
    %452 = math.exp %451 : vector<2x16xf32>
    %cst_39 = arith.constant 1.000000e+00 : f32
    %453 = vector.broadcast %cst_39 : f32 to vector<2x16xf32>
    %454 = arith.addf %453, %452 : vector<2x16xf32>
    %cst_40 = arith.constant 1.000000e+00 : f32
    %455 = vector.broadcast %cst_40 : f32 to vector<2x16xf32>
    %456 = arith.divf %455, %454 : vector<2x16xf32>
    %457 = vector.broadcast %10 : f32 to vector<2x16xf32>
    %458 = arith.mulf %457, %250 : vector<2x16xf32>
    %459 = vector.broadcast %74 : f32 to vector<2x16xf32>
    %460 = arith.addf %459, %458 : vector<2x16xf32>
    %461 = vector.broadcast %26 : f32 to vector<2x16xf32>
    %462 = arith.mulf %461, %252 : vector<2x16xf32>
    %463 = arith.addf %460, %462 : vector<2x16xf32>
    %464 = vector.broadcast %42 : f32 to vector<2x16xf32>
    %465 = arith.mulf %464, %254 : vector<2x16xf32>
    %466 = arith.addf %463, %465 : vector<2x16xf32>
    %467 = vector.broadcast %58 : f32 to vector<2x16xf32>
    %468 = arith.mulf %467, %256 : vector<2x16xf32>
    %469 = arith.addf %466, %468 : vector<2x16xf32>
    %cst_41 = arith.constant 0.000000e+00 : f32
    %470 = vector.broadcast %cst_41 : f32 to vector<2x16xf32>
    %471 = arith.subf %470, %469 : vector<2x16xf32>
    %472 = math.exp %471 : vector<2x16xf32>
    %cst_42 = arith.constant 1.000000e+00 : f32
    %473 = vector.broadcast %cst_42 : f32 to vector<2x16xf32>
    %474 = arith.addf %473, %472 : vector<2x16xf32>
    %cst_43 = arith.constant 1.000000e+00 : f32
    %475 = vector.broadcast %cst_43 : f32 to vector<2x16xf32>
    %476 = arith.divf %475, %474 : vector<2x16xf32>
    %477 = vector.broadcast %11 : f32 to vector<2x16xf32>
    %478 = arith.mulf %477, %250 : vector<2x16xf32>
    %479 = vector.broadcast %75 : f32 to vector<2x16xf32>
    %480 = arith.addf %479, %478 : vector<2x16xf32>
    %481 = vector.broadcast %27 : f32 to vector<2x16xf32>
    %482 = arith.mulf %481, %252 : vector<2x16xf32>
    %483 = arith.addf %480, %482 : vector<2x16xf32>
    %484 = vector.broadcast %43 : f32 to vector<2x16xf32>
    %485 = arith.mulf %484, %254 : vector<2x16xf32>
    %486 = arith.addf %483, %485 : vector<2x16xf32>
    %487 = vector.broadcast %59 : f32 to vector<2x16xf32>
    %488 = arith.mulf %487, %256 : vector<2x16xf32>
    %489 = arith.addf %486, %488 : vector<2x16xf32>
    %cst_44 = arith.constant 0.000000e+00 : f32
    %490 = vector.broadcast %cst_44 : f32 to vector<2x16xf32>
    %491 = arith.subf %490, %489 : vector<2x16xf32>
    %492 = math.exp %491 : vector<2x16xf32>
    %cst_45 = arith.constant 1.000000e+00 : f32
    %493 = vector.broadcast %cst_45 : f32 to vector<2x16xf32>
    %494 = arith.addf %493, %492 : vector<2x16xf32>
    %cst_46 = arith.constant 1.000000e+00 : f32
    %495 = vector.broadcast %cst_46 : f32 to vector<2x16xf32>
    %496 = arith.divf %495, %494 : vector<2x16xf32>
    %497 = vector.broadcast %12 : f32 to vector<2x16xf32>
    %498 = arith.mulf %497, %250 : vector<2x16xf32>
    %499 = vector.broadcast %76 : f32 to vector<2x16xf32>
    %500 = arith.addf %499, %498 : vector<2x16xf32>
    %501 = vector.broadcast %28 : f32 to vector<2x16xf32>
    %502 = arith.mulf %501, %252 : vector<2x16xf32>
    %503 = arith.addf %500, %502 : vector<2x16xf32>
    %504 = vector.broadcast %44 : f32 to vector<2x16xf32>
    %505 = arith.mulf %504, %254 : vector<2x16xf32>
    %506 = arith.addf %503, %505 : vector<2x16xf32>
    %507 = vector.broadcast %60 : f32 to vector<2x16xf32>
    %508 = arith.mulf %507, %256 : vector<2x16xf32>
    %509 = arith.addf %506, %508 : vector<2x16xf32>
    %cst_47 = arith.constant 0.000000e+00 : f32
    %510 = vector.broadcast %cst_47 : f32 to vector<2x16xf32>
    %511 = arith.subf %510, %509 : vector<2x16xf32>
    %512 = math.exp %511 : vector<2x16xf32>
    %cst_48 = arith.constant 1.000000e+00 : f32
    %513 = vector.broadcast %cst_48 : f32 to vector<2x16xf32>
    %514 = arith.addf %513, %512 : vector<2x16xf32>
    %cst_49 = arith.constant 1.000000e+00 : f32
    %515 = vector.broadcast %cst_49 : f32 to vector<2x16xf32>
    %516 = arith.divf %515, %514 : vector<2x16xf32>
    %517 = vector.broadcast %13 : f32 to vector<2x16xf32>
    %518 = arith.mulf %517, %250 : vector<2x16xf32>
    %519 = vector.broadcast %77 : f32 to vector<2x16xf32>
    %520 = arith.addf %519, %518 : vector<2x16xf32>
    %521 = vector.broadcast %29 : f32 to vector<2x16xf32>
    %522 = arith.mulf %521, %252 : vector<2x16xf32>
    %523 = arith.addf %520, %522 : vector<2x16xf32>
    %524 = vector.broadcast %45 : f32 to vector<2x16xf32>
    %525 = arith.mulf %524, %254 : vector<2x16xf32>
    %526 = arith.addf %523, %525 : vector<2x16xf32>
    %527 = vector.broadcast %61 : f32 to vector<2x16xf32>
    %528 = arith.mulf %527, %256 : vector<2x16xf32>
    %529 = arith.addf %526, %528 : vector<2x16xf32>
    %cst_50 = arith.constant 0.000000e+00 : f32
    %530 = vector.broadcast %cst_50 : f32 to vector<2x16xf32>
    %531 = arith.subf %530, %529 : vector<2x16xf32>
    %532 = math.exp %531 : vector<2x16xf32>
    %cst_51 = arith.constant 1.000000e+00 : f32
    %533 = vector.broadcast %cst_51 : f32 to vector<2x16xf32>
    %534 = arith.addf %533, %532 : vector<2x16xf32>
    %cst_52 = arith.constant 1.000000e+00 : f32
    %535 = vector.broadcast %cst_52 : f32 to vector<2x16xf32>
    %536 = arith.divf %535, %534 : vector<2x16xf32>
    %537 = vector.broadcast %14 : f32 to vector<2x16xf32>
    %538 = arith.mulf %537, %250 : vector<2x16xf32>
    %539 = vector.broadcast %78 : f32 to vector<2x16xf32>
    %540 = arith.addf %539, %538 : vector<2x16xf32>
    %541 = vector.broadcast %30 : f32 to vector<2x16xf32>
    %542 = arith.mulf %541, %252 : vector<2x16xf32>
    %543 = arith.addf %540, %542 : vector<2x16xf32>
    %544 = vector.broadcast %46 : f32 to vector<2x16xf32>
    %545 = arith.mulf %544, %254 : vector<2x16xf32>
    %546 = arith.addf %543, %545 : vector<2x16xf32>
    %547 = vector.broadcast %62 : f32 to vector<2x16xf32>
    %548 = arith.mulf %547, %256 : vector<2x16xf32>
    %549 = arith.addf %546, %548 : vector<2x16xf32>
    %cst_53 = arith.constant 0.000000e+00 : f32
    %550 = vector.broadcast %cst_53 : f32 to vector<2x16xf32>
    %551 = arith.subf %550, %549 : vector<2x16xf32>
    %552 = math.exp %551 : vector<2x16xf32>
    %cst_54 = arith.constant 1.000000e+00 : f32
    %553 = vector.broadcast %cst_54 : f32 to vector<2x16xf32>
    %554 = arith.addf %553, %552 : vector<2x16xf32>
    %cst_55 = arith.constant 1.000000e+00 : f32
    %555 = vector.broadcast %cst_55 : f32 to vector<2x16xf32>
    %556 = arith.divf %555, %554 : vector<2x16xf32>
    %557 = vector.broadcast %15 : f32 to vector<2x16xf32>
    %558 = arith.mulf %557, %250 : vector<2x16xf32>
    %559 = vector.broadcast %79 : f32 to vector<2x16xf32>
    %560 = arith.addf %559, %558 : vector<2x16xf32>
    %561 = vector.broadcast %31 : f32 to vector<2x16xf32>
    %562 = arith.mulf %561, %252 : vector<2x16xf32>
    %563 = arith.addf %560, %562 : vector<2x16xf32>
    %564 = vector.broadcast %47 : f32 to vector<2x16xf32>
    %565 = arith.mulf %564, %254 : vector<2x16xf32>
    %566 = arith.addf %563, %565 : vector<2x16xf32>
    %567 = vector.broadcast %63 : f32 to vector<2x16xf32>
    %568 = arith.mulf %567, %256 : vector<2x16xf32>
    %569 = arith.addf %566, %568 : vector<2x16xf32>
    %cst_56 = arith.constant 0.000000e+00 : f32
    %570 = vector.broadcast %cst_56 : f32 to vector<2x16xf32>
    %571 = arith.subf %570, %569 : vector<2x16xf32>
    %572 = math.exp %571 : vector<2x16xf32>
    %cst_57 = arith.constant 1.000000e+00 : f32
    %573 = vector.broadcast %cst_57 : f32 to vector<2x16xf32>
    %574 = arith.addf %573, %572 : vector<2x16xf32>
    %cst_58 = arith.constant 1.000000e+00 : f32
    %575 = vector.broadcast %cst_58 : f32 to vector<2x16xf32>
    %576 = arith.divf %575, %574 : vector<2x16xf32>
    %577 = vector.broadcast %80 : f32 to vector<2x16xf32>
    %578 = arith.mulf %577, %276 : vector<2x16xf32>
    %579 = vector.broadcast %112 : f32 to vector<2x16xf32>
    %580 = arith.addf %579, %578 : vector<2x16xf32>
    %581 = vector.broadcast %82 : f32 to vector<2x16xf32>
    %582 = arith.mulf %581, %296 : vector<2x16xf32>
    %583 = arith.addf %580, %582 : vector<2x16xf32>
    %584 = vector.broadcast %84 : f32 to vector<2x16xf32>
    %585 = arith.mulf %584, %316 : vector<2x16xf32>
    %586 = arith.addf %583, %585 : vector<2x16xf32>
    %587 = vector.broadcast %86 : f32 to vector<2x16xf32>
    %588 = arith.mulf %587, %336 : vector<2x16xf32>
    %589 = arith.addf %586, %588 : vector<2x16xf32>
    %590 = vector.broadcast %88 : f32 to vector<2x16xf32>
    %591 = arith.mulf %590, %356 : vector<2x16xf32>
    %592 = arith.addf %589, %591 : vector<2x16xf32>
    %593 = vector.broadcast %90 : f32 to vector<2x16xf32>
    %594 = arith.mulf %593, %376 : vector<2x16xf32>
    %595 = arith.addf %592, %594 : vector<2x16xf32>
    %596 = vector.broadcast %92 : f32 to vector<2x16xf32>
    %597 = arith.mulf %596, %396 : vector<2x16xf32>
    %598 = arith.addf %595, %597 : vector<2x16xf32>
    %599 = vector.broadcast %94 : f32 to vector<2x16xf32>
    %600 = arith.mulf %599, %416 : vector<2x16xf32>
    %601 = arith.addf %598, %600 : vector<2x16xf32>
    %602 = vector.broadcast %96 : f32 to vector<2x16xf32>
    %603 = arith.mulf %602, %436 : vector<2x16xf32>
    %604 = arith.addf %601, %603 : vector<2x16xf32>
    %605 = vector.broadcast %98 : f32 to vector<2x16xf32>
    %606 = arith.mulf %605, %456 : vector<2x16xf32>
    %607 = arith.addf %604, %606 : vector<2x16xf32>
    %608 = vector.broadcast %100 : f32 to vector<2x16xf32>
    %609 = arith.mulf %608, %476 : vector<2x16xf32>
    %610 = arith.addf %607, %609 : vector<2x16xf32>
    %611 = vector.broadcast %102 : f32 to vector<2x16xf32>
    %612 = arith.mulf %611, %496 : vector<2x16xf32>
    %613 = arith.addf %610, %612 : vector<2x16xf32>
    %614 = vector.broadcast %104 : f32 to vector<2x16xf32>
    %615 = arith.mulf %614, %516 : vector<2x16xf32>
    %616 = arith.addf %613, %615 : vector<2x16xf32>
    %617 = vector.broadcast %106 : f32 to vector<2x16xf32>
    %618 = arith.mulf %617, %536 : vector<2x16xf32>
    %619 = arith.addf %616, %618 : vector<2x16xf32>
    %620 = vector.broadcast %108 : f32 to vector<2x16xf32>
    %621 = arith.mulf %620, %556 : vector<2x16xf32>
    %622 = arith.addf %619, %621 : vector<2x16xf32>
    %623 = vector.broadcast %110 : f32 to vector<2x16xf32>
    %624 = arith.mulf %623, %576 : vector<2x16xf32>
    %625 = arith.addf %622, %624 : vector<2x16xf32>
    %cst_59 = arith.constant 0.000000e+00 : f32
    %626 = vector.broadcast %cst_59 : f32 to vector<2x16xf32>
    %627 = arith.subf %626, %625 : vector<2x16xf32>
    %628 = math.exp %627 : vector<2x16xf32>
    %cst_60 = arith.constant 1.000000e+00 : f32
    %629 = vector.broadcast %cst_60 : f32 to vector<2x16xf32>
    %630 = arith.addf %629, %628 : vector<2x16xf32>
    %cst_61 = arith.constant 1.000000e+00 : f32
    %631 = vector.broadcast %cst_61 : f32 to vector<2x16xf32>
    %632 = arith.divf %631, %630 : vector<2x16xf32>
    %633 = vector.broadcast %81 : f32 to vector<2x16xf32>
    %634 = arith.mulf %633, %276 : vector<2x16xf32>
    %635 = vector.broadcast %113 : f32 to vector<2x16xf32>
    %636 = arith.addf %635, %634 : vector<2x16xf32>
    %637 = vector.broadcast %83 : f32 to vector<2x16xf32>
    %638 = arith.mulf %637, %296 : vector<2x16xf32>
    %639 = arith.addf %636, %638 : vector<2x16xf32>
    %640 = vector.broadcast %85 : f32 to vector<2x16xf32>
    %641 = arith.mulf %640, %316 : vector<2x16xf32>
    %642 = arith.addf %639, %641 : vector<2x16xf32>
    %643 = vector.broadcast %87 : f32 to vector<2x16xf32>
    %644 = arith.mulf %643, %336 : vector<2x16xf32>
    %645 = arith.addf %642, %644 : vector<2x16xf32>
    %646 = vector.broadcast %89 : f32 to vector<2x16xf32>
    %647 = arith.mulf %646, %356 : vector<2x16xf32>
    %648 = arith.addf %645, %647 : vector<2x16xf32>
    %649 = vector.broadcast %91 : f32 to vector<2x16xf32>
    %650 = arith.mulf %649, %376 : vector<2x16xf32>
    %651 = arith.addf %648, %650 : vector<2x16xf32>
    %652 = vector.broadcast %93 : f32 to vector<2x16xf32>
    %653 = arith.mulf %652, %396 : vector<2x16xf32>
    %654 = arith.addf %651, %653 : vector<2x16xf32>
    %655 = vector.broadcast %95 : f32 to vector<2x16xf32>
    %656 = arith.mulf %655, %416 : vector<2x16xf32>
    %657 = arith.addf %654, %656 : vector<2x16xf32>
    %658 = vector.broadcast %97 : f32 to vector<2x16xf32>
    %659 = arith.mulf %658, %436 : vector<2x16xf32>
    %660 = arith.addf %657, %659 : vector<2x16xf32>
    %661 = vector.broadcast %99 : f32 to vector<2x16xf32>
    %662 = arith.mulf %661, %456 : vector<2x16xf32>
    %663 = arith.addf %660, %662 : vector<2x16xf32>
    %664 = vector.broadcast %101 : f32 to vector<2x16xf32>
    %665 = arith.mulf %664, %476 : vector<2x16xf32>
    %666 = arith.addf %663, %665 : vector<2x16xf32>
    %667 = vector.broadcast %103 : f32 to vector<2x16xf32>
    %668 = arith.mulf %667, %496 : vector<2x16xf32>
    %669 = arith.addf %666, %668 : vector<2x16xf32>
    %670 = vector.broadcast %105 : f32 to vector<2x16xf32>
    %671 = arith.mulf %670, %516 : vector<2x16xf32>
    %672 = arith.addf %669, %671 : vector<2x16xf32>
    %673 = vector.broadcast %107 : f32 to vector<2x16xf32>
    %674 = arith.mulf %673, %536 : vector<2x16xf32>
    %675 = arith.addf %672, %674 : vector<2x16xf32>
    %676 = vector.broadcast %109 : f32 to vector<2x16xf32>
    %677 = arith.mulf %676, %556 : vector<2x16xf32>
    %678 = arith.addf %675, %677 : vector<2x16xf32>
    %679 = vector.broadcast %111 : f32 to vector<2x16xf32>
    %680 = arith.mulf %679, %576 : vector<2x16xf32>
    %681 = arith.addf %678, %680 : vector<2x16xf32>
    %cst_62 = arith.constant 0.000000e+00 : f32
    %682 = vector.broadcast %cst_62 : f32 to vector<2x16xf32>
    %683 = arith.subf %682, %681 : vector<2x16xf32>
    %684 = math.exp %683 : vector<2x16xf32>
    %cst_63 = arith.constant 1.000000e+00 : f32
    %685 = vector.broadcast %cst_63 : f32 to vector<2x16xf32>
    %686 = arith.addf %685, %684 : vector<2x16xf32>
    %cst_64 = arith.constant 1.000000e+00 : f32
    %687 = vector.broadcast %cst_64 : f32 to vector<2x16xf32>
    %688 = arith.divf %687, %686 : vector<2x16xf32>
    %689 = vector.broadcast %114 : f32 to vector<2x16xf32>
    %690 = arith.mulf %689, %632 : vector<2x16xf32>
    %691 = vector.broadcast %130 : f32 to vector<2x16xf32>
    %692 = arith.addf %691, %690 : vector<2x16xf32>
    %693 = vector.broadcast %122 : f32 to vector<2x16xf32>
    %694 = arith.mulf %693, %688 : vector<2x16xf32>
    %695 = arith.addf %692, %694 : vector<2x16xf32>
    %696 = vector.broadcast %115 : f32 to vector<2x16xf32>
    %697 = arith.mulf %696, %632 : vector<2x16xf32>
    %698 = vector.broadcast %131 : f32 to vector<2x16xf32>
    %699 = arith.addf %698, %697 : vector<2x16xf32>
    %700 = vector.broadcast %123 : f32 to vector<2x16xf32>
    %701 = arith.mulf %700, %688 : vector<2x16xf32>
    %702 = arith.addf %699, %701 : vector<2x16xf32>
    %703 = vector.broadcast %116 : f32 to vector<2x16xf32>
    %704 = arith.mulf %703, %632 : vector<2x16xf32>
    %705 = vector.broadcast %132 : f32 to vector<2x16xf32>
    %706 = arith.addf %705, %704 : vector<2x16xf32>
    %707 = vector.broadcast %124 : f32 to vector<2x16xf32>
    %708 = arith.mulf %707, %688 : vector<2x16xf32>
    %709 = arith.addf %706, %708 : vector<2x16xf32>
    %710 = vector.broadcast %117 : f32 to vector<2x16xf32>
    %711 = arith.mulf %710, %632 : vector<2x16xf32>
    %712 = vector.broadcast %133 : f32 to vector<2x16xf32>
    %713 = arith.addf %712, %711 : vector<2x16xf32>
    %714 = vector.broadcast %125 : f32 to vector<2x16xf32>
    %715 = arith.mulf %714, %688 : vector<2x16xf32>
    %716 = arith.addf %713, %715 : vector<2x16xf32>
    %717 = vector.broadcast %118 : f32 to vector<2x16xf32>
    %718 = arith.mulf %717, %632 : vector<2x16xf32>
    %719 = vector.broadcast %134 : f32 to vector<2x16xf32>
    %720 = arith.addf %719, %718 : vector<2x16xf32>
    %721 = vector.broadcast %126 : f32 to vector<2x16xf32>
    %722 = arith.mulf %721, %688 : vector<2x16xf32>
    %723 = arith.addf %720, %722 : vector<2x16xf32>
    %724 = vector.broadcast %119 : f32 to vector<2x16xf32>
    %725 = arith.mulf %724, %632 : vector<2x16xf32>
    %726 = vector.broadcast %135 : f32 to vector<2x16xf32>
    %727 = arith.addf %726, %725 : vector<2x16xf32>
    %728 = vector.broadcast %127 : f32 to vector<2x16xf32>
    %729 = arith.mulf %728, %688 : vector<2x16xf32>
    %730 = arith.addf %727, %729 : vector<2x16xf32>
    %731 = vector.broadcast %120 : f32 to vector<2x16xf32>
    %732 = arith.mulf %731, %632 : vector<2x16xf32>
    %733 = vector.broadcast %136 : f32 to vector<2x16xf32>
    %734 = arith.addf %733, %732 : vector<2x16xf32>
    %735 = vector.broadcast %128 : f32 to vector<2x16xf32>
    %736 = arith.mulf %735, %688 : vector<2x16xf32>
    %737 = arith.addf %734, %736 : vector<2x16xf32>
    %738 = vector.broadcast %121 : f32 to vector<2x16xf32>
    %739 = arith.mulf %738, %632 : vector<2x16xf32>
    %740 = vector.broadcast %137 : f32 to vector<2x16xf32>
    %741 = arith.addf %740, %739 : vector<2x16xf32>
    %742 = vector.broadcast %129 : f32 to vector<2x16xf32>
    %743 = arith.mulf %742, %688 : vector<2x16xf32>
    %744 = arith.addf %741, %743 : vector<2x16xf32>
    %c0_65 = arith.constant 0 : index
    %c0_66 = arith.constant 0 : index
    %745 = vector.load %arg4[%c0_65, %c0_66] : memref<2x16xf32, #tpu.memory_space<vmem>>, vector<2x16xf32>
    %746 = vector.broadcast %138 : f32 to vector<2x16xf32>
    %747 = arith.mulf %746, %745 : vector<2x16xf32>
    %748 = vector.broadcast %154 : f32 to vector<2x16xf32>
    %749 = arith.addf %748, %747 : vector<2x16xf32>
    %cst_67 = arith.constant 0.000000e+00 : f32
    %750 = vector.broadcast %cst_67 : f32 to vector<2x16xf32>
    %751 = arith.subf %750, %749 : vector<2x16xf32>
    %752 = math.exp %751 : vector<2x16xf32>
    %cst_68 = arith.constant 1.000000e+00 : f32
    %753 = vector.broadcast %cst_68 : f32 to vector<2x16xf32>
    %754 = arith.addf %753, %752 : vector<2x16xf32>
    %cst_69 = arith.constant 1.000000e+00 : f32
    %755 = vector.broadcast %cst_69 : f32 to vector<2x16xf32>
    %756 = arith.divf %755, %754 : vector<2x16xf32>
    %757 = vector.broadcast %139 : f32 to vector<2x16xf32>
    %758 = arith.mulf %757, %745 : vector<2x16xf32>
    %759 = vector.broadcast %155 : f32 to vector<2x16xf32>
    %760 = arith.addf %759, %758 : vector<2x16xf32>
    %cst_70 = arith.constant 0.000000e+00 : f32
    %761 = vector.broadcast %cst_70 : f32 to vector<2x16xf32>
    %762 = arith.subf %761, %760 : vector<2x16xf32>
    %763 = math.exp %762 : vector<2x16xf32>
    %cst_71 = arith.constant 1.000000e+00 : f32
    %764 = vector.broadcast %cst_71 : f32 to vector<2x16xf32>
    %765 = arith.addf %764, %763 : vector<2x16xf32>
    %cst_72 = arith.constant 1.000000e+00 : f32
    %766 = vector.broadcast %cst_72 : f32 to vector<2x16xf32>
    %767 = arith.divf %766, %765 : vector<2x16xf32>
    %768 = vector.broadcast %140 : f32 to vector<2x16xf32>
    %769 = arith.mulf %768, %745 : vector<2x16xf32>
    %770 = vector.broadcast %156 : f32 to vector<2x16xf32>
    %771 = arith.addf %770, %769 : vector<2x16xf32>
    %cst_73 = arith.constant 0.000000e+00 : f32
    %772 = vector.broadcast %cst_73 : f32 to vector<2x16xf32>
    %773 = arith.subf %772, %771 : vector<2x16xf32>
    %774 = math.exp %773 : vector<2x16xf32>
    %cst_74 = arith.constant 1.000000e+00 : f32
    %775 = vector.broadcast %cst_74 : f32 to vector<2x16xf32>
    %776 = arith.addf %775, %774 : vector<2x16xf32>
    %cst_75 = arith.constant 1.000000e+00 : f32
    %777 = vector.broadcast %cst_75 : f32 to vector<2x16xf32>
    %778 = arith.divf %777, %776 : vector<2x16xf32>
    %779 = vector.broadcast %141 : f32 to vector<2x16xf32>
    %780 = arith.mulf %779, %745 : vector<2x16xf32>
    %781 = vector.broadcast %157 : f32 to vector<2x16xf32>
    %782 = arith.addf %781, %780 : vector<2x16xf32>
    %cst_76 = arith.constant 0.000000e+00 : f32
    %783 = vector.broadcast %cst_76 : f32 to vector<2x16xf32>
    %784 = arith.subf %783, %782 : vector<2x16xf32>
    %785 = math.exp %784 : vector<2x16xf32>
    %cst_77 = arith.constant 1.000000e+00 : f32
    %786 = vector.broadcast %cst_77 : f32 to vector<2x16xf32>
    %787 = arith.addf %786, %785 : vector<2x16xf32>
    %cst_78 = arith.constant 1.000000e+00 : f32
    %788 = vector.broadcast %cst_78 : f32 to vector<2x16xf32>
    %789 = arith.divf %788, %787 : vector<2x16xf32>
    %790 = vector.broadcast %142 : f32 to vector<2x16xf32>
    %791 = arith.mulf %790, %745 : vector<2x16xf32>
    %792 = vector.broadcast %158 : f32 to vector<2x16xf32>
    %793 = arith.addf %792, %791 : vector<2x16xf32>
    %cst_79 = arith.constant 0.000000e+00 : f32
    %794 = vector.broadcast %cst_79 : f32 to vector<2x16xf32>
    %795 = arith.subf %794, %793 : vector<2x16xf32>
    %796 = math.exp %795 : vector<2x16xf32>
    %cst_80 = arith.constant 1.000000e+00 : f32
    %797 = vector.broadcast %cst_80 : f32 to vector<2x16xf32>
    %798 = arith.addf %797, %796 : vector<2x16xf32>
    %cst_81 = arith.constant 1.000000e+00 : f32
    %799 = vector.broadcast %cst_81 : f32 to vector<2x16xf32>
    %800 = arith.divf %799, %798 : vector<2x16xf32>
    %801 = vector.broadcast %143 : f32 to vector<2x16xf32>
    %802 = arith.mulf %801, %745 : vector<2x16xf32>
    %803 = vector.broadcast %159 : f32 to vector<2x16xf32>
    %804 = arith.addf %803, %802 : vector<2x16xf32>
    %cst_82 = arith.constant 0.000000e+00 : f32
    %805 = vector.broadcast %cst_82 : f32 to vector<2x16xf32>
    %806 = arith.subf %805, %804 : vector<2x16xf32>
    %807 = math.exp %806 : vector<2x16xf32>
    %cst_83 = arith.constant 1.000000e+00 : f32
    %808 = vector.broadcast %cst_83 : f32 to vector<2x16xf32>
    %809 = arith.addf %808, %807 : vector<2x16xf32>
    %cst_84 = arith.constant 1.000000e+00 : f32
    %810 = vector.broadcast %cst_84 : f32 to vector<2x16xf32>
    %811 = arith.divf %810, %809 : vector<2x16xf32>
    %812 = vector.broadcast %144 : f32 to vector<2x16xf32>
    %813 = arith.mulf %812, %745 : vector<2x16xf32>
    %814 = vector.broadcast %160 : f32 to vector<2x16xf32>
    %815 = arith.addf %814, %813 : vector<2x16xf32>
    %cst_85 = arith.constant 0.000000e+00 : f32
    %816 = vector.broadcast %cst_85 : f32 to vector<2x16xf32>
    %817 = arith.subf %816, %815 : vector<2x16xf32>
    %818 = math.exp %817 : vector<2x16xf32>
    %cst_86 = arith.constant 1.000000e+00 : f32
    %819 = vector.broadcast %cst_86 : f32 to vector<2x16xf32>
    %820 = arith.addf %819, %818 : vector<2x16xf32>
    %cst_87 = arith.constant 1.000000e+00 : f32
    %821 = vector.broadcast %cst_87 : f32 to vector<2x16xf32>
    %822 = arith.divf %821, %820 : vector<2x16xf32>
    %823 = vector.broadcast %145 : f32 to vector<2x16xf32>
    %824 = arith.mulf %823, %745 : vector<2x16xf32>
    %825 = vector.broadcast %161 : f32 to vector<2x16xf32>
    %826 = arith.addf %825, %824 : vector<2x16xf32>
    %cst_88 = arith.constant 0.000000e+00 : f32
    %827 = vector.broadcast %cst_88 : f32 to vector<2x16xf32>
    %828 = arith.subf %827, %826 : vector<2x16xf32>
    %829 = math.exp %828 : vector<2x16xf32>
    %cst_89 = arith.constant 1.000000e+00 : f32
    %830 = vector.broadcast %cst_89 : f32 to vector<2x16xf32>
    %831 = arith.addf %830, %829 : vector<2x16xf32>
    %cst_90 = arith.constant 1.000000e+00 : f32
    %832 = vector.broadcast %cst_90 : f32 to vector<2x16xf32>
    %833 = arith.divf %832, %831 : vector<2x16xf32>
    %834 = vector.broadcast %146 : f32 to vector<2x16xf32>
    %835 = arith.mulf %834, %745 : vector<2x16xf32>
    %836 = vector.broadcast %162 : f32 to vector<2x16xf32>
    %837 = arith.addf %836, %835 : vector<2x16xf32>
    %cst_91 = arith.constant 0.000000e+00 : f32
    %838 = vector.broadcast %cst_91 : f32 to vector<2x16xf32>
    %839 = arith.subf %838, %837 : vector<2x16xf32>
    %840 = math.exp %839 : vector<2x16xf32>
    %cst_92 = arith.constant 1.000000e+00 : f32
    %841 = vector.broadcast %cst_92 : f32 to vector<2x16xf32>
    %842 = arith.addf %841, %840 : vector<2x16xf32>
    %cst_93 = arith.constant 1.000000e+00 : f32
    %843 = vector.broadcast %cst_93 : f32 to vector<2x16xf32>
    %844 = arith.divf %843, %842 : vector<2x16xf32>
    %845 = vector.broadcast %147 : f32 to vector<2x16xf32>
    %846 = arith.mulf %845, %745 : vector<2x16xf32>
    %847 = vector.broadcast %163 : f32 to vector<2x16xf32>
    %848 = arith.addf %847, %846 : vector<2x16xf32>
    %cst_94 = arith.constant 0.000000e+00 : f32
    %849 = vector.broadcast %cst_94 : f32 to vector<2x16xf32>
    %850 = arith.subf %849, %848 : vector<2x16xf32>
    %851 = math.exp %850 : vector<2x16xf32>
    %cst_95 = arith.constant 1.000000e+00 : f32
    %852 = vector.broadcast %cst_95 : f32 to vector<2x16xf32>
    %853 = arith.addf %852, %851 : vector<2x16xf32>
    %cst_96 = arith.constant 1.000000e+00 : f32
    %854 = vector.broadcast %cst_96 : f32 to vector<2x16xf32>
    %855 = arith.divf %854, %853 : vector<2x16xf32>
    %856 = vector.broadcast %148 : f32 to vector<2x16xf32>
    %857 = arith.mulf %856, %745 : vector<2x16xf32>
    %858 = vector.broadcast %164 : f32 to vector<2x16xf32>
    %859 = arith.addf %858, %857 : vector<2x16xf32>
    %cst_97 = arith.constant 0.000000e+00 : f32
    %860 = vector.broadcast %cst_97 : f32 to vector<2x16xf32>
    %861 = arith.subf %860, %859 : vector<2x16xf32>
    %862 = math.exp %861 : vector<2x16xf32>
    %cst_98 = arith.constant 1.000000e+00 : f32
    %863 = vector.broadcast %cst_98 : f32 to vector<2x16xf32>
    %864 = arith.addf %863, %862 : vector<2x16xf32>
    %cst_99 = arith.constant 1.000000e+00 : f32
    %865 = vector.broadcast %cst_99 : f32 to vector<2x16xf32>
    %866 = arith.divf %865, %864 : vector<2x16xf32>
    %867 = vector.broadcast %149 : f32 to vector<2x16xf32>
    %868 = arith.mulf %867, %745 : vector<2x16xf32>
    %869 = vector.broadcast %165 : f32 to vector<2x16xf32>
    %870 = arith.addf %869, %868 : vector<2x16xf32>
    %cst_100 = arith.constant 0.000000e+00 : f32
    %871 = vector.broadcast %cst_100 : f32 to vector<2x16xf32>
    %872 = arith.subf %871, %870 : vector<2x16xf32>
    %873 = math.exp %872 : vector<2x16xf32>
    %cst_101 = arith.constant 1.000000e+00 : f32
    %874 = vector.broadcast %cst_101 : f32 to vector<2x16xf32>
    %875 = arith.addf %874, %873 : vector<2x16xf32>
    %cst_102 = arith.constant 1.000000e+00 : f32
    %876 = vector.broadcast %cst_102 : f32 to vector<2x16xf32>
    %877 = arith.divf %876, %875 : vector<2x16xf32>
    %878 = vector.broadcast %150 : f32 to vector<2x16xf32>
    %879 = arith.mulf %878, %745 : vector<2x16xf32>
    %880 = vector.broadcast %166 : f32 to vector<2x16xf32>
    %881 = arith.addf %880, %879 : vector<2x16xf32>
    %cst_103 = arith.constant 0.000000e+00 : f32
    %882 = vector.broadcast %cst_103 : f32 to vector<2x16xf32>
    %883 = arith.subf %882, %881 : vector<2x16xf32>
    %884 = math.exp %883 : vector<2x16xf32>
    %cst_104 = arith.constant 1.000000e+00 : f32
    %885 = vector.broadcast %cst_104 : f32 to vector<2x16xf32>
    %886 = arith.addf %885, %884 : vector<2x16xf32>
    %cst_105 = arith.constant 1.000000e+00 : f32
    %887 = vector.broadcast %cst_105 : f32 to vector<2x16xf32>
    %888 = arith.divf %887, %886 : vector<2x16xf32>
    %889 = vector.broadcast %151 : f32 to vector<2x16xf32>
    %890 = arith.mulf %889, %745 : vector<2x16xf32>
    %891 = vector.broadcast %167 : f32 to vector<2x16xf32>
    %892 = arith.addf %891, %890 : vector<2x16xf32>
    %cst_106 = arith.constant 0.000000e+00 : f32
    %893 = vector.broadcast %cst_106 : f32 to vector<2x16xf32>
    %894 = arith.subf %893, %892 : vector<2x16xf32>
    %895 = math.exp %894 : vector<2x16xf32>
    %cst_107 = arith.constant 1.000000e+00 : f32
    %896 = vector.broadcast %cst_107 : f32 to vector<2x16xf32>
    %897 = arith.addf %896, %895 : vector<2x16xf32>
    %cst_108 = arith.constant 1.000000e+00 : f32
    %898 = vector.broadcast %cst_108 : f32 to vector<2x16xf32>
    %899 = arith.divf %898, %897 : vector<2x16xf32>
    %900 = vector.broadcast %152 : f32 to vector<2x16xf32>
    %901 = arith.mulf %900, %745 : vector<2x16xf32>
    %902 = vector.broadcast %168 : f32 to vector<2x16xf32>
    %903 = arith.addf %902, %901 : vector<2x16xf32>
    %cst_109 = arith.constant 0.000000e+00 : f32
    %904 = vector.broadcast %cst_109 : f32 to vector<2x16xf32>
    %905 = arith.subf %904, %903 : vector<2x16xf32>
    %906 = math.exp %905 : vector<2x16xf32>
    %cst_110 = arith.constant 1.000000e+00 : f32
    %907 = vector.broadcast %cst_110 : f32 to vector<2x16xf32>
    %908 = arith.addf %907, %906 : vector<2x16xf32>
    %cst_111 = arith.constant 1.000000e+00 : f32
    %909 = vector.broadcast %cst_111 : f32 to vector<2x16xf32>
    %910 = arith.divf %909, %908 : vector<2x16xf32>
    %911 = vector.broadcast %153 : f32 to vector<2x16xf32>
    %912 = arith.mulf %911, %745 : vector<2x16xf32>
    %913 = vector.broadcast %169 : f32 to vector<2x16xf32>
    %914 = arith.addf %913, %912 : vector<2x16xf32>
    %cst_112 = arith.constant 0.000000e+00 : f32
    %915 = vector.broadcast %cst_112 : f32 to vector<2x16xf32>
    %916 = arith.subf %915, %914 : vector<2x16xf32>
    %917 = math.exp %916 : vector<2x16xf32>
    %cst_113 = arith.constant 1.000000e+00 : f32
    %918 = vector.broadcast %cst_113 : f32 to vector<2x16xf32>
    %919 = arith.addf %918, %917 : vector<2x16xf32>
    %cst_114 = arith.constant 1.000000e+00 : f32
    %920 = vector.broadcast %cst_114 : f32 to vector<2x16xf32>
    %921 = arith.divf %920, %919 : vector<2x16xf32>
    %922 = vector.broadcast %170 : f32 to vector<2x16xf32>
    %923 = arith.mulf %922, %756 : vector<2x16xf32>
    %924 = vector.broadcast %202 : f32 to vector<2x16xf32>
    %925 = arith.addf %924, %923 : vector<2x16xf32>
    %926 = vector.broadcast %172 : f32 to vector<2x16xf32>
    %927 = arith.mulf %926, %767 : vector<2x16xf32>
    %928 = arith.addf %925, %927 : vector<2x16xf32>
    %929 = vector.broadcast %174 : f32 to vector<2x16xf32>
    %930 = arith.mulf %929, %778 : vector<2x16xf32>
    %931 = arith.addf %928, %930 : vector<2x16xf32>
    %932 = vector.broadcast %176 : f32 to vector<2x16xf32>
    %933 = arith.mulf %932, %789 : vector<2x16xf32>
    %934 = arith.addf %931, %933 : vector<2x16xf32>
    %935 = vector.broadcast %178 : f32 to vector<2x16xf32>
    %936 = arith.mulf %935, %800 : vector<2x16xf32>
    %937 = arith.addf %934, %936 : vector<2x16xf32>
    %938 = vector.broadcast %180 : f32 to vector<2x16xf32>
    %939 = arith.mulf %938, %811 : vector<2x16xf32>
    %940 = arith.addf %937, %939 : vector<2x16xf32>
    %941 = vector.broadcast %182 : f32 to vector<2x16xf32>
    %942 = arith.mulf %941, %822 : vector<2x16xf32>
    %943 = arith.addf %940, %942 : vector<2x16xf32>
    %944 = vector.broadcast %184 : f32 to vector<2x16xf32>
    %945 = arith.mulf %944, %833 : vector<2x16xf32>
    %946 = arith.addf %943, %945 : vector<2x16xf32>
    %947 = vector.broadcast %186 : f32 to vector<2x16xf32>
    %948 = arith.mulf %947, %844 : vector<2x16xf32>
    %949 = arith.addf %946, %948 : vector<2x16xf32>
    %950 = vector.broadcast %188 : f32 to vector<2x16xf32>
    %951 = arith.mulf %950, %855 : vector<2x16xf32>
    %952 = arith.addf %949, %951 : vector<2x16xf32>
    %953 = vector.broadcast %190 : f32 to vector<2x16xf32>
    %954 = arith.mulf %953, %866 : vector<2x16xf32>
    %955 = arith.addf %952, %954 : vector<2x16xf32>
    %956 = vector.broadcast %192 : f32 to vector<2x16xf32>
    %957 = arith.mulf %956, %877 : vector<2x16xf32>
    %958 = arith.addf %955, %957 : vector<2x16xf32>
    %959 = vector.broadcast %194 : f32 to vector<2x16xf32>
    %960 = arith.mulf %959, %888 : vector<2x16xf32>
    %961 = arith.addf %958, %960 : vector<2x16xf32>
    %962 = vector.broadcast %196 : f32 to vector<2x16xf32>
    %963 = arith.mulf %962, %899 : vector<2x16xf32>
    %964 = arith.addf %961, %963 : vector<2x16xf32>
    %965 = vector.broadcast %198 : f32 to vector<2x16xf32>
    %966 = arith.mulf %965, %910 : vector<2x16xf32>
    %967 = arith.addf %964, %966 : vector<2x16xf32>
    %968 = vector.broadcast %200 : f32 to vector<2x16xf32>
    %969 = arith.mulf %968, %921 : vector<2x16xf32>
    %970 = arith.addf %967, %969 : vector<2x16xf32>
    %cst_115 = arith.constant 0.000000e+00 : f32
    %971 = vector.broadcast %cst_115 : f32 to vector<2x16xf32>
    %972 = arith.subf %971, %970 : vector<2x16xf32>
    %973 = math.exp %972 : vector<2x16xf32>
    %cst_116 = arith.constant 1.000000e+00 : f32
    %974 = vector.broadcast %cst_116 : f32 to vector<2x16xf32>
    %975 = arith.addf %974, %973 : vector<2x16xf32>
    %cst_117 = arith.constant 1.000000e+00 : f32
    %976 = vector.broadcast %cst_117 : f32 to vector<2x16xf32>
    %977 = arith.divf %976, %975 : vector<2x16xf32>
    %978 = vector.broadcast %171 : f32 to vector<2x16xf32>
    %979 = arith.mulf %978, %756 : vector<2x16xf32>
    %980 = vector.broadcast %203 : f32 to vector<2x16xf32>
    %981 = arith.addf %980, %979 : vector<2x16xf32>
    %982 = vector.broadcast %173 : f32 to vector<2x16xf32>
    %983 = arith.mulf %982, %767 : vector<2x16xf32>
    %984 = arith.addf %981, %983 : vector<2x16xf32>
    %985 = vector.broadcast %175 : f32 to vector<2x16xf32>
    %986 = arith.mulf %985, %778 : vector<2x16xf32>
    %987 = arith.addf %984, %986 : vector<2x16xf32>
    %988 = vector.broadcast %177 : f32 to vector<2x16xf32>
    %989 = arith.mulf %988, %789 : vector<2x16xf32>
    %990 = arith.addf %987, %989 : vector<2x16xf32>
    %991 = vector.broadcast %179 : f32 to vector<2x16xf32>
    %992 = arith.mulf %991, %800 : vector<2x16xf32>
    %993 = arith.addf %990, %992 : vector<2x16xf32>
    %994 = vector.broadcast %181 : f32 to vector<2x16xf32>
    %995 = arith.mulf %994, %811 : vector<2x16xf32>
    %996 = arith.addf %993, %995 : vector<2x16xf32>
    %997 = vector.broadcast %183 : f32 to vector<2x16xf32>
    %998 = arith.mulf %997, %822 : vector<2x16xf32>
    %999 = arith.addf %996, %998 : vector<2x16xf32>
    %1000 = vector.broadcast %185 : f32 to vector<2x16xf32>
    %1001 = arith.mulf %1000, %833 : vector<2x16xf32>
    %1002 = arith.addf %999, %1001 : vector<2x16xf32>
    %1003 = vector.broadcast %187 : f32 to vector<2x16xf32>
    %1004 = arith.mulf %1003, %844 : vector<2x16xf32>
    %1005 = arith.addf %1002, %1004 : vector<2x16xf32>
    %1006 = vector.broadcast %189 : f32 to vector<2x16xf32>
    %1007 = arith.mulf %1006, %855 : vector<2x16xf32>
    %1008 = arith.addf %1005, %1007 : vector<2x16xf32>
    %1009 = vector.broadcast %191 : f32 to vector<2x16xf32>
    %1010 = arith.mulf %1009, %866 : vector<2x16xf32>
    %1011 = arith.addf %1008, %1010 : vector<2x16xf32>
    %1012 = vector.broadcast %193 : f32 to vector<2x16xf32>
    %1013 = arith.mulf %1012, %877 : vector<2x16xf32>
    %1014 = arith.addf %1011, %1013 : vector<2x16xf32>
    %1015 = vector.broadcast %195 : f32 to vector<2x16xf32>
    %1016 = arith.mulf %1015, %888 : vector<2x16xf32>
    %1017 = arith.addf %1014, %1016 : vector<2x16xf32>
    %1018 = vector.broadcast %197 : f32 to vector<2x16xf32>
    %1019 = arith.mulf %1018, %899 : vector<2x16xf32>
    %1020 = arith.addf %1017, %1019 : vector<2x16xf32>
    %1021 = vector.broadcast %199 : f32 to vector<2x16xf32>
    %1022 = arith.mulf %1021, %910 : vector<2x16xf32>
    %1023 = arith.addf %1020, %1022 : vector<2x16xf32>
    %1024 = vector.broadcast %201 : f32 to vector<2x16xf32>
    %1025 = arith.mulf %1024, %921 : vector<2x16xf32>
    %1026 = arith.addf %1023, %1025 : vector<2x16xf32>
    %cst_118 = arith.constant 0.000000e+00 : f32
    %1027 = vector.broadcast %cst_118 : f32 to vector<2x16xf32>
    %1028 = arith.subf %1027, %1026 : vector<2x16xf32>
    %1029 = math.exp %1028 : vector<2x16xf32>
    %cst_119 = arith.constant 1.000000e+00 : f32
    %1030 = vector.broadcast %cst_119 : f32 to vector<2x16xf32>
    %1031 = arith.addf %1030, %1029 : vector<2x16xf32>
    %cst_120 = arith.constant 1.000000e+00 : f32
    %1032 = vector.broadcast %cst_120 : f32 to vector<2x16xf32>
    %1033 = arith.divf %1032, %1031 : vector<2x16xf32>
    %1034 = vector.broadcast %204 : f32 to vector<2x16xf32>
    %1035 = arith.mulf %1034, %977 : vector<2x16xf32>
    %1036 = vector.broadcast %220 : f32 to vector<2x16xf32>
    %1037 = arith.addf %1036, %1035 : vector<2x16xf32>
    %1038 = vector.broadcast %212 : f32 to vector<2x16xf32>
    %1039 = arith.mulf %1038, %1033 : vector<2x16xf32>
    %1040 = arith.addf %1037, %1039 : vector<2x16xf32>
    %1041 = vector.broadcast %205 : f32 to vector<2x16xf32>
    %1042 = arith.mulf %1041, %977 : vector<2x16xf32>
    %1043 = vector.broadcast %221 : f32 to vector<2x16xf32>
    %1044 = arith.addf %1043, %1042 : vector<2x16xf32>
    %1045 = vector.broadcast %213 : f32 to vector<2x16xf32>
    %1046 = arith.mulf %1045, %1033 : vector<2x16xf32>
    %1047 = arith.addf %1044, %1046 : vector<2x16xf32>
    %1048 = vector.broadcast %206 : f32 to vector<2x16xf32>
    %1049 = arith.mulf %1048, %977 : vector<2x16xf32>
    %1050 = vector.broadcast %222 : f32 to vector<2x16xf32>
    %1051 = arith.addf %1050, %1049 : vector<2x16xf32>
    %1052 = vector.broadcast %214 : f32 to vector<2x16xf32>
    %1053 = arith.mulf %1052, %1033 : vector<2x16xf32>
    %1054 = arith.addf %1051, %1053 : vector<2x16xf32>
    %1055 = vector.broadcast %207 : f32 to vector<2x16xf32>
    %1056 = arith.mulf %1055, %977 : vector<2x16xf32>
    %1057 = vector.broadcast %223 : f32 to vector<2x16xf32>
    %1058 = arith.addf %1057, %1056 : vector<2x16xf32>
    %1059 = vector.broadcast %215 : f32 to vector<2x16xf32>
    %1060 = arith.mulf %1059, %1033 : vector<2x16xf32>
    %1061 = arith.addf %1058, %1060 : vector<2x16xf32>
    %1062 = vector.broadcast %208 : f32 to vector<2x16xf32>
    %1063 = arith.mulf %1062, %977 : vector<2x16xf32>
    %1064 = vector.broadcast %224 : f32 to vector<2x16xf32>
    %1065 = arith.addf %1064, %1063 : vector<2x16xf32>
    %1066 = vector.broadcast %216 : f32 to vector<2x16xf32>
    %1067 = arith.mulf %1066, %1033 : vector<2x16xf32>
    %1068 = arith.addf %1065, %1067 : vector<2x16xf32>
    %1069 = vector.broadcast %209 : f32 to vector<2x16xf32>
    %1070 = arith.mulf %1069, %977 : vector<2x16xf32>
    %1071 = vector.broadcast %225 : f32 to vector<2x16xf32>
    %1072 = arith.addf %1071, %1070 : vector<2x16xf32>
    %1073 = vector.broadcast %217 : f32 to vector<2x16xf32>
    %1074 = arith.mulf %1073, %1033 : vector<2x16xf32>
    %1075 = arith.addf %1072, %1074 : vector<2x16xf32>
    %1076 = vector.broadcast %210 : f32 to vector<2x16xf32>
    %1077 = arith.mulf %1076, %977 : vector<2x16xf32>
    %1078 = vector.broadcast %226 : f32 to vector<2x16xf32>
    %1079 = arith.addf %1078, %1077 : vector<2x16xf32>
    %1080 = vector.broadcast %218 : f32 to vector<2x16xf32>
    %1081 = arith.mulf %1080, %1033 : vector<2x16xf32>
    %1082 = arith.addf %1079, %1081 : vector<2x16xf32>
    %1083 = vector.broadcast %211 : f32 to vector<2x16xf32>
    %1084 = arith.mulf %1083, %977 : vector<2x16xf32>
    %1085 = vector.broadcast %227 : f32 to vector<2x16xf32>
    %1086 = arith.addf %1085, %1084 : vector<2x16xf32>
    %1087 = vector.broadcast %219 : f32 to vector<2x16xf32>
    %1088 = arith.mulf %1087, %1033 : vector<2x16xf32>
    %1089 = arith.addf %1086, %1088 : vector<2x16xf32>
    %c0_121 = arith.constant 0 : index
    %c0_122 = arith.constant 0 : index
    %1090 = vector.load %arg5[%c0_121, %c0_122] : memref<2x16xf32, #tpu.memory_space<vmem>>, vector<2x16xf32>
    %1091 = vector.broadcast %138 : f32 to vector<2x16xf32>
    %1092 = arith.mulf %1091, %1090 : vector<2x16xf32>
    %1093 = vector.broadcast %154 : f32 to vector<2x16xf32>
    %1094 = arith.addf %1093, %1092 : vector<2x16xf32>
    %cst_123 = arith.constant 0.000000e+00 : f32
    %1095 = vector.broadcast %cst_123 : f32 to vector<2x16xf32>
    %1096 = arith.subf %1095, %1094 : vector<2x16xf32>
    %1097 = math.exp %1096 : vector<2x16xf32>
    %cst_124 = arith.constant 1.000000e+00 : f32
    %1098 = vector.broadcast %cst_124 : f32 to vector<2x16xf32>
    %1099 = arith.addf %1098, %1097 : vector<2x16xf32>
    %cst_125 = arith.constant 1.000000e+00 : f32
    %1100 = vector.broadcast %cst_125 : f32 to vector<2x16xf32>
    %1101 = arith.divf %1100, %1099 : vector<2x16xf32>
    %1102 = vector.broadcast %139 : f32 to vector<2x16xf32>
    %1103 = arith.mulf %1102, %1090 : vector<2x16xf32>
    %1104 = vector.broadcast %155 : f32 to vector<2x16xf32>
    %1105 = arith.addf %1104, %1103 : vector<2x16xf32>
    %cst_126 = arith.constant 0.000000e+00 : f32
    %1106 = vector.broadcast %cst_126 : f32 to vector<2x16xf32>
    %1107 = arith.subf %1106, %1105 : vector<2x16xf32>
    %1108 = math.exp %1107 : vector<2x16xf32>
    %cst_127 = arith.constant 1.000000e+00 : f32
    %1109 = vector.broadcast %cst_127 : f32 to vector<2x16xf32>
    %1110 = arith.addf %1109, %1108 : vector<2x16xf32>
    %cst_128 = arith.constant 1.000000e+00 : f32
    %1111 = vector.broadcast %cst_128 : f32 to vector<2x16xf32>
    %1112 = arith.divf %1111, %1110 : vector<2x16xf32>
    %1113 = vector.broadcast %140 : f32 to vector<2x16xf32>
    %1114 = arith.mulf %1113, %1090 : vector<2x16xf32>
    %1115 = vector.broadcast %156 : f32 to vector<2x16xf32>
    %1116 = arith.addf %1115, %1114 : vector<2x16xf32>
    %cst_129 = arith.constant 0.000000e+00 : f32
    %1117 = vector.broadcast %cst_129 : f32 to vector<2x16xf32>
    %1118 = arith.subf %1117, %1116 : vector<2x16xf32>
    %1119 = math.exp %1118 : vector<2x16xf32>
    %cst_130 = arith.constant 1.000000e+00 : f32
    %1120 = vector.broadcast %cst_130 : f32 to vector<2x16xf32>
    %1121 = arith.addf %1120, %1119 : vector<2x16xf32>
    %cst_131 = arith.constant 1.000000e+00 : f32
    %1122 = vector.broadcast %cst_131 : f32 to vector<2x16xf32>
    %1123 = arith.divf %1122, %1121 : vector<2x16xf32>
    %1124 = vector.broadcast %141 : f32 to vector<2x16xf32>
    %1125 = arith.mulf %1124, %1090 : vector<2x16xf32>
    %1126 = vector.broadcast %157 : f32 to vector<2x16xf32>
    %1127 = arith.addf %1126, %1125 : vector<2x16xf32>
    %cst_132 = arith.constant 0.000000e+00 : f32
    %1128 = vector.broadcast %cst_132 : f32 to vector<2x16xf32>
    %1129 = arith.subf %1128, %1127 : vector<2x16xf32>
    %1130 = math.exp %1129 : vector<2x16xf32>
    %cst_133 = arith.constant 1.000000e+00 : f32
    %1131 = vector.broadcast %cst_133 : f32 to vector<2x16xf32>
    %1132 = arith.addf %1131, %1130 : vector<2x16xf32>
    %cst_134 = arith.constant 1.000000e+00 : f32
    %1133 = vector.broadcast %cst_134 : f32 to vector<2x16xf32>
    %1134 = arith.divf %1133, %1132 : vector<2x16xf32>
    %1135 = vector.broadcast %142 : f32 to vector<2x16xf32>
    %1136 = arith.mulf %1135, %1090 : vector<2x16xf32>
    %1137 = vector.broadcast %158 : f32 to vector<2x16xf32>
    %1138 = arith.addf %1137, %1136 : vector<2x16xf32>
    %cst_135 = arith.constant 0.000000e+00 : f32
    %1139 = vector.broadcast %cst_135 : f32 to vector<2x16xf32>
    %1140 = arith.subf %1139, %1138 : vector<2x16xf32>
    %1141 = math.exp %1140 : vector<2x16xf32>
    %cst_136 = arith.constant 1.000000e+00 : f32
    %1142 = vector.broadcast %cst_136 : f32 to vector<2x16xf32>
    %1143 = arith.addf %1142, %1141 : vector<2x16xf32>
    %cst_137 = arith.constant 1.000000e+00 : f32
    %1144 = vector.broadcast %cst_137 : f32 to vector<2x16xf32>
    %1145 = arith.divf %1144, %1143 : vector<2x16xf32>
    %1146 = vector.broadcast %143 : f32 to vector<2x16xf32>
    %1147 = arith.mulf %1146, %1090 : vector<2x16xf32>
    %1148 = vector.broadcast %159 : f32 to vector<2x16xf32>
    %1149 = arith.addf %1148, %1147 : vector<2x16xf32>
    %cst_138 = arith.constant 0.000000e+00 : f32
    %1150 = vector.broadcast %cst_138 : f32 to vector<2x16xf32>
    %1151 = arith.subf %1150, %1149 : vector<2x16xf32>
    %1152 = math.exp %1151 : vector<2x16xf32>
    %cst_139 = arith.constant 1.000000e+00 : f32
    %1153 = vector.broadcast %cst_139 : f32 to vector<2x16xf32>
    %1154 = arith.addf %1153, %1152 : vector<2x16xf32>
    %cst_140 = arith.constant 1.000000e+00 : f32
    %1155 = vector.broadcast %cst_140 : f32 to vector<2x16xf32>
    %1156 = arith.divf %1155, %1154 : vector<2x16xf32>
    %1157 = vector.broadcast %144 : f32 to vector<2x16xf32>
    %1158 = arith.mulf %1157, %1090 : vector<2x16xf32>
    %1159 = vector.broadcast %160 : f32 to vector<2x16xf32>
    %1160 = arith.addf %1159, %1158 : vector<2x16xf32>
    %cst_141 = arith.constant 0.000000e+00 : f32
    %1161 = vector.broadcast %cst_141 : f32 to vector<2x16xf32>
    %1162 = arith.subf %1161, %1160 : vector<2x16xf32>
    %1163 = math.exp %1162 : vector<2x16xf32>
    %cst_142 = arith.constant 1.000000e+00 : f32
    %1164 = vector.broadcast %cst_142 : f32 to vector<2x16xf32>
    %1165 = arith.addf %1164, %1163 : vector<2x16xf32>
    %cst_143 = arith.constant 1.000000e+00 : f32
    %1166 = vector.broadcast %cst_143 : f32 to vector<2x16xf32>
    %1167 = arith.divf %1166, %1165 : vector<2x16xf32>
    %1168 = vector.broadcast %145 : f32 to vector<2x16xf32>
    %1169 = arith.mulf %1168, %1090 : vector<2x16xf32>
    %1170 = vector.broadcast %161 : f32 to vector<2x16xf32>
    %1171 = arith.addf %1170, %1169 : vector<2x16xf32>
    %cst_144 = arith.constant 0.000000e+00 : f32
    %1172 = vector.broadcast %cst_144 : f32 to vector<2x16xf32>
    %1173 = arith.subf %1172, %1171 : vector<2x16xf32>
    %1174 = math.exp %1173 : vector<2x16xf32>
    %cst_145 = arith.constant 1.000000e+00 : f32
    %1175 = vector.broadcast %cst_145 : f32 to vector<2x16xf32>
    %1176 = arith.addf %1175, %1174 : vector<2x16xf32>
    %cst_146 = arith.constant 1.000000e+00 : f32
    %1177 = vector.broadcast %cst_146 : f32 to vector<2x16xf32>
    %1178 = arith.divf %1177, %1176 : vector<2x16xf32>
    %1179 = vector.broadcast %146 : f32 to vector<2x16xf32>
    %1180 = arith.mulf %1179, %1090 : vector<2x16xf32>
    %1181 = vector.broadcast %162 : f32 to vector<2x16xf32>
    %1182 = arith.addf %1181, %1180 : vector<2x16xf32>
    %cst_147 = arith.constant 0.000000e+00 : f32
    %1183 = vector.broadcast %cst_147 : f32 to vector<2x16xf32>
    %1184 = arith.subf %1183, %1182 : vector<2x16xf32>
    %1185 = math.exp %1184 : vector<2x16xf32>
    %cst_148 = arith.constant 1.000000e+00 : f32
    %1186 = vector.broadcast %cst_148 : f32 to vector<2x16xf32>
    %1187 = arith.addf %1186, %1185 : vector<2x16xf32>
    %cst_149 = arith.constant 1.000000e+00 : f32
    %1188 = vector.broadcast %cst_149 : f32 to vector<2x16xf32>
    %1189 = arith.divf %1188, %1187 : vector<2x16xf32>
    %1190 = vector.broadcast %147 : f32 to vector<2x16xf32>
    %1191 = arith.mulf %1190, %1090 : vector<2x16xf32>
    %1192 = vector.broadcast %163 : f32 to vector<2x16xf32>
    %1193 = arith.addf %1192, %1191 : vector<2x16xf32>
    %cst_150 = arith.constant 0.000000e+00 : f32
    %1194 = vector.broadcast %cst_150 : f32 to vector<2x16xf32>
    %1195 = arith.subf %1194, %1193 : vector<2x16xf32>
    %1196 = math.exp %1195 : vector<2x16xf32>
    %cst_151 = arith.constant 1.000000e+00 : f32
    %1197 = vector.broadcast %cst_151 : f32 to vector<2x16xf32>
    %1198 = arith.addf %1197, %1196 : vector<2x16xf32>
    %cst_152 = arith.constant 1.000000e+00 : f32
    %1199 = vector.broadcast %cst_152 : f32 to vector<2x16xf32>
    %1200 = arith.divf %1199, %1198 : vector<2x16xf32>
    %1201 = vector.broadcast %148 : f32 to vector<2x16xf32>
    %1202 = arith.mulf %1201, %1090 : vector<2x16xf32>
    %1203 = vector.broadcast %164 : f32 to vector<2x16xf32>
    %1204 = arith.addf %1203, %1202 : vector<2x16xf32>
    %cst_153 = arith.constant 0.000000e+00 : f32
    %1205 = vector.broadcast %cst_153 : f32 to vector<2x16xf32>
    %1206 = arith.subf %1205, %1204 : vector<2x16xf32>
    %1207 = math.exp %1206 : vector<2x16xf32>
    %cst_154 = arith.constant 1.000000e+00 : f32
    %1208 = vector.broadcast %cst_154 : f32 to vector<2x16xf32>
    %1209 = arith.addf %1208, %1207 : vector<2x16xf32>
    %cst_155 = arith.constant 1.000000e+00 : f32
    %1210 = vector.broadcast %cst_155 : f32 to vector<2x16xf32>
    %1211 = arith.divf %1210, %1209 : vector<2x16xf32>
    %1212 = vector.broadcast %149 : f32 to vector<2x16xf32>
    %1213 = arith.mulf %1212, %1090 : vector<2x16xf32>
    %1214 = vector.broadcast %165 : f32 to vector<2x16xf32>
    %1215 = arith.addf %1214, %1213 : vector<2x16xf32>
    %cst_156 = arith.constant 0.000000e+00 : f32
    %1216 = vector.broadcast %cst_156 : f32 to vector<2x16xf32>
    %1217 = arith.subf %1216, %1215 : vector<2x16xf32>
    %1218 = math.exp %1217 : vector<2x16xf32>
    %cst_157 = arith.constant 1.000000e+00 : f32
    %1219 = vector.broadcast %cst_157 : f32 to vector<2x16xf32>
    %1220 = arith.addf %1219, %1218 : vector<2x16xf32>
    %cst_158 = arith.constant 1.000000e+00 : f32
    %1221 = vector.broadcast %cst_158 : f32 to vector<2x16xf32>
    %1222 = arith.divf %1221, %1220 : vector<2x16xf32>
    %1223 = vector.broadcast %150 : f32 to vector<2x16xf32>
    %1224 = arith.mulf %1223, %1090 : vector<2x16xf32>
    %1225 = vector.broadcast %166 : f32 to vector<2x16xf32>
    %1226 = arith.addf %1225, %1224 : vector<2x16xf32>
    %cst_159 = arith.constant 0.000000e+00 : f32
    %1227 = vector.broadcast %cst_159 : f32 to vector<2x16xf32>
    %1228 = arith.subf %1227, %1226 : vector<2x16xf32>
    %1229 = math.exp %1228 : vector<2x16xf32>
    %cst_160 = arith.constant 1.000000e+00 : f32
    %1230 = vector.broadcast %cst_160 : f32 to vector<2x16xf32>
    %1231 = arith.addf %1230, %1229 : vector<2x16xf32>
    %cst_161 = arith.constant 1.000000e+00 : f32
    %1232 = vector.broadcast %cst_161 : f32 to vector<2x16xf32>
    %1233 = arith.divf %1232, %1231 : vector<2x16xf32>
    %1234 = vector.broadcast %151 : f32 to vector<2x16xf32>
    %1235 = arith.mulf %1234, %1090 : vector<2x16xf32>
    %1236 = vector.broadcast %167 : f32 to vector<2x16xf32>
    %1237 = arith.addf %1236, %1235 : vector<2x16xf32>
    %cst_162 = arith.constant 0.000000e+00 : f32
    %1238 = vector.broadcast %cst_162 : f32 to vector<2x16xf32>
    %1239 = arith.subf %1238, %1237 : vector<2x16xf32>
    %1240 = math.exp %1239 : vector<2x16xf32>
    %cst_163 = arith.constant 1.000000e+00 : f32
    %1241 = vector.broadcast %cst_163 : f32 to vector<2x16xf32>
    %1242 = arith.addf %1241, %1240 : vector<2x16xf32>
    %cst_164 = arith.constant 1.000000e+00 : f32
    %1243 = vector.broadcast %cst_164 : f32 to vector<2x16xf32>
    %1244 = arith.divf %1243, %1242 : vector<2x16xf32>
    %1245 = vector.broadcast %152 : f32 to vector<2x16xf32>
    %1246 = arith.mulf %1245, %1090 : vector<2x16xf32>
    %1247 = vector.broadcast %168 : f32 to vector<2x16xf32>
    %1248 = arith.addf %1247, %1246 : vector<2x16xf32>
    %cst_165 = arith.constant 0.000000e+00 : f32
    %1249 = vector.broadcast %cst_165 : f32 to vector<2x16xf32>
    %1250 = arith.subf %1249, %1248 : vector<2x16xf32>
    %1251 = math.exp %1250 : vector<2x16xf32>
    %cst_166 = arith.constant 1.000000e+00 : f32
    %1252 = vector.broadcast %cst_166 : f32 to vector<2x16xf32>
    %1253 = arith.addf %1252, %1251 : vector<2x16xf32>
    %cst_167 = arith.constant 1.000000e+00 : f32
    %1254 = vector.broadcast %cst_167 : f32 to vector<2x16xf32>
    %1255 = arith.divf %1254, %1253 : vector<2x16xf32>
    %1256 = vector.broadcast %153 : f32 to vector<2x16xf32>
    %1257 = arith.mulf %1256, %1090 : vector<2x16xf32>
    %1258 = vector.broadcast %169 : f32 to vector<2x16xf32>
    %1259 = arith.addf %1258, %1257 : vector<2x16xf32>
    %cst_168 = arith.constant 0.000000e+00 : f32
    %1260 = vector.broadcast %cst_168 : f32 to vector<2x16xf32>
    %1261 = arith.subf %1260, %1259 : vector<2x16xf32>
    %1262 = math.exp %1261 : vector<2x16xf32>
    %cst_169 = arith.constant 1.000000e+00 : f32
    %1263 = vector.broadcast %cst_169 : f32 to vector<2x16xf32>
    %1264 = arith.addf %1263, %1262 : vector<2x16xf32>
    %cst_170 = arith.constant 1.000000e+00 : f32
    %1265 = vector.broadcast %cst_170 : f32 to vector<2x16xf32>
    %1266 = arith.divf %1265, %1264 : vector<2x16xf32>
    %1267 = vector.broadcast %170 : f32 to vector<2x16xf32>
    %1268 = arith.mulf %1267, %1101 : vector<2x16xf32>
    %1269 = vector.broadcast %202 : f32 to vector<2x16xf32>
    %1270 = arith.addf %1269, %1268 : vector<2x16xf32>
    %1271 = vector.broadcast %172 : f32 to vector<2x16xf32>
    %1272 = arith.mulf %1271, %1112 : vector<2x16xf32>
    %1273 = arith.addf %1270, %1272 : vector<2x16xf32>
    %1274 = vector.broadcast %174 : f32 to vector<2x16xf32>
    %1275 = arith.mulf %1274, %1123 : vector<2x16xf32>
    %1276 = arith.addf %1273, %1275 : vector<2x16xf32>
    %1277 = vector.broadcast %176 : f32 to vector<2x16xf32>
    %1278 = arith.mulf %1277, %1134 : vector<2x16xf32>
    %1279 = arith.addf %1276, %1278 : vector<2x16xf32>
    %1280 = vector.broadcast %178 : f32 to vector<2x16xf32>
    %1281 = arith.mulf %1280, %1145 : vector<2x16xf32>
    %1282 = arith.addf %1279, %1281 : vector<2x16xf32>
    %1283 = vector.broadcast %180 : f32 to vector<2x16xf32>
    %1284 = arith.mulf %1283, %1156 : vector<2x16xf32>
    %1285 = arith.addf %1282, %1284 : vector<2x16xf32>
    %1286 = vector.broadcast %182 : f32 to vector<2x16xf32>
    %1287 = arith.mulf %1286, %1167 : vector<2x16xf32>
    %1288 = arith.addf %1285, %1287 : vector<2x16xf32>
    %1289 = vector.broadcast %184 : f32 to vector<2x16xf32>
    %1290 = arith.mulf %1289, %1178 : vector<2x16xf32>
    %1291 = arith.addf %1288, %1290 : vector<2x16xf32>
    %1292 = vector.broadcast %186 : f32 to vector<2x16xf32>
    %1293 = arith.mulf %1292, %1189 : vector<2x16xf32>
    %1294 = arith.addf %1291, %1293 : vector<2x16xf32>
    %1295 = vector.broadcast %188 : f32 to vector<2x16xf32>
    %1296 = arith.mulf %1295, %1200 : vector<2x16xf32>
    %1297 = arith.addf %1294, %1296 : vector<2x16xf32>
    %1298 = vector.broadcast %190 : f32 to vector<2x16xf32>
    %1299 = arith.mulf %1298, %1211 : vector<2x16xf32>
    %1300 = arith.addf %1297, %1299 : vector<2x16xf32>
    %1301 = vector.broadcast %192 : f32 to vector<2x16xf32>
    %1302 = arith.mulf %1301, %1222 : vector<2x16xf32>
    %1303 = arith.addf %1300, %1302 : vector<2x16xf32>
    %1304 = vector.broadcast %194 : f32 to vector<2x16xf32>
    %1305 = arith.mulf %1304, %1233 : vector<2x16xf32>
    %1306 = arith.addf %1303, %1305 : vector<2x16xf32>
    %1307 = vector.broadcast %196 : f32 to vector<2x16xf32>
    %1308 = arith.mulf %1307, %1244 : vector<2x16xf32>
    %1309 = arith.addf %1306, %1308 : vector<2x16xf32>
    %1310 = vector.broadcast %198 : f32 to vector<2x16xf32>
    %1311 = arith.mulf %1310, %1255 : vector<2x16xf32>
    %1312 = arith.addf %1309, %1311 : vector<2x16xf32>
    %1313 = vector.broadcast %200 : f32 to vector<2x16xf32>
    %1314 = arith.mulf %1313, %1266 : vector<2x16xf32>
    %1315 = arith.addf %1312, %1314 : vector<2x16xf32>
    %cst_171 = arith.constant 0.000000e+00 : f32
    %1316 = vector.broadcast %cst_171 : f32 to vector<2x16xf32>
    %1317 = arith.subf %1316, %1315 : vector<2x16xf32>
    %1318 = math.exp %1317 : vector<2x16xf32>
    %cst_172 = arith.constant 1.000000e+00 : f32
    %1319 = vector.broadcast %cst_172 : f32 to vector<2x16xf32>
    %1320 = arith.addf %1319, %1318 : vector<2x16xf32>
    %cst_173 = arith.constant 1.000000e+00 : f32
    %1321 = vector.broadcast %cst_173 : f32 to vector<2x16xf32>
    %1322 = arith.divf %1321, %1320 : vector<2x16xf32>
    %1323 = vector.broadcast %171 : f32 to vector<2x16xf32>
    %1324 = arith.mulf %1323, %1101 : vector<2x16xf32>
    %1325 = vector.broadcast %203 : f32 to vector<2x16xf32>
    %1326 = arith.addf %1325, %1324 : vector<2x16xf32>
    %1327 = vector.broadcast %173 : f32 to vector<2x16xf32>
    %1328 = arith.mulf %1327, %1112 : vector<2x16xf32>
    %1329 = arith.addf %1326, %1328 : vector<2x16xf32>
    %1330 = vector.broadcast %175 : f32 to vector<2x16xf32>
    %1331 = arith.mulf %1330, %1123 : vector<2x16xf32>
    %1332 = arith.addf %1329, %1331 : vector<2x16xf32>
    %1333 = vector.broadcast %177 : f32 to vector<2x16xf32>
    %1334 = arith.mulf %1333, %1134 : vector<2x16xf32>
    %1335 = arith.addf %1332, %1334 : vector<2x16xf32>
    %1336 = vector.broadcast %179 : f32 to vector<2x16xf32>
    %1337 = arith.mulf %1336, %1145 : vector<2x16xf32>
    %1338 = arith.addf %1335, %1337 : vector<2x16xf32>
    %1339 = vector.broadcast %181 : f32 to vector<2x16xf32>
    %1340 = arith.mulf %1339, %1156 : vector<2x16xf32>
    %1341 = arith.addf %1338, %1340 : vector<2x16xf32>
    %1342 = vector.broadcast %183 : f32 to vector<2x16xf32>
    %1343 = arith.mulf %1342, %1167 : vector<2x16xf32>
    %1344 = arith.addf %1341, %1343 : vector<2x16xf32>
    %1345 = vector.broadcast %185 : f32 to vector<2x16xf32>
    %1346 = arith.mulf %1345, %1178 : vector<2x16xf32>
    %1347 = arith.addf %1344, %1346 : vector<2x16xf32>
    %1348 = vector.broadcast %187 : f32 to vector<2x16xf32>
    %1349 = arith.mulf %1348, %1189 : vector<2x16xf32>
    %1350 = arith.addf %1347, %1349 : vector<2x16xf32>
    %1351 = vector.broadcast %189 : f32 to vector<2x16xf32>
    %1352 = arith.mulf %1351, %1200 : vector<2x16xf32>
    %1353 = arith.addf %1350, %1352 : vector<2x16xf32>
    %1354 = vector.broadcast %191 : f32 to vector<2x16xf32>
    %1355 = arith.mulf %1354, %1211 : vector<2x16xf32>
    %1356 = arith.addf %1353, %1355 : vector<2x16xf32>
    %1357 = vector.broadcast %193 : f32 to vector<2x16xf32>
    %1358 = arith.mulf %1357, %1222 : vector<2x16xf32>
    %1359 = arith.addf %1356, %1358 : vector<2x16xf32>
    %1360 = vector.broadcast %195 : f32 to vector<2x16xf32>
    %1361 = arith.mulf %1360, %1233 : vector<2x16xf32>
    %1362 = arith.addf %1359, %1361 : vector<2x16xf32>
    %1363 = vector.broadcast %197 : f32 to vector<2x16xf32>
    %1364 = arith.mulf %1363, %1244 : vector<2x16xf32>
    %1365 = arith.addf %1362, %1364 : vector<2x16xf32>
    %1366 = vector.broadcast %199 : f32 to vector<2x16xf32>
    %1367 = arith.mulf %1366, %1255 : vector<2x16xf32>
    %1368 = arith.addf %1365, %1367 : vector<2x16xf32>
    %1369 = vector.broadcast %201 : f32 to vector<2x16xf32>
    %1370 = arith.mulf %1369, %1266 : vector<2x16xf32>
    %1371 = arith.addf %1368, %1370 : vector<2x16xf32>
    %cst_174 = arith.constant 0.000000e+00 : f32
    %1372 = vector.broadcast %cst_174 : f32 to vector<2x16xf32>
    %1373 = arith.subf %1372, %1371 : vector<2x16xf32>
    %1374 = math.exp %1373 : vector<2x16xf32>
    %cst_175 = arith.constant 1.000000e+00 : f32
    %1375 = vector.broadcast %cst_175 : f32 to vector<2x16xf32>
    %1376 = arith.addf %1375, %1374 : vector<2x16xf32>
    %cst_176 = arith.constant 1.000000e+00 : f32
    %1377 = vector.broadcast %cst_176 : f32 to vector<2x16xf32>
    %1378 = arith.divf %1377, %1376 : vector<2x16xf32>
    %1379 = vector.broadcast %204 : f32 to vector<2x16xf32>
    %1380 = arith.mulf %1379, %1322 : vector<2x16xf32>
    %1381 = vector.broadcast %220 : f32 to vector<2x16xf32>
    %1382 = arith.addf %1381, %1380 : vector<2x16xf32>
    %1383 = vector.broadcast %212 : f32 to vector<2x16xf32>
    %1384 = arith.mulf %1383, %1378 : vector<2x16xf32>
    %1385 = arith.addf %1382, %1384 : vector<2x16xf32>
    %1386 = vector.broadcast %205 : f32 to vector<2x16xf32>
    %1387 = arith.mulf %1386, %1322 : vector<2x16xf32>
    %1388 = vector.broadcast %221 : f32 to vector<2x16xf32>
    %1389 = arith.addf %1388, %1387 : vector<2x16xf32>
    %1390 = vector.broadcast %213 : f32 to vector<2x16xf32>
    %1391 = arith.mulf %1390, %1378 : vector<2x16xf32>
    %1392 = arith.addf %1389, %1391 : vector<2x16xf32>
    %1393 = vector.broadcast %206 : f32 to vector<2x16xf32>
    %1394 = arith.mulf %1393, %1322 : vector<2x16xf32>
    %1395 = vector.broadcast %222 : f32 to vector<2x16xf32>
    %1396 = arith.addf %1395, %1394 : vector<2x16xf32>
    %1397 = vector.broadcast %214 : f32 to vector<2x16xf32>
    %1398 = arith.mulf %1397, %1378 : vector<2x16xf32>
    %1399 = arith.addf %1396, %1398 : vector<2x16xf32>
    %1400 = vector.broadcast %207 : f32 to vector<2x16xf32>
    %1401 = arith.mulf %1400, %1322 : vector<2x16xf32>
    %1402 = vector.broadcast %223 : f32 to vector<2x16xf32>
    %1403 = arith.addf %1402, %1401 : vector<2x16xf32>
    %1404 = vector.broadcast %215 : f32 to vector<2x16xf32>
    %1405 = arith.mulf %1404, %1378 : vector<2x16xf32>
    %1406 = arith.addf %1403, %1405 : vector<2x16xf32>
    %1407 = vector.broadcast %208 : f32 to vector<2x16xf32>
    %1408 = arith.mulf %1407, %1322 : vector<2x16xf32>
    %1409 = vector.broadcast %224 : f32 to vector<2x16xf32>
    %1410 = arith.addf %1409, %1408 : vector<2x16xf32>
    %1411 = vector.broadcast %216 : f32 to vector<2x16xf32>
    %1412 = arith.mulf %1411, %1378 : vector<2x16xf32>
    %1413 = arith.addf %1410, %1412 : vector<2x16xf32>
    %1414 = vector.broadcast %209 : f32 to vector<2x16xf32>
    %1415 = arith.mulf %1414, %1322 : vector<2x16xf32>
    %1416 = vector.broadcast %225 : f32 to vector<2x16xf32>
    %1417 = arith.addf %1416, %1415 : vector<2x16xf32>
    %1418 = vector.broadcast %217 : f32 to vector<2x16xf32>
    %1419 = arith.mulf %1418, %1378 : vector<2x16xf32>
    %1420 = arith.addf %1417, %1419 : vector<2x16xf32>
    %1421 = vector.broadcast %210 : f32 to vector<2x16xf32>
    %1422 = arith.mulf %1421, %1322 : vector<2x16xf32>
    %1423 = vector.broadcast %226 : f32 to vector<2x16xf32>
    %1424 = arith.addf %1423, %1422 : vector<2x16xf32>
    %1425 = vector.broadcast %218 : f32 to vector<2x16xf32>
    %1426 = arith.mulf %1425, %1378 : vector<2x16xf32>
    %1427 = arith.addf %1424, %1426 : vector<2x16xf32>
    %1428 = vector.broadcast %211 : f32 to vector<2x16xf32>
    %1429 = arith.mulf %1428, %1322 : vector<2x16xf32>
    %1430 = vector.broadcast %227 : f32 to vector<2x16xf32>
    %1431 = arith.addf %1430, %1429 : vector<2x16xf32>
    %1432 = vector.broadcast %219 : f32 to vector<2x16xf32>
    %1433 = arith.mulf %1432, %1378 : vector<2x16xf32>
    %1434 = arith.addf %1431, %1433 : vector<2x16xf32>
    %c0_177 = arith.constant 0 : index
    %c0_178 = arith.constant 0 : index
    %c0_179 = arith.constant 0 : index
    %1435 = vector.load %arg3[%c0_177, %c0_178, %c0_179] : memref<2x8x16xf32, #tpu.memory_space<vmem>>, vector<2x1x16xf32>
    %1436 = vector.shape_cast %1435 : vector<2x1x16xf32> to vector<2x16xf32>
    %1437 = arith.mulf %1436, %695 : vector<2x16xf32>
    %1438 = math.tanh %1437 : vector<2x16xf32>
    %1439 = arith.mulf %1438, %1040 : vector<2x16xf32>
    %1440 = math.tanh %1439 : vector<2x16xf32>
    %1441 = arith.mulf %1440, %1385 : vector<2x16xf32>
    %1442 = math.tanh %1441 : vector<2x16xf32>
    %c0_180 = arith.constant 0 : index
    %c1_181 = arith.constant 1 : index
    %c0_182 = arith.constant 0 : index
    %1443 = vector.load %arg3[%c0_180, %c1_181, %c0_182] : memref<2x8x16xf32, #tpu.memory_space<vmem>>, vector<2x1x16xf32>
    %1444 = vector.shape_cast %1443 : vector<2x1x16xf32> to vector<2x16xf32>
    %1445 = arith.mulf %1444, %702 : vector<2x16xf32>
    %1446 = math.tanh %1445 : vector<2x16xf32>
    %1447 = arith.mulf %1446, %1047 : vector<2x16xf32>
    %1448 = math.tanh %1447 : vector<2x16xf32>
    %1449 = arith.mulf %1448, %1392 : vector<2x16xf32>
    %1450 = math.tanh %1449 : vector<2x16xf32>
    %c0_183 = arith.constant 0 : index
    %c2_184 = arith.constant 2 : index
    %c0_185 = arith.constant 0 : index
    %1451 = vector.load %arg3[%c0_183, %c2_184, %c0_185] : memref<2x8x16xf32, #tpu.memory_space<vmem>>, vector<2x1x16xf32>
    %1452 = vector.shape_cast %1451 : vector<2x1x16xf32> to vector<2x16xf32>
    %1453 = arith.mulf %1452, %709 : vector<2x16xf32>
    %1454 = math.tanh %1453 : vector<2x16xf32>
    %1455 = arith.mulf %1454, %1054 : vector<2x16xf32>
    %1456 = math.tanh %1455 : vector<2x16xf32>
    %1457 = arith.mulf %1456, %1399 : vector<2x16xf32>
    %1458 = math.tanh %1457 : vector<2x16xf32>
    %c0_186 = arith.constant 0 : index
    %c3_187 = arith.constant 3 : index
    %c0_188 = arith.constant 0 : index
    %1459 = vector.load %arg3[%c0_186, %c3_187, %c0_188] : memref<2x8x16xf32, #tpu.memory_space<vmem>>, vector<2x1x16xf32>
    %1460 = vector.shape_cast %1459 : vector<2x1x16xf32> to vector<2x16xf32>
    %1461 = arith.mulf %1460, %716 : vector<2x16xf32>
    %1462 = math.tanh %1461 : vector<2x16xf32>
    %1463 = arith.mulf %1462, %1061 : vector<2x16xf32>
    %1464 = math.tanh %1463 : vector<2x16xf32>
    %1465 = arith.mulf %1464, %1406 : vector<2x16xf32>
    %1466 = math.tanh %1465 : vector<2x16xf32>
    %c0_189 = arith.constant 0 : index
    %c4_190 = arith.constant 4 : index
    %c0_191 = arith.constant 0 : index
    %1467 = vector.load %arg3[%c0_189, %c4_190, %c0_191] : memref<2x8x16xf32, #tpu.memory_space<vmem>>, vector<2x1x16xf32>
    %1468 = vector.shape_cast %1467 : vector<2x1x16xf32> to vector<2x16xf32>
    %1469 = arith.mulf %1468, %723 : vector<2x16xf32>
    %1470 = math.tanh %1469 : vector<2x16xf32>
    %1471 = arith.mulf %1470, %1068 : vector<2x16xf32>
    %1472 = math.tanh %1471 : vector<2x16xf32>
    %1473 = arith.mulf %1472, %1413 : vector<2x16xf32>
    %1474 = math.tanh %1473 : vector<2x16xf32>
    %c0_192 = arith.constant 0 : index
    %c5_193 = arith.constant 5 : index
    %c0_194 = arith.constant 0 : index
    %1475 = vector.load %arg3[%c0_192, %c5_193, %c0_194] : memref<2x8x16xf32, #tpu.memory_space<vmem>>, vector<2x1x16xf32>
    %1476 = vector.shape_cast %1475 : vector<2x1x16xf32> to vector<2x16xf32>
    %1477 = arith.mulf %1476, %730 : vector<2x16xf32>
    %1478 = math.tanh %1477 : vector<2x16xf32>
    %1479 = arith.mulf %1478, %1075 : vector<2x16xf32>
    %1480 = math.tanh %1479 : vector<2x16xf32>
    %1481 = arith.mulf %1480, %1420 : vector<2x16xf32>
    %1482 = math.tanh %1481 : vector<2x16xf32>
    %c0_195 = arith.constant 0 : index
    %c6_196 = arith.constant 6 : index
    %c0_197 = arith.constant 0 : index
    %1483 = vector.load %arg3[%c0_195, %c6_196, %c0_197] : memref<2x8x16xf32, #tpu.memory_space<vmem>>, vector<2x1x16xf32>
    %1484 = vector.shape_cast %1483 : vector<2x1x16xf32> to vector<2x16xf32>
    %1485 = arith.mulf %1484, %737 : vector<2x16xf32>
    %1486 = math.tanh %1485 : vector<2x16xf32>
    %1487 = arith.mulf %1486, %1082 : vector<2x16xf32>
    %1488 = math.tanh %1487 : vector<2x16xf32>
    %1489 = arith.mulf %1488, %1427 : vector<2x16xf32>
    %1490 = math.tanh %1489 : vector<2x16xf32>
    %c0_198 = arith.constant 0 : index
    %c7_199 = arith.constant 7 : index
    %c0_200 = arith.constant 0 : index
    %1491 = vector.load %arg3[%c0_198, %c7_199, %c0_200] : memref<2x8x16xf32, #tpu.memory_space<vmem>>, vector<2x1x16xf32>
    %1492 = vector.shape_cast %1491 : vector<2x1x16xf32> to vector<2x16xf32>
    %1493 = arith.mulf %1492, %744 : vector<2x16xf32>
    %1494 = math.tanh %1493 : vector<2x16xf32>
    %1495 = arith.mulf %1494, %1089 : vector<2x16xf32>
    %1496 = math.tanh %1495 : vector<2x16xf32>
    %1497 = arith.mulf %1496, %1434 : vector<2x16xf32>
    %1498 = math.tanh %1497 : vector<2x16xf32>
    %1499 = vector.shape_cast %1442 : vector<2x16xf32> to vector<2x1x16xf32>
    %1500 = vector.shape_cast %1450 : vector<2x16xf32> to vector<2x1x16xf32>
    %1501 = vector.shape_cast %1458 : vector<2x16xf32> to vector<2x1x16xf32>
    %1502 = vector.shape_cast %1466 : vector<2x16xf32> to vector<2x1x16xf32>
    %1503 = vector.shape_cast %1474 : vector<2x16xf32> to vector<2x1x16xf32>
    %1504 = vector.shape_cast %1482 : vector<2x16xf32> to vector<2x1x16xf32>
    %1505 = vector.shape_cast %1490 : vector<2x16xf32> to vector<2x1x16xf32>
    %1506 = vector.shape_cast %1498 : vector<2x16xf32> to vector<2x1x16xf32>
    %1507 = tpu.concatenate %1499, %1500, %1501, %1502, %1503, %1504, %1505, %1506 in 1 : vector<2x1x16xf32>, vector<2x1x16xf32>, vector<2x1x16xf32>, vector<2x1x16xf32>, vector<2x1x16xf32>, vector<2x1x16xf32>, vector<2x1x16xf32>, vector<2x1x16xf32> -> vector<2x8x16xf32>
    %1508 = tpu.transpose %1507, [0, 2, 1] : vector<2x8x16xf32> -> vector<2x16x8xf32>
    "tpu.trace_start"() <{level = 10 : i32, message = "bne,bme->bnm"}> : () -> ()
    %cst_201 = arith.constant dense<0.000000e+00> : vector<2x16x16xf32>
    %1509 = tpu.matmul %1508, %1508, %cst_201 {dimension_numbers = #tpu.dot_dimension_numbers<[2], [2], [1], [1], [0, 0, 0, 1, 1, 1], [0], [0]>} : vector<2x16x8xf32>, vector<2x16x8xf32>, vector<2x16x16xf32> -> vector<2x16x16xf32>
    "tpu.trace_stop"() : () -> ()
    %cst_202 = arith.constant 0.000000e+00 : f32
    %1510 = vector.broadcast %cst_202 : f32 to vector<2x16x16xf32>
    %1511 = arith.maximumf %1509, %1510 : vector<2x16x16xf32>
    %c0_203 = arith.constant 0 : index
    %c0_204 = arith.constant 0 : index
    %c0_205 = arith.constant 0 : index
    %1512 = vector.load %arg2[%c0_203, %c0_204, %c0_205] : memref<2x4x16xf32, #tpu.memory_space<vmem>>, vector<2x4x16xf32>
    "tpu.trace_start"() <{level = 10 : i32, message = "bim,bnm->bin"}> : () -> ()
    %cst_206 = arith.constant dense<0.000000e+00> : vector<2x4x16xf32>
    %1513 = tpu.matmul %1512, %1511, %cst_206 {dimension_numbers = #tpu.dot_dimension_numbers<[2], [2], [1], [1], [0, 0, 0, 1, 1, 1], [0], [0]>} : vector<2x4x16xf32>, vector<2x16x16xf32>, vector<2x4x16xf32> -> vector<2x4x16xf32>
    %cst_207 = arith.constant 0.000000e+00 : f32
    "tpu.trace_stop"() : () -> ()
    %1514 = vector.broadcast %cst_207 : f32 to vector<2x4x16xf32>
    %1515 = arith.cmpf ogt, %1513, %1514 : vector<2x4x16xf32>
    %cst_208 = arith.constant 0.00999999977 : f32
    %1516 = vector.broadcast %cst_208 : f32 to vector<2x4x16xf32>
    %1517 = arith.mulf %1516, %1513 : vector<2x4x16xf32>
    %1518 = arith.select %1515, %1513, %1517 : vector<2x4x16xi1>, vector<2x4x16xf32>
    "tpu.trace_start"() <{level = 10 : i32, message = "bim,bnm->bin"}> : () -> ()
    %cst_209 = arith.constant dense<0.000000e+00> : vector<2x4x16xf32>
    %1519 = tpu.matmul %1518, %1511, %cst_209 {dimension_numbers = #tpu.dot_dimension_numbers<[2], [2], [1], [1], [0, 0, 0, 1, 1, 1], [0], [0]>} : vector<2x4x16xf32>, vector<2x16x16xf32>, vector<2x4x16xf32> -> vector<2x4x16xf32>
    %cst_210 = arith.constant 0.000000e+00 : f32
    "tpu.trace_stop"() : () -> ()
    %1520 = vector.broadcast %cst_210 : f32 to vector<2x4x16xf32>
    %1521 = arith.cmpf ogt, %1519, %1520 : vector<2x4x16xf32>
    %cst_211 = arith.constant 0.00999999977 : f32
    %1522 = vector.broadcast %cst_211 : f32 to vector<2x4x16xf32>
    %1523 = arith.mulf %1522, %1519 : vector<2x4x16xf32>
    %1524 = arith.select %1521, %1519, %1523 : vector<2x4x16xi1>, vector<2x4x16xf32>
    "tpu.trace_start"() <{level = 10 : i32, message = "bim,bmn->bin"}> : () -> ()
    %cst_212 = arith.constant dense<0.000000e+00> : vector<2x4x16xf32>
    %1525 = tpu.matmul %1524, %1511, %cst_212 {dimension_numbers = #tpu.dot_dimension_numbers<[2], [1], [1], [2], [0, 0, 0, 1, 1, 2], [0], [0]>} : vector<2x4x16xf32>, vector<2x16x16xf32>, vector<2x4x16xf32> -> vector<2x4x16xf32>
    %cst_213 = arith.constant 0.000000e+00 : f32
    "tpu.trace_stop"() : () -> ()
    %1526 = vector.broadcast %cst_213 : f32 to vector<2x4x16xf32>
    %1527 = arith.cmpf ogt, %1525, %1526 : vector<2x4x16xf32>
    %cst_214 = arith.constant 0.00999999977 : f32
    %1528 = vector.broadcast %cst_214 : f32 to vector<2x4x16xf32>
    %1529 = arith.mulf %1528, %1525 : vector<2x4x16xf32>
    %1530 = arith.select %1527, %1525, %1529 : vector<2x4x16xi1>, vector<2x4x16xf32>
    "tpu.trace_start"() <{level = 10 : i32, message = "bim,bmn->bin"}> : () -> ()
    %cst_215 = arith.constant dense<0.000000e+00> : vector<2x4x16xf32>
    %1531 = tpu.matmul %1530, %1511, %cst_215 {dimension_numbers = #tpu.dot_dimension_numbers<[2], [1], [1], [2], [0, 0, 0, 1, 1, 2], [0], [0]>} : vector<2x4x16xf32>, vector<2x16x16xf32>, vector<2x4x16xf32> -> vector<2x4x16xf32>
    %cst_216 = arith.constant 0.000000e+00 : f32
    "tpu.trace_stop"() : () -> ()
    %1532 = vector.broadcast %cst_216 : f32 to vector<2x4x16xf32>
    %1533 = arith.cmpf ogt, %1531, %1532 : vector<2x4x16xf32>
    %cst_217 = arith.constant 0.00999999977 : f32
    %1534 = vector.broadcast %cst_217 : f32 to vector<2x4x16xf32>
    %1535 = arith.mulf %1534, %1531 : vector<2x4x16xf32>
    %1536 = arith.select %1533, %1531, %1535 : vector<2x4x16xi1>, vector<2x4x16xf32>
    %1537 = arith.addf %1512, %1518 : vector<2x4x16xf32>
    %1538 = arith.addf %1537, %1524 : vector<2x4x16xf32>
    %cst_218 = arith.constant 0.333333343 : f32
    %1539 = vector.broadcast %cst_218 : f32 to vector<2x4x16xf32>
    %1540 = arith.mulf %1538, %1539 : vector<2x4x16xf32>
    %1541 = vector.extract_strided_slice %1540 {offsets = [0, 0, 0], sizes = [2, 1, 16], strides = [1, 1, 1]} : vector<2x4x16xf32> to vector<2x1x16xf32>
    %1542 = vector.shape_cast %1541 : vector<2x1x16xf32> to vector<2x16xf32>
    %1543 = vector.broadcast %228 : f32 to vector<2x16xf32>
    %1544 = arith.mulf %1543, %1542 : vector<2x16xf32>
    %1545 = vector.extract_strided_slice %1540 {offsets = [0, 1, 0], sizes = [2, 1, 16], strides = [1, 1, 1]} : vector<2x4x16xf32> to vector<2x1x16xf32>
    %1546 = vector.shape_cast %1545 : vector<2x1x16xf32> to vector<2x16xf32>
    %1547 = vector.broadcast %229 : f32 to vector<2x16xf32>
    %1548 = arith.mulf %1547, %1546 : vector<2x16xf32>
    %1549 = arith.addf %1544, %1548 : vector<2x16xf32>
    %1550 = vector.extract_strided_slice %1540 {offsets = [0, 2, 0], sizes = [2, 1, 16], strides = [1, 1, 1]} : vector<2x4x16xf32> to vector<2x1x16xf32>
    %1551 = vector.shape_cast %1550 : vector<2x1x16xf32> to vector<2x16xf32>
    %1552 = vector.broadcast %230 : f32 to vector<2x16xf32>
    %1553 = arith.mulf %1552, %1551 : vector<2x16xf32>
    %1554 = arith.addf %1549, %1553 : vector<2x16xf32>
    %1555 = vector.extract_strided_slice %1540 {offsets = [0, 3, 0], sizes = [2, 1, 16], strides = [1, 1, 1]} : vector<2x4x16xf32> to vector<2x1x16xf32>
    %1556 = vector.shape_cast %1555 : vector<2x1x16xf32> to vector<2x16xf32>
    %1557 = vector.broadcast %231 : f32 to vector<2x16xf32>
    %1558 = arith.mulf %1557, %1556 : vector<2x16xf32>
    %1559 = arith.addf %1554, %1558 : vector<2x16xf32>
    %1560 = vector.broadcast %232 : f32 to vector<2x16xf32>
    %1561 = arith.addf %1559, %1560 : vector<2x16xf32>
    %cst_219 = arith.constant dense<0xFF800000> : vector<2xf32>
    %1562 = vector.multi_reduction <maximumf>, %1561, %cst_219 [1] : vector<2x16xf32> to vector<2xf32>
    %1563 = vector.shape_cast %1562 : vector<2xf32> to vector<2x1xf32>
    %1564 = vector.broadcast %1563 : vector<2x1xf32> to vector<2x16xf32>
    %1565 = arith.subf %1561, %1564 : vector<2x16xf32>
    %1566 = math.exp %1565 : vector<2x16xf32>
    %cst_220 = arith.constant dense<0.000000e+00> : vector<2xf32>
    %1567 = vector.multi_reduction <add>, %1566, %cst_220 [1] : vector<2x16xf32> to vector<2xf32>
    %1568 = vector.shape_cast %1567 : vector<2xf32> to vector<2x1xf32>
    %1569 = tpu.reciprocal %1568 {approx = true} : vector<2x1xf32> -> vector<2x1xf32>
    %1570 = vector.broadcast %1569 : vector<2x1xf32> to vector<2x16xf32>
    %1571 = arith.mulf %1566, %1570 : vector<2x16xf32>
    %1572 = vector.shape_cast %1571 : vector<2x16xf32> to vector<2x1x16xf32>
    %1573 = vector.broadcast %1572 : vector<2x1x16xf32> to vector<2x4x16xf32>
    %1574 = arith.mulf %1540, %1573 : vector<2x4x16xf32>
    %cst_221 = arith.constant dense<0.000000e+00> : vector<2x4xf32>
    %1575 = vector.multi_reduction <add>, %1574, %cst_221 [2] : vector<2x4x16xf32> to vector<2x4xf32>
    %1576 = vector.extract_strided_slice %1575 {offsets = [0, 0], sizes = [2, 1], strides = [1, 1]} : vector<2x4xf32> to vector<2x1xf32>
    %1577 = vector.broadcast %233 : f32 to vector<2x1xf32>
    %1578 = arith.mulf %1577, %1576 : vector<2x1xf32>
    %1579 = vector.extract_strided_slice %1575 {offsets = [0, 1], sizes = [2, 1], strides = [1, 1]} : vector<2x4xf32> to vector<2x1xf32>
    %1580 = vector.broadcast %237 : f32 to vector<2x1xf32>
    %1581 = arith.mulf %1580, %1579 : vector<2x1xf32>
    %1582 = arith.addf %1578, %1581 : vector<2x1xf32>
    %1583 = vector.extract_strided_slice %1575 {offsets = [0, 2], sizes = [2, 1], strides = [1, 1]} : vector<2x4xf32> to vector<2x1xf32>
    %1584 = vector.broadcast %241 : f32 to vector<2x1xf32>
    %1585 = arith.mulf %1584, %1583 : vector<2x1xf32>
    %1586 = arith.addf %1582, %1585 : vector<2x1xf32>
    %1587 = vector.extract_strided_slice %1575 {offsets = [0, 3], sizes = [2, 1], strides = [1, 1]} : vector<2x4xf32> to vector<2x1xf32>
    %1588 = vector.broadcast %245 : f32 to vector<2x1xf32>
    %1589 = arith.mulf %1588, %1587 : vector<2x1xf32>
    %1590 = arith.addf %1586, %1589 : vector<2x1xf32>
    %1591 = vector.extract_strided_slice %1575 {offsets = [0, 0], sizes = [2, 1], strides = [1, 1]} : vector<2x4xf32> to vector<2x1xf32>
    %1592 = vector.broadcast %234 : f32 to vector<2x1xf32>
    %1593 = arith.mulf %1592, %1591 : vector<2x1xf32>
    %1594 = vector.extract_strided_slice %1575 {offsets = [0, 1], sizes = [2, 1], strides = [1, 1]} : vector<2x4xf32> to vector<2x1xf32>
    %1595 = vector.broadcast %238 : f32 to vector<2x1xf32>
    %1596 = arith.mulf %1595, %1594 : vector<2x1xf32>
    %1597 = arith.addf %1593, %1596 : vector<2x1xf32>
    %1598 = vector.extract_strided_slice %1575 {offsets = [0, 2], sizes = [2, 1], strides = [1, 1]} : vector<2x4xf32> to vector<2x1xf32>
    %1599 = vector.broadcast %242 : f32 to vector<2x1xf32>
    %1600 = arith.mulf %1599, %1598 : vector<2x1xf32>
    %1601 = arith.addf %1597, %1600 : vector<2x1xf32>
    %1602 = vector.extract_strided_slice %1575 {offsets = [0, 3], sizes = [2, 1], strides = [1, 1]} : vector<2x4xf32> to vector<2x1xf32>
    %1603 = vector.broadcast %246 : f32 to vector<2x1xf32>
    %1604 = arith.mulf %1603, %1602 : vector<2x1xf32>
    %1605 = arith.addf %1601, %1604 : vector<2x1xf32>
    %1606 = vector.extract_strided_slice %1575 {offsets = [0, 0], sizes = [2, 1], strides = [1, 1]} : vector<2x4xf32> to vector<2x1xf32>
    %1607 = vector.broadcast %235 : f32 to vector<2x1xf32>
    %1608 = arith.mulf %1607, %1606 : vector<2x1xf32>
    %1609 = vector.extract_strided_slice %1575 {offsets = [0, 1], sizes = [2, 1], strides = [1, 1]} : vector<2x4xf32> to vector<2x1xf32>
    %1610 = vector.broadcast %239 : f32 to vector<2x1xf32>
    %1611 = arith.mulf %1610, %1609 : vector<2x1xf32>
    %1612 = arith.addf %1608, %1611 : vector<2x1xf32>
    %1613 = vector.extract_strided_slice %1575 {offsets = [0, 2], sizes = [2, 1], strides = [1, 1]} : vector<2x4xf32> to vector<2x1xf32>
    %1614 = vector.broadcast %243 : f32 to vector<2x1xf32>
    %1615 = arith.mulf %1614, %1613 : vector<2x1xf32>
    %1616 = arith.addf %1612, %1615 : vector<2x1xf32>
    %1617 = vector.extract_strided_slice %1575 {offsets = [0, 3], sizes = [2, 1], strides = [1, 1]} : vector<2x4xf32> to vector<2x1xf32>
    %1618 = vector.broadcast %247 : f32 to vector<2x1xf32>
    %1619 = arith.mulf %1618, %1617 : vector<2x1xf32>
    %1620 = arith.addf %1616, %1619 : vector<2x1xf32>
    %1621 = vector.extract_strided_slice %1575 {offsets = [0, 0], sizes = [2, 1], strides = [1, 1]} : vector<2x4xf32> to vector<2x1xf32>
    %1622 = vector.broadcast %236 : f32 to vector<2x1xf32>
    %1623 = arith.mulf %1622, %1621 : vector<2x1xf32>
    %1624 = vector.extract_strided_slice %1575 {offsets = [0, 1], sizes = [2, 1], strides = [1, 1]} : vector<2x4xf32> to vector<2x1xf32>
    %1625 = vector.broadcast %240 : f32 to vector<2x1xf32>
    %1626 = arith.mulf %1625, %1624 : vector<2x1xf32>
    %1627 = arith.addf %1623, %1626 : vector<2x1xf32>
    %1628 = vector.extract_strided_slice %1575 {offsets = [0, 2], sizes = [2, 1], strides = [1, 1]} : vector<2x4xf32> to vector<2x1xf32>
    %1629 = vector.broadcast %244 : f32 to vector<2x1xf32>
    %1630 = arith.mulf %1629, %1628 : vector<2x1xf32>
    %1631 = arith.addf %1627, %1630 : vector<2x1xf32>
    %1632 = vector.extract_strided_slice %1575 {offsets = [0, 3], sizes = [2, 1], strides = [1, 1]} : vector<2x4xf32> to vector<2x1xf32>
    %1633 = vector.broadcast %248 : f32 to vector<2x1xf32>
    %1634 = arith.mulf %1633, %1632 : vector<2x1xf32>
    %1635 = arith.addf %1631, %1634 : vector<2x1xf32>
    %1636 = arith.addf %1524, %1530 : vector<2x4x16xf32>
    %1637 = arith.addf %1636, %1536 : vector<2x4x16xf32>
    %cst_222 = arith.constant 0.333333343 : f32
    %1638 = vector.broadcast %cst_222 : f32 to vector<2x4x16xf32>
    %1639 = arith.mulf %1637, %1638 : vector<2x4x16xf32>
    %1640 = vector.extract_strided_slice %1639 {offsets = [0, 0, 0], sizes = [2, 1, 16], strides = [1, 1, 1]} : vector<2x4x16xf32> to vector<2x1x16xf32>
    %1641 = vector.shape_cast %1640 : vector<2x1x16xf32> to vector<2x16xf32>
    %1642 = vector.broadcast %228 : f32 to vector<2x16xf32>
    %1643 = arith.mulf %1642, %1641 : vector<2x16xf32>
    %1644 = vector.extract_strided_slice %1639 {offsets = [0, 1, 0], sizes = [2, 1, 16], strides = [1, 1, 1]} : vector<2x4x16xf32> to vector<2x1x16xf32>
    %1645 = vector.shape_cast %1644 : vector<2x1x16xf32> to vector<2x16xf32>
    %1646 = vector.broadcast %229 : f32 to vector<2x16xf32>
    %1647 = arith.mulf %1646, %1645 : vector<2x16xf32>
    %1648 = arith.addf %1643, %1647 : vector<2x16xf32>
    %1649 = vector.extract_strided_slice %1639 {offsets = [0, 2, 0], sizes = [2, 1, 16], strides = [1, 1, 1]} : vector<2x4x16xf32> to vector<2x1x16xf32>
    %1650 = vector.shape_cast %1649 : vector<2x1x16xf32> to vector<2x16xf32>
    %1651 = vector.broadcast %230 : f32 to vector<2x16xf32>
    %1652 = arith.mulf %1651, %1650 : vector<2x16xf32>
    %1653 = arith.addf %1648, %1652 : vector<2x16xf32>
    %1654 = vector.extract_strided_slice %1639 {offsets = [0, 3, 0], sizes = [2, 1, 16], strides = [1, 1, 1]} : vector<2x4x16xf32> to vector<2x1x16xf32>
    %1655 = vector.shape_cast %1654 : vector<2x1x16xf32> to vector<2x16xf32>
    %1656 = vector.broadcast %231 : f32 to vector<2x16xf32>
    %1657 = arith.mulf %1656, %1655 : vector<2x16xf32>
    %1658 = arith.addf %1653, %1657 : vector<2x16xf32>
    %1659 = vector.broadcast %232 : f32 to vector<2x16xf32>
    %1660 = arith.addf %1658, %1659 : vector<2x16xf32>
    %cst_223 = arith.constant dense<0xFF800000> : vector<2xf32>
    %1661 = vector.multi_reduction <maximumf>, %1660, %cst_223 [1] : vector<2x16xf32> to vector<2xf32>
    %1662 = vector.shape_cast %1661 : vector<2xf32> to vector<2x1xf32>
    %1663 = vector.broadcast %1662 : vector<2x1xf32> to vector<2x16xf32>
    %1664 = arith.subf %1660, %1663 : vector<2x16xf32>
    %1665 = math.exp %1664 : vector<2x16xf32>
    %cst_224 = arith.constant dense<0.000000e+00> : vector<2xf32>
    %1666 = vector.multi_reduction <add>, %1665, %cst_224 [1] : vector<2x16xf32> to vector<2xf32>
    %1667 = vector.shape_cast %1666 : vector<2xf32> to vector<2x1xf32>
    %1668 = tpu.reciprocal %1667 {approx = true} : vector<2x1xf32> -> vector<2x1xf32>
    %1669 = vector.broadcast %1668 : vector<2x1xf32> to vector<2x16xf32>
    %1670 = arith.mulf %1665, %1669 : vector<2x16xf32>
    %1671 = vector.shape_cast %1670 : vector<2x16xf32> to vector<2x1x16xf32>
    %1672 = vector.broadcast %1671 : vector<2x1x16xf32> to vector<2x4x16xf32>
    %1673 = arith.mulf %1639, %1672 : vector<2x4x16xf32>
    %cst_225 = arith.constant dense<0.000000e+00> : vector<2x4xf32>
    %1674 = vector.multi_reduction <add>, %1673, %cst_225 [2] : vector<2x4x16xf32> to vector<2x4xf32>
    %1675 = vector.extract_strided_slice %1674 {offsets = [0, 0], sizes = [2, 1], strides = [1, 1]} : vector<2x4xf32> to vector<2x1xf32>
    %1676 = vector.broadcast %233 : f32 to vector<2x1xf32>
    %1677 = arith.mulf %1676, %1675 : vector<2x1xf32>
    %1678 = vector.extract_strided_slice %1674 {offsets = [0, 1], sizes = [2, 1], strides = [1, 1]} : vector<2x4xf32> to vector<2x1xf32>
    %1679 = vector.broadcast %237 : f32 to vector<2x1xf32>
    %1680 = arith.mulf %1679, %1678 : vector<2x1xf32>
    %1681 = arith.addf %1677, %1680 : vector<2x1xf32>
    %1682 = vector.extract_strided_slice %1674 {offsets = [0, 2], sizes = [2, 1], strides = [1, 1]} : vector<2x4xf32> to vector<2x1xf32>
    %1683 = vector.broadcast %241 : f32 to vector<2x1xf32>
    %1684 = arith.mulf %1683, %1682 : vector<2x1xf32>
    %1685 = arith.addf %1681, %1684 : vector<2x1xf32>
    %1686 = vector.extract_strided_slice %1674 {offsets = [0, 3], sizes = [2, 1], strides = [1, 1]} : vector<2x4xf32> to vector<2x1xf32>
    %1687 = vector.broadcast %245 : f32 to vector<2x1xf32>
    %1688 = arith.mulf %1687, %1686 : vector<2x1xf32>
    %1689 = arith.addf %1685, %1688 : vector<2x1xf32>
    %1690 = vector.extract_strided_slice %1674 {offsets = [0, 0], sizes = [2, 1], strides = [1, 1]} : vector<2x4xf32> to vector<2x1xf32>
    %1691 = vector.broadcast %234 : f32 to vector<2x1xf32>
    %1692 = arith.mulf %1691, %1690 : vector<2x1xf32>
    %1693 = vector.extract_strided_slice %1674 {offsets = [0, 1], sizes = [2, 1], strides = [1, 1]} : vector<2x4xf32> to vector<2x1xf32>
    %1694 = vector.broadcast %238 : f32 to vector<2x1xf32>
    %1695 = arith.mulf %1694, %1693 : vector<2x1xf32>
    %1696 = arith.addf %1692, %1695 : vector<2x1xf32>
    %1697 = vector.extract_strided_slice %1674 {offsets = [0, 2], sizes = [2, 1], strides = [1, 1]} : vector<2x4xf32> to vector<2x1xf32>
    %1698 = vector.broadcast %242 : f32 to vector<2x1xf32>
    %1699 = arith.mulf %1698, %1697 : vector<2x1xf32>
    %1700 = arith.addf %1696, %1699 : vector<2x1xf32>
    %1701 = vector.extract_strided_slice %1674 {offsets = [0, 3], sizes = [2, 1], strides = [1, 1]} : vector<2x4xf32> to vector<2x1xf32>
    %1702 = vector.broadcast %246 : f32 to vector<2x1xf32>
    %1703 = arith.mulf %1702, %1701 : vector<2x1xf32>
    %1704 = arith.addf %1700, %1703 : vector<2x1xf32>
    %1705 = vector.extract_strided_slice %1674 {offsets = [0, 0], sizes = [2, 1], strides = [1, 1]} : vector<2x4xf32> to vector<2x1xf32>
    %1706 = vector.broadcast %235 : f32 to vector<2x1xf32>
    %1707 = arith.mulf %1706, %1705 : vector<2x1xf32>
    %1708 = vector.extract_strided_slice %1674 {offsets = [0, 1], sizes = [2, 1], strides = [1, 1]} : vector<2x4xf32> to vector<2x1xf32>
    %1709 = vector.broadcast %239 : f32 to vector<2x1xf32>
    %1710 = arith.mulf %1709, %1708 : vector<2x1xf32>
    %1711 = arith.addf %1707, %1710 : vector<2x1xf32>
    %1712 = vector.extract_strided_slice %1674 {offsets = [0, 2], sizes = [2, 1], strides = [1, 1]} : vector<2x4xf32> to vector<2x1xf32>
    %1713 = vector.broadcast %243 : f32 to vector<2x1xf32>
    %1714 = arith.mulf %1713, %1712 : vector<2x1xf32>
    %1715 = arith.addf %1711, %1714 : vector<2x1xf32>
    %1716 = vector.extract_strided_slice %1674 {offsets = [0, 3], sizes = [2, 1], strides = [1, 1]} : vector<2x4xf32> to vector<2x1xf32>
    %1717 = vector.broadcast %247 : f32 to vector<2x1xf32>
    %1718 = arith.mulf %1717, %1716 : vector<2x1xf32>
    %1719 = arith.addf %1715, %1718 : vector<2x1xf32>
    %1720 = vector.extract_strided_slice %1674 {offsets = [0, 0], sizes = [2, 1], strides = [1, 1]} : vector<2x4xf32> to vector<2x1xf32>
    %1721 = vector.broadcast %236 : f32 to vector<2x1xf32>
    %1722 = arith.mulf %1721, %1720 : vector<2x1xf32>
    %1723 = vector.extract_strided_slice %1674 {offsets = [0, 1], sizes = [2, 1], strides = [1, 1]} : vector<2x4xf32> to vector<2x1xf32>
    %1724 = vector.broadcast %240 : f32 to vector<2x1xf32>
    %1725 = arith.mulf %1724, %1723 : vector<2x1xf32>
    %1726 = arith.addf %1722, %1725 : vector<2x1xf32>
    %1727 = vector.extract_strided_slice %1674 {offsets = [0, 2], sizes = [2, 1], strides = [1, 1]} : vector<2x4xf32> to vector<2x1xf32>
    %1728 = vector.broadcast %244 : f32 to vector<2x1xf32>
    %1729 = arith.mulf %1728, %1727 : vector<2x1xf32>
    %1730 = arith.addf %1726, %1729 : vector<2x1xf32>
    %1731 = vector.extract_strided_slice %1674 {offsets = [0, 3], sizes = [2, 1], strides = [1, 1]} : vector<2x4xf32> to vector<2x1xf32>
    %1732 = vector.broadcast %248 : f32 to vector<2x1xf32>
    %1733 = arith.mulf %1732, %1731 : vector<2x1xf32>
    %1734 = arith.addf %1730, %1733 : vector<2x1xf32>
    %1735 = arith.addf %1590, %1689 : vector<2x1xf32>
    %c0_226 = arith.constant 0 : index
    %c0_227 = arith.constant 0 : index
    %1736 = vector.load %arg7[%c0_226, %c0_227] : memref<4x16xf32, #tpu.memory_space<vmem>>, vector<1x16xf32>
    %1737 = vector.broadcast %1735 : vector<2x1xf32> to vector<2x16xf32>
    %1738 = vector.broadcast %1736 : vector<1x16xf32> to vector<2x16xf32>
    %1739 = arith.addf %1737, %1738 : vector<2x16xf32>
    %c0_228 = arith.constant 0 : index
    %c0_229 = arith.constant 0 : index
    %c0_230 = arith.constant 0 : index
    %1740 = vector.load %arg6[%c0_228, %c0_229, %c0_230] : memref<24x4x16xf32, #tpu.memory_space<vmem>>, vector<1x4x16xf32>
    %1741 = vector.shape_cast %1740 : vector<1x4x16xf32> to vector<4x16xf32>
    %1742 = vector.shape_cast %1741 : vector<4x16xf32> to vector<1x4x16xf32>
    %1743 = vector.broadcast %1742 : vector<1x4x16xf32> to vector<2x4x16xf32>
    %1744 = arith.mulf %1512, %1743 : vector<2x4x16xf32>
    %cst_231 = arith.constant dense<0.000000e+00> : vector<2x16xf32>
    %1745 = vector.multi_reduction <add>, %1744, %cst_231 [1] : vector<2x4x16xf32> to vector<2x16xf32>
    %1746 = arith.addf %1739, %1745 : vector<2x16xf32>
    %c12_232 = arith.constant 12 : index
    %c0_233 = arith.constant 0 : index
    %c0_234 = arith.constant 0 : index
    %1747 = vector.load %arg6[%c12_232, %c0_233, %c0_234] : memref<24x4x16xf32, #tpu.memory_space<vmem>>, vector<1x4x16xf32>
    %1748 = vector.shape_cast %1747 : vector<1x4x16xf32> to vector<4x16xf32>
    %1749 = vector.shape_cast %1748 : vector<4x16xf32> to vector<1x4x16xf32>
    %1750 = vector.broadcast %1749 : vector<1x4x16xf32> to vector<2x4x16xf32>
    %1751 = arith.mulf %1524, %1750 : vector<2x4x16xf32>
    %cst_235 = arith.constant dense<0.000000e+00> : vector<2x16xf32>
    %1752 = vector.multi_reduction <add>, %1751, %cst_235 [1] : vector<2x4x16xf32> to vector<2x16xf32>
    %1753 = arith.addf %1746, %1752 : vector<2x16xf32>
    %c4_236 = arith.constant 4 : index
    %c0_237 = arith.constant 0 : index
    %c0_238 = arith.constant 0 : index
    %1754 = vector.load %arg6[%c4_236, %c0_237, %c0_238] : memref<24x4x16xf32, #tpu.memory_space<vmem>>, vector<1x4x16xf32>
    %1755 = vector.shape_cast %1754 : vector<1x4x16xf32> to vector<4x16xf32>
    %1756 = vector.shape_cast %1755 : vector<4x16xf32> to vector<1x4x16xf32>
    %1757 = vector.broadcast %1756 : vector<1x4x16xf32> to vector<2x4x16xf32>
    %1758 = arith.mulf %1518, %1757 : vector<2x4x16xf32>
    %cst_239 = arith.constant dense<0.000000e+00> : vector<2x16xf32>
    %1759 = vector.multi_reduction <add>, %1758, %cst_239 [1] : vector<2x4x16xf32> to vector<2x16xf32>
    %1760 = arith.addf %1753, %1759 : vector<2x16xf32>
    %c16_240 = arith.constant 16 : index
    %c0_241 = arith.constant 0 : index
    %c0_242 = arith.constant 0 : index
    %1761 = vector.load %arg6[%c16_240, %c0_241, %c0_242] : memref<24x4x16xf32, #tpu.memory_space<vmem>>, vector<1x4x16xf32>
    %1762 = vector.shape_cast %1761 : vector<1x4x16xf32> to vector<4x16xf32>
    %1763 = vector.shape_cast %1762 : vector<4x16xf32> to vector<1x4x16xf32>
    %1764 = vector.broadcast %1763 : vector<1x4x16xf32> to vector<2x4x16xf32>
    %1765 = arith.mulf %1530, %1764 : vector<2x4x16xf32>
    %cst_243 = arith.constant dense<0.000000e+00> : vector<2x16xf32>
    %1766 = vector.multi_reduction <add>, %1765, %cst_243 [1] : vector<2x4x16xf32> to vector<2x16xf32>
    %1767 = arith.addf %1760, %1766 : vector<2x16xf32>
    %c8_244 = arith.constant 8 : index
    %c0_245 = arith.constant 0 : index
    %c0_246 = arith.constant 0 : index
    %1768 = vector.load %arg6[%c8_244, %c0_245, %c0_246] : memref<24x4x16xf32, #tpu.memory_space<vmem>>, vector<1x4x16xf32>
    %1769 = vector.shape_cast %1768 : vector<1x4x16xf32> to vector<4x16xf32>
    %1770 = vector.shape_cast %1769 : vector<4x16xf32> to vector<1x4x16xf32>
    %1771 = vector.broadcast %1770 : vector<1x4x16xf32> to vector<2x4x16xf32>
    %1772 = arith.mulf %1524, %1771 : vector<2x4x16xf32>
    %cst_247 = arith.constant dense<0.000000e+00> : vector<2x16xf32>
    %1773 = vector.multi_reduction <add>, %1772, %cst_247 [1] : vector<2x4x16xf32> to vector<2x16xf32>
    %1774 = arith.addf %1767, %1773 : vector<2x16xf32>
    %c20_248 = arith.constant 20 : index
    %c0_249 = arith.constant 0 : index
    %c0_250 = arith.constant 0 : index
    %1775 = vector.load %arg6[%c20_248, %c0_249, %c0_250] : memref<24x4x16xf32, #tpu.memory_space<vmem>>, vector<1x4x16xf32>
    %1776 = vector.shape_cast %1775 : vector<1x4x16xf32> to vector<4x16xf32>
    %1777 = vector.shape_cast %1776 : vector<4x16xf32> to vector<1x4x16xf32>
    %1778 = vector.broadcast %1777 : vector<1x4x16xf32> to vector<2x4x16xf32>
    %1779 = arith.mulf %1536, %1778 : vector<2x4x16xf32>
    %cst_251 = arith.constant dense<0.000000e+00> : vector<2x16xf32>
    %1780 = vector.multi_reduction <add>, %1779, %cst_251 [1] : vector<2x4x16xf32> to vector<2x16xf32>
    %1781 = arith.addf %1774, %1780 : vector<2x16xf32>
    %c0_252 = arith.constant 0 : index
    %c0_253 = arith.constant 0 : index
    %c0_254 = arith.constant 0 : index
    %1782 = vector.load %arg8[%c0_252, %c0_253, %c0_254] : memref<4x2x16xf32, #tpu.memory_space<vmem>>, vector<1x2x16xf32>
    %1783 = vector.shape_cast %1782 : vector<1x2x16xf32> to vector<2x16xf32>
    %1784 = vector.shape_cast %1781 : vector<2x16xf32> to vector<1x2x16xf32>
    tpu.vector_store %arg8[%c0_252, %c0_253, %c0_254], %1784 {strides = array<i32>} : memref<4x2x16xf32, #tpu.memory_space<vmem>>, vector<1x2x16xf32>,
    %1785 = arith.addf %1605, %1704 : vector<2x1xf32>
    %c1_255 = arith.constant 1 : index
    %c0_256 = arith.constant 0 : index
    %1786 = vector.load %arg7[%c1_255, %c0_256] : memref<4x16xf32, #tpu.memory_space<vmem>>, vector<1x16xf32>
    %1787 = vector.broadcast %1785 : vector<2x1xf32> to vector<2x16xf32>
    %1788 = vector.broadcast %1786 : vector<1x16xf32> to vector<2x16xf32>
    %1789 = arith.addf %1787, %1788 : vector<2x16xf32>
    %c1_257 = arith.constant 1 : index
    %c0_258 = arith.constant 0 : index
    %c0_259 = arith.constant 0 : index
    %1790 = vector.load %arg6[%c1_257, %c0_258, %c0_259] : memref<24x4x16xf32, #tpu.memory_space<vmem>>, vector<1x4x16xf32>
    %1791 = vector.shape_cast %1790 : vector<1x4x16xf32> to vector<4x16xf32>
    %1792 = vector.shape_cast %1791 : vector<4x16xf32> to vector<1x4x16xf32>
    %1793 = vector.broadcast %1792 : vector<1x4x16xf32> to vector<2x4x16xf32>
    %1794 = arith.mulf %1512, %1793 : vector<2x4x16xf32>
    %cst_260 = arith.constant dense<0.000000e+00> : vector<2x16xf32>
    %1795 = vector.multi_reduction <add>, %1794, %cst_260 [1] : vector<2x4x16xf32> to vector<2x16xf32>
    %1796 = arith.addf %1789, %1795 : vector<2x16xf32>
    %c13_261 = arith.constant 13 : index
    %c0_262 = arith.constant 0 : index
    %c0_263 = arith.constant 0 : index
    %1797 = vector.load %arg6[%c13_261, %c0_262, %c0_263] : memref<24x4x16xf32, #tpu.memory_space<vmem>>, vector<1x4x16xf32>
    %1798 = vector.shape_cast %1797 : vector<1x4x16xf32> to vector<4x16xf32>
    %1799 = vector.shape_cast %1798 : vector<4x16xf32> to vector<1x4x16xf32>
    %1800 = vector.broadcast %1799 : vector<1x4x16xf32> to vector<2x4x16xf32>
    %1801 = arith.mulf %1524, %1800 : vector<2x4x16xf32>
    %cst_264 = arith.constant dense<0.000000e+00> : vector<2x16xf32>
    %1802 = vector.multi_reduction <add>, %1801, %cst_264 [1] : vector<2x4x16xf32> to vector<2x16xf32>
    %1803 = arith.addf %1796, %1802 : vector<2x16xf32>
    %c5_265 = arith.constant 5 : index
    %c0_266 = arith.constant 0 : index
    %c0_267 = arith.constant 0 : index
    %1804 = vector.load %arg6[%c5_265, %c0_266, %c0_267] : memref<24x4x16xf32, #tpu.memory_space<vmem>>, vector<1x4x16xf32>
    %1805 = vector.shape_cast %1804 : vector<1x4x16xf32> to vector<4x16xf32>
    %1806 = vector.shape_cast %1805 : vector<4x16xf32> to vector<1x4x16xf32>
    %1807 = vector.broadcast %1806 : vector<1x4x16xf32> to vector<2x4x16xf32>
    %1808 = arith.mulf %1518, %1807 : vector<2x4x16xf32>
    %cst_268 = arith.constant dense<0.000000e+00> : vector<2x16xf32>
    %1809 = vector.multi_reduction <add>, %1808, %cst_268 [1] : vector<2x4x16xf32> to vector<2x16xf32>
    %1810 = arith.addf %1803, %1809 : vector<2x16xf32>
    %c17_269 = arith.constant 17 : index
    %c0_270 = arith.constant 0 : index
    %c0_271 = arith.constant 0 : index
    %1811 = vector.load %arg6[%c17_269, %c0_270, %c0_271] : memref<24x4x16xf32, #tpu.memory_space<vmem>>, vector<1x4x16xf32>
    %1812 = vector.shape_cast %1811 : vector<1x4x16xf32> to vector<4x16xf32>
    %1813 = vector.shape_cast %1812 : vector<4x16xf32> to vector<1x4x16xf32>
    %1814 = vector.broadcast %1813 : vector<1x4x16xf32> to vector<2x4x16xf32>
    %1815 = arith.mulf %1530, %1814 : vector<2x4x16xf32>
    %cst_272 = arith.constant dense<0.000000e+00> : vector<2x16xf32>
    %1816 = vector.multi_reduction <add>, %1815, %cst_272 [1] : vector<2x4x16xf32> to vector<2x16xf32>
    %1817 = arith.addf %1810, %1816 : vector<2x16xf32>
    %c9_273 = arith.constant 9 : index
    %c0_274 = arith.constant 0 : index
    %c0_275 = arith.constant 0 : index
    %1818 = vector.load %arg6[%c9_273, %c0_274, %c0_275] : memref<24x4x16xf32, #tpu.memory_space<vmem>>, vector<1x4x16xf32>
    %1819 = vector.shape_cast %1818 : vector<1x4x16xf32> to vector<4x16xf32>
    %1820 = vector.shape_cast %1819 : vector<4x16xf32> to vector<1x4x16xf32>
    %1821 = vector.broadcast %1820 : vector<1x4x16xf32> to vector<2x4x16xf32>
    %1822 = arith.mulf %1524, %1821 : vector<2x4x16xf32>
    %cst_276 = arith.constant dense<0.000000e+00> : vector<2x16xf32>
    %1823 = vector.multi_reduction <add>, %1822, %cst_276 [1] : vector<2x4x16xf32> to vector<2x16xf32>
    %1824 = arith.addf %1817, %1823 : vector<2x16xf32>
    %c21_277 = arith.constant 21 : index
    %c0_278 = arith.constant 0 : index
    %c0_279 = arith.constant 0 : index
    %1825 = vector.load %arg6[%c21_277, %c0_278, %c0_279] : memref<24x4x16xf32, #tpu.memory_space<vmem>>, vector<1x4x16xf32>
    %1826 = vector.shape_cast %1825 : vector<1x4x16xf32> to vector<4x16xf32>
    %1827 = vector.shape_cast %1826 : vector<4x16xf32> to vector<1x4x16xf32>
    %1828 = vector.broadcast %1827 : vector<1x4x16xf32> to vector<2x4x16xf32>
    %1829 = arith.mulf %1536, %1828 : vector<2x4x16xf32>
    %cst_280 = arith.constant dense<0.000000e+00> : vector<2x16xf32>
    %1830 = vector.multi_reduction <add>, %1829, %cst_280 [1] : vector<2x4x16xf32> to vector<2x16xf32>
    %1831 = arith.addf %1824, %1830 : vector<2x16xf32>
    %c1_281 = arith.constant 1 : index
    %c0_282 = arith.constant 0 : index
    %c0_283 = arith.constant 0 : index
    %1832 = vector.load %arg8[%c1_281, %c0_282, %c0_283] : memref<4x2x16xf32, #tpu.memory_space<vmem>>, vector<1x2x16xf32>
    %1833 = vector.shape_cast %1832 : vector<1x2x16xf32> to vector<2x16xf32>
    %1834 = vector.shape_cast %1831 : vector<2x16xf32> to vector<1x2x16xf32>
    tpu.vector_store %arg8[%c1_281, %c0_282, %c0_283], %1834 {strides = array<i32>} : memref<4x2x16xf32, #tpu.memory_space<vmem>>, vector<1x2x16xf32>,
    %1835 = arith.addf %1620, %1719 : vector<2x1xf32>
    %c2_284 = arith.constant 2 : index
    %c0_285 = arith.constant 0 : index
    %1836 = vector.load %arg7[%c2_284, %c0_285] : memref<4x16xf32, #tpu.memory_space<vmem>>, vector<1x16xf32>
    %1837 = vector.broadcast %1835 : vector<2x1xf32> to vector<2x16xf32>
    %1838 = vector.broadcast %1836 : vector<1x16xf32> to vector<2x16xf32>
    %1839 = arith.addf %1837, %1838 : vector<2x16xf32>
    %c2_286 = arith.constant 2 : index
    %c0_287 = arith.constant 0 : index
    %c0_288 = arith.constant 0 : index
    %1840 = vector.load %arg6[%c2_286, %c0_287, %c0_288] : memref<24x4x16xf32, #tpu.memory_space<vmem>>, vector<1x4x16xf32>
    %1841 = vector.shape_cast %1840 : vector<1x4x16xf32> to vector<4x16xf32>
    %1842 = vector.shape_cast %1841 : vector<4x16xf32> to vector<1x4x16xf32>
    %1843 = vector.broadcast %1842 : vector<1x4x16xf32> to vector<2x4x16xf32>
    %1844 = arith.mulf %1512, %1843 : vector<2x4x16xf32>
    %cst_289 = arith.constant dense<0.000000e+00> : vector<2x16xf32>
    %1845 = vector.multi_reduction <add>, %1844, %cst_289 [1] : vector<2x4x16xf32> to vector<2x16xf32>
    %1846 = arith.addf %1839, %1845 : vector<2x16xf32>
    %c14_290 = arith.constant 14 : index
    %c0_291 = arith.constant 0 : index
    %c0_292 = arith.constant 0 : index
    %1847 = vector.load %arg6[%c14_290, %c0_291, %c0_292] : memref<24x4x16xf32, #tpu.memory_space<vmem>>, vector<1x4x16xf32>
    %1848 = vector.shape_cast %1847 : vector<1x4x16xf32> to vector<4x16xf32>
    %1849 = vector.shape_cast %1848 : vector<4x16xf32> to vector<1x4x16xf32>
    %1850 = vector.broadcast %1849 : vector<1x4x16xf32> to vector<2x4x16xf32>
    %1851 = arith.mulf %1524, %1850 : vector<2x4x16xf32>
    %cst_293 = arith.constant dense<0.000000e+00> : vector<2x16xf32>
    %1852 = vector.multi_reduction <add>, %1851, %cst_293 [1] : vector<2x4x16xf32> to vector<2x16xf32>
    %1853 = arith.addf %1846, %1852 : vector<2x16xf32>
    %c6_294 = arith.constant 6 : index
    %c0_295 = arith.constant 0 : index
    %c0_296 = arith.constant 0 : index
    %1854 = vector.load %arg6[%c6_294, %c0_295, %c0_296] : memref<24x4x16xf32, #tpu.memory_space<vmem>>, vector<1x4x16xf32>
    %1855 = vector.shape_cast %1854 : vector<1x4x16xf32> to vector<4x16xf32>
    %1856 = vector.shape_cast %1855 : vector<4x16xf32> to vector<1x4x16xf32>
    %1857 = vector.broadcast %1856 : vector<1x4x16xf32> to vector<2x4x16xf32>
    %1858 = arith.mulf %1518, %1857 : vector<2x4x16xf32>
    %cst_297 = arith.constant dense<0.000000e+00> : vector<2x16xf32>
    %1859 = vector.multi_reduction <add>, %1858, %cst_297 [1] : vector<2x4x16xf32> to vector<2x16xf32>
    %1860 = arith.addf %1853, %1859 : vector<2x16xf32>
    %c18_298 = arith.constant 18 : index
    %c0_299 = arith.constant 0 : index
    %c0_300 = arith.constant 0 : index
    %1861 = vector.load %arg6[%c18_298, %c0_299, %c0_300] : memref<24x4x16xf32, #tpu.memory_space<vmem>>, vector<1x4x16xf32>
    %1862 = vector.shape_cast %1861 : vector<1x4x16xf32> to vector<4x16xf32>
    %1863 = vector.shape_cast %1862 : vector<4x16xf32> to vector<1x4x16xf32>
    %1864 = vector.broadcast %1863 : vector<1x4x16xf32> to vector<2x4x16xf32>
    %1865 = arith.mulf %1530, %1864 : vector<2x4x16xf32>
    %cst_301 = arith.constant dense<0.000000e+00> : vector<2x16xf32>
    %1866 = vector.multi_reduction <add>, %1865, %cst_301 [1] : vector<2x4x16xf32> to vector<2x16xf32>
    %1867 = arith.addf %1860, %1866 : vector<2x16xf32>
    %c10_302 = arith.constant 10 : index
    %c0_303 = arith.constant 0 : index
    %c0_304 = arith.constant 0 : index
    %1868 = vector.load %arg6[%c10_302, %c0_303, %c0_304] : memref<24x4x16xf32, #tpu.memory_space<vmem>>, vector<1x4x16xf32>
    %1869 = vector.shape_cast %1868 : vector<1x4x16xf32> to vector<4x16xf32>
    %1870 = vector.shape_cast %1869 : vector<4x16xf32> to vector<1x4x16xf32>
    %1871 = vector.broadcast %1870 : vector<1x4x16xf32> to vector<2x4x16xf32>
    %1872 = arith.mulf %1524, %1871 : vector<2x4x16xf32>
    %cst_305 = arith.constant dense<0.000000e+00> : vector<2x16xf32>
    %1873 = vector.multi_reduction <add>, %1872, %cst_305 [1] : vector<2x4x16xf32> to vector<2x16xf32>
    %1874 = arith.addf %1867, %1873 : vector<2x16xf32>
    %c22_306 = arith.constant 22 : index
    %c0_307 = arith.constant 0 : index
    %c0_308 = arith.constant 0 : index
    %1875 = vector.load %arg6[%c22_306, %c0_307, %c0_308] : memref<24x4x16xf32, #tpu.memory_space<vmem>>, vector<1x4x16xf32>
    %1876 = vector.shape_cast %1875 : vector<1x4x16xf32> to vector<4x16xf32>
    %1877 = vector.shape_cast %1876 : vector<4x16xf32> to vector<1x4x16xf32>
    %1878 = vector.broadcast %1877 : vector<1x4x16xf32> to vector<2x4x16xf32>
    %1879 = arith.mulf %1536, %1878 : vector<2x4x16xf32>
    %cst_309 = arith.constant dense<0.000000e+00> : vector<2x16xf32>
    %1880 = vector.multi_reduction <add>, %1879, %cst_309 [1] : vector<2x4x16xf32> to vector<2x16xf32>
    %1881 = arith.addf %1874, %1880 : vector<2x16xf32>
    %c2_310 = arith.constant 2 : index
    %c0_311 = arith.constant 0 : index
    %c0_312 = arith.constant 0 : index
    %1882 = vector.load %arg8[%c2_310, %c0_311, %c0_312] : memref<4x2x16xf32, #tpu.memory_space<vmem>>, vector<1x2x16xf32>
    %1883 = vector.shape_cast %1882 : vector<1x2x16xf32> to vector<2x16xf32>
    %1884 = vector.shape_cast %1881 : vector<2x16xf32> to vector<1x2x16xf32>
    tpu.vector_store %arg8[%c2_310, %c0_311, %c0_312], %1884 {strides = array<i32>} : memref<4x2x16xf32, #tpu.memory_space<vmem>>, vector<1x2x16xf32>,
    %1885 = arith.addf %1635, %1734 : vector<2x1xf32>
    %c3_313 = arith.constant 3 : index
    %c0_314 = arith.constant 0 : index
    %1886 = vector.load %arg7[%c3_313, %c0_314] : memref<4x16xf32, #tpu.memory_space<vmem>>, vector<1x16xf32>
    %1887 = vector.broadcast %1885 : vector<2x1xf32> to vector<2x16xf32>
    %1888 = vector.broadcast %1886 : vector<1x16xf32> to vector<2x16xf32>
    %1889 = arith.addf %1887, %1888 : vector<2x16xf32>
    %c3_315 = arith.constant 3 : index
    %c0_316 = arith.constant 0 : index
    %c0_317 = arith.constant 0 : index
    %1890 = vector.load %arg6[%c3_315, %c0_316, %c0_317] : memref<24x4x16xf32, #tpu.memory_space<vmem>>, vector<1x4x16xf32>
    %1891 = vector.shape_cast %1890 : vector<1x4x16xf32> to vector<4x16xf32>
    %1892 = vector.shape_cast %1891 : vector<4x16xf32> to vector<1x4x16xf32>
    %1893 = vector.broadcast %1892 : vector<1x4x16xf32> to vector<2x4x16xf32>
    %1894 = arith.mulf %1512, %1893 : vector<2x4x16xf32>
    %cst_318 = arith.constant dense<0.000000e+00> : vector<2x16xf32>
    %1895 = vector.multi_reduction <add>, %1894, %cst_318 [1] : vector<2x4x16xf32> to vector<2x16xf32>
    %1896 = arith.addf %1889, %1895 : vector<2x16xf32>
    %c15_319 = arith.constant 15 : index
    %c0_320 = arith.constant 0 : index
    %c0_321 = arith.constant 0 : index
    %1897 = vector.load %arg6[%c15_319, %c0_320, %c0_321] : memref<24x4x16xf32, #tpu.memory_space<vmem>>, vector<1x4x16xf32>
    %1898 = vector.shape_cast %1897 : vector<1x4x16xf32> to vector<4x16xf32>
    %1899 = vector.shape_cast %1898 : vector<4x16xf32> to vector<1x4x16xf32>
    %1900 = vector.broadcast %1899 : vector<1x4x16xf32> to vector<2x4x16xf32>
    %1901 = arith.mulf %1524, %1900 : vector<2x4x16xf32>
    %cst_322 = arith.constant dense<0.000000e+00> : vector<2x16xf32>
    %1902 = vector.multi_reduction <add>, %1901, %cst_322 [1] : vector<2x4x16xf32> to vector<2x16xf32>
    %1903 = arith.addf %1896, %1902 : vector<2x16xf32>
    %c7_323 = arith.constant 7 : index
    %c0_324 = arith.constant 0 : index
    %c0_325 = arith.constant 0 : index
    %1904 = vector.load %arg6[%c7_323, %c0_324, %c0_325] : memref<24x4x16xf32, #tpu.memory_space<vmem>>, vector<1x4x16xf32>
    %1905 = vector.shape_cast %1904 : vector<1x4x16xf32> to vector<4x16xf32>
    %1906 = vector.shape_cast %1905 : vector<4x16xf32> to vector<1x4x16xf32>
    %1907 = vector.broadcast %1906 : vector<1x4x16xf32> to vector<2x4x16xf32>
    %1908 = arith.mulf %1518, %1907 : vector<2x4x16xf32>
    %cst_326 = arith.constant dense<0.000000e+00> : vector<2x16xf32>
    %1909 = vector.multi_reduction <add>, %1908, %cst_326 [1] : vector<2x4x16xf32> to vector<2x16xf32>
    %1910 = arith.addf %1903, %1909 : vector<2x16xf32>
    %c19_327 = arith.constant 19 : index
    %c0_328 = arith.constant 0 : index
    %c0_329 = arith.constant 0 : index
    %1911 = vector.load %arg6[%c19_327, %c0_328, %c0_329] : memref<24x4x16xf32, #tpu.memory_space<vmem>>, vector<1x4x16xf32>
    %1912 = vector.shape_cast %1911 : vector<1x4x16xf32> to vector<4x16xf32>
    %1913 = vector.shape_cast %1912 : vector<4x16xf32> to vector<1x4x16xf32>
    %1914 = vector.broadcast %1913 : vector<1x4x16xf32> to vector<2x4x16xf32>
    %1915 = arith.mulf %1530, %1914 : vector<2x4x16xf32>
    %cst_330 = arith.constant dense<0.000000e+00> : vector<2x16xf32>
    %1916 = vector.multi_reduction <add>, %1915, %cst_330 [1] : vector<2x4x16xf32> to vector<2x16xf32>
    %1917 = arith.addf %1910, %1916 : vector<2x16xf32>
    %c11_331 = arith.constant 11 : index
    %c0_332 = arith.constant 0 : index
    %c0_333 = arith.constant 0 : index
    %1918 = vector.load %arg6[%c11_331, %c0_332, %c0_333] : memref<24x4x16xf32, #tpu.memory_space<vmem>>, vector<1x4x16xf32>
    %1919 = vector.shape_cast %1918 : vector<1x4x16xf32> to vector<4x16xf32>
    %1920 = vector.shape_cast %1919 : vector<4x16xf32> to vector<1x4x16xf32>
    %1921 = vector.broadcast %1920 : vector<1x4x16xf32> to vector<2x4x16xf32>
    %1922 = arith.mulf %1524, %1921 : vector<2x4x16xf32>
    %cst_334 = arith.constant dense<0.000000e+00> : vector<2x16xf32>
    %1923 = vector.multi_reduction <add>, %1922, %cst_334 [1] : vector<2x4x16xf32> to vector<2x16xf32>
    %1924 = arith.addf %1917, %1923 : vector<2x16xf32>
    %c23_335 = arith.constant 23 : index
    %c0_336 = arith.constant 0 : index
    %c0_337 = arith.constant 0 : index
    %1925 = vector.load %arg6[%c23_335, %c0_336, %c0_337] : memref<24x4x16xf32, #tpu.memory_space<vmem>>, vector<1x4x16xf32>
    %1926 = vector.shape_cast %1925 : vector<1x4x16xf32> to vector<4x16xf32>
    %1927 = vector.shape_cast %1926 : vector<4x16xf32> to vector<1x4x16xf32>
    %1928 = vector.broadcast %1927 : vector<1x4x16xf32> to vector<2x4x16xf32>
    %1929 = arith.mulf %1536, %1928 : vector<2x4x16xf32>
    %cst_338 = arith.constant dense<0.000000e+00> : vector<2x16xf32>
    %1930 = vector.multi_reduction <add>, %1929, %cst_338 [1] : vector<2x4x16xf32> to vector<2x16xf32>
    %1931 = arith.addf %1924, %1930 : vector<2x16xf32>
    %c3_339 = arith.constant 3 : index
    %c0_340 = arith.constant 0 : index
    %c0_341 = arith.constant 0 : index
    %1932 = vector.load %arg8[%c3_339, %c0_340, %c0_341] : memref<4x2x16xf32, #tpu.memory_space<vmem>>, vector<1x2x16xf32>
    %1933 = vector.shape_cast %1932 : vector<1x2x16xf32> to vector<2x16xf32>
    %1934 = vector.shape_cast %1931 : vector<2x16xf32> to vector<1x2x16xf32>
    tpu.vector_store %arg8[%c3_339, %c0_340, %c0_341], %1934 {strides = array<i32>} : memref<4x2x16xf32, #tpu.memory_space<vmem>>, vector<1x2x16xf32>,
    return
  }
  func.func @transform_0(%arg0: i32) -> i32 {
    %c0_i32 = arith.constant 0 : i32
    %c0_i32_0 = arith.constant 0 : i32
    return %c0_i32 : i32
  }
  func.func @transform_1(%arg0: i32) -> (i32, i32, i32) {
    %c0_i32 = arith.constant 0 : i32
    %c0_i32_0 = arith.constant 0 : i32
    %c0_i32_1 = arith.constant 0 : i32
    return %arg0, %c0_i32, %c0_i32_0 : i32, i32, i32
  }
  func.func @transform_2(%arg0: i32) -> (i32, i32, i32) {
    %c0_i32 = arith.constant 0 : i32
    %c0_i32_0 = arith.constant 0 : i32
    %c0_i32_1 = arith.constant 0 : i32
    return %arg0, %c0_i32, %c0_i32_0 : i32, i32, i32
  }
  func.func @transform_3(%arg0: i32) -> (i32, i32) {
    %c0_i32 = arith.constant 0 : i32
    %c0_i32_0 = arith.constant 0 : i32
    return %arg0, %c0_i32 : i32, i32
  }
  func.func @transform_4(%arg0: i32) -> (i32, i32) {
    %c0_i32 = arith.constant 0 : i32
    %c0_i32_0 = arith.constant 0 : i32
    return %arg0, %c0_i32 : i32, i32
  }
  func.func @transform_5(%arg0: i32) -> (i32, i32, i32) {
    %c0_i32 = arith.constant 0 : i32
    %c0_i32_0 = arith.constant 0 : i32
    %c0_i32_1 = arith.constant 0 : i32
    %c0_i32_2 = arith.constant 0 : i32
    return %c0_i32, %c0_i32_0, %c0_i32_1 : i32, i32, i32
  }
  func.func @transform_6(%arg0: i32) -> (i32, i32) {
    %c0_i32 = arith.constant 0 : i32
    %c0_i32_0 = arith.constant 0 : i32
    %c0_i32_1 = arith.constant 0 : i32
    return %c0_i32, %c0_i32_0 : i32, i32
  }
  func.func @transform_7(%arg0: i32) -> (i32, i32, i32) {
    %c0_i32 = arith.constant 0 : i32
    %c0_i32_0 = arith.constant 0 : i32
    %c0_i32_1 = arith.constant 0 : i32
    return %c0_i32, %arg0, %c0_i32_0 : i32, i32, i32
  }
}

</mosaic_0001>

<bundles_post_ra>
// kernel: dcnn_forward.1
= control target key start
LH: loop header
LB: loop body
LE: loop exit
PB: predicated region body
PF: predicated region fallthrough
CT: control target
= control target key end

     0   :  { %s8738_s0 = inlined_call_operand.vmem [shape: f32[249], index: 0, kind: input, shape index: {}]   ;;  %s8739_s1 = inlined_call_operand.vmem [shape: f32[2,4,16], index: 1, kind: input, shape index: {}]   ;;  %s8740_s2 = inlined_call_operand.vmem [shape: f32[2,8,16], index: 2, kind: input, shape index: {}]   ;;  %s8741_s3 = inlined_call_operand.vmem [shape: f32[2,16], index: 3, kind: input, shape index: {}]   ;;  %s8742_s4 = inlined_call_operand.vmem [shape: f32[2,16], index: 4, kind: input, shape index: {}]   ;;  %s8743_s5 = inlined_call_operand.vmem [shape: f32[24,4,16], index: 5, kind: input, shape index: {}]   ;;  %s8744_s6 = inlined_call_operand.vmem [shape: f32[4,16], index: 6, kind: input, shape index: {}]   ;;  %s8745_s7 = inlined_call_operand.vmem [shape: f32[4,2,16], index: 7, kind: output, shape index: {}]  }
   0x1   :  { %8961 = sst [smem:[#allocation169_spill]] %s8739_s1 }
   0x2   :  { %8962 = sst [smem:[#allocation170_spill]] %s8740_s2 }
   0x3   :  { %8963 = sst [smem:[#allocation171_spill]] %s8742_s4 }
   0x4   :  { %8964 = sst [smem:[#allocation172_spill]] %s8743_s5 }
   0x5   :  { %8965 = sst [smem:[#allocation173_spill]] %s8744_s6 }
   0x6   :  { %8966 = sst [smem:[#allocation174_spill]] %s8745_s7 }
   0x7   :  { %12 = vsyncpa [#allocation3], 0  ;;  %s19_s26 = sshll.u32 %s8738_s0, 4  ;;  %s20_s26 = int_to_ptr.vmem [resolvable:$true] %s19_s26 }
   0x8   :  { %s5351_s27 = scalar_lea.vmem %s20_s26, 32  ;;  %p5356_p1 = scmp.lt.s32.totalorder %s20_s26, %s20_s26 }
   0x9   :  { %p5352_p0 = scmp.ne.s32.totalorder %s20_s26, %s5351_s27  ;;  %p5357_p2 = scmp.lt.s32.totalorder %s5351_s27, %s5351_s27 }
   0xb   :  { %p5358_p3 = por %p5357_p2, %p5356_p1 }
   0xd   :  { %p5359_p4 = pnand %p5358_p3, %p5352_p0 }
   0xf   :  { %5362 = shalt.err (!%p5359_p4)
}
  0x10   :  { %s5365_s28 = smov [#allocation2]  }
  0x11   :  { %22 = dma.vmem_to_smem %s20_s26, 32, %s5365_s28, [#allocation3]  }
  0x12   :  { %5363 = dma.done.wait [#allocation3], 32  }
  0x13   :  { %5364 = vsyncadd [#allocation3], 4294967264 }
  0x14   :  { %38 = sfence }
  0x15   :  { %s5413_s29 = sld [smem:[#allocation2]]  ;;  %s4496_s30 = sld [smem:[#allocation2 + $0x1]]  ;;  %v5440_v0 = vld [vmem:[%s8739_s1 + $0x4] sm:$0x1]  ;;  %v5454_v3 = vld [vmem:[%s8739_s1] sm:$0x1] }
  0x16   :  { %s5415_s8 = sld [smem:[#allocation2 + $0x2]]  ;;  %s5417_s0 = sld [smem:[#allocation2 + $0x3]]  ;;  %8969 = vst [vmem:[#allocation7_spill] sm:$0xff] %v5440_v0  ;;  %8970 = vst [vmem:[#allocation8_spill] sm:$0xff] %v5454_v3  ;;  %v5526_v25 = vld [vmem:[%s8739_s1 + $0x5] sm:$0x1] }
  0x17   :  { %s5419_s9 = sld [smem:[#allocation2 + $0x4]]  ;;  %s5421_s10 = sld [smem:[#allocation2 + $0x5]]  ;;  %8972 = vst [vmem:[#allocation10_spill] sm:$0xff] %v5526_v25  ;;  %v5551_v34 = vld [vmem:[%s8739_s1 + $0x1] sm:$0x1]  ;;  %vm1880_vm0 = vcmask 1040384  }
  0x18   :  { %s5423_s11 = sld [smem:[#allocation2 + $0x6]]  ;;  %s5425_s12 = sld [smem:[#allocation2 + $0x7]]  ;;  %8974 = vst [vmem:[#allocation12_spill] sm:$0xff] %v5551_v34  ;;  %v5626_v59 = vld [vmem:[%s8739_s1 + $0x6] sm:$0x1]  ;;  %vm1883_vm1 = vcmask 1041408  }
  0x19   :  { %s5427_s13 = sld [smem:[#allocation2 + $0x8]]  ;;  %s5429_s14 = sld [smem:[#allocation2 + $0x9]]  ;;  %vm1886_vm2 = vcmask 1042432   ;;  %vm1889_vm3 = vcmask 1043456   ;;  %vm1892_vm4 = vcmask 1044480   ;;  %vm1895_vm5 = vcmask 1045504  }
  0x1a   :  { %s5431_s15 = sld [smem:[#allocation2 + $0xa]]  ;;  %s5433_s16 = sld [smem:[#allocation2 + $0xb]]  ;;  %vm1898_vm6 = vcmask 1046528   ;;  %vm1965_vm7 = vcmask 64512   ;;  %vm5367_vm9 = vmmov 0   ;;  %vm2845_vm10 = vcmask 125952  }
  0x1b   :  { %8967 = sst [smem:[#allocation5_spill]] %s5413_s29  ;;  %v8746_v1 = vstv %s5413_s29  ;;  %s5443_s20 = sld [smem:[#allocation2 + $0xc]]  ;;  %v329_v2 = vstv %s4496_s30  ;;  %vm4901_vm8 = vmpackc.low %vm1965_vm7, %vm1965_vm7  ;;  %vm2134_vm11 = vcmask 130048  }
  0x1c   :  { %s5435_s17 = sld [smem:[#allocation2 + $0x10]]  ;;  %s5445_s21 = sld [smem:[#allocation2 + $0x11]]  ;;  %v362_v4 = vstv %s5415_s8  ;;  %v395_v5 = vstv %s5417_s0  ;;  %v5463_v6 = vmul.f32 %v8746_v1, %v5440_v0  ;;  %v5466_v7 = vmul.f32 %v329_v2, %v5454_v3  ;;  %vm7765_vm12 = vmpackc.low %vm2134_vm11, %vm2134_vm11 }
  0x1d   :  { %s5447_s22 = sld [smem:[#allocation2 + $0x12]]  ;;  %s5449_s23 = sld [smem:[#allocation2 + $0x13]]  ;;  %v428_v8 = vstv %s5419_s9  ;;  %v5474_v9 = vmul.f32 %v329_v2, %v5440_v0  ;;  %v5477_v10 = vmul.f32 %v362_v4, %v5454_v3  ;;  %v461_v11 = vstv %s5421_s10 }
  0x1e   :  { %s5458_s26 = sld [smem:[#allocation2 + $0x14]]  ;;  %s5469_s27 = sld [smem:[#allocation2 + $0x15]]  ;;  %v494_v12 = vstv %s5423_s11  ;;  %v5484_v13 = vmul.f32 %v362_v4, %v5440_v0  ;;  %v5487_v14 = vmul.f32 %v395_v5, %v5454_v3  ;;  %v5490_v15 = vmul.f32 %v395_v5, %v5440_v0 }
  0x1f   :  { %s5471_s28 = sld [smem:[#allocation2 + $0x16]]  ;;  %s5481_s30 = sld [smem:[#allocation2 + $0x17]]  ;;  %v527_v16 = vstv %s5425_s12  ;;  %v5496_v17 = vmul.f32 %v428_v8, %v5454_v3  ;;  %v5499_v18 = vmul.f32 %v428_v8, %v5440_v0  ;;  %v5502_v19 = vmul.f32 %v461_v11, %v5454_v3 }
  0x20   :  { %s5493_s8 = sld [smem:[#allocation2 + $0x18]]  ;;  %v560_v20 = vstv %s5427_s13  ;;  %s5505_s0 = sld [smem:[#allocation2 + $0x19]]  ;;  %v5508_v21 = vmul.f32 %v461_v11, %v5440_v0  ;;  %v5511_v22 = vmul.f32 %v494_v12, %v5454_v3  ;;  %v5514_v23 = vmul.f32 %v494_v12, %v5440_v0  ;;  %v5655_v11 = vld [vmem:[%s8739_s1 + $0x2] sm:$0x1] }
  0x21   :  { %v5517_v24 = vmul.f32 %v527_v16, %v5454_v3  ;;  %s5519_s9 = sld [smem:[#allocation2 + $0x20]]  ;;  %s5521_s10 = sld [smem:[#allocation2 + $0x21]]  ;;  %v5530_v27 = vmul.f32 %v527_v16, %v5440_v0  ;;  %v5533_v28 = vmul.f32 %v560_v20, %v5454_v3  ;;  %v593_v29 = vstv %s5429_s14 }
  0x22   :  { %8968 = sst [smem:[#allocation6_spill]] %s5435_s17  ;;  %v8748_v26 = vstv %s5435_s17  ;;  %s5536_s13 = sld [smem:[#allocation2 + $0x22]]  ;;  %v335_v30 = vstv %s5445_s21  ;;  %v5540_v31 = vmul.f32 %v560_v20, %v5440_v0  ;;  %v626_v32 = vstv %s5431_s15 }
  0x23   :  { %s5544_s18 = sld [smem:[#allocation2 + $0x23]]  ;;  %s5546_s19 = sld [smem:[#allocation2 + $0x24]]  ;;  %v368_v35 = vstv %s5447_s22  ;;  %v401_v36 = vstv %s5449_s23  ;;  %v5556_v37 = vmul.f32 %v593_v29, %v5454_v3  ;;  %v5562_v39 = vmul.f32 %v8748_v26, %v5526_v25 }
  0x24   :  { %8973 = vst [vmem:[#allocation11_spill] sm:$0xff] %v5540_v31  ;;  %v5565_v40 = vmul.f32 %v335_v30, %v5551_v34  ;;  %v434_v41 = vstv %s5458_s26  ;;  %v5569_v42 = vmul.f32 %v593_v29, %v5440_v0  ;;  %s5571_s14 = sld [smem:[#allocation2 + $0x25]]  ;;  %v5574_v43 = vmul.f32 %v335_v30, %v5526_v25  ;;  %s5581_s15 = sld [smem:[#allocation2 + $0x31]] }
  0x25   :  { %v5577_v44 = vmul.f32 %v368_v35, %v5551_v34  ;;  %v467_v45 = vstv %s5469_s27  ;;  %v500_v46 = vstv %s5471_s28  ;;  %v5584_v47 = vmul.f32 %v368_v35, %v5526_v25  ;;  %s5593_s21 = sld [smem:[#allocation2 + $0x30]]  ;;  %s5605_s22 = sld [smem:[#allocation2 + $0x32]] }
  0x26   :  { %8975 = vst [vmem:[#allocation13_spill] sm:$0xff] %v5569_v42  ;;  %v5587_v48 = vmul.f32 %v401_v36, %v5551_v34  ;;  %v5590_v49 = vmul.f32 %v401_v36, %v5526_v25  ;;  %v533_v50 = vstv %s5481_s30  ;;  %v5596_v51 = vmul.f32 %v434_v41, %v5551_v34  ;;  %s5607_s23 = sld [smem:[#allocation2 + $0x33]]  ;;  %s5619_s26 = sld [smem:[#allocation2 + $0x40]] }
  0x27   :  { %8971 = sst [smem:[#allocation9_spill]] %s5519_s9  ;;  %v5599_v52 = vmul.f32 %v434_v41, %v5526_v25  ;;  %v5602_v53 = vmul.f32 %v467_v45, %v5551_v34  ;;  %v566_v54 = vstv %s5493_s8  ;;  %v5610_v55 = vmul.f32 %v467_v45, %v5526_v25  ;;  %s5621_s27 = sld [smem:[#allocation2 + $0x41]] }
  0x28   :  { %v5613_v56 = vmul.f32 %v500_v46, %v5551_v34  ;;  %v5616_v57 = vmul.f32 %v500_v46, %v5526_v25  ;;  %v599_v58 = vstv %s5505_s0  ;;  %v8747_v60 = vstv %s5519_s9  ;;  %s5636_s8 = sld [smem:[#allocation2 + $0x42]]  ;;  %s5638_s0 = sld [smem:[#allocation2 + $0x43]] }
  0x29   :  { %v340_v61 = vstv %s5521_s10  ;;  %v5631_v62 = vmul.f32 %v533_v50, %v5551_v34  ;;  %v5634_v63 = vmul.f32 %v533_v50, %v5526_v25  ;;  %v373_v2 = vstv %s5536_s13  ;;  %s5650_s10 = sld [smem:[#allocation2 + $0x44]]  ;;  %s5698_s24 = sld [smem:[#allocation2 + $0x26]] }
  0x2a   :  { %v5642_v4 = vmul.f32 %v566_v54, %v5551_v34  ;;  %v5645_v5 = vmul.f32 %v566_v54, %v5526_v25  ;;  %v5648_v8 = vmul.f32 %v599_v58, %v5551_v34  ;;  %v406_v12 = vstv %s5544_s18  ;;  %s5679_s13 = sld [smem:[#allocation2 + $0x34]]  ;;  %s5706_s25 = sld [smem:[#allocation2 + $0x27]] }
  0x2b   :  { %8976 = sst [smem:[#allocation14_spill]] %s5593_s21  ;;  %8978 = vst [vmem:[#allocation16_spill] sm:$0xff] %v5634_v63  ;;  %v439_v16 = vstv %s5546_s19  ;;  %v5660_v20 = vmul.f32 %v599_v58, %v5526_v25  ;;  %v5663_v29 = vmul.f32 %v626_v32, %v5454_v3  ;;  %v309_v30 = vmul.f32 %v8747_v60, %v5626_v59  ;;  %v5684_v58 = vld [vmem:[%s8739_s1 + $0x3] sm:$0x1]  ;;  %s5782_s11 = sld [smem:[#allocation2 + $0x38]] }
  0x2c   :  { %8977 = sst [smem:[#allocation15_spill]] %s5619_s26  ;;  %8979 = vst [vmem:[#allocation17_spill] sm:$0xff] %v5645_v5  ;;  %8980 = vst [vmem:[#allocation18_spill] sm:$0xff] %v5648_v8  ;;  %v341_v35 = vmul.f32 %v340_v61, %v5655_v11  ;;  %v342_v36 = vmul.f32 %v340_v61, %v5626_v59  ;;  %v5671_v41 = vmul.f32 %v626_v32, %v5440_v0  ;;  %v472_v54 = vstv %s5571_s14  ;;  %s5708_s14 = sld [smem:[#allocation2 + $0x28]] }
  0x2d   :  { %8981 = vst [vmem:[#allocation19_spill] sm:$0xff] %v5660_v20  ;;  %8982 = vst [vmem:[#allocation20_spill] sm:$0xff] %v5663_v29  ;;  %v374_v45 = vmul.f32 %v373_v2, %v5655_v11  ;;  %v5675_v46 = vmul.f32 %v373_v2, %v5626_v59  ;;  %v407_v50 = vmul.f32 %v406_v12, %v5655_v11  ;;  %v345_v61 = vstv %s5581_s15  ;;  %s5714_s15 = sld [smem:[#allocation2 + $0x35]]  ;;  %s5790_s12 = sld [smem:[#allocation2 + $0x48]] }
  0x2e   :  { %8983 = vst [vmem:[#allocation21_spill] sm:$0xff] %v5671_v41  ;;  %v5688_v32 = vmul.f32 %v406_v12, %v5626_v59  ;;  %v440_v2 = vmul.f32 %v439_v16, %v5655_v11  ;;  %v5692_v1 = vmul.f32 %v439_v16, %v5626_v59  ;;  %v8753_v60 = vstv %s5619_s26  ;;  %s5814_s18 = sld [smem:[#allocation2 + $0x39]]  ;;  %s5826_s19 = sld [smem:[#allocation2 + $0x1a]] }
  0x2f   :  { %v332_v38 = vstv %s5621_s27  ;;  %v346_v33 = vmul.f32 %v345_v61, %v5684_v58  ;;  %v301_v0 = vadd.f32 %v8753_v60, %v5463_v6  ;;  %v365_v20 = vstv %s5636_s8  ;;  %s5716_s27 = sld [smem:[#allocation2 + $0x45]]  ;;  %v5721_v6 = vld [vmem:[%s8739_s1 + $0x7] sm:$0x1]  ;;  %s5746_s8 = sld [smem:[#allocation2 + $0x36]] }
  0x30   :  { %v333_v12 = vadd.f32 %v332_v38, %v5466_v7  ;;  %v334_v41 = vadd.f32 %v332_v38, %v5474_v9  ;;  %v366_v16 = vadd.f32 %v365_v20, %v5477_v10  ;;  %v378_v26 = vstv %s5605_s22  ;;  %s5727_s22 = sld [smem:[#allocation2 + $0x46]]  ;;  %s5911_s28 = sld [smem:[#allocation2 + $0x2b]] }
  0x31   :  { %v398_v3 = vstv %s5638_s0  ;;  %v411_v42 = vstv %s5607_s23  ;;  %v306_v7 = vadd.f32 %v5562_v39, %v301_v0  ;;  %v431_v10 = vstv %s5650_s10  ;;  %s5736_s23 = sld [smem:[#allocation2 + $0x29]]  ;;  %s5757_s0 = sld [smem:[#allocation2 + $0x47]] }
  0x32   :  { %v338_v9 = vadd.f32 %v5565_v40, %v333_v12  ;;  %v399_v38 = vadd.f32 %v398_v3, %v5487_v14  ;;  %v371_v60 = vadd.f32 %v5577_v44, %v366_v16  ;;  %v379_v5 = vmul.f32 %v378_v26, %v5684_v58  ;;  %s5765_s10 = sld [smem:[#allocation2 + $0x37]]  ;;  %s5914_s30 = sld [smem:[#allocation2 + $0x3b]] }
  0x33   :  { %v412_v25 = vmul.f32 %v411_v42, %v5684_v58  ;;  %v432_v29 = vadd.f32 %v431_v10, %v5496_v17  ;;  %v339_v31 = vadd.f32 %v5574_v43, %v334_v41  ;;  %v367_v0 = vadd.f32 %v365_v20, %v5484_v13  ;;  %s6075_s7 = sld [smem:[#allocation2 + $0x4f]]  ;;  %s6212_s6 = sld [smem:[#allocation2 + $0x64]] }
  0x34   :  { %v343_v63 = vadd.f32 %v341_v35, %v338_v9  ;;  %v404_v39 = vadd.f32 %v5587_v48, %v399_v38  ;;  %v311_v14 = vadd.f32 %v309_v30, %v306_v7  ;;  %v8984_v40 = vstv %s5593_s21  ;;  %s6092_s5 = sld [smem:[#allocation2 + $0x3f]]  ;;  %s6356_s29 = sld [smem:[#allocation2 + $0x61]] }
  0x35   :  { %v314_v12 = vmul.f32 %v8984_v40, %v5721_v6  ;;  %v376_v44 = vadd.f32 %v374_v45, %v371_v60  ;;  %v473_v16 = vmul.f32 %v472_v54, %v5655_v11  ;;  %v444_v17 = vstv %s5679_s13  ;;  %s5810_s13 = sld [smem:[#allocation2 + $0x49]]  ;;  %s6364_s26 = sld [smem:[#allocation2 + $0x63]] }
  0x36   :  { %v348_v34 = vadd.f32 %v346_v33, %v343_v63  ;;  %v409_v8 = vadd.f32 %v407_v50, %v404_v39  ;;  %v5744_v43 = vmul.f32 %v472_v54, %v5626_v59  ;;  %v347_v13 = vmul.f32 %v345_v61, %v5721_v6  ;;  %s6358_s2 = sld [smem:[#allocation2 + $0x71]]  ;;  %s6380_s4 = sld [smem:[#allocation2 + $0x67]] }
  0x37   :  { %v5749_v48 = vadd.f32 %v379_v5, %v376_v44  ;;  %v437_v60 = vadd.f32 %v5596_v51, %v432_v29  ;;  %v445_v33 = vmul.f32 %v444_v17, %v5684_v58  ;;  %v344_v63 = vadd.f32 %v342_v36, %v339_v31  ;;  %s6517_s21 = sld [smem:[#allocation2 + $0x8d]]  ;;  %s6525_s9 = sld [smem:[#allocation2 + $0x8e]] }
  0x38   :  { %v372_v20 = vadd.f32 %v5584_v47, %v367_v0  ;;  %v400_v30 = vadd.f32 %v398_v3, %v5490_v15  ;;  %v5755_v35 = vadd.f32 %v412_v25, %v409_v8  ;;  %v316_v41 = vadd.f32 %v314_v12, %v311_v14  ;;  %s6527_s17 = sld [smem:[#allocation2 + $0x9d]] }
  0x39   :  { %v442_v45 = vadd.f32 %v440_v2, %v437_v60  ;;  %v505_v50 = vstv %s5698_s24  ;;  %v538_v5 = vstv %s5706_s25  ;;  %v433_v51 = vadd.f32 %v431_v10, %v5499_v18  ;;  %s5841_s24 = sld [smem:[#allocation2 + $0x4a]] }
  0x3a   :  { %v464_v29 = vstv %s5716_s27  ;;  %v477_v31 = vstv %s5714_s15  ;;  %v571_v36 = vstv %s5708_s14  ;;  %v380_v3 = vmul.f32 %v378_v26, %v5721_v6  ;;  %s5854_s25 = sld [smem:[#allocation2 + $0x2a]]  ;;  %s5884_s15 = sld [smem:[#allocation2 + $0x4b]] }
  0x3b   :  { %v5768_v15 = vadd.f32 %v445_v33, %v442_v45  ;;  %v465_v25 = vadd.f32 %v464_v29, %v5502_v19  ;;  %v497_v47 = vstv %s5727_s22  ;;  %v349_v8 = vadd.f32 %v347_v13, %v344_v63  ;;  %s5869_s14 = sld [smem:[#allocation2 + $0x3a]]  ;;  %s5899_s27 = sld [smem:[#allocation2 + $0x1b]] }
  0x3c   :  { %v377_v54 = vadd.f32 %v5675_v46, %v372_v20  ;;  %v405_v61 = vadd.f32 %v5590_v49, %v400_v30  ;;  %v498_v18 = vadd.f32 %v497_v47, %v5511_v22  ;;  %v318_v2 = vsub.f32 0.0, %v316_v41  ;;  %s5934_s22 = sld [smem:[#allocation2 + $0x4c]]  ;;  %9005 = sst [smem:[#allocation25_spill]] %s6358_s2 }
  0x3d   :  { %v470_v7 = vadd.f32 %v5602_v53, %v465_v25  ;;  %v478_v26 = vmul.f32 %v477_v31, %v5684_v58  ;;  %v604_v9 = vstv %s5736_s23  ;;  %v413_v19 = vmul.f32 %v411_v42, %v5721_v6  ;;  %s5941_s23 = sld [smem:[#allocation2 + $0x1c]]  ;;  %9019 = sst [smem:[#allocation32_spill]] %s6517_s21 }
  0x3e   :  { %v438_v46 = vadd.f32 %v5599_v52, %v433_v51  ;;  %v506_v49 = vmul.f32 %v505_v50, %v5655_v11  ;;  %v5788_v38 = vmul.f32 %v505_v50, %v5626_v59  ;;  %v350_v22 = vsub.f32 0.0, %v348_v34  ;;  %9020 = sst [smem:[#allocation33_spill]] %s6525_s9 }
  0x3f   :  { %v475_v53 = vadd.f32 %v473_v16, %v470_v7  ;;  %v503_v10 = vadd.f32 %v5613_v56, %v498_v18  ;;  %v510_v0 = vstv %s5746_s8  ;;  %v351_v39 = vsub.f32 0.0, %v349_v8  ;;  %s5943_s8 = sld [smem:[#allocation2 + $0x2c]]  ;;  %9021 = sst [smem:[#allocation34_spill]] %s6527_s17 }
  0x40   :  { %v382_v14 = vadd.f32 %v380_v3, %v377_v54  ;;  %v410_v40 = vadd.f32 %v5688_v32, %v405_v61  ;;  %v511_v42 = vmul.f32 %v510_v0, %v5684_v58  ;;  %v321_v52 = vmul.f32 1.442695, %v318_v2 }
  0x41   :  { %v5798_v12 = vadd.f32 %v478_v26, %v475_v53  ;;  %v530_v44 = vstv %s5757_s0  ;;  %v539_v13 = vmul.f32 %v538_v5, %v5655_v11  ;;  %v443_v34 = vadd.f32 %v5692_v1, %v438_v46  ;;  %s5961_s0 = sld [smem:[#allocation2 + $0x3c]] }
  0x42   :  { %v446_v16 = vmul.f32 %v444_v17, %v5721_v6  ;;  %v508_v56 = vadd.f32 %v506_v49, %v503_v10  ;;  %v531_v60 = vadd.f32 %v530_v44, %v5517_v24  ;;  %v352_v33 = vmul.f32 1.442695, %v350_v22 }
  0x43   :  { %v383_v32 = vsub.f32 0.0, %v5749_v48  ;;  %v5807_v63 = vmul.f32 %v538_v5, %v5626_v59  ;;  %v543_v20 = vstv %s5765_s10  ;;  %v354_v30 = vmul.f32 1.442695, %v351_v39  ;;  %s5969_s10 = sld [smem:[#allocation2 + $0xd]] }
  0x44   :  { %v384_v41 = vsub.f32 0.0, %v382_v14  ;;  %v415_v1 = vadd.f32 %v413_v19, %v410_v40  ;;  %v5812_v17 = vadd.f32 %v511_v42, %v508_v56  ;;  %4947 = vpow2.f32 %v321_v52  ;;  %v8985_v42 = vld [vmem:[#allocation18_spill] sm:$0xff] }
  0x45   :  { %v466_v24 = vadd.f32 %v464_v29, %v5508_v21  ;;  %v536_v48 = vadd.f32 %v5631_v62, %v531_v60  ;;  %v544_v45 = vmul.f32 %v543_v20, %v5684_v58  ;;  %v416_v50 = vsub.f32 0.0, %v5755_v35  ;;  %v8987_v60 = vld [vmem:[#allocation16_spill] sm:$0xff] }
  0x46   :  { %v448_v5 = vadd.f32 %v446_v16, %v443_v34  ;;  %v572_v51 = vmul.f32 %v571_v36, %v5655_v11  ;;  %v576_v3 = vstv %s5782_s11  ;;  %4949 = vpow2.f32 %v352_v33  ;;  %s5981_s11 = sld [smem:[#allocation2 + $0x1d]] }
  0x47   :  { %v385_v25 = vmul.f32 1.442695, %v383_v32  ;;  %v541_v21 = vadd.f32 %v539_v13, %v536_v48  ;;  %v563_v29 = vstv %s5790_s12  ;;  %4951 = vpow2.f32 %v354_v30  ;;  %s5983_s12 = sld [smem:[#allocation2 + $0x4d]] }
  0x48   :  { %v387_v62 = vmul.f32 1.442695, %v384_v41  ;;  %v417_v8 = vsub.f32 0.0, %v415_v1  ;;  %v564_v35 = vadd.f32 %v563_v29, %v5533_v28  ;;  %v471_v54 = vadd.f32 %v5610_v55, %v466_v24  ;;  %v8988_v1 = vld [vmem:[#allocation11_spill] sm:$0xff] }
  0x49   :  { %v5831_v61 = vadd.f32 %v544_v45, %v541_v21  ;;  %v5836_v18 = vmul.f32 %v571_v36, %v5626_v59  ;;  %v577_v2 = vmul.f32 %v576_v3, %v5684_v58  ;;  %v418_v7 = vmul.f32 1.442695, %v416_v50  ;;  %v8989_v45 = vld [vmem:[#allocation20_spill] sm:$0xff] }
  0x4a   :  { %v449_v26 = vsub.f32 0.0, %v5768_v15  ;;  %v499_v28 = vadd.f32 %v497_v47, %v5514_v23  ;;  %v569_v55 = vadd.f32 %v5642_v4, %v564_v35  ;;  %4953 = vpow2.f32 %v385_v25 }
  0x4b   :  { %v450_v19 = vsub.f32 0.0, %v448_v5  ;;  %v479_v36 = vmul.f32 %v477_v31, %v5721_v6  ;;  %v605_v46 = vmul.f32 %v604_v9, %v5655_v11  ;;  %4955 = vpow2.f32 %v387_v62 }
  0x4c   :  { %v420_v49 = vmul.f32 1.442695, %v417_v8  ;;  %v574_v22 = vadd.f32 %v572_v51, %v569_v55  ;;  %v596_v15 = vstv %s5810_s13  ;;  %v476_v23 = vadd.f32 %v5744_v43, %v471_v54  ;;  %s5992_s13 = sld [smem:[#allocation2 + $0x2d]] }
  0x4d   :  { %v532_v4 = vadd.f32 %v530_v44, %v5530_v27  ;;  %v597_v47 = vadd.f32 %v596_v15, %v5556_v37  ;;  %v609_v31 = vstv %s5814_s18  ;;  %4957 = vpow2.f32 %v418_v7  ;;  %v8990_v7 = vld [vmem:[#allocation10_spill] sm:$0xff]  ;;  %s6002_s18 = sld [smem:[#allocation2 + $0x3d]] }
  0x4e   :  { %v451_v53 = vmul.f32 1.442695, %v449_v26  ;;  %v504_v10 = vadd.f32 %v5616_v57, %v499_v28  ;;  %v5864_v39 = vadd.f32 %v577_v2, %v574_v22  ;;  %v4948_v14 = vpop.eup %4947  ;;  %v453_v40 = vmul.f32 1.442695, %v450_v19  ;;  %v8986_v57 = vld [vmem:[#allocation12_spill] sm:$0xff] }
  0x4f   :  { %v602_v52 = vadd.f32 %v8985_v42, %v597_v47  ;;  %v610_v13 = vmul.f32 %v609_v31, %v5684_v58  ;;  %v632_v43 = vstv %s5826_s19  ;;  %4959 = vpow2.f32 %v420_v49  ;;  %s6011_s19 = sld [smem:[#allocation2 + $0xe]] }
  0x50   :  { %v512_v27 = vmul.f32 %v510_v0, %v5721_v6  ;;  %v5877_v37 = vmul.f32 %v604_v9, %v5626_v59  ;;  %v633_v44 = vmul.f32 %v632_v43, %v8986_v57  ;;  %v4950_v34 = vpop.eup %4949  ;;  %v481_v16 = vadd.f32 %v479_v36, %v476_v23 }
  0x51   :  { %v482_v56 = vsub.f32 0.0, %v5798_v12  ;;  %v537_v33 = vadd.f32 %v8987_v60, %v532_v4  ;;  %v607_v32 = vadd.f32 %v605_v46, %v602_v52  ;;  %v4952_v30 = vpop.eup %4951  ;;  %v324_v41 = vadd.f32 1.0, %v4948_v14  ;;  %v8993_v14 = vld [vmem:[#allocation8_spill] sm:$0xff] }
  0x52   :  { %4961 = vpow2.f32 %v451_v53  ;;  %v509_v0 = vadd.f32 %v5788_v38, %v504_v10  ;;  %v629_v9 = vstv %s5841_s24  ;;  %v565_v24 = vadd.f32 %v563_v29, %v8988_v1  ;;  %v8992_v53 = vld [vmem:[#allocation13_spill] sm:$0xff]  ;;  %s6023_s24 = sld [smem:[#allocation2 + $0x1e]] }
  0x53   :  { %4963 = vpow2.f32 %v453_v40  ;;  %v5887_v48 = vadd.f32 %v610_v13, %v607_v32  ;;  %v630_v12 = vadd.f32 %v629_v9, %v8989_v45  ;;  %v356_v50 = vadd.f32 1.0, %v4950_v34  ;;  %v8995_v32 = vld [vmem:[#allocation19_spill] sm:$0xff] }
  0x54   :  { %v545_v5 = vmul.f32 %v543_v20, %v5721_v6  ;;  %v578_v51 = vmul.f32 %v576_v3, %v5721_v6  ;;  %v637_v38 = vstv %s5854_s25  ;;  %v4954_v25 = vpop.eup %4953  ;;  %v357_v21 = vadd.f32 1.0, %v4952_v30  ;;  %s6036_s25 = sld [smem:[#allocation2 + $0x2e]] }
  0x55   :  { %v542_v62 = vadd.f32 %v5807_v63, %v537_v33  ;;  %v635_v29 = vadd.f32 %v633_v44, %v630_v12  ;;  %v638_v8 = vmul.f32 %v637_v38, %v5655_v11  ;;  %v4956_v35 = vpop.eup %4955  ;;  %v483_v54 = vsub.f32 0.0, %v481_v16  ;;  %v8991_v63 = vld [vmem:[#allocation17_spill] sm:$0xff] }
  0x56   :  { %v484_v2 = vmul.f32 1.442695, %v482_v56  ;;  %v5906_v20 = vmul.f32 %v609_v31, %v5721_v6  ;;  %v5909_v3 = vmul.f32 %v632_v43, %v8990_v7  ;;  %4965 = vrcp.f32 %v324_v41 }
  0x57   :  { %v514_v26 = vadd.f32 %v512_v27, %v509_v0  ;;  %v570_v28 = vadd.f32 %v8991_v63, %v565_v24  ;;  %v640_v55 = vadd.f32 %v638_v8, %v635_v29  ;;  %v4958_v19 = vpop.eup %4957  ;;  %4967 = vrcp.f32 %v356_v50 }
  0x58   :  { %v389_v36 = vadd.f32 1.0, %v4954_v25  ;;  %v515_v46 = vsub.f32 0.0, %v5812_v17  ;;  %v642_v49 = vstv %s5869_s14  ;;  %4969 = vrcp.f32 %v357_v21  ;;  %v8996_v21 = vld [vmem:[#allocation21_spill] sm:$0xff]  ;;  %s6053_s14 = sld [smem:[#allocation2 + $0x3e]] }
  0x59   :  { %v390_v22 = vadd.f32 1.0, %v4956_v35  ;;  %v547_v23 = vadd.f32 %v545_v5, %v542_v62  ;;  %v643_v4 = vmul.f32 %v642_v49, %v5684_v58  ;;  %v4960_v47 = vpop.eup %4959  ;;  %4971 = vpow2.f32 %v484_v2 }
  0x5a   :  { %v486_v31 = vmul.f32 1.442695, %v483_v54  ;;  %v598_v10 = vadd.f32 %v596_v15, %v8992_v53  ;;  %v8994_v40 = vstv %s5433_s16  ;;  %v422_v52 = vadd.f32 1.0, %v4958_v19 }
  0x5b   :  { %v660_v42 = vmul.f32 %v8994_v40, %v8993_v14  ;;  %v575_v17 = vadd.f32 %v5836_v18, %v570_v28  ;;  %v5928_v13 = vadd.f32 %v643_v4, %v640_v55  ;;  %v662_v43 = vstv %s5884_s15  ;;  %s6059_s15 = sld [smem:[#allocation2 + $0xf]] }
  0x5c   :  { %v4962_v27 = vpop.eup %4961  ;;  %4973 = vrcp.f32 %v389_v36  ;;  %v516_v44 = vsub.f32 0.0, %v514_v26  ;;  %v548_v34 = vsub.f32 0.0, %v5831_v61  ;;  %v423_v56 = vadd.f32 1.0, %v4960_v47 }
  0x5d   :  { %v663_v16 = vadd.f32 %v662_v43, %v660_v42  ;;  %v4964_v15 = vpop.eup %4963  ;;  %4975 = vrcp.f32 %v390_v22  ;;  %v549_v18 = vsub.f32 0.0, %v547_v23  ;;  %v665_v60 = vstv %s5899_s27  ;;  %s6069_s27 = sld [smem:[#allocation2 + $0x1f]] }
  0x5e   :  { %4977 = vpow2.f32 %v486_v31  ;;  %v517_v33 = vmul.f32 1.442695, %v515_v46  ;;  %v603_v30 = vadd.f32 %v8995_v32, %v598_v10  ;;  %v666_v61 = vmul.f32 %v665_v60, %v8986_v57  ;;  %v8998_v32 = vld [vmem:[#allocation7_spill] sm:$0xff] }
  0x5f   :  { %4979 = vrcp.f32 %v422_v52  ;;  %v455_v41 = vadd.f32 1.0, %v4962_v27  ;;  %v580_v0 = vadd.f32 %v578_v51, %v575_v17  ;;  %v670_v1 = vstv %s5911_s28  ;;  %s6083_s28 = sld [smem:[#allocation2 + $0x2f]] }
  0x60   :  { %v456_v24 = vadd.f32 1.0, %v4964_v15  ;;  %v668_v45 = vadd.f32 %v666_v61, %v663_v16  ;;  %v671_v12 = vmul.f32 %v670_v1, %v5655_v11  ;;  %v675_v50 = vstv %s5914_s30  ;;  %v5950_v5 = vpop.eup %4965  ;;  %s6118_s30 = sld [smem:[#allocation2 + $0x54]] }
  0x61   :  { %4981 = vrcp.f32 %v423_v56  ;;  %v581_v25 = vsub.f32 0.0, %v5864_v39  ;;  %v631_v62 = vadd.f32 %v629_v9, %v8996_v21  ;;  %v676_v29 = vmul.f32 %v675_v50, %v5684_v58  ;;  %v5959_v51 = vpop.eup %4967 }
  0x62   :  { %4983 = vpow2.f32 %v517_v33  ;;  %v519_v8 = vmul.f32 1.442695, %v516_v44  ;;  %v608_v35 = vadd.f32 %v5877_v37, %v603_v30  ;;  %v673_v54 = vadd.f32 %v671_v12, %v668_v45  ;;  %v5964_v2 = vpop.eup %4969 }
  0x63   :  { %4985 = vrcp.f32 %v455_v41  ;;  %v550_v39 = vmul.f32 1.442695, %v548_v34  ;;  %v8997_v9 = vstv %s5443_s20  ;;  %v4972_v63 = vpop.eup %4971  ;;  %v552_v28 = vmul.f32 1.442695, %v549_v18 }
  0x64   :  { %v693_v26 = vmul.f32 %v8997_v9, %v8993_v14  ;;  %4987 = vrcp.f32 %v456_v24  ;;  %v582_v55 = vsub.f32 0.0, %v580_v0  ;;  %v5971_v19 = vadd.f32 %v676_v29, %v673_v54 }
  0x65   :  { %v614_v37 = vsub.f32 0.0, %v5887_v48  ;;  %v636_v36 = vadd.f32 %v5909_v3, %v631_v62  ;;  %v639_v46 = vmul.f32 %v637_v38, %v5626_v59  ;;  %v695_v22 = vstv %s5934_s22  ;;  %s6131_s22 = sld [smem:[#allocation2 + $0x50]] }
  0x66   :  { %v5979_v23 = vpop.eup %4973  ;;  %4989 = vpow2.f32 %v519_v8  ;;  %v583_v4 = vmul.f32 1.442695, %v581_v25  ;;  %v613_v47 = vadd.f32 %v5906_v20, %v608_v35  ;;  %v696_v48 = vadd.f32 %v695_v22, %v693_v26 }
  0x67   :  { %v5988_v3 = vpop.eup %4975  ;;  %v488_v31 = vadd.f32 1.0, %v4972_v63  ;;  %4991 = vpow2.f32 %v550_v39  ;;  %v698_v38 = vstv %s5941_s23  ;;  %v703_v53 = vstv %s5943_s8  ;;  %s6133_s23 = sld [smem:[#allocation2 + $0x56]]  ;;  %s6177_s8 = sld [smem:[#allocation2 + $0x5c]] }
  0x68   :  { %v4978_v10 = vpop.eup %4977  ;;  %4993 = vpow2.f32 %v552_v28  ;;  %v585_v40 = vmul.f32 1.442695, %v582_v55  ;;  %v699_v42 = vmul.f32 %v698_v38, %v8986_v57  ;;  %v704_v20 = vmul.f32 %v703_v53, %v5655_v11 }
  0x69   :  { %v6000_v52 = vpop.eup %4979  ;;  %v616_v17 = vmul.f32 1.442695, %v614_v37  ;;  %v641_v27 = vadd.f32 %v639_v46, %v636_v36  ;;  %v644_v44 = vmul.f32 %v642_v49, %v5721_v6  ;;  %v647_v34 = vsub.f32 0.0, %v5928_v13 }
  0x6a   :  { %4995 = vpow2.f32 %v583_v4  ;;  %v615_v16 = vsub.f32 0.0, %v613_v47  ;;  %v701_v15 = vadd.f32 %v699_v42, %v696_v48  ;;  %v708_v56 = vstv %s5961_s0  ;;  %s6193_s0 = sld [smem:[#allocation2 + $0x60]] }
  0x6b   :  { %v6009_v18 = vpop.eup %4981  ;;  %v489_v33 = vadd.f32 1.0, %v4978_v10  ;;  %4997 = vrcp.f32 %v488_v31  ;;  %v8999_v30 = vstv %s5433_s16  ;;  %v709_v49 = vmul.f32 %v708_v56, %v5684_v58  ;;  %s6025_s16 = sld [smem:[#allocation2 + $0x4e]]  ;;  %9001 = sst [smem:[#allocation22_spill]] %s6131_s22 }
  0x6c   :  { %v661_v61 = vmul.f32 %v8999_v30, %v8998_v32  ;;  %v4984_v41 = vpop.eup %4983  ;;  %4999 = vpow2.f32 %v585_v40  ;;  %v680_v13 = vsub.f32 0.0, %v5971_v19  ;;  %v706_v0 = vadd.f32 %v704_v20, %v701_v15 }
  0x6d   :  { %v725_v24 = vstv %s5969_s10  ;;  %v6021_v45 = vpop.eup %4985  ;;  %5001 = vpow2.f32 %v616_v17  ;;  %v6027_v12 = vadd.f32 %v644_v44, %v641_v27  ;;  %v649_v25 = vmul.f32 1.442695, %v647_v34  ;;  %s6179_s10 = sld [smem:[#allocation2 + $0x5e]] }
  0x6e   :  { %v726_v21 = vmul.f32 %v725_v24, %v8993_v14  ;;  %v6032_v62 = vpop.eup %4987  ;;  %v618_v29 = vmul.f32 1.442695, %v615_v16  ;;  %v711_v8 = vadd.f32 %v709_v49, %v706_v0  ;;  %v728_v35 = vstv %s5983_s12  ;;  %s6156_s12 = sld [smem:[#allocation2 + $0x58]] }
  0x6f   :  { %v731_v54 = vstv %s5981_s11  ;;  %v664_v39 = vadd.f32 %v662_v43, %v661_v61  ;;  %v667_v9 = vmul.f32 %v665_v60, %v8990_v7  ;;  %5003 = vrcp.f32 %v489_v33  ;;  %s6168_s11 = sld [smem:[#allocation2 + $0x5a]] }
  0x70   :  { %v729_v26 = vadd.f32 %v728_v35, %v726_v21  ;;  %v732_v63 = vmul.f32 %v731_v54, %v8986_v57  ;;  %v4990_v28 = vpop.eup %4989  ;;  %v682_v55 = vmul.f32 1.442695, %v680_v13  ;;  %v713_v19 = vsub.f32 0.0, %v711_v8 }
  0x71   :  { %v736_v37 = vstv %s5992_s13  ;;  %v4992_v36 = vpop.eup %4991  ;;  %5005 = vpow2.f32 %v649_v25  ;;  %v741_v60 = vstv %s6002_s18  ;;  %v521_v47 = vadd.f32 1.0, %v4984_v41  ;;  %s6195_s13 = sld [smem:[#allocation2 + $0x62]] }
  0x72   :  { %v734_v46 = vadd.f32 %v732_v63, %v729_v26  ;;  %v737_v43 = vmul.f32 %v736_v37, %v5655_v11  ;;  %v4994_v4 = vpop.eup %4993  ;;  %5007 = vpow2.f32 %v618_v29  ;;  %v715_v48 = vmul.f32 1.442695, %v713_v19  ;;  %s6241_s18 = sld [smem:[#allocation2 + $0x6a]] }
  0x73   :  { %v742_v31 = vmul.f32 %v741_v60, %v5684_v58  ;;  %v522_v10 = vadd.f32 1.0, %v4990_v28  ;;  %v669_v40 = vadd.f32 %v667_v9, %v664_v39  ;;  %v758_v20 = vstv %s6011_s19  ;;  %s6170_s19 = sld [smem:[#allocation2 + $0x70]] }
  0x74   :  { %v739_v42 = vadd.f32 %v737_v43, %v734_v46  ;;  %v4996_v17 = vpop.eup %4995  ;;  %v554_v27 = vadd.f32 1.0, %v4992_v36  ;;  %v672_v44 = vmul.f32 %v670_v1, %v5626_v59  ;;  %5009 = vpow2.f32 %v682_v55 }
  0x75   :  { %v759_v34 = vmul.f32 %v758_v20, %v8993_v14  ;;  %v6067_v16 = vpop.eup %4997  ;;  %5011 = vpow2.f32 %v715_v48  ;;  %v761_v33 = vstv %s6025_s16  ;;  %v764_v30 = vstv %s6023_s24  ;;  %s6223_s24 = sld [smem:[#allocation2 + $0x66]]  ;;  %s6229_s16 = sld [smem:[#allocation2 + $0x68]] }
  0x76   :  { %v744_v15 = vadd.f32 %v742_v31, %v739_v42  ;;  %v6073_v61 = vpop.eup %4999  ;;  %v555_v1 = vadd.f32 1.0, %v4994_v4  ;;  %v648_v49 = vsub.f32 0.0, %v6027_v12  ;;  %v765_v13 = vmul.f32 %v764_v30, %v8986_v57 }
  0x77   :  { %v762_v41 = vadd.f32 %v761_v33, %v759_v34  ;;  %v5002_v0 = vpop.eup %5001  ;;  %5013 = vrcp.f32 %v521_v47  ;;  %v9000_v25 = vstv %s5443_s20  ;;  %v769_v8 = vstv %s6036_s25  ;;  %s6110_s20 = sld [smem:[#allocation2 + $0x52]]  ;;  %s6260_s25 = sld [smem:[#allocation2 + $0x53]] }
  0x78   :  { %v694_v21 = vmul.f32 %v9000_v25, %v8998_v32  ;;  %v746_v29 = vsub.f32 0.0, %v744_v15  ;;  %5015 = vrcp.f32 %v522_v10  ;;  %v587_v12 = vadd.f32 1.0, %v4996_v17 }
  0x79   :  { %v767_v39 = vadd.f32 %v765_v13, %v762_v41  ;;  %v770_v9 = vmul.f32 %v769_v8, %v5655_v11  ;;  %5017 = vrcp.f32 %v554_v27  ;;  %v674_v26 = vadd.f32 %v672_v44, %v669_v40  ;;  %v6097_v55 = vpop.eup %5003  ;;  %9002 = sst [smem:[#allocation23_spill]] %s6170_s19 }
  0x7a   :  { %v677_v63 = vmul.f32 %v675_v50, %v5721_v6  ;;  %v748_v28 = vmul.f32 1.442695, %v746_v29  ;;  %5019 = vrcp.f32 %v555_v1  ;;  %v620_v19 = vadd.f32 1.0, %v5002_v0 }
  0x7b   :  { %v772_v36 = vadd.f32 %v770_v9, %v767_v39  ;;  %v774_v46 = vstv %s6053_s14  ;;  %v5006_v43 = vpop.eup %5005  ;;  %v697_v4 = vadd.f32 %v695_v22, %v694_v21  ;;  %v700_v47 = vmul.f32 %v698_v38, %v8990_v7  ;;  %s6305_s14 = sld [smem:[#allocation2 + $0x59]] }
  0x7c   :  { %5021 = vpow2.f32 %v748_v28  ;;  %v775_v50 = vmul.f32 %v774_v46, %v5684_v58  ;;  %v6108_v48 = vpop.eup %5007  ;;  %v6112_v31 = vmul.f32 1.442695, %v648_v49  ;;  %v727_v10 = vmul.f32 %v725_v24, %v8998_v32 }
  0x7d   :  { %5023 = vrcp.f32 %v587_v12  ;;  %v791_v22 = vstv %s6059_s15  ;;  %v705_v38 = vmul.f32 %v703_v53, %v5626_v59  ;;  %v797_v17 = vstv %s6069_s27  ;;  %s6273_s15 = sld [smem:[#allocation2 + $0x55]]  ;;  %s6318_s27 = sld [smem:[#allocation2 + $0x6c]] }
  0x7e   :  { %v777_v40 = vadd.f32 %v775_v50, %v772_v36  ;;  %v792_v42 = vmul.f32 %v791_v22, %v8993_v14  ;;  %v5010_v27 = vpop.eup %5009  ;;  %5025 = vrcp.f32 %v620_v19  ;;  %v653_v32 = vadd.f32 1.0, %v5006_v43 }
  0x7f   :  { %v794_v24 = vstv %s6075_s7  ;;  %v798_v44 = vmul.f32 %v797_v17, %v8986_v57  ;;  %v5012_v34 = vpop.eup %5011  ;;  %v702_v53 = vadd.f32 %v700_v47, %v697_v4  ;;  %v802_v1 = vstv %s6083_s28  ;;  %v6146_v57 = vld [vmem:[%s8739_s1 + $0x4] sm:$0x1]  ;;  %s6316_s7 = sld [smem:[#allocation2 + $0x51]]  ;;  %s6372_s28 = sld [smem:[#allocation2 + $0x65]] }
  0x80   :  { %v779_v15 = vsub.f32 0.0, %v777_v40  ;;  %v795_v14 = vadd.f32 %v794_v24, %v792_v42  ;;  %v730_v49 = vadd.f32 %v728_v35, %v727_v10  ;;  %v733_v41 = vmul.f32 %v731_v54, %v8990_v7 }
  0x81   :  { %v760_v13 = vmul.f32 %v6146_v57, %v758_v20  ;;  %v803_v0 = vmul.f32 %v802_v1, %v5655_v11  ;;  %v6154_v25 = vpop.eup %5013  ;;  %v686_v35 = vadd.f32 1.0, %v5010_v27  ;;  %v807_v7 = vstv %s6092_s5  ;;  %s6391_s5 = sld [smem:[#allocation2 + $0x69]] }
  0x82   :  { %v781_v21 = vmul.f32 1.442695, %v779_v15  ;;  %v800_v29 = vadd.f32 %v798_v44, %v795_v14  ;;  %v6159_v54 = vpop.eup %5015  ;;  %5027 = vrcp.f32 %v653_v32  ;;  %v6161_v12 = vadd.f32 %v677_v63, %v674_v26 }
  0x83   :  { %v719_v20 = vadd.f32 1.0, %v5012_v34  ;;  %v808_v11 = vmul.f32 %v807_v7, %v5684_v58  ;;  %v6166_v39 = vpop.eup %5017  ;;  %v707_v9 = vadd.f32 %v705_v38, %v702_v53  ;;  %v710_v28 = vmul.f32 %v708_v56, %v5721_v6 }
  0x84   :  { %5029 = vpow2.f32 %v781_v21  ;;  %v805_v19 = vadd.f32 %v803_v0, %v800_v29  ;;  %v6175_v26 = vpop.eup %5019  ;;  %v735_v58 = vadd.f32 %v733_v41, %v730_v49  ;;  %v738_v63 = vmul.f32 %v736_v37, %v5626_v59 }
  0x85   :  { %v763_v36 = vadd.f32 %v761_v33, %v760_v13  ;;  %v830_v43 = vstv %s6110_s20  ;;  %5031 = vrcp.f32 %v686_v35  ;;  %v835_v50 = vstv %s6118_s30  ;;  %v5344_v33 = vld [vmem:[%s8739_s1 + $0x5] sm:$0x1]  ;;  %s6296_s20 = sld [smem:[#allocation2 + $0x57]] }
  0x86   :  { %v5022_v4 = vpop.eup %5021  ;;  %v810_v56 = vadd.f32 %v808_v11, %v805_v19  ;;  %v6188_v47 = vmul.f32 %v5959_v51, %v830_v43  ;;  %5033 = vrcp.f32 %v719_v20  ;;  %v766_v38 = vmul.f32 %v5344_v33, %v764_v30  ;;  %9003 = sst [smem:[#allocation24_spill]] %s6316_s7 }
  0x87   :  { %v6191_v10 = vpop.eup %5023  ;;  %v752_v37 = vadd.f32 1.0, %v5022_v4  ;;  %v6205_v40 = vmul.f32 %v5979_v23, %v835_v50  ;;  %5035 = vpow2.f32 %v6112_v31  ;;  %v8766_v27 = vstv %s6131_s22  ;;  %s6337_s22 = sld [smem:[#allocation2 + $0x5d]]  ;;  %s6339_s30 = sld [smem:[#allocation2 + $0x5f]] }
  0x88   :  { %v812_v42 = vsub.f32 0.0, %v810_v56  ;;  %v840_v32 = vstv %s6133_s23  ;;  %v6210_v44 = vpop.eup %5025  ;;  %v6215_v34 = vadd.f32 1.0, %v6073_v61  ;;  %v681_v30 = vsub.f32 0.0, %v6161_v12  ;;  %s6393_s23 = sld [smem:[#allocation2 + $0x6e]] }
  0x89   :  { %5037 = vrcp.f32 %v752_v37  ;;  %v6221_v31 = vmul.f32 %v6000_v52, %v840_v32  ;;  %v740_v53 = vadd.f32 %v738_v63, %v735_v58  ;;  %v743_v15 = vmul.f32 %v741_v60, %v5721_v6 }
  0x8a   :  { %v814_v61 = vmul.f32 1.442695, %v812_v42  ;;  %v845_v14 = vstv %s6156_s12  ;;  %v6231_v49 = vadd.f32 %v710_v28, %v707_v9  ;;  %v768_v41 = vadd.f32 %v766_v38, %v763_v36  ;;  %s6402_s12 = sld [smem:[#allocation2 + $0x6b]] }
  0x8b   :  { %v826_v13 = vmul.f32 %v5950_v5, %v8766_v27  ;;  %v6239_v0 = vmul.f32 %v6021_v45, %v845_v14  ;;  %v771_v60 = vmul.f32 %v769_v8, %v5626_v59  ;;  %v8762_v35 = vstv %s6170_s19  ;;  %s6329_s19 = sld [smem:[#allocation2 + $0x5b]] }
  0x8c   :  { %5039 = vpow2.f32 %v814_v61  ;;  %v850_v21 = vstv %s6168_s11  ;;  %v6248_v29 = vpop.eup %5027  ;;  %v793_v12 = vmul.f32 %v6146_v57, %v791_v22  ;;  %v855_v11 = vstv %s6177_s8  ;;  %s6491_s11 = sld [smem:[#allocation2 + $0x8a]]  ;;  %s6493_s8 = sld [smem:[#allocation2 + $0x8b]] }
  0x8d   :  { %v6256_v20 = vmul.f32 %v6067_v16, %v850_v21  ;;  %v860_v9 = vstv %s6179_s10  ;;  %v745_v8 = vadd.f32 %v743_v15, %v740_v53  ;;  %v832_v28 = vmul.f32 %v5964_v2, %v830_v43  ;;  %s6515_s10 = sld [smem:[#allocation2 + $0x9c]] }
  0x8e   :  { %v5030_v59 = vpop.eup %5029  ;;  %v6266_v19 = vmul.f32 %v6154_v25, %v855_v11  ;;  %v6271_v22 = vmul.f32 %v6166_v39, %v860_v9  ;;  %v829_v58 = vadd.f32 %v8762_v35, %v826_v13  ;;  %v865_v63 = vstv %s6193_s0  ;;  %s6537_s0 = sld [smem:[#allocation2 + $0x8f]] }
  0x8f   :  { %v785_v57 = vadd.f32 1.0, %v5030_v59  ;;  %v870_v36 = vstv %s6195_s13  ;;  %v6279_v43 = vpop.eup %5031  ;;  %v773_v4 = vadd.f32 %v771_v60, %v768_v41  ;;  %v776_v56 = vmul.f32 %v774_v46, %v5721_v6  ;;  %s6620_s13 = sld [smem:[#allocation2 + $0xa1]] }
  0x90   :  { %v6287_v37 = vmul.f32 %v6191_v10, %v865_v63  ;;  %v6292_v38 = vmul.f32 %v6210_v44, %v870_v36  ;;  %v6294_v42 = vpop.eup %5033  ;;  %v796_v53 = vadd.f32 %v794_v24, %v793_v12  ;;  %v799_v6 = vmul.f32 %v5344_v33, %v797_v17 }
  0x91   :  { %5041 = vrcp.f32 %v785_v57  ;;  %v875_v46 = vstv %s6212_s6  ;;  %v6303_v15 = vpop.eup %5035  ;;  %v684_v61 = vmul.f32 1.442695, %v681_v30  ;;  %v714_v41 = vsub.f32 0.0, %v6231_v49  ;;  %s6602_s6 = sld [smem:[#allocation2 + $0x91]] }
  0x92   :  { %v6311_v13 = vmul.f32 %v6248_v29, %v875_v46  ;;  %v8778_v60 = vstv %s6223_s24  ;;  %v834_v17 = vadd.f32 %v832_v28, %v829_v58  ;;  %v837_v24 = vmul.f32 %v5988_v3, %v835_v50  ;;  %v5345_v28 = vld [vmem:[%s8739_s1 + $0x6] sm:$0x1] }
  0x93   :  { %v6314_v59 = vpop.eup %5037  ;;  %v6326_v33 = vmul.f32 %v6279_v43, %v8778_v60  ;;  %v8774_v30 = vstv %s6229_s16  ;;  %v747_v49 = vsub.f32 0.0, %v745_v8  ;;  %v778_v12 = vadd.f32 %v776_v56, %v773_v4  ;;  %9018 = sst [smem:[#allocation31_spill]] %s6515_s10 }
  0x94   :  { %v6334_v57 = vmul.f32 %v6294_v42, %v8774_v30  ;;  %v8768_v35 = vstv %s6241_s18  ;;  %5043 = vrcp.f32 %v6215_v34  ;;  %v801_v50 = vadd.f32 %v799_v6, %v796_v53  ;;  %9022 = sst [smem:[#allocation35_spill]] %s6537_s0 }
  0x95   :  { %v804_v8 = vmul.f32 %v5345_v28, %v802_v1  ;;  %v6350_v58 = vmul.f32 %v6314_v59, %v8768_v35  ;;  %5045 = vpow2.f32 %v684_v61  ;;  %v717_v56 = vmul.f32 1.442695, %v714_v41  ;;  %9033 = sst [smem:[#allocation42_spill]] %s6620_s13 }
  0x96   :  { %v5040_v4 = vpop.eup %5039  ;;  %v842_v27 = vmul.f32 %v6009_v18, %v840_v32  ;;  %v923_v34 = vstv %s6260_s25  ;;  %v839_v1 = vadd.f32 %v837_v24, %v834_v17  ;;  %v928_v28 = vstv %s6273_s15  ;;  %s6416_s25 = sld [smem:[#allocation2 + $0x6d]]  ;;  %s6505_s15 = sld [smem:[#allocation2 + $0x9a]] }
  0x97   :  { %9004 = vst [vmem:[#allocation18_spill] sm:$0xff] %v6350_v58  ;;  %v818_v53 = vadd.f32 1.0, %v5040_v4  ;;  %v6361_v6 = vmul.f32 %v5959_v51, %v923_v34  ;;  %v621_v32 = vadd.f32 1.0, %v6108_v48  ;;  %v750_v61 = vmul.f32 1.442695, %v747_v49  ;;  %9028 = sst [smem:[#allocation39_spill]] %s6602_s6 }
  0x98   :  { %v780_v41 = vsub.f32 0.0, %v778_v12  ;;  %v6370_v35 = vmul.f32 %v5979_v23, %v928_v28  ;;  %v806_v17 = vadd.f32 %v804_v8, %v801_v50  ;;  %v5346_v51 = vld [vmem:[%s8739_s1 + $0x7] sm:$0x1]  ;;  %v933_v48 = vstv %s6296_s20  ;;  %s6433_s1 = sld [smem:[#allocation2 + $0x6f]]  ;;  %s6539_s20 = sld [smem:[#allocation2 + $0x9e]] }
  0x99   :  { %v809_v24 = vmul.f32 %v5346_v51, %v807_v7  ;;  %5047 = vrcp.f32 %v818_v53  ;;  %v847_v23 = vmul.f32 %v6032_v62, %v845_v14  ;;  %v6388_v49 = vmul.f32 %v6000_v52, %v933_v48 }
  0x9a   :  { %5049 = vpow2.f32 %v717_v56  ;;  %v938_v12 = vstv %s6305_s14  ;;  %v844_v7 = vadd.f32 %v842_v27, %v839_v1  ;;  %v8772_v8 = vstv %s6318_s27  ;;  %s6660_s14 = sld [smem:[#allocation2 + $0xa4]] }
  0x9b   :  { %v5042_v50 = vpop.eup %5041  ;;  %v8771_v4 = vstv %s6316_s7  ;;  %v6400_v14 = vmul.f32 %v6021_v45, %v938_v12  ;;  %5051 = vpow2.f32 %v750_v61  ;;  %v783_v52 = vmul.f32 1.442695, %v780_v41  ;;  %s6513_s7 = sld [smem:[#allocation2 + $0x8c]] }
  0x9c   :  { %v6406_v56 = vmul.f32 %v5042_v50, %v8772_v8  ;;  %v943_v53 = vstv %s6329_s19  ;;  %v811_v27 = vadd.f32 %v809_v24, %v806_v17  ;;  %v8776_v51 = vstv %s6337_s22  ;;  %9007 = sst [smem:[#allocation26_spill]] %s6416_s25  ;;  %s6618_s19 = sld [smem:[#allocation2 + $0x92]] }
  0x9d   :  { %v6412_v1 = vmul.f32 %v6067_v16, %v943_v53  ;;  %v8773_v45 = vstv %s6339_s30  ;;  %5053 = vrcp.f32 %v621_v32  ;;  %v919_v61 = vmul.f32 %v5950_v5, %v8771_v4  ;;  %9014 = sst [smem:[#allocation28_spill]] %s6505_s15 }
  0x9e   :  { %9006 = vst [vmem:[#allocation12_spill] sm:$0xff] %v6406_v56  ;;  %v6424_v41 = vmul.f32 %v6154_v25, %v8776_v51  ;;  %v6429_v16 = vmul.f32 %v6166_v39, %v8773_v45  ;;  %v6431_v17 = vpop.eup %5043  ;;  %9008 = sst [smem:[#allocation27_spill]] %s6433_s1  ;;  %v849_v32 = vadd.f32 %v847_v23, %v844_v7  ;;  %v852_v5 = vmul.f32 %v6097_v55, %v850_v21 }
  0x9f   :  { %v8779_v24 = vstv %s6358_s2  ;;  %v8775_v4 = vstv %s6356_s29  ;;  %v5046_v25 = vpop.eup %5045  ;;  %v654_v8 = vadd.f32 1.0, %v6303_v15  ;;  %5055 = vpow2.f32 %v783_v52  ;;  %s6507_s2 = sld [smem:[#allocation2 + $0x9b]] }
  0xa0   :  { %v6444_v39 = vmul.f32 %v6191_v10, %v8775_v4  ;;  %v8777_v45 = vstv %s6364_s26  ;;  %v813_v23 = vsub.f32 0.0, %v811_v27  ;;  %v857_v21 = vmul.f32 %v6159_v54, %v855_v11  ;;  %9023 = sst [smem:[#allocation36_spill]] %s6539_s20 }
  0xa1   :  { %v6453_v7 = vmul.f32 %v6210_v44, %v8777_v45  ;;  %v968_v30 = vstv %s6372_s28  ;;  %v922_v15 = vadd.f32 %v8779_v24, %v919_v61  ;;  %v925_v52 = vmul.f32 %v5964_v2, %v923_v34  ;;  %9017 = sst [smem:[#allocation30_spill]] %s6513_s7 }
  0xa2   :  { %v6462_v10 = vmul.f32 %v6248_v29, %v968_v30  ;;  %v8780_v27 = vstv %s6380_s4  ;;  %v854_v11 = vadd.f32 %v852_v5, %v849_v32  ;;  %v900_v51 = vstv %s6393_s23  ;;  %9032 = sst [smem:[#allocation41_spill]] %s6618_s19  ;;  %s6683_s28 = sld [smem:[#allocation2 + $0xa5]] }
  0xa3   :  { %v5048_v4 = vpop.eup %5047  ;;  %v6469_v44 = vmul.f32 %v6279_v43, %v8780_v27  ;;  %v978_v45 = vstv %s6391_s5  ;;  %v687_v61 = vadd.f32 1.0, %v5046_v25  ;;  %v8781_v34 = vstv %s6402_s12  ;;  %9042 = sst [smem:[#allocation47_spill]] %s6660_s14  ;;  %s6690_s23 = sld [smem:[#allocation2 + $0xaa]] }
  0xa4   :  { %v5050_v60 = vpop.eup %5049  ;;  %v6474_v2 = vmul.f32 %v5048_v4, %v900_v51  ;;  %v6479_v29 = vmul.f32 %v6294_v42, %v978_v45  ;;  %v816_v32 = vmul.f32 1.442695, %v813_v23  ;;  %v6485_v5 = vmul.f32 %v6314_v59, %v8781_v34  ;;  %s6729_s5 = sld [smem:[#allocation2 + $0xa9]] }
  0xa5   :  { %9009 = vst [vmem:[#allocation16_spill] sm:$0xff] %v6469_v44  ;;  %v5052_v43 = vpop.eup %5051  ;;  %5057 = vrcp.f32 %v654_v8  ;;  %v927_v24 = vadd.f32 %v925_v52, %v922_v15  ;;  %v930_v25 = vmul.f32 %v5988_v3, %v928_v28  ;;  %v988_v27 = vstv %s6416_s25  ;;  %9015 = sst [smem:[#allocation29_spill]] %s6507_s2  ;;  %s6688_s25 = sld [smem:[#allocation2 + $0x98]] }
  0xa6   :  { %9010 = vst [vmem:[#allocation11_spill] sm:$0xff] %v6474_v2  ;;  %9011 = vst [vmem:[#allocation20_spill] sm:$0xff] %v6479_v29  ;;  %v859_v42 = vadd.f32 %v857_v21, %v854_v11  ;;  %v862_v23 = vmul.f32 %v6175_v26, %v860_v9  ;;  %v6500_v59 = vmul.f32 %v5042_v50, %v988_v27  ;;  %v8796_v34 = vstv %s6433_s1  ;;  %s6569_s1 = sld [smem:[#allocation2 + $0x9f]] }
  0xa7   :  { %9012 = vst [vmem:[#allocation10_spill] sm:$0xff] %v6485_v5  ;;  %v6503_v8 = vpop.eup %5053  ;;  %5059 = vrcp.f32 %v687_v61  ;;  %v6511_v3 = vmul.f32 %v5048_v4, %v8796_v34  ;;  %v720_v9 = vadd.f32 1.0, %v5050_v60  ;;  %v753_v50 = vadd.f32 1.0, %v5052_v43  ;;  %v6532_v60 = vld [vmem:[%s8741_s3] sm:$0x3]  ;;  %s6582_s3 = sld [smem:[#allocation2 + $0x90]] }
  0xa8   :  { %9013 = vst [vmem:[#allocation17_spill] sm:$0xff] %v6500_v59  ;;  %5061 = vpow2.f32 %v816_v32  ;;  %v932_v21 = vadd.f32 %v930_v25, %v927_v24  ;;  %v935_v15 = vmul.f32 %v6009_v18, %v933_v48  ;;  %v864_v52 = vadd.f32 %v862_v23, %v859_v42  ;;  %9046 = sst [smem:[#allocation51_spill]] %s6683_s28 }
  0xa9   :  { %9016 = vst [vmem:[#allocation13_spill] sm:$0xff] %v6511_v3  ;;  %v5056_v28 = vpop.eup %5055  ;;  %v867_v4 = vmul.f32 %v6431_v17, %v865_v63  ;;  %5063 = vrcp.f32 %v720_v9  ;;  %v940_v63 = vmul.f32 %v6032_v62, %v938_v12  ;;  %v872_v11 = vmul.f32 %v6503_v8, %v870_v36  ;;  %9049 = sst [smem:[#allocation53_spill]] %s6690_s23 }
  0xaa   :  { %5065 = vrcp.f32 %v753_v50  ;;  %v937_v18 = vadd.f32 %v935_v15, %v932_v21  ;;  %v786_v48 = vadd.f32 1.0, %v5056_v28  ;;  %v8790_v61 = vstv %s6491_s11  ;;  %9057 = sst [smem:[#allocation60_spill]] %s6729_s5 }
  0xab   :  { %v869_v24 = vadd.f32 %v867_v4, %v864_v52  ;;  %v1100_v43 = vmul.f32 %v8790_v61, %v6532_v60  ;;  %v8791_v62 = vstv %s6505_s15  ;;  %v8789_v12 = vstv %s6493_s8  ;;  %9048 = sst [smem:[#allocation52_spill]] %s6688_s25  ;;  %s6915_s15 = sld [smem:[#allocation2 + $0xb9]] }
  0xac   :  { %v8792_v25 = vstv %s6507_s2  ;;  %v945_v42 = vmul.f32 %v6097_v55, %v943_v53  ;;  %v1110_v23 = vmul.f32 %v8789_v12, %v6532_v60  ;;  %v8795_v36 = vstv %s6513_s7  ;;  %9024 = sst [smem:[#allocation37_spill]] %s6569_s1  ;;  %s6913_s2 = sld [smem:[#allocation2 + $0x86]] }
  0xad   :  { %v8793_v9 = vstv %s6515_s10  ;;  %v942_v50 = vadd.f32 %v940_v63, %v937_v18  ;;  %v1102_v21 = vadd.f32 %v8791_v62, %v1100_v43  ;;  %v1120_v15 = vmul.f32 %v8795_v36, %v6532_v60  ;;  %9025 = sst [smem:[#allocation38_spill]] %s6582_s3  ;;  %s6884_s10 = sld [smem:[#allocation2 + $0xba]] }
  0xae   :  { %v8794_v52 = vstv %s6517_s21  ;;  %v874_v55 = vadd.f32 %v872_v11, %v869_v24  ;;  %v1112_v12 = vadd.f32 %v8792_v25, %v1110_v23  ;;  %v1139_v43 = vstv %s6525_s9  ;;  %s9090_s9 = sld [smem:[#allocation169_spill]]  ;;  %s6919_s21 = sld [smem:[#allocation2 + $0x7e]] }
  0xaf   :  { %v6545_v32 = vpop.eup %5057  ;;  %v1103_v61 = vsub.f32 0.0, %v1102_v21  ;;  %v1122_v18 = vadd.f32 %v8793_v9, %v1120_v15  ;;  %v1130_v63 = vmul.f32 %v8794_v52, %v6532_v60  ;;  %5067 = vrcp.f32 %v786_v48  ;;  %s6925_s7 = sld [smem:[#allocation2 + $0xbc]] }
  0xb0   :  { %v877_v53 = vmul.f32 %v6545_v32, %v875_v46  ;;  %v9026_v62 = vstv %s6223_s24  ;;  %v1113_v46 = vsub.f32 0.0, %v1112_v12  ;;  %v8797_v11 = vstv %s6527_s17  ;;  %s6633_s24 = sld [smem:[#allocation2 + $0x93]]  ;;  %s6875_s17 = sld [smem:[#allocation2 + $0x85]] }
  0xb1   :  { %v6561_v28 = vpop.eup %5059  ;;  %v947_v21 = vadd.f32 %v945_v42, %v942_v50  ;;  %v9027_v25 = vstv %s6337_s22  ;;  %v1104_v9 = vmul.f32 1.442695, %v1103_v61  ;;  %v1140_v48 = vmul.f32 %v1139_v43, %v6532_v60  ;;  %s6604_s22 = sld [smem:[#allocation2 + $0xa0]]  ;;  %9095 = sst [smem:[#allocation83_spill]] %s6915_s15 }
  0xb2   :  { %v5062_v4 = vpop.eup %5061  ;;  %v882_v24 = vmul.f32 %v6561_v28, %v9026_v62  ;;  %v950_v15 = vmul.f32 %v6159_v54, %v9027_v25  ;;  %v879_v36 = vadd.f32 %v877_v53, %v874_v55  ;;  %v8802_v62 = vstv %s6539_s20  ;;  %s6873_s20 = sld [smem:[#allocation2 + $0x76]]  ;;  %9094 = sst [smem:[#allocation82_spill]] %s6913_s2 }
  0xb3   :  { %v819_v23 = vadd.f32 1.0, %v5062_v4  ;;  %v6591_v52 = vpop.eup %5063  ;;  %v1149_v12 = vstv %s6537_s0  ;;  %5069 = vpow2.f32 %v1104_v9  ;;  %v1114_v42 = vmul.f32 1.442695, %v1113_v46  ;;  %9089 = sst [smem:[#allocation81_spill]] %s6884_s10  ;;  %s6927_s0 = sld [smem:[#allocation2 + $0xbe]] }
  0xb4   :  { %v6598_v34 = vpop.eup %5065  ;;  %v1123_v50 = vsub.f32 0.0, %v1122_v18  ;;  %v1132_v54 = vadd.f32 %v8797_v11, %v1130_v63  ;;  %v9030_v61 = vstv %s6229_s16  ;;  %v952_v4 = vadd.f32 %v950_v15, %v947_v21  ;;  %s6635_s16 = sld [smem:[#allocation2 + $0xa2]]  ;;  %9096 = sst [smem:[#allocation84_spill]] %s6919_s21 }
  0xb5   :  { %v887_v25 = vmul.f32 %v6591_v52, %v9030_v61  ;;  %v9031_v55 = vstv %s6339_s30  ;;  %v1150_v9 = vmul.f32 %v1149_v12, %v6532_v60  ;;  %5071 = vrcp.f32 %v819_v23  ;;  %s6675_s30 = sld [smem:[#allocation2 + $0x96]]  ;;  %9097 = sst [smem:[#allocation85_spill]] %s6925_s7 }
  0xb6   :  { %v955_v53 = vmul.f32 %v6175_v26, %v9031_v55  ;;  %v884_v18 = vadd.f32 %v882_v24, %v879_v36  ;;  %v1142_v63 = vadd.f32 %v8802_v62, %v1140_v48  ;;  %v8798_v46 = vstv %s6569_s1  ;;  %9036 = sst [smem:[#allocation43_spill]] %s6633_s24  ;;  %s9105_s21 = sld [smem:[#allocation30_spill]] }
  0xb7   :  { %9029 = sst [smem:[#allocation40_spill]] %s6604_s22  ;;  %5073 = vpow2.f32 %v1114_v42  ;;  %v1124_v11 = vmul.f32 1.442695, %v1123_v50  ;;  %v1133_v61 = vsub.f32 0.0, %v1132_v54  ;;  %v8799_v26 = vstv %s6582_s3  ;;  %s9083_s3 = sld [smem:[#allocation6_spill]] }
  0xb8   :  { %v957_v21 = vadd.f32 %v955_v53, %v952_v4  ;;  %v9034_v15 = vstv %s6356_s29  ;;  %v1152_v36 = vadd.f32 %v8798_v46, %v1150_v9  ;;  %v889_v23 = vadd.f32 %v887_v25, %v884_v18  ;;  %s6640_s29 = sld [smem:[#allocation2 + $0x94]]  ;;  %s9084_s1 = sld [smem:[#allocation9_spill]] }
  0xb9   :  { %v960_v55 = vmul.f32 %v6431_v17, %v9034_v15  ;;  %v6628_v24 = vpop.eup %5067  ;;  %v9035_v48 = vstv %s6241_s18  ;;  %v1143_v50 = vsub.f32 0.0, %v1142_v63  ;;  %5075 = vpow2.f32 %v1124_v11  ;;  %s6650_s18 = sld [smem:[#allocation2 + $0xa3]]  ;;  %9086 = sst [smem:[#allocation6_spill]] %s6873_s20 }
  0xba   :  { %v892_v42 = vmul.f32 %v6598_v34, %v9035_v48  ;;  %9037 = sst [smem:[#allocation44_spill]] %s6635_s16  ;;  %v1134_v54 = vmul.f32 1.442695, %v1133_v61  ;;  %v1160_v17 = vmul.f32 %v8799_v26, %v6532_v60  ;;  %v8800_v25 = vstv %s6604_s22  ;;  %s6717_s22 = sld [smem:[#allocation2 + $0xca]] }
  0xbb   :  { %v8801_v4 = vstv %s6602_s6  ;;  %v962_v9 = vadd.f32 %v960_v55, %v957_v21  ;;  %v9039_v18 = vstv %s6364_s26  ;;  %v1153_v15 = vsub.f32 0.0, %v1152_v36  ;;  %9044 = sst [smem:[#allocation49_spill]] %s6675_s30  ;;  %s6681_s26 = sld [smem:[#allocation2 + $0x97]] }
  0xbc   :  { %v965_v63 = vmul.f32 %v6503_v8, %v9039_v18  ;;  %v894_v48 = vadd.f32 %v892_v42, %v889_v23  ;;  %v9040_v11 = vstv %s6318_s27  ;;  %v1144_v46 = vmul.f32 1.442695, %v1143_v50  ;;  %s6666_s27 = sld [smem:[#allocation2 + $0x95]]  ;;  %s6864_s6 = sld [smem:[#allocation2 + $0x84]] }
  0xbd   :  { %v5070_v53 = vpop.eup %5069  ;;  %v897_v61 = vmul.f32 %v6628_v24, %v9040_v11  ;;  %5077 = vpow2.f32 %v1134_v54  ;;  %v1162_v26 = vadd.f32 %v8800_v25, %v1160_v17  ;;  %v1170_v21 = vmul.f32 %v8801_v4, %v6532_v60  ;;  %9087 = sst [smem:[#allocation9_spill]] %s6875_s17 }
  0xbe   :  { %9038 = sst [smem:[#allocation45_spill]] %s6640_s29  ;;  %v8822_v55 = vstv %s6618_s19  ;;  %v1106_v36 = vadd.f32 1.0, %v5070_v53  ;;  %v8817_v23 = vstv %s6620_s13  ;;  %v967_v50 = vadd.f32 %v965_v63, %v962_v9  ;;  %s6703_s13 = sld [smem:[#allocation2 + $0xa6]] }
  0xbf   :  { %9041 = sst [smem:[#allocation46_spill]] %s6650_s18  ;;  %v6658_v8 = vpop.eup %5071  ;;  %v970_v54 = vmul.f32 %v6545_v32, %v968_v30  ;;  %v1154_v17 = vmul.f32 1.442695, %v1153_v15  ;;  %v899_v18 = vadd.f32 %v897_v61, %v894_v48  ;;  %5079 = vpow2.f32 %v1144_v46 }
  0xc0   :  { %v1180_v11 = vmul.f32 %v8822_v55, %v6532_v60  ;;  %v1163_v25 = vsub.f32 0.0, %v1162_v26  ;;  %v1172_v4 = vadd.f32 %v8817_v23, %v1170_v21  ;;  %v8812_v53 = vstv %s6635_s16  ;;  %s6708_s16 = sld [smem:[#allocation2 + $0xa7]]  ;;  %9055 = sst [smem:[#allocation59_spill]] %s6717_s22 }
  0xc1   :  { %v5074_v42 = vpop.eup %5073  ;;  %v8821_v62 = vstv %s6633_s24  ;;  %v902_v30 = vmul.f32 %v6658_v8, %v900_v51  ;;  %5081 = vrcp.f32 %v1106_v36  ;;  %v8811_v46 = vstv %s6640_s29  ;;  %9045 = sst [smem:[#allocation50_spill]] %s6681_s26  ;;  %s6710_s24 = sld [smem:[#allocation2 + $0xa8]] }
  0xc2   :  { %9043 = sst [smem:[#allocation48_spill]] %s6666_s27  ;;  %v1116_v32 = vadd.f32 1.0, %v5074_v42  ;;  %v972_v26 = vadd.f32 %v970_v54, %v967_v50  ;;  %v9047_v63 = vstv %s6380_s4  ;;  %5083 = vpow2.f32 %v1154_v17  ;;  %s6701_s4 = sld [smem:[#allocation2 + $0x99]] }
  0xc3   :  { %v5076_v9 = vpop.eup %5075  ;;  %v975_v15 = vmul.f32 %v6561_v28, %v9047_v63  ;;  %v1182_v51 = vadd.f32 %v8812_v53, %v1180_v11  ;;  %v1190_v48 = vmul.f32 %v8821_v62, %v6532_v60  ;;  %v1164_v61 = vmul.f32 1.442695, %v1163_v25  ;;  %s6715_s29 = sld [smem:[#allocation2 + $0xac]]  ;;  %s6862_s19 = sld [smem:[#allocation2 + $0x75]] }
  0xc4   :  { %v1173_v21 = vsub.f32 0.0, %v1172_v4  ;;  %v8810_v36 = vstv %s6650_s18  ;;  %v1200_v42 = vmul.f32 %v8811_v46, %v6532_v60  ;;  %9051 = sst [smem:[#allocation55_spill]] %s6703_s13  ;;  %v6705_v28 = vadd.f32 %v902_v30, %v899_v18  ;;  %s6856_s18 = sld [smem:[#allocation2 + $0xb8]] }
  0xc5   :  { %5085 = vrcp.f32 %v1116_v32  ;;  %v1126_v50 = vadd.f32 1.0, %v5076_v9  ;;  %v8809_v54 = vstv %s6660_s14  ;;  %v977_v25 = vadd.f32 %v975_v15, %v972_v26  ;;  %s6847_s14 = sld [smem:[#allocation2 + $0x7b]]  ;;  %9080 = sst [smem:[#allocation78_spill]] %s6864_s6 }
  0xc6   :  { %9052 = sst [smem:[#allocation56_spill]] %s6708_s16  ;;  %v980_v4 = vmul.f32 %v6591_v52, %v978_v45  ;;  %v1183_v18 = vsub.f32 0.0, %v1182_v51  ;;  %v1192_v11 = vadd.f32 %v8810_v36, %v1190_v48  ;;  %v8808_v30 = vstv %s6666_s27  ;;  %s6841_s27 = sld [smem:[#allocation2 + $0xb5]] }
  0xc7   :  { %v5078_v17 = vpop.eup %5077  ;;  %9053 = sst [smem:[#allocation57_spill]] %s6710_s24  ;;  %v9056_v32 = vstv %s6402_s12  ;;  %5087 = vpow2.f32 %v1164_v61  ;;  %v1174_v26 = vmul.f32 1.442695, %v1173_v21  ;;  %v1202_v45 = vadd.f32 %v8809_v54, %v1200_v42  ;;  %s6740_s12 = sld [smem:[#allocation2 + $0xae]] }
  0xc8   :  { %9050 = sst [smem:[#allocation54_spill]] %s6701_s4  ;;  %v6725_v9 = vmul.f32 %v6598_v34, %v9056_v32  ;;  %v906_v63 = vsub.f32 0.0, %v6705_v28  ;;  %5089 = vrcp.f32 %v1126_v50  ;;  %v1136_v15 = vadd.f32 1.0, %v5078_v17 }
  0xc9   :  { %9054 = sst [smem:[#allocation58_spill]] %s6715_s29  ;;  %v5080_v52 = vpop.eup %5079  ;;  %v8814_v51 = vstv %s6675_s30  ;;  %v982_v48 = vadd.f32 %v980_v4, %v977_v25  ;;  %v1210_v34 = vmul.f32 %v8808_v30, %v6532_v60  ;;  %v8816_v61 = vstv %s6683_s28  ;;  %s6763_s30 = sld [smem:[#allocation2 + $0xb0]] }
  0xca   :  { %v8815_v21 = vstv %s6681_s26  ;;  %v1184_v28 = vmul.f32 1.442695, %v1183_v18  ;;  %v1193_v50 = vsub.f32 0.0, %v1192_v11  ;;  %v8819_v17 = vstv %s6688_s25  ;;  %s6776_s25 = sld [smem:[#allocation2 + $0xab]]  ;;  %s6778_s26 = sld [smem:[#allocation2 + $0xad]] }
  0xcb   :  { %v6738_v42 = vpop.eup %5081  ;;  %v8820_v25 = vstv %s6690_s23  ;;  %v1146_v32 = vadd.f32 1.0, %v5080_v52  ;;  %5091 = vpow2.f32 %v1174_v26  ;;  %v1203_v30 = vsub.f32 0.0, %v1202_v45  ;;  %s6807_s23 = sld [smem:[#allocation2 + $0xb4]]  ;;  %s6829_s28 = sld [smem:[#allocation2 + $0x82]] }
  0xcc   :  { %v5084_v4 = vpop.eup %5083  ;;  %v1220_v54 = vmul.f32 %v8814_v51, %v6532_v60  ;;  %5093 = vrcp.f32 %v1136_v15  ;;  %v8901_v36 = vstv %s6703_s13  ;;  %v1230_v18 = vmul.f32 %v8815_v21, %v6532_v60  ;;  %s6827_s13 = sld [smem:[#allocation2 + $0x73]]  ;;  %9074 = sst [smem:[#allocation72_spill]] %s6841_s27 }
  0xcd   :  { %9058 = sst [smem:[#allocation61_spill]] %s6740_s12  ;;  %v8878_v11 = vstv %s6701_s4  ;;  %v1212_v46 = vadd.f32 %v8816_v61, %v1210_v34  ;;  %v8833_v53 = vstv %s6708_s16  ;;  %v1240_v26 = vmul.f32 %v8819_v17, %v6532_v60  ;;  %s6789_s4 = sld [smem:[#allocation2 + $0xb2]] }
  0xce   :  { %v1260_v45 = vmul.f32 %v6738_v42, %v8820_v25  ;;  %v1156_v15 = vadd.f32 1.0, %v5084_v4  ;;  %v8832_v51 = vstv %s6710_s24  ;;  %v8830_v21 = vstv %s6717_s22  ;;  %s6791_s16 = sld [smem:[#allocation2 + $0xcb]]  ;;  %s9065_s22 = sld [smem:[#allocation27_spill]] }
  0xcf   :  { %v6761_v52 = vpop.eup %5085  ;;  %9059 = sst [smem:[#allocation62_spill]] %s6763_s30  ;;  %v8831_v34 = vstv %s6715_s29  ;;  %5095 = vpow2.f32 %v1184_v28  ;;  %v1194_v61 = vmul.f32 1.442695, %v1193_v50  ;;  %v1222_v23 = vadd.f32 %v8901_v36, %v1220_v54  ;;  %s6799_s29 = sld [smem:[#allocation2 + $0xaf]] }
  0xd0   :  { %v1250_v17 = vmul.f32 %v8878_v11, %v6532_v60  ;;  %5097 = vrcp.f32 %v1146_v32  ;;  %v1204_v25 = vmul.f32 1.442695, %v1203_v30  ;;  %v1232_v62 = vadd.f32 %v8833_v53, %v1230_v18  ;;  %9061 = sst [smem:[#allocation26_spill]] %s6776_s25 }
  0xd1   :  { %v8834_v4 = vstv %s6729_s5  ;;  %v5088_v55 = vpop.eup %5087  ;;  %9062 = sst [smem:[#allocation63_spill]] %s6778_s26  ;;  %v1213_v28 = vsub.f32 0.0, %v1212_v46  ;;  %v1242_v50 = vadd.f32 %v8832_v51, %v1240_v26  ;;  %v1262_v54 = vadd.f32 %v8830_v21, %v1260_v45  ;;  %s6801_s24 = sld [smem:[#allocation2 + $0xb1]] }
  0xd2   :  { %v1264_v60 = vmul.f32 %v6761_v52, %v8831_v34  ;;  %v6787_v32 = vpop.eup %5089  ;;  %v990_v30 = vmul.f32 %v6628_v24, %v988_v27  ;;  %5099 = vrcp.f32 %v1156_v15  ;;  %v8872_v18 = vstv %s6740_s12  ;;  %9068 = sst [smem:[#allocation67_spill]] %s6807_s23  ;;  %s6813_s5 = sld [smem:[#allocation2 + $0xb3]] }
  0xd3   :  { %9063 = sst [smem:[#allocation64_spill]] %s6789_s4  ;;  %v909_v46 = vmul.f32 1.442695, %v906_v63  ;;  %5101 = vpow2.f32 %v1194_v61  ;;  %v1223_v26 = vsub.f32 0.0, %v1222_v23  ;;  %v1252_v45 = vadd.f32 %v8834_v4, %v1250_v17  ;;  %s6821_s12 = sld [smem:[#allocation2 + $0xb6]] }
  0xd4   :  { %9064 = sst [smem:[#allocation65_spill]] %s6791_s16  ;;  %v987_v21 = vadd.f32 %v6725_v9, %v982_v48  ;;  %v1166_v34 = vadd.f32 1.0, %v5088_v55  ;;  %5103 = vpow2.f32 %v1204_v25  ;;  %v1233_v51 = vsub.f32 0.0, %v1232_v62 }
  0xd5   :  { %9066 = sst [smem:[#allocation27_spill]] %s6799_s29  ;;  %v5092_v27 = vpop.eup %5091  ;;  %v1214_v24 = vmul.f32 1.442695, %v1213_v28  ;;  %v1243_v15 = vsub.f32 0.0, %v1242_v50  ;;  %v1265_v53 = vadd.f32 %v1264_v60, %v1262_v54  ;;  %v1267_v63 = vmul.f32 %v6787_v32, %v8872_v18 }
  0xd6   :  { %v5094_v23 = vpop.eup %5093  ;;  %v8868_v61 = vstv %s6763_s30  ;;  %5105 = vpow2.f32 %v909_v46  ;;  %v9069_v17 = vstv %s9065_s22  ;;  %v1224_v55 = vmul.f32 1.442695, %v1223_v26  ;;  %s6819_s22 = sld [smem:[#allocation2 + $0x72]]  ;;  %9071 = sst [smem:[#allocation69_spill]] %s6827_s13 }
  0xd7   :  { %9067 = sst [smem:[#allocation66_spill]] %s6801_s24  ;;  %v995_v4 = vmul.f32 %v6658_v8, %v9069_v17  ;;  %v1253_v62 = vsub.f32 0.0, %v1252_v45  ;;  %v992_v9 = vadd.f32 %v990_v30, %v987_v21  ;;  %5107 = vrcp.f32 %v1166_v34  ;;  %s6839_s30 = sld [smem:[#allocation2 + $0x7a]] }
  0xd8   :  { %v1176_v48 = vadd.f32 1.0, %v5092_v27  ;;  %v1234_v25 = vmul.f32 1.442695, %v1233_v51  ;;  %5109 = vpow2.f32 %v1214_v24  ;;  %v1244_v50 = vmul.f32 1.442695, %v1243_v15  ;;  %9072 = sst [smem:[#allocation70_spill]] %s6829_s28 }
  0xd9   :  { %v5096_v28 = vpop.eup %5095  ;;  %v1268_v54 = vadd.f32 %v1267_v63, %v1265_v53  ;;  %v1270_v8 = vmul.f32 %v5094_v23, %v8868_v61  ;;  %v8865_v46 = vstv %s6789_s4  ;;  %v8877_v21 = vstv %s6776_s25  ;;  %s6845_s25 = sld [smem:[#allocation2 + $0x74]]  ;;  %9076 = sst [smem:[#allocation74_spill]] %s6847_s14 }
  0xda   :  { %v6817_v60 = vpop.eup %5097  ;;  %v8871_v34 = vstv %s6791_s16  ;;  %v8870_v51 = vstv %s6778_s26  ;;  %5111 = vpow2.f32 %v1224_v55  ;;  %v1254_v53 = vmul.f32 1.442695, %v1253_v62  ;;  %s6854_s26 = sld [smem:[#allocation2 + $0x83]]  ;;  %9079 = sst [smem:[#allocation77_spill]] %s6862_s19 }
  0xdb   :  { %v1315_v30 = vmul.f32 %v6738_v42, %v8877_v21  ;;  %v1319_v26 = vmul.f32 %v6761_v52, %v8870_v51  ;;  %5113 = vrcp.f32 %v1176_v48  ;;  %v1186_v27 = vadd.f32 1.0, %v5096_v28  ;;  %9078 = sst [smem:[#allocation76_spill]] %s6856_s18  ;;  %s6868_s4 = sld [smem:[#allocation2 + $0x7c]] }
  0xdc   :  { %9070 = sst [smem:[#allocation68_spill]] %s6819_s22  ;;  %v6837_v45 = vpop.eup %5099  ;;  %v8866_v24 = vstv %s6799_s29  ;;  %v8864_v15 = vstv %s6801_s24  ;;  %5115 = vpow2.f32 %v1234_v25  ;;  %v1271_v42 = vadd.f32 %v1270_v8, %v1268_v54  ;;  %s6870_s16 = sld [smem:[#allocation2 + $0xb7]] }
  0xdd   :  { %9073 = sst [smem:[#allocation71_spill]] %s6839_s30  ;;  %v5102_v63 = vpop.eup %5101  ;;  %v1273_v52 = vmul.f32 %v6817_v60, %v8865_v46  ;;  %v1317_v17 = vadd.f32 %v8871_v34, %v1315_v30  ;;  %5117 = vpow2.f32 %v1244_v50  ;;  %v8863_v62 = vstv %s6807_s23  ;;  %s9085_s29 = sld [smem:[#allocation14_spill]] }
  0xde   :  { %v5104_v55 = vpop.eup %5103  ;;  %v1322_v48 = vmul.f32 %v6787_v32, %v8866_v24  ;;  %5119 = vpow2.f32 %v1254_v53  ;;  %v1325_v28 = vmul.f32 %v5094_v23, %v8864_v15  ;;  %v997_v54 = vadd.f32 %v995_v4, %v992_v9  ;;  %s6882_s24 = sld [smem:[#allocation2 + $0x7d]]  ;;  %s6943_s23 = sld [smem:[#allocation2 + $0xc4]] }
  0xdf   :  { %9075 = sst [smem:[#allocation73_spill]] %s6845_s25  ;;  %v1320_v25 = vadd.f32 %v1319_v26, %v1317_v17  ;;  %5121 = vrcp.f32 %v1186_v27  ;;  %v1196_v50 = vadd.f32 1.0, %v5102_v63  ;;  %v8867_v8 = vstv %s6813_s5  ;;  %v5347_v26 = vld [vmem:[%s9090_s9 + $0x1] sm:$0x1]  ;;  %s6953_s14 = sld [smem:[#allocation2 + $0xbf]] }
  0xe0   :  { %9077 = sst [smem:[#allocation75_spill]] %s6854_s26  ;;  %v5106_v32 = vpop.eup %5105  ;;  %v1206_v53 = vadd.f32 1.0, %v5104_v55  ;;  %v1274_v23 = vadd.f32 %v1273_v52, %v1271_v42  ;;  %v1276_v30 = vmul.f32 %v6837_v45, %v8863_v62  ;;  %v9091_v27 = vstv %s9083_s3  ;;  %v5348_v42 = vld [vmem:[%s9090_s9 + $0x2] sm:$0x1]  ;;  %v5349_v55 = vld [vmem:[%s9090_s9 + $0x3] sm:$0x1] }
  0xe1   :  { %9081 = sst [smem:[#allocation79_spill]] %s6868_s4  ;;  %v1323_v4 = vadd.f32 %v1322_v48, %v1320_v25  ;;  %v6880_v9 = vpop.eup %5107  ;;  %v6891_v63 = vmul.f32 %v5347_v26, %v9091_v27  ;;  %v9092_v52 = vstv %s9084_s1  ;;  %v8869_v62 = vstv %s6821_s12  ;;  %s6933_s1 = sld [smem:[#allocation2 + $0xbb]] }
  0xe2   :  { %9082 = sst [smem:[#allocation80_spill]] %s6870_s16  ;;  %v6898_v17 = vmul.f32 %v5348_v42, %v9092_v52  ;;  %v5110_v15 = vpop.eup %5109  ;;  %v1328_v24 = vmul.f32 %v6817_v60, %v8867_v8  ;;  %v999_v42 = vsub.f32 0.0, %v997_v54  ;;  %5123 = vrcp.f32 %v1196_v50  ;;  %s6935_s3 = sld [smem:[#allocation2 + $0xc0]] }
  0xe3   :  { %v9093_v48 = vstv %s9085_s29  ;;  %v1326_v46 = vadd.f32 %v1325_v28, %v1323_v4  ;;  %5125 = vrcp.f32 %v1206_v53  ;;  %v1277_v60 = vadd.f32 %v1276_v30, %v1274_v23  ;;  %9098 = sst [smem:[#allocation86_spill]] %s6927_s0  ;;  %s6941_s29 = sld [smem:[#allocation2 + $0xc2]] }
  0xe4   :  { %9088 = sst [smem:[#allocation14_spill]] %s6882_s24  ;;  %v6905_v25 = vmul.f32 %v5349_v55, %v9093_v48  ;;  %v8874_v55 = vstv %s6841_s27  ;;  %v5112_v48 = vpop.eup %5111  ;;  %v1279_v4 = vmul.f32 %v6880_v9, %v8869_v62  ;;  %v8879_v61 = vstv %s6856_s18  ;;  %s6948_s9 = sld [smem:[#allocation2 + $0xbd]] }
  0xe5   :  { %v5114_v8 = vpop.eup %5113  ;;  %v912_v53 = vadd.f32 1.0, %v5106_v32  ;;  %v1329_v30 = vadd.f32 %v1328_v24, %v1326_v46  ;;  %v1331_v62 = vmul.f32 %v6837_v45, %v8874_v55  ;;  %9101 = sst [smem:[#allocation89_spill]] %s6943_s23  ;;  %v1002_v50 = vmul.f32 1.442695, %v999_v42  ;;  %s6976_s30 = sld [smem:[#allocation2 + $0xc1]] }
  0xe6   :  { %v5116_v27 = vpop.eup %5115  ;;  %v8895_v18 = vstv %s6870_s16  ;;  %v1216_v24 = vadd.f32 1.0, %v5110_v15  ;;  %v1280_v45 = vadd.f32 %v1279_v4, %v1277_v60  ;;  %v1282_v55 = vmul.f32 %v5114_v8, %v8879_v61  ;;  %9103 = sst [smem:[#allocation91_spill]] %s6953_s14  ;;  %s9106_s18 = sld [smem:[#allocation32_spill]] }
  0xe7   :  { %9099 = sst [smem:[#allocation87_spill]] %s6933_s1  ;;  %v5118_v54 = vpop.eup %5117  ;;  %v1226_v51 = vadd.f32 1.0, %v5112_v48  ;;  %v8894_v34 = vstv %s6884_s10  ;;  %5127 = vrcp.f32 %v912_v53  ;;  %v1236_v11 = vadd.f32 1.0, %v5116_v27  ;;  %s9104_s10 = sld [smem:[#allocation171_spill]] }
  0xe8   :  { %9100 = sst [smem:[#allocation88_spill]] %s6935_s3  ;;  %v5120_v32 = vpop.eup %5119  ;;  %v1332_v52 = vadd.f32 %v1331_v62, %v1329_v30  ;;  %v1334_v15 = vmul.f32 %v6880_v9, %v8895_v18  ;;  %5129 = vpow2.f32 %v1002_v50  ;;  %v1246_v4 = vadd.f32 1.0, %v5118_v54  ;;  %s9107_s16 = sld [smem:[#allocation28_spill]] }
  0xe9   :  { %v5122_v23 = vpop.eup %5121  ;;  %v8893_v61 = vstv %s6915_s15  ;;  %5131 = vrcp.f32 %v1216_v24  ;;  %v1256_v21 = vadd.f32 1.0, %v5120_v32  ;;  %v1283_v46 = vadd.f32 %v1282_v55, %v1280_v45  ;;  %s9110_s24 = sld [smem:[#allocation29_spill]]  ;;  %s9112_s4 = sld [smem:[#allocation34_spill]] }
  0xea   :  { %9102 = sst [smem:[#allocation90_spill]] %s6948_s9  ;;  %v1285_v48 = vmul.f32 %v5122_v23, %v8894_v34  ;;  %5133 = vrcp.f32 %v1226_v51  ;;  %v8897_v62 = vstv %s6925_s7  ;;  %v8899_v9 = vstv %s6927_s0  ;;  %s9116_s7 = sld [smem:[#allocation36_spill]] }
  0xeb   :  { %5135 = vrcp.f32 %v1236_v11  ;;  %v1335_v54 = vadd.f32 %v1334_v15, %v1332_v52  ;;  %v1337_v55 = vmul.f32 %v5114_v8, %v8893_v61  ;;  %v8900_v30 = vstv %s6933_s1  ;;  %s9118_s0 = sld [smem:[#allocation37_spill]]  ;;  %s9129_s27 = sld [smem:[#allocation39_spill]] }
  0xec   :  { %v5124_v53 = vpop.eup %5123  ;;  %5137 = vrcp.f32 %v1246_v4  ;;  %v1286_v8 = vadd.f32 %v1285_v48, %v1283_v46  ;;  %v8902_v45 = vstv %s6948_s9  ;;  %v1340_v27 = vmul.f32 %v5122_v23, %v8900_v30  ;;  %s9130_s15 = sld [smem:[#allocation41_spill]]  ;;  %s7051_s9 = sld [smem:[#allocation2 + $0xc6]] }
  0xed   :  { %v5126_v50 = vpop.eup %5125  ;;  %v6974_v32 = vld [vmem:[%s9104_s10] sm:$0x3]  ;;  %5139 = vrcp.f32 %v1256_v21  ;;  %v1288_v24 = vmul.f32 %v5124_v53, %v8897_v62  ;;  %s9111_s10 = sld [smem:[#allocation31_spill]]  ;;  %v8907_v4 = vstv %s6953_s14  ;;  %v9113_v61 = vstv %s6491_s11  ;;  %s7021_s11 = sld [smem:[#allocation2 + $0xc3]] }
  0xee   :  { %v1291_v15 = vmul.f32 %v5126_v50, %v8899_v9  ;;  %v1426_v34 = vmul.f32 %v6974_v32, %v9113_v61  ;;  %v1338_v18 = vadd.f32 %v1337_v55, %v1335_v54  ;;  %v9114_v60 = vstv %s6493_s8  ;;  %s7029_s8 = sld [smem:[#allocation2 + $0x77]]  ;;  %s9139_s14 = sld [smem:[#allocation45_spill]] }
  0xef   :  { %v1434_v21 = vmul.f32 %v6974_v32, %v9114_v60  ;;  %v9115_v46 = vstv %s9105_s21  ;;  %v9117_v62 = vstv %s9106_s18  ;;  %v1343_v42 = vmul.f32 %v5124_v53, %v8902_v45  ;;  %s9128_s18 = sld [smem:[#allocation38_spill]]  ;;  %s9131_s21 = sld [smem:[#allocation40_spill]] }
  0xf0   :  { %v1442_v48 = vmul.f32 %v6974_v32, %v9115_v46  ;;  %v1450_v9 = vmul.f32 %v6974_v32, %v9117_v62  ;;  %v9119_v23 = vstv %s9107_s16  ;;  %v1458_v61 = vmul.f32 %v6974_v32, %v1139_v43  ;;  %s7033_s16 = sld [smem:[#allocation2 + $0x78]] }
  0xf1   :  { %v1427_v30 = vadd.f32 %v1426_v34, %v9119_v23  ;;  %v1466_v54 = vmul.f32 %v6974_v32, %v1149_v12  ;;  %v7011_v55 = vpop.eup %5127  ;;  %v1289_v60 = vadd.f32 %v1288_v24, %v1286_v8  ;;  %v9120_v36 = vstv %s9110_s24  ;;  %s7042_s24 = sld [smem:[#allocation2 + $0x87]]  ;;  %s7059_s1 = sld [smem:[#allocation2 + $0x88]] }
  0xf2   :  { %v1435_v28 = vadd.f32 %v1434_v21, %v9120_v36  ;;  %v9122_v52 = vstv %s9112_s4  ;;  %v7019_v11 = vpop.eup %5129  ;;  %v1346_v34 = vmul.f32 %v5126_v50, %v8907_v4  ;;  %v9124_v53 = vstv %s9116_s7  ;;  %s7040_s7 = sld [smem:[#allocation2 + $0x7f]]  ;;  %s9137_s4 = sld [smem:[#allocation44_spill]] }
  0xf3   :  { %v9121_v46 = vstv %s9111_s10  ;;  %v1451_v62 = vadd.f32 %v1450_v9, %v9122_v52  ;;  %9123 = sst [smem:[#allocation30_spill]] %s7021_s11  ;;  %v1428_v43 = vsub.f32 0.0, %v1427_v30  ;;  %v1459_v23 = vadd.f32 %v1458_v61, %v9124_v53  ;;  %v5132_v51 = vpop.eup %5131  ;;  %s9136_s10 = sld [smem:[#allocation42_spill]] }
  0xf4   :  { %v1443_v26 = vadd.f32 %v1442_v48, %v9121_v46  ;;  %v9125_v12 = vstv %s9118_s0  ;;  %9126 = sst [smem:[#allocation32_spill]] %s7029_s8  ;;  %v1341_v36 = vadd.f32 %v1340_v27, %v1338_v18  ;;  %v1436_v8 = vsub.f32 0.0, %v1435_v28  ;;  %v7031_v9 = vpop.eup %5133  ;;  %s9133_s0 = sld [smem:[#allocation43_spill]] }
  0xf5   :  { %v1467_v45 = vadd.f32 %v1466_v54, %v9125_v12  ;;  %v1452_v21 = vsub.f32 0.0, %v1451_v62  ;;  %v1429_v50 = vmul.f32 1.442695, %v1428_v43  ;;  %v1460_v30 = vsub.f32 0.0, %v1459_v23  ;;  %v7036_v61 = vpop.eup %5135  ;;  %9140 = sst [smem:[#allocation29_spill]] %s7051_s9 }
  0xf6   :  { %v1444_v24 = vsub.f32 0.0, %v1443_v26  ;;  %9127 = sst [smem:[#allocation28_spill]] %s7033_s16  ;;  %v1292_v54 = vadd.f32 %v1291_v15, %v1289_v60  ;;  %v1437_v46 = vmul.f32 1.442695, %v1436_v8  ;;  %v7038_v26 = vpop.eup %5137  ;;  %v9135_v27 = vstv %s6935_s3  ;;  %s9143_s3 = sld [smem:[#allocation46_spill]] }
  0xf7   :  { %v1468_v48 = vsub.f32 0.0, %v1467_v45  ;;  %v1453_v28 = vmul.f32 1.442695, %v1452_v21  ;;  %9134 = sst [smem:[#allocation35_spill]] %s7042_s24  ;;  %v1294_v62 = vmul.f32 %v5132_v51, %v9135_v27  ;;  %5141 = vpow2.f32 %v1429_v50  ;;  %v7049_v60 = vpop.eup %5139 }
  0xf8   :  { %v1445_v18 = vmul.f32 1.442695, %v1444_v24  ;;  %9132 = sst [smem:[#allocation33_spill]] %s7040_s7  ;;  %v1461_v45 = vmul.f32 1.442695, %v1460_v30  ;;  %v9138_v43 = vstv %s9128_s18  ;;  %v1344_v53 = vadd.f32 %v1343_v42, %v1341_v36  ;;  %s7073_s18 = sld [smem:[#allocation2 + $0xc5]] }
  0xf9   :  { %v1474_v15 = vmul.f32 %v6974_v32, %v9138_v43  ;;  %5143 = vpow2.f32 %v1437_v46  ;;  %v9141_v23 = vstv %s9129_s27  ;;  %v9142_v8 = vstv %s9130_s15  ;;  %9144 = sst [smem:[#allocation31_spill]] %s7059_s1  ;;  %s7075_s27 = sld [smem:[#allocation2 + $0xc8]] }
  0xfa   :  { %v1482_v12 = vmul.f32 %v6974_v32, %v9141_v23  ;;  %v1490_v24 = vmul.f32 %v6974_v32, %v9142_v8  ;;  %5145 = vpow2.f32 %v1445_v18  ;;  %v1469_v21 = vmul.f32 1.442695, %v1468_v48  ;;  %s9150_s15 = sld [smem:[#allocation47_spill]] }
  0xfb   :  { %v9145_v50 = vstv %s9131_s21  ;;  %v9146_v27 = vstv %s9133_s0  ;;  %5147 = vpow2.f32 %v1453_v28  ;;  %v9147_v42 = vstv %s9136_s10  ;;  %s7085_s21 = sld [smem:[#allocation2 + $0x80]]  ;;  %s7093_s0 = sld [smem:[#allocation2 + $0xc7]] }
  0xfc   :  { %v1475_v30 = vadd.f32 %v1474_v15, %v9145_v50  ;;  %v1498_v43 = vmul.f32 %v6974_v32, %v9146_v27  ;;  %v1483_v36 = vadd.f32 %v1482_v12, %v9147_v42  ;;  %v9148_v46 = vstv %s9137_s4  ;;  %s7103_s10 = sld [smem:[#allocation2 + $0x81]]  ;;  %s9161_s4 = sld [smem:[#allocation48_spill]] }
  0xfd   :  { %v1491_v23 = vadd.f32 %v1490_v24, %v9148_v46  ;;  %v9149_v4 = vstv %s9139_s14  ;;  %5149 = vpow2.f32 %v1461_v45  ;;  %v9151_v15 = vstv %s9143_s3  ;;  %s7083_s14 = sld [smem:[#allocation2 + $0x79]] }
  0xfe   :  { %v1506_v52 = vmul.f32 %v6974_v32, %v9149_v4  ;;  %v1476_v48 = vsub.f32 0.0, %v1475_v30  ;;  %v1499_v8 = vadd.f32 %v1498_v43, %v9151_v15  ;;  %v1295_v50 = vadd.f32 %v1294_v62, %v1292_v54  ;;  %s7091_s3 = sld [smem:[#allocation2 + $0x89]] }
  0xff   :  { %v9152_v28 = vstv %s6941_s29  ;;  %v1484_v24 = vsub.f32 0.0, %v1483_v36  ;;  %v1492_v27 = vsub.f32 0.0, %v1491_v23  ;;  %v1347_v4 = vadd.f32 %v1346_v34, %v1344_v53 }
 0x100   :  { %v1297_v12 = vmul.f32 %v7031_v9, %v9152_v28  ;;  %v9155_v45 = vstv %s6976_s30  ;;  %5151 = vpow2.f32 %v1469_v21  ;;  %v1477_v54 = vmul.f32 1.442695, %v1476_v48 }
 0x101   :  { %9154 = sst [smem:[#allocation36_spill]] %s7085_s21  ;;  %v1349_v30 = vmul.f32 %v5132_v51, %v9155_v45  ;;  %v1485_v62 = vmul.f32 1.442695, %v1484_v24  ;;  %v1493_v43 = vmul.f32 1.442695, %v1492_v27  ;;  %v1500_v42 = vsub.f32 0.0, %v1499_v8  ;;  %v5142_v48 = vpop.eup %5141 }
 0x102   :  { %v9156_v46 = vstv %s9150_s15  ;;  %v1298_v53 = vadd.f32 %v1297_v12, %v1295_v50  ;;  %v9158_v18 = vstv %s6943_s23  ;;  %v8910_v21 = vstv %s7051_s9  ;;  %9159 = sst [smem:[#allocation38_spill]] %s7103_s10  ;;  %s9162_s15 = sld [smem:[#allocation49_spill]] }
 0x103   :  { %9153 = sst [smem:[#allocation34_spill]] %s7083_s14  ;;  %v1507_v36 = vadd.f32 %v1506_v52, %v9156_v46  ;;  %v1300_v51 = vmul.f32 %v7036_v61, %v9158_v18  ;;  %5153 = vpow2.f32 %v1477_v54  ;;  %v1350_v8 = vadd.f32 %v1349_v30, %v1347_v4  ;;  %v5144_v45 = vpop.eup %5143  ;;  %s9166_s9 = sld [smem:[#allocation55_spill]] }
 0x104   :  { %9157 = sst [smem:[#allocation37_spill]] %s7091_s3  ;;  %v9160_v24 = vstv %s7021_s11  ;;  %5155 = vpow2.f32 %v1485_v62  ;;  %v1431_v50 = vadd.f32 1.0, %v5142_v48  ;;  %v1501_v18 = vmul.f32 1.442695, %v1500_v42  ;;  %v5146_v54 = vpop.eup %5145  ;;  %s7109_s23 = sld [smem:[#allocation2 + $0xc9]] }
 0x105   :  { %v1352_v27 = vmul.f32 %v7031_v9, %v9160_v24  ;;  %5157 = vpow2.f32 %v1493_v43  ;;  %v1508_v12 = vsub.f32 0.0, %v1507_v36  ;;  %v1303_v4 = vmul.f32 %v7038_v26, %v8910_v21  ;;  %v5148_v62 = vpop.eup %5147  ;;  %s9164_s11 = sld [smem:[#allocation51_spill]] }
 0x106   :  { %v8913_v30 = vstv %s7075_s27  ;;  %v8912_v46 = vstv %s7073_s18  ;;  %v1439_v9 = vadd.f32 1.0, %v5144_v45  ;;  %v1301_v48 = vadd.f32 %v1300_v51, %v1298_v53 }
 0x107   :  { %5159 = vrcp.f32 %v1431_v50  ;;  %v1447_v43 = vadd.f32 1.0, %v5146_v54  ;;  %v9163_v42 = vstv %s9161_s4  ;;  %v5150_v24 = vpop.eup %5149  ;;  %v1353_v15 = vadd.f32 %v1352_v27, %v1350_v8  ;;  %s9167_s4 = sld [smem:[#allocation50_spill]] }
 0x108   :  { %v1514_v36 = vmul.f32 %v6974_v32, %v9163_v42  ;;  %5161 = vrcp.f32 %v1439_v9  ;;  %v9165_v21 = vstv %s9162_s15  ;;  %v1355_v53 = vmul.f32 %v7036_v61, %v8912_v46  ;;  %s9172_s15 = sld [smem:[#allocation52_spill]] }
 0x109   :  { %v1522_v45 = vmul.f32 %v6974_v32, %v9165_v21  ;;  %5163 = vpow2.f32 %v1501_v18  ;;  %v1509_v51 = vmul.f32 1.442695, %v1508_v12  ;;  %v1306_v42 = vmul.f32 %v7049_v60, %v8913_v30 }
 0x10a   :  { %v5152_v50 = vpop.eup %5151  ;;  %v8914_v28 = vstv %s7093_s0  ;;  %v1455_v9 = vadd.f32 1.0, %v5148_v62  ;;  %v1304_v52 = vadd.f32 %v1303_v4, %v1301_v48  ;;  %5165 = vrcp.f32 %v1447_v43 }
 0x10b   :  { %v1463_v21 = vadd.f32 1.0, %v5150_v24  ;;  %v9168_v8 = vstv %s9164_s11  ;;  %v9169_v34 = vstv %s6819_s22  ;;  %v9170_v18 = vstv %s6827_s13  ;;  %s9173_s11 = sld [smem:[#allocation54_spill]]  ;;  %s9180_s13 = sld [smem:[#allocation60_spill]] }
 0x10c   :  { %v1515_v27 = vadd.f32 %v1514_v36, %v9168_v8  ;;  %v7137_v61 = vmul.f32 %v7011_v55, %v9169_v34  ;;  %v7142_v12 = vmul.f32 %v7011_v55, %v9170_v18  ;;  %v9171_v54 = vstv %s9166_s9  ;;  %s9175_s9 = sld [smem:[#allocation56_spill]]  ;;  %s9181_s22 = sld [smem:[#allocation53_spill]] }
 0x10d   :  { %v1523_v30 = vadd.f32 %v1522_v45, %v9171_v54  ;;  %v5154_v62 = vpop.eup %5153  ;;  %v1356_v4 = vadd.f32 %v1355_v53, %v1353_v15  ;;  %v1358_v48 = vmul.f32 %v7038_v26, %v8914_v28  ;;  %v1471_v43 = vadd.f32 1.0, %v5152_v50 }
 0x10e   :  { %5167 = vpow2.f32 %v1509_v51  ;;  %v5156_v36 = vpop.eup %5155  ;;  %v1005_v34 = vadd.f32 1.0, %v7019_v11  ;;  %v8918_v24 = vstv %s7109_s23  ;;  %v9174_v8 = vstv %s9167_s4  ;;  %s9179_s4 = sld [smem:[#allocation57_spill]] }
 0x10f   :  { %5169 = vrcp.f32 %v1455_v9  ;;  %v1530_v18 = vmul.f32 %v6974_v32, %v9174_v8  ;;  %v5158_v45 = vpop.eup %5157  ;;  %v1307_v54 = vadd.f32 %v1306_v42, %v1304_v52  ;;  %v1516_v15 = vsub.f32 0.0, %v1515_v27 }
 0x110   :  { %5171 = vrcp.f32 %v1463_v21  ;;  %v9176_v26 = vstv %s9172_s15  ;;  %v9177_v51 = vstv %s6845_s25  ;;  %v1479_v11 = vadd.f32 1.0, %v5154_v62  ;;  %s9184_s15 = sld [smem:[#allocation58_spill]]  ;;  %s9187_s25 = sld [smem:[#allocation59_spill]] }
 0x111   :  { %v1538_v53 = vmul.f32 %v6974_v32, %v9176_v26  ;;  %v7161_v50 = vmul.f32 %v7011_v55, %v9177_v51  ;;  %v1524_v28 = vsub.f32 0.0, %v1523_v30  ;;  %v9178_v9 = vstv %s9173_s11  ;;  %v5160_v46 = vpop.eup %5159  ;;  %s9185_s11 = sld [smem:[#allocation26_spill]] }
 0x112   :  { %v1546_v8 = vmul.f32 %v6974_v32, %v9178_v9  ;;  %v1359_v23 = vadd.f32 %v1358_v48, %v1356_v4  ;;  %v1361_v52 = vmul.f32 %v7049_v60, %v8918_v24  ;;  %5173 = vrcp.f32 %v1471_v43  ;;  %v5162_v21 = vpop.eup %5161 }
 0x113   :  { %v1487_v42 = vadd.f32 1.0, %v5156_v36  ;;  %v9182_v27 = vstv %s6862_s19  ;;  %v9183_v62 = vstv %s6873_s20  ;;  %v1495_v32 = vadd.f32 1.0, %v5158_v45  ;;  %v5164_v51 = vpop.eup %5163  ;;  %s9196_s20 = sld [smem:[#allocation63_spill]]  ;;  %s9288_s19 = sld [smem:[#allocation25_spill]] }
 0x114   :  { %v7172_v26 = vmul.f32 %v7011_v55, %v9182_v27  ;;  %v7177_v30 = vmul.f32 %v7011_v55, %v9183_v62  ;;  %v9186_v4 = vstv %s9175_s9  ;;  %5175 = vrcp.f32 %v1005_v34  ;;  %v5166_v2 = vpop.eup %5165  ;;  %s9192_s9 = sld [smem:[#allocation61_spill]] }
 0x115   :  { %v1531_v48 = vadd.f32 %v1530_v18, %v9186_v4  ;;  %v1308_v60 = vsub.f32 0.0, %v1307_v54  ;;  %v1517_v43 = vmul.f32 1.442695, %v1516_v15  ;;  %v9188_v36 = vstv %s9179_s4  ;;  %s9194_s4 = sld [smem:[#allocation65_spill]] }
 0x116   :  { %v1539_v9 = vadd.f32 %v1538_v53, %v9188_v36  ;;  %5177 = vrcp.f32 %v1479_v11  ;;  %v1525_v27 = vmul.f32 1.442695, %v1524_v28  ;;  %v9189_v24 = vstv %s9180_s13  ;;  %s9199_s13 = sld [smem:[#allocation62_spill]] }
 0x117   :  { %v1547_v3 = vadd.f32 %v1546_v8, %v9189_v24  ;;  %v9190_v59 = vstv %s9181_s22  ;;  %v1362_v5 = vadd.f32 %v1361_v52, %v1359_v23  ;;  %5179 = vrcp.f32 %v1487_v42  ;;  %s9200_s22 = sld [smem:[#allocation27_spill]] }
 0x118   :  { %v1554_v62 = vmul.f32 %v5160_v46, %v9190_v59  ;;  %v9191_v45 = vstv %s9184_s15  ;;  %v9193_v34 = vstv %s9185_s11  ;;  %5181 = vrcp.f32 %v1495_v32  ;;  %v5168_v28 = vpop.eup %5167  ;;  %s9206_s15 = sld [smem:[#allocation66_spill]]  ;;  %s9209_s11 = sld [smem:[#allocation67_spill]] }
 0x119   :  { %v1556_v18 = vmul.f32 %v5162_v21, %v9191_v45  ;;  %v1592_v4 = vmul.f32 %v5160_v46, %v9193_v34  ;;  %v1503_v54 = vadd.f32 1.0, %v5164_v51  ;;  %v1532_v15 = vsub.f32 0.0, %v1531_v48  ;;  %v5170_v42 = vpop.eup %5169 }
 0x11a   :  { %v9195_v53 = vstv %s9187_s25  ;;  %v9197_v24 = vstv %s7029_s8  ;;  %v9198_v8 = vstv %s7033_s16  ;;  %5183 = vpow2.f32 %v1517_v43  ;;  %v5172_v36 = vpop.eup %5171  ;;  %s9202_s25 = sld [smem:[#allocation64_spill]]  ;;  %s7389_s16 = sld [smem:[#allocation2 + $0xdb]] }
 0x11b   :  { %v1555_v11 = vadd.f32 %v1554_v62, %v9195_v53  ;;  %v1067_v59 = vmul.f32 %v7011_v55, %v9197_v24  ;;  %v1078_v23 = vmul.f32 %v7011_v55, %v9198_v8  ;;  %v1540_v52 = vsub.f32 0.0, %v1539_v9  ;;  %s7391_s8 = sld [smem:[#allocation2 + $0xe3]] }
 0x11c   :  { %v1309_v46 = vmul.f32 1.442695, %v1308_v60  ;;  %5185 = vpow2.f32 %v1525_v27  ;;  %v1548_v32 = vsub.f32 0.0, %v1547_v3  ;;  %v9201_v48 = vstv %s9192_s9  ;;  %v5174_v3 = vpop.eup %5173  ;;  %s9218_s9 = sld [smem:[#allocation80_spill]] }
 0x11d   :  { %v1558_v51 = vmul.f32 %v5166_v2, %v9201_v48  ;;  %v1511_v62 = vadd.f32 1.0, %v5168_v28  ;;  %v1557_v45 = vadd.f32 %v1556_v18, %v1555_v11  ;;  %v9203_v34 = vstv %s9194_s4  ;;  %s9221_s4 = sld [smem:[#allocation76_spill]] }
 0x11e   :  { %v1593_v53 = vadd.f32 %v1592_v4, %v9203_v34  ;;  %v9204_v24 = vstv %s9196_s20  ;;  %v9205_v43 = vstv %s7083_s14  ;;  %v1363_v56 = vsub.f32 0.0, %v1362_v5  ;;  %s9216_s20 = sld [smem:[#allocation72_spill]]  ;;  %s9270_s14 = sld [smem:[#allocation29_spill]] }
 0x11f   :  { %v1594_v8 = vmul.f32 %v5162_v21, %v9204_v24  ;;  %v1089_v9 = vmul.f32 %v7011_v55, %v9205_v43  ;;  %5187 = vrcp.f32 %v1503_v54  ;;  %v1533_v60 = vmul.f32 1.442695, %v1532_v15  ;;  %v5176_v15 = vpop.eup %5175 }
 0x120   :  { %v9207_v27 = vstv %s6829_s28  ;;  %v1541_v28 = vmul.f32 1.442695, %v1540_v52  ;;  %v9208_v29 = vstv %s9199_s13  ;;  %v9210_v4 = vstv %s9200_s22  ;;  %v5178_v43 = vpop.eup %5177  ;;  %s9223_s13 = sld [smem:[#allocation71_spill]]  ;;  %s9228_s22 = sld [smem:[#allocation83_spill]] }
 0x121   :  { %v7211_v48 = vadd.f32 %v9207_v27, %v7137_v61  ;;  %v1560_v18 = vmul.f32 %v5170_v42, %v9208_v29  ;;  %v1596_v11 = vmul.f32 %v5166_v2, %v9210_v4  ;;  %v9211_v21 = vstv %s6854_s26  ;;  %v5180_v4 = vpop.eup %5179  ;;  %s7380_s26 = sld [smem:[#allocation2 + $0xe2]]  ;;  %s7386_s28 = sld [smem:[#allocation2 + $0xd3]] }
 0x122   :  { %v7220_v34 = vadd.f32 %v9211_v21, %v7142_v12  ;;  %5189 = vpow2.f32 %v1309_v46  ;;  %v1549_v5 = vmul.f32 1.442695, %v1548_v32  ;;  %v9212_v55 = vstv %s9202_s25  ;;  %s9230_s25 = sld [smem:[#allocation74_spill]] }
 0x123   :  { %v1562_v54 = vmul.f32 %v5172_v36, %v9212_v55  ;;  %5191 = vrcp.f32 %v1511_v62  ;;  %v1559_v61 = vadd.f32 %v1558_v51, %v1557_v45  ;;  %v1595_v52 = vadd.f32 %v1594_v8, %v1593_v53 }
 0x124   :  { %v9213_v24 = vstv %s9206_s15  ;;  %v9214_v2 = vstv %s6864_s6  ;;  %v1364_v12 = vmul.f32 1.442695, %v1363_v56  ;;  %5193 = vpow2.f32 %v1533_v60  ;;  %s9231_s15 = sld [smem:[#allocation79_spill]]  ;;  %s7356_s6 = sld [smem:[#allocation2 + $0xd1]] }
 0x125   :  { %v1598_v29 = vmul.f32 %v5170_v42, %v9213_v24  ;;  %v7229_v27 = vadd.f32 %v9214_v2, %v7161_v50  ;;  %v9215_v46 = vstv %s9209_s11  ;;  %5195 = vpow2.f32 %v1541_v28  ;;  %v5182_v42 = vpop.eup %5181  ;;  %s9232_s11 = sld [smem:[#allocation14_spill]] }
 0x126   :  { %v1564_v32 = vmul.f32 %v5174_v3, %v9215_v46  ;;  %v1561_v62 = vadd.f32 %v1560_v18, %v1559_v61  ;;  %v1597_v51 = vadd.f32 %v1596_v11, %v1595_v52  ;;  %v9217_v45 = vstv %s6813_s5  ;;  %v5184_v28 = vpop.eup %5183  ;;  %s9225_s5 = sld [smem:[#allocation81_spill]] }
 0x127   :  { %v1600_v53 = vmul.f32 %v5172_v36, %v9217_v45  ;;  %v9219_v8 = vstv %s6875_s17  ;;  %v9220_v50 = vstv %s6913_s2  ;;  %v9222_v60 = vstv %s7042_s24  ;;  %v5186_v24 = vpop.eup %5185  ;;  %s9254_s24 = sld [smem:[#allocation5_spill]]  ;;  %s9258_s2 = sld [smem:[#allocation169_spill]] }
 0x128   :  { %v7238_v21 = vadd.f32 %v9219_v8, %v7172_v26  ;;  %v7243_v56 = vadd.f32 %v9220_v50, %v7177_v30  ;;  %v7247_v55 = vadd.f32 %v9222_v60, %v1067_v59  ;;  %5197 = vpow2.f32 %v1549_v5  ;;  %s7319_s17 = sld [smem:[#allocation2 + $0xd6]] }
 0x129   :  { %v1563_v18 = vadd.f32 %v1562_v54, %v1561_v62  ;;  %v9224_v11 = vstv %s6821_s12  ;;  %v1599_v61 = vadd.f32 %v1598_v29, %v1597_v51  ;;  %v9226_v52 = vstv %s9216_s20  ;;  %s9234_s12 = sld [smem:[#allocation84_spill]]  ;;  %v5188_v51 = vpop.eup %5187  ;;  %s9236_s20 = sld [smem:[#allocation85_spill]] }
 0x12a   :  { %v1566_v36 = vmul.f32 %v5178_v43, %v9224_v11  ;;  %v1602_v26 = vmul.f32 %v5174_v3, %v9226_v52  ;;  %v9227_v2 = vstv %s7059_s1  ;;  %5199 = vpow2.f32 %v1364_v12  ;;  %s9238_s1 = sld [smem:[#allocation87_spill]] }
 0x12b   :  { %v7255_v46 = vadd.f32 %v9227_v2, %v1078_v23  ;;  %v1519_v30 = vadd.f32 1.0, %v5184_v28  ;;  %v9229_v59 = vstv %s9218_s9  ;;  %v1527_v45 = vadd.f32 1.0, %v5186_v24  ;;  %s9242_s9 = sld [smem:[#allocation90_spill]] }
 0x12c   :  { %v1604_v5 = vmul.f32 %v5178_v43, %v9229_v59  ;;  %v1565_v54 = vadd.f32 %v1564_v32, %v1563_v18  ;;  %v9233_v62 = vstv %s9221_s4  ;;  %v1601_v29 = vadd.f32 %v1600_v53, %v1599_v61  ;;  %v5190_v53 = vpop.eup %5189  ;;  %s9247_s4 = sld [smem:[#allocation86_spill]] }
 0x12d   :  { %v1568_v8 = vmul.f32 %v5180_v4, %v9233_v62  ;;  %v9235_v3 = vstv %s9223_s13  ;;  %v9237_v23 = vstv %s7091_s3  ;;  %5201 = vrcp.f32 %v1519_v30  ;;  %s9251_s3 = sld [smem:[#allocation91_spill]]  ;;  %s9269_s13 = sld [smem:[#allocation89_spill]] }
 0x12e   :  { %v1018_v50 = vmul.f32 %v5176_v15, %v9235_v3  ;;  %v7265_v60 = vadd.f32 %v9237_v23, %v1089_v9  ;;  %v9239_v12 = vstv %s9225_s5  ;;  %5203 = vrcp.f32 %v1527_v45  ;;  %v5192_v3 = vpop.eup %5191  ;;  %s7283_s5 = sld [smem:[#allocation2 + $0xcc]] }
 0x12f   :  { %v1570_v28 = vmul.f32 %v5182_v42, %v9239_v12  ;;  %v1567_v43 = vadd.f32 %v1566_v36, %v1565_v54  ;;  %v1603_v11 = vadd.f32 %v1602_v26, %v1601_v29  ;;  %v9240_v32 = vstv %s9228_s22  ;;  %s7285_s22 = sld [smem:[#allocation2 + $0xcd]] }
 0x130   :  { %v1606_v18 = vmul.f32 %v5180_v4, %v9240_v32  ;;  %v9241_v61 = vstv %s9230_s25  ;;  %v9243_v24 = vstv %s9231_s15  ;;  %v9244_v9 = vstv %s9232_s11  ;;  %v5194_v4 = vpop.eup %5193  ;;  %s7317_s11 = sld [smem:[#allocation2 + $0xdd]]  ;;  %s7347_s15 = sld [smem:[#allocation2 + $0xe0]] }
 0x131   :  { %v1029_v52 = vmul.f32 %v5176_v15, %v9241_v61  ;;  %v1040_v2 = vmul.f32 %v5176_v15, %v9243_v24  ;;  %v1051_v59 = vmul.f32 %v5176_v15, %v9244_v9  ;;  %v9245_v62 = vstv %s9234_s12  ;;  %s7333_s12 = sld [smem:[#allocation2 + $0xdf]]  ;;  %s7366_s25 = sld [smem:[#allocation2 + $0xd8]] }
 0x132   :  { %v1062_v30 = vmul.f32 %v5176_v15, %v9245_v62  ;;  %v1569_v23 = vadd.f32 %v1568_v8, %v1567_v43  ;;  %v9246_v45 = vstv %s9236_s20  ;;  %v1605_v26 = vadd.f32 %v1604_v5, %v1603_v11  ;;  %v5196_v43 = vpop.eup %5195  ;;  %s7295_s20 = sld [smem:[#allocation2 + $0xce]] }
 0x133   :  { %v1572_v36 = vmul.f32 %v5188_v51, %v9246_v45  ;;  %v9248_v54 = vstv %s9238_s1  ;;  %v9249_v12 = vstv %s7040_s7  ;;  %v9250_v61 = vstv %s7085_s21  ;;  %s7297_s1 = sld [smem:[#allocation2 + $0xdc]]  ;;  %v5198_v44 = vpop.eup %5197  ;;  %s7301_s7 = sld [smem:[#allocation2 + $0xcf]] }
 0x134   :  { %v1608_v29 = vmul.f32 %v5182_v42, %v9248_v54  ;;  %v1073_v32 = vmul.f32 %v5176_v15, %v9249_v12  ;;  %v1084_v24 = vmul.f32 %v5176_v15, %v9250_v61  ;;  %v9252_v9 = vstv %s7103_s10  ;;  %s7303_s21 = sld [smem:[#allocation2 + $0xd4]]  ;;  %s7331_s10 = sld [smem:[#allocation2 + $0xd7]] }
 0x135   :  { %v1095_v62 = vmul.f32 %v5176_v15, %v9252_v9  ;;  %v9253_v58 = vstv %s9242_s9  ;;  %v1535_v42 = vadd.f32 1.0, %v5194_v4  ;;  %v1571_v5 = vadd.f32 %v1570_v28, %v1569_v23  ;;  %s9257_s9 = sld [smem:[#allocation15_spill]]  ;;  %v5350_v4 = vld [vmem:[%s9258_s2] sm:$0x1]  ;;  %s9264_s2 = sld [smem:[#allocation30_spill]] }
 0x136   :  { %v1610_v8 = vmul.f32 %v5188_v51, %v9253_v58  ;;  %v9255_v11 = vstv %s9247_s4  ;;  %v1607_v54 = vadd.f32 %v1606_v18, %v1605_v26  ;;  %v7306_v15 = vadd.f32 %v1018_v50, %v7211_v48  ;;  %s7315_s4 = sld [smem:[#allocation2 + $0xd5]]  ;;  %v5200_v48 = vpop.eup %5199 }
 0x137   :  { %v1574_v45 = vmul.f32 %v5192_v3, %v9255_v11  ;;  %v1543_v12 = vadd.f32 1.0, %v5196_v43  ;;  %v9256_v58 = vstv %s9251_s3  ;;  %v9259_v28 = vstv %s9254_s24  ;;  %s7321_s3 = sld [smem:[#allocation2 + $0xde]]  ;;  %s9261_s24 = sld [smem:[#allocation88_spill]] }
 0x138   :  { %v1612_v51 = vmul.f32 %v5192_v3, %v9256_v58  ;;  %v297_v23 = vmul.f32 %v5350_v4, %v9259_v28  ;;  %5205 = vrcp.f32 %v1535_v42  ;;  %v1551_v18 = vadd.f32 1.0, %v5198_v44  ;;  %9263 = sst [smem:[#allocation41_spill]] %s7333_s12 }
 0x139   :  { %v1573_v26 = vadd.f32 %v1572_v36, %v1571_v5  ;;  %v1609_v61 = vadd.f32 %v1608_v29, %v1607_v54  ;;  %v7324_v50 = vadd.f32 %v1029_v52, %v7220_v34  ;;  %v7327_v3 = vadd.f32 %v1040_v2, %v7229_v27  ;;  %v5202_v52 = vpop.eup %5201 }
 0x13a   :  { %5207 = vrcp.f32 %v1543_v12  ;;  %9262 = sst [smem:[#allocation39_spill]] %s7331_s10  ;;  %v7336_v44 = vadd.f32 %v1051_v59, %v7238_v21  ;;  %v7339_v27 = vadd.f32 %v1062_v30, %v7243_v56  ;;  %v7342_v2 = vadd.f32 %v1073_v32, %v7247_v55  ;;  %v5204_v5 = vpop.eup %5203 }
 0x13b   :  { %v9260_v9 = vstv %s9257_s9  ;;  %5209 = vrcp.f32 %v1551_v18  ;;  %v1575_v36 = vadd.f32 %v1574_v45, %v1573_v26  ;;  %v1611_v34 = vadd.f32 %v1610_v8, %v1609_v61  ;;  %s7345_s9 = sld [smem:[#allocation2 + $0xd0]] }
 0x13c   :  { %v300_v43 = vadd.f32 %v9260_v9, %v297_v23  ;;  %v1311_v29 = vadd.f32 1.0, %v5190_v53  ;;  %v7350_v21 = vadd.f32 %v1084_v24, %v7255_v46  ;;  %v9266_v30 = vstv %s6976_s30  ;;  %s7372_s30 = sld [smem:[#allocation2 + $0xd2]] }
 0x13d   :  { %v9265_v59 = vstv %s9261_s24  ;;  %v1613_v56 = vadd.f32 %v1612_v51, %v1611_v34  ;;  %v1614_v11 = vmul.f32 %v5202_v52, %v9266_v30  ;;  %v7359_v55 = vadd.f32 %v1095_v62, %v7265_v60  ;;  %s7368_s24 = sld [smem:[#allocation2 + $0xe1]] }
 0x13e   :  { %v305_v42 = vadd.f32 %v6891_v63, %v300_v43  ;;  %v1576_v8 = vmul.f32 %v5202_v52, %v9265_v59  ;;  %v9267_v63 = vstv %s6941_s29  ;;  %v9268_v32 = vstv %s9264_s2  ;;  %s7374_s29 = sld [smem:[#allocation2 + $0xd9]]  ;;  %s7378_s2 = sld [smem:[#allocation2 + $0xda]] }
 0x13f   :  { %v1578_v53 = vmul.f32 %v5204_v5, %v9267_v63  ;;  %v1616_v45 = vmul.f32 %v5204_v5, %v9268_v32  ;;  %v1369_v46 = vstv %s7283_s5  ;;  %v8949_v24 = vstv %s7297_s1  ;;  %s9329_s5 = sld [smem:[#allocation74_spill]] }
 0x140   :  { %v310_v54 = vadd.f32 %v6898_v17, %v305_v42  ;;  %v1577_v12 = vadd.f32 %v1576_v8, %v1575_v36  ;;  %v1615_v60 = vadd.f32 %v1614_v11, %v1613_v56  ;;  %5211 = vrcp.f32 %v1311_v29 }
 0x141   :  { %v1366_v62 = vadd.f32 1.0, %v5200_v48  ;;  %v1373_v58 = vstv %s7303_s21  ;;  %v1376_v51 = vstv %s7285_s22  ;;  %v8944_v4 = vstv %s7317_s11  ;;  %s9325_s21 = sld [smem:[#allocation34_spill]]  ;;  %s9330_s22 = sld [smem:[#allocation78_spill]] }
 0x142   :  { %v315_v17 = vadd.f32 %v6905_v25, %v310_v54  ;;  %v1380_v28 = vstv %s7315_s4  ;;  %v1383_v23 = vstv %s7295_s20  ;;  %v8942_v18 = vstv %s7321_s3  ;;  %v5206_v48 = vpop.eup %5205  ;;  %s9331_s20 = sld [smem:[#allocation79_spill]]  ;;  %s9335_s4 = sld [smem:[#allocation14_spill]] }
 0x143   :  { %v1579_v26 = vadd.f32 %v1578_v53, %v1577_v12  ;;  %v1617_v61 = vadd.f32 %v1616_v45, %v1615_v60  ;;  %v1387_v9 = vstv %s7319_s17  ;;  %v1390_v43 = vstv %s7301_s7  ;;  %s9317_s17 = sld [smem:[#allocation68_spill]] }
 0x144   :  { %v317_v25 = vsub.f32 0.0, %v315_v17  ;;  %v8943_v36 = vstv %s7333_s12  ;;  %v8950_v34 = vstv %s7331_s10  ;;  %v5208_v52 = vpop.eup %5207  ;;  %5213 = vrcp.f32 %v1366_v62  ;;  %s9275_s12 = sld [smem:[#allocation170_spill]]  ;;  %s9279_s10 = sld [smem:[#allocation39_spill]] }
 0x145   :  { %v9271_v29 = vstv %s9269_s13  ;;  %v9272_v5 = vstv %s7073_s18  ;;  %v5210_v56 = vpop.eup %5209  ;;  %v8941_v30 = vstv %s7345_s9  ;;  %v8948_v11 = vstv %s7347_s15  ;;  %s9285_s18 = sld [smem:[#allocation22_spill]]  ;;  %s9286_s13 = sld [smem:[#allocation24_spill]] }
 0x146   :  { %v1580_v42 = vmul.f32 %v5206_v48, %v9271_v29  ;;  %v1618_v59 = vmul.f32 %v5206_v48, %v9272_v5  ;;  %v319_v8 = vmul.f32 1.442695, %v317_v25  ;;  %v9273_v63 = vstv %s9270_s14  ;;  %s9287_s14 = sld [smem:[#allocation23_spill]]  ;;  %s9324_s7 = sld [smem:[#allocation28_spill]] }
 0x147   :  { %v1582_v53 = vmul.f32 %v5208_v52, %v9273_v63  ;;  %v9274_v32 = vstv %s7093_s0  ;;  %v9276_v60 = vstv %s7075_s27  ;;  %v9277_v48 = vstv %s7109_s23  ;;  %s9278_s0 = sld [smem:[#allocation41_spill]]  ;;  %s9355_s27 = sld [smem:[#allocation36_spill]] }
 0x148   :  { %v1620_v45 = vmul.f32 %v5208_v52, %v9274_v32  ;;  %v1581_v12 = vadd.f32 %v1580_v42, %v1579_v26  ;;  %v1584_v62 = vmul.f32 %v5210_v56, %v9276_v60  ;;  %v1619_v17 = vadd.f32 %v1618_v59, %v1617_v61  ;;  %s4734_s23 = sld [smem:[#allocation2 + $0xef]] }
 0x149   :  { %v1622_v25 = vmul.f32 %v5210_v56, %v9277_v48  ;;  %v8939_v52 = vstv %s7356_s6  ;;  %5215 = vpow2.f32 %v319_v8  ;;  %v8940_v48 = vstv %s7372_s30 }
 0x14a   :  { %v1663_v54 = vld [vmem:[%s9275_s12 + $0x8] sm:$0x1]  ;;  %v1685_v29 = vld [vmem:[%s9275_s12 + $0x9] sm:$0x1]  ;;  %v1707_v26 = vld [vmem:[%s9275_s12 + $0xa] sm:$0x1]  ;;  %v1583_v32 = vadd.f32 %v1582_v53, %v1581_v12  ;;  %v1621_v61 = vadd.f32 %v1620_v45, %v1619_v17  ;;  %v5212_v53 = vpop.eup %5211  ;;  %v8945_v45 = vstv %s7386_s28 }
 0x14b   :  { %v1665_v59 = vmul.f32 %v1663_v54, %v7306_v15  ;;  %v1729_v56 = vld [vmem:[%s9275_s12 + $0xb] sm:$0x1]  ;;  %v1751_v60 = vld [vmem:[%s9275_s12 + $0xc] sm:$0x1]  ;;  %v1687_v8 = vmul.f32 %v1685_v29, %v7324_v50  ;;  %v1709_v15 = vmul.f32 %v1707_v26, %v7327_v3  ;;  %v1773_v54 = vld [vmem:[%s9275_s12 + $0xd] sm:$0x1]  ;;  %v8946_v63 = vstv %s7391_s8 }
 0x14c   :  { %v1585_v12 = vadd.f32 %v1584_v62, %v1583_v32  ;;  %v1623_v17 = vadd.f32 %v1622_v25, %v1621_v61  ;;  %v1795_v42 = vld [vmem:[%s9275_s12 + $0xe] sm:$0x1]  ;;  %v8947_v5 = vstv %s7389_s16  ;;  %v1731_v50 = vmul.f32 %v1729_v56, %v7336_v44  ;;  %v1817_v26 = vld [vmem:[%s9275_s12 + $0xf] sm:$0x1] }
 0x14d   :  { %v1753_v29 = vmul.f32 %v1751_v60, %v7339_v27  ;;  %v1370_v62 = vmul.f32 %v5212_v53, %v1369_v46  ;;  %5217 = vtanh.f32 %v1665_v59  ;;  %v1377_v32 = vmul.f32 %v5212_v53, %v1376_v51 }
 0x14e   :  { %v1586_v3 = vsub.f32 0.0, %v1585_v12  ;;  %v1624_v25 = vsub.f32 0.0, %v1623_v17  ;;  %5219 = vtanh.f32 %v1687_v8  ;;  %v1775_v44 = vmul.f32 %v1773_v54, %v7342_v2  ;;  %v5214_v61 = vpop.eup %5213 }
 0x14f   :  { %v1797_v27 = vmul.f32 %v1795_v42, %v7350_v21  ;;  %v1384_v56 = vmul.f32 %v5212_v53, %v1383_v23  ;;  %5221 = vtanh.f32 %v1709_v15  ;;  %v1391_v12 = vmul.f32 %v5212_v53, %v1390_v43 }
 0x150   :  { %v1587_v59 = vmul.f32 1.442695, %v1586_v3  ;;  %v1625_v60 = vmul.f32 1.442695, %v1624_v25  ;;  %v1398_v17 = vmul.f32 %v5212_v53, %v8941_v30  ;;  %5223 = vtanh.f32 %v1731_v50 }
 0x151   :  { %v1819_v2 = vmul.f32 %v1817_v26, %v7359_v55  ;;  %v1372_v21 = vadd.f32 %v8949_v24, %v1370_v62  ;;  %v1374_v42 = vmul.f32 %v5214_v61, %v1373_v58  ;;  %v1405_v8 = vmul.f32 %v5212_v53, %v8939_v52 }
 0x152   :  { %5225 = vpow2.f32 %v1587_v59  ;;  %v1379_v54 = vadd.f32 %v8944_v4, %v1377_v32  ;;  %v1381_v3 = vmul.f32 %v5214_v61, %v1380_v28  ;;  %v1412_v50 = vmul.f32 %v5212_v53, %v8940_v48 }
 0x153   :  { %v5216_v15 = vpop.eup %5215  ;;  %5227 = vpow2.f32 %v1625_v60  ;;  %v1386_v55 = vadd.f32 %v8942_v18, %v1384_v56  ;;  %v1388_v62 = vmul.f32 %v5214_v61, %v1387_v9  ;;  %v1393_v26 = vadd.f32 %v8943_v36, %v1391_v12 }
 0x154   :  { %5229 = vtanh.f32 %v1753_v29  ;;  %v323_v25 = vadd.f32 1.0, %v5216_v15  ;;  %v1395_v59 = vmul.f32 %v5214_v61, %v8950_v34  ;;  %v1419_v32 = vmul.f32 %v5212_v53, %v8945_v45 }
 0x155   :  { %5231 = vtanh.f32 %v1775_v44  ;;  %v7485_v52 = vadd.f32 %v1374_v42, %v1372_v21  ;;  %v1400_v60 = vadd.f32 %v8948_v11, %v1398_v17  ;;  %v9280_v56 = vstv %s7366_s25 }
 0x156   :  { %v1402_v48 = vmul.f32 %v5214_v61, %v9280_v56  ;;  %5233 = vrcp.f32 %v323_v25  ;;  %v7491_v29 = vadd.f32 %v1381_v3, %v1379_v54  ;;  %v9281_v15 = vstv %s7368_s24 }
 0x157   :  { %v1407_v30 = vadd.f32 %v9281_v15, %v1405_v8  ;;  %v9282_v18 = vstv %s7374_s29  ;;  %5235 = vtanh.f32 %v1797_v27  ;;  %v5218_v36 = vpop.eup %5217  ;;  %v7497_v4 = vadd.f32 %v1388_v62, %v1386_v55 }
 0x158   :  { %v1409_v12 = vmul.f32 %v5214_v61, %v9282_v18  ;;  %v9283_v53 = vstv %s7380_s26  ;;  %v9284_v21 = vstv %s7378_s2  ;;  %5237 = vtanh.f32 %v1819_v2  ;;  %v5220_v45 = vpop.eup %5219 }
 0x159   :  { %v1414_v44 = vadd.f32 %v9283_v53, %v1412_v50  ;;  %v1416_v42 = vmul.f32 %v5214_v61, %v9284_v21  ;;  %v7503_v17 = vadd.f32 %v1395_v59, %v1393_v26  ;;  %v1421_v25 = vadd.f32 %v8946_v63, %v1419_v32  ;;  %v5222_v3 = vpop.eup %5221 }
 0x15a   :  { %v1423_v54 = vmul.f32 %v5214_v61, %v8947_v5  ;;  %v7509_v8 = vadd.f32 %v1402_v48, %v1400_v60  ;;  %v1669_v18 = vrot.slane %v7485_v52, 1  ;;  %v5224_v27 = vpop.eup %5223  ;;  %v7512_v55 = vadd.f32 %v1409_v12, %v1407_v30 }
 0x15b   :  { %v1691_v50 = vrot.slane %v7491_v29, 1  ;;  %v7515_v56 = vadd.f32 %v1416_v42, %v1414_v44  ;;  %v1713_v2 = vrot.slane %v7497_v4, 1  ;;  %v1735_v61 = vrot.slane %v7503_v17, 1 }
 0x15c   :  { %v5226_v62 = vpop.eup %5225  ;;  %v7518_v59 = vadd.f32 %v1423_v54, %v1421_v25  ;;  %v1673_v15 = vmul.f32 %v5218_v36, %v1669_v18  ;;  %v1757_v30 = vrot.slane %v7509_v8, 1  ;;  %v1779_v44 = vrot.slane %v7512_v55, 1 }
 0x15d   :  { %v5228_v26 = vpop.eup %5227  ;;  %v1589_v32 = vadd.f32 1.0, %v5226_v62  ;;  %v1695_v53 = vmul.f32 %v5220_v45, %v1691_v50  ;;  %v1717_v42 = vmul.f32 %v5222_v3, %v1713_v2  ;;  %v1801_v25 = vrot.slane %v7515_v56, 1 }
 0x15e   :  { %v5230_v48 = vpop.eup %5229  ;;  %v1627_v60 = vadd.f32 1.0, %v5228_v26  ;;  %v1739_v62 = vmul.f32 %v5224_v27, %v1735_v61  ;;  %v1823_v63 = vrot.slane %v7518_v59, 1  ;;  %v9289_v26 = vstv %s9285_s18  ;;  %s9356_s18 = sld [smem:[#allocation37_spill]] }
 0x15f   :  { %v5232_v12 = vpop.eup %5231  ;;  %5239 = vrcp.f32 %v1589_v32  ;;  %v9290_v18 = vstv %s9286_s13  ;;  %v1761_v45 = vmul.f32 %v5230_v48, %v1757_v30  ;;  %v9291_v32 = vstv %s9287_s14  ;;  %s9358_s13 = sld [smem:[#allocation38_spill]]  ;;  %s4741_s14 = sld [smem:[#allocation2 + $0xf6]] }
 0x160   :  { %v5234_v21 = vpop.eup %5233  ;;  %5241 = vrcp.f32 %v1627_v60  ;;  %v1783_v50 = vmul.f32 %v5232_v12, %v1779_v44  ;;  %v9292_v34 = vstv %s9288_s19  ;;  %v9294_v44 = vstv %s7297_s1  ;;  %s9333_s1 = sld [smem:[#allocation9_spill]]  ;;  %s4730_s19 = sld [smem:[#allocation2 + $0xeb]] }
 0x161   :  { %v5236_v54 = vpop.eup %5235  ;;  %v825_v36 = vmul.f32 %v5234_v21, %v9289_v26  ;;  %v918_v5 = vmul.f32 %v5234_v21, %v9290_v18  ;;  %5243 = vtanh.f32 %v1673_v15  ;;  %v9295_v21 = vstv %s7317_s11  ;;  %s9328_s11 = sld [smem:[#allocation75_spill]] }
 0x162   :  { %v5238_v11 = vpop.eup %5237  ;;  %5245 = vtanh.f32 %v1695_v53  ;;  %v1805_v3 = vmul.f32 %v5236_v54, %v1801_v25  ;;  %v9297_v25 = vstv %s9278_s0  ;;  %v9298_v54 = vstv %s7345_s9  ;;  %s9342_s9 = sld [smem:[#allocation84_spill]]  ;;  %s4736_s0 = sld [smem:[#allocation2 + $0xf1]] }
 0x163   :  { %v828_v24 = vadd.f32 %v9291_v32, %v825_v36  ;;  %v921_v60 = vadd.f32 %v9292_v34, %v918_v5  ;;  %5247 = vtanh.f32 %v1717_v42  ;;  %v1827_v27 = vmul.f32 %v5238_v11, %v1823_v63 }
 0x164   :  { %5249 = vtanh.f32 %v1739_v62  ;;  %v9296_v42 = vstv %s7321_s3  ;;  %v9300_v26 = vstv %s7356_s6  ;;  %v9301_v18 = vstv %s7374_s29  ;;  %s9318_s6 = sld [smem:[#allocation69_spill]]  ;;  %s9340_s3 = sld [smem:[#allocation82_spill]] }
 0x165   :  { %v833_v2 = vadd.f32 %v6188_v47, %v828_v24  ;;  %v926_v61 = vadd.f32 %v6361_v6, %v921_v60  ;;  %5251 = vtanh.f32 %v1761_v45  ;;  %s9354_s29 = sld [smem:[#allocation31_spill]] }
 0x166   :  { %5253 = vtanh.f32 %v1783_v50 }
 0x167   :  { %v838_v34 = vadd.f32 %v6205_v40, %v833_v2  ;;  %v931_v5 = vadd.f32 %v6370_v35, %v926_v61  ;;  %5255 = vtanh.f32 %v1805_v3  ;;  %v9302_v61 = vstv %s7347_s15  ;;  %s9327_s15 = sld [smem:[#allocation71_spill]] }
 0x168   :  { %5257 = vtanh.f32 %v1827_v27 }
 0x169   :  { %v5240_v48 = vpop.eup %5239  ;;  %v843_v47 = vadd.f32 %v6221_v31, %v838_v34  ;;  %v936_v6 = vadd.f32 %v6388_v49, %v931_v5  ;;  %v9293_v49 = vstv %s9279_s10  ;;  %v9303_v5 = vstv %s7368_s24  ;;  %s9348_s24 = sld [smem:[#allocation35_spill]]  ;;  %s4740_s10 = sld [smem:[#allocation2 + $0xf5]] }
 0x16a   :  { %v5242_v24 = vpop.eup %5241  ;;  %v1630_v11 = vmul.f32 %v5240_v48, %v1369_v46  ;;  %v1634_v40 = vmul.f32 %v5240_v48, %v1376_v51  ;;  %v1638_v35 = vmul.f32 %v5240_v48, %v1383_v23  ;;  %v1642_v63 = vmul.f32 %v5240_v48, %v1390_v43 }
 0x16b   :  { %v1632_v15 = vmul.f32 %v5242_v24, %v1373_v58  ;;  %v1636_v30 = vmul.f32 %v5242_v24, %v1380_v28  ;;  %v1640_v31 = vmul.f32 %v5242_v24, %v1387_v9  ;;  %v1644_v12 = vmul.f32 %v5242_v24, %v9293_v49  ;;  %v5244_v53 = vpop.eup %5243 }
 0x16c   :  { %v1631_v46 = vadd.f32 %v1630_v11, %v9294_v44  ;;  %v1635_v51 = vadd.f32 %v1634_v40, %v9295_v21  ;;  %v1639_v23 = vadd.f32 %v1638_v35, %v9296_v42  ;;  %v1643_v43 = vadd.f32 %v1642_v63, %v9297_v25  ;;  %v5246_v58 = vpop.eup %5245 }
 0x16d   :  { %v1646_v28 = vmul.f32 %v5240_v48, %v9298_v54  ;;  %v9299_v9 = vstv %s7366_s25  ;;  %v1650_v36 = vmul.f32 %v5240_v48, %v9300_v26  ;;  %v1652_v45 = vmul.f32 %v5242_v24, %v9301_v18  ;;  %v5248_v50 = vpop.eup %5247  ;;  %s9326_s25 = sld [smem:[#allocation70_spill]] }
 0x16e   :  { %v1648_v62 = vmul.f32 %v5242_v24, %v9299_v9  ;;  %v7571_v32 = vadd.f32 %v1632_v15, %v1631_v46  ;;  %v7573_v60 = vadd.f32 %v1636_v30, %v1635_v51  ;;  %v7575_v3 = vadd.f32 %v1640_v31, %v1639_v23  ;;  %v5250_v2 = vpop.eup %5249 }
 0x16f   :  { %v7577_v27 = vadd.f32 %v1644_v12, %v1643_v43  ;;  %v1647_v34 = vadd.f32 %v1646_v28, %v9302_v61  ;;  %v1651_v11 = vadd.f32 %v1650_v36, %v9303_v5  ;;  %v9304_v40 = vstv %s7372_s30  ;;  %v5252_v44 = vpop.eup %5251  ;;  %s9350_s30 = sld [smem:[#allocation33_spill]] }
 0x170   :  { %v1654_v35 = vmul.f32 %v5240_v48, %v9304_v40  ;;  %v9305_v63 = vstv %s7378_s2  ;;  %v9306_v15 = vstv %s7386_s28  ;;  %v9307_v30 = vstv %s7389_s16  ;;  %v5254_v51 = vpop.eup %5253  ;;  %s9321_s28 = sld [smem:[#allocation77_spill]]  ;;  %s9323_s16 = sld [smem:[#allocation32_spill]] }
 0x171   :  { %v1656_v49 = vmul.f32 %v5242_v24, %v9305_v63  ;;  %v1658_v46 = vmul.f32 %v5240_v48, %v9306_v15  ;;  %v1660_v21 = vmul.f32 %v5242_v24, %v9307_v30  ;;  %v1677_v31 = vrot.slane %v7571_v32, 1  ;;  %v5256_v28 = vpop.eup %5255  ;;  %s4743_s2 = sld [smem:[#allocation2 + $0xf8]] }
 0x172   :  { %v1699_v12 = vrot.slane %v7573_v60, 1  ;;  %v7593_v42 = vadd.f32 %v1648_v62, %v1647_v34  ;;  %v7595_v23 = vadd.f32 %v1652_v45, %v1651_v11  ;;  %v9308_v25 = vstv %s7380_s26  ;;  %v5258_v18 = vpop.eup %5257  ;;  %s9320_s26 = sld [smem:[#allocation73_spill]] }
 0x173   :  { %v1655_v43 = vadd.f32 %v1654_v35, %v9308_v25  ;;  %v1721_v54 = vrot.slane %v7575_v3, 1  ;;  %v9309_v9 = vstv %s7391_s8  ;;  %v1681_v36 = vmul.f32 %v5244_v53, %v1677_v31  ;;  %s9322_s8 = sld [smem:[#allocation6_spill]] }
 0x174   :  { %v1659_v26 = vadd.f32 %v1658_v46, %v9309_v9  ;;  %v1703_v48 = vmul.f32 %v5246_v58, %v1699_v12  ;;  %v1743_v24 = vrot.slane %v7577_v27, 1  ;;  %v1765_v62 = vrot.slane %v7593_v42, 1 }
 0x175   :  { %v7603_v61 = vadd.f32 %v1656_v49, %v1655_v43  ;;  %v1725_v5 = vmul.f32 %v5248_v50, %v1721_v54  ;;  %v1787_v45 = vrot.slane %v7595_v23, 1  ;;  %5259 = vtanh.f32 %v1681_v36  ;;  %v9310_v36 = vld [vmem:[#allocation16_spill] sm:$0xff] }
 0x176   :  { %v7607_v34 = vadd.f32 %v1660_v21, %v1659_v26  ;;  %v1747_v11 = vmul.f32 %v5250_v2, %v1743_v24  ;;  %v848_v40 = vadd.f32 %v6239_v0, %v843_v47  ;;  %5261 = vtanh.f32 %v1703_v48 }
 0x177   :  { %v1769_v35 = vmul.f32 %v5252_v44, %v1765_v62  ;;  %v1791_v53 = vmul.f32 %v5254_v51, %v1787_v45  ;;  %v1809_v58 = vrot.slane %v7603_v61, 1  ;;  %5263 = vtanh.f32 %v1725_v5  ;;  %v9311_v62 = vld [vmem:[#allocation18_spill] sm:$0xff] }
 0x178   :  { %v1831_v63 = vrot.slane %v7607_v34, 1  ;;  %v853_v50 = vadd.f32 %v6256_v20, %v848_v40  ;;  %v941_v49 = vadd.f32 %v6400_v14, %v936_v6  ;;  %5265 = vtanh.f32 %v1747_v11  ;;  %v9312_v11 = vld [vmem:[#allocation20_spill] sm:$0xff] }
 0x179   :  { %v1813_v15 = vmul.f32 %v5256_v28, %v1809_v58  ;;  %5267 = vtanh.f32 %v1769_v35  ;;  %v9313_v58 = vld [vmem:[#allocation12_spill] sm:$0xff] }
 0x17a   :  { %v1835_v46 = vmul.f32 %v5258_v18, %v1831_v63  ;;  %v858_v2 = vadd.f32 %v6266_v19, %v853_v50  ;;  %v946_v0 = vadd.f32 %v6412_v1, %v941_v49  ;;  %5269 = vtanh.f32 %v1791_v53  ;;  %v9314_v63 = vld [vmem:[#allocation10_spill] sm:$0xff]  ;;  %v9315_v49 = vld [vmem:[#allocation11_spill] sm:$0xff] }
 0x17b   :  { %5271 = vtanh.f32 %v1813_v15 }
 0x17c   :  { %v863_v47 = vadd.f32 %v6271_v22, %v858_v2  ;;  %v951_v44 = vadd.f32 %v6424_v41, %v946_v0  ;;  %5273 = vtanh.f32 %v1835_v46  ;;  %v9316_v46 = vld [vmem:[#allocation17_spill] sm:$0xff] }
 0x17e   :  { %v868_v30 = vadd.f32 %v6287_v37, %v863_v47  ;;  %v956_v20 = vadd.f32 %v6429_v16, %v951_v44  ;;  %v9319_v47 = vld [vmem:[#allocation13_spill] sm:$0xff] }
 0x17f   :  { %v5260_v14 = vpop.eup %5259 }
 0x180   :  { %v873_v6 = vadd.f32 %v6292_v38, %v868_v30  ;;  %v961_v21 = vadd.f32 %v6444_v39, %v956_v20  ;;  %v5262_v31 = vpop.eup %5261 }
 0x181   :  { %v5264_v19 = vpop.eup %5263  ;;  %v1841_v1 = vrot.slane %v5262_v31, 7 }
 0x182   :  { %v878_v12 = vadd.f32 %v6311_v13, %v873_v6  ;;  %v966_v22 = vadd.f32 %v6453_v7, %v961_v21  ;;  %v5266_v41 = vpop.eup %5265  ;;  %v1847_v51 = vrot.slane %v5264_v19, 6 }
 0x183   :  { %v5268_v37 = vpop.eup %5267  ;;  %v1853_v16 = vrot.slane %v5266_v41, 5  ;;  %v1882_v25 = vsel %vm1880_vm0, %v5260_v14, %v1841_v1  ;;  %v9334_v41 = vstv %s9318_s6  ;;  %s4742_s6 = sld [smem:[#allocation2 + $0xf7]] }
 0x184   :  { %v883_v38 = vadd.f32 %v6326_v33, %v878_v12  ;;  %v971_v39 = vadd.f32 %v6462_v10, %v966_v22  ;;  %v5270_v43 = vpop.eup %5269  ;;  %v1859_v54 = vrot.slane %v5268_v37, 4  ;;  %v1885_v28 = vsel %vm1883_vm1, %v1882_v25, %v1847_v51 }
 0x185   :  { %v5272_v13 = vpop.eup %5271  ;;  %v1865_v7 = vrot.slane %v5270_v43, 3  ;;  %v1888_v9 = vsel %vm1886_vm2, %v1885_v28, %v1853_v16  ;;  %v9332_v12 = vstv %s9317_s17  ;;  %v9336_v37 = vstv %s9320_s26  ;;  %s4738_s17 = sld [smem:[#allocation2 + $0xf3]] }
 0x186   :  { %v888_v26 = vadd.f32 %v6334_v57, %v883_v38  ;;  %v976_v48 = vadd.f32 %v9310_v36, %v971_v39  ;;  %v5274_v24 = vpop.eup %5273  ;;  %v1871_v18 = vrot.slane %v5272_v13, 2  ;;  %v1891_v33 = vsel %vm1889_vm3, %v1888_v9, %v1859_v54 }
 0x187   :  { %v1877_v10 = vrot.slane %v5274_v24, 1  ;;  %v1894_v5 = vsel %vm1892_vm4, %v1891_v33, %v1865_v7  ;;  %v9337_v25 = vstv %s9321_s28  ;;  %v9338_v43 = vstv %s9322_s8  ;;  %s9551_s8 = sld [smem:[#allocation174_spill]] }
 0x188   :  { %v893_v45 = vadd.f32 %v9311_v62, %v888_v26  ;;  %v981_v40 = vadd.f32 %v9312_v11, %v976_v48  ;;  %v1897_v35 = vsel %vm1895_vm5, %v1894_v5, %v1871_v18  ;;  %v9339_v28 = vstv %s9323_s16 }
 0x189   :  { %v1900_v53 = vsel %vm1898_vm6, %v1897_v35, %v1877_v10  ;;  %v9341_v7 = vstv %s9324_s7  ;;  %v9343_v26 = vstv %s9325_s21  ;;  %v9344_v48 = vstv %s9326_s25 }
 0x18a   :  { %v898_v57 = vadd.f32 %v9313_v58, %v893_v45  ;;  %v986_v50 = vadd.f32 %v9314_v63, %v981_v40  ;;  %1933 = vxpose.xlu0.b32.start.end [1/1] (short) (narrow) %v1900_v53, 16  ;;  %v9345_v18 = vstv %s9327_s15  ;;  %v9346_v10 = vstv %s9328_s11 }
 0x18b   :  { %v9347_v62 = vstv %s9329_s5  ;;  %v9349_v11 = vstv %s9330_s22  ;;  %v9351_v35 = vstv %s9331_s20  ;;  %v9352_v58 = vstv %s9333_s1  ;;  %s9366_s5 = sld [smem:[#allocation169_spill]]  ;;  %s4723_s22 = sld [smem:[#allocation2 + $0xe4]] }
 0x18c   :  { %v903_v15 = vadd.f32 %v9315_v49, %v898_v57  ;;  %v991_v2 = vadd.f32 %v9316_v46, %v986_v50  ;;  %v9353_v63 = vstv %s9335_s4  ;;  %v1662_v49 = vld [vmem:[%s9275_s12] sm:$0x1]  ;;  %s4725_s20 = sld [smem:[#allocation2 + $0xe6]]  ;;  %s4726_s1 = sld [smem:[#allocation2 + $0xe7]] }
 0x18d   :  { %s4727_s4 = sld [smem:[#allocation2 + $0xe8]] }
 0x18e   :  { %v905_v0 = vsub.f32 0.0, %v903_v15  ;;  %v996_v44 = vadd.f32 %v9319_v47, %v991_v2  ;;  %v1684_v15 = vld [vmem:[%s9275_s12 + $0x1] sm:$0x1] }
 0x190   :  { %v907_v30 = vmul.f32 1.442695, %v905_v0  ;;  %v998_v20 = vsub.f32 0.0, %v996_v44  ;;  %v9357_v0 = vstv %s9340_s3  ;;  %v9359_v44 = vstv %s9342_s9  ;;  %s9367_s3 = sld [smem:[#allocation173_spill]]  ;;  %s4732_s9 = sld [smem:[#allocation2 + $0xed]] }
 0x192   :  { %5275 = vpow2.f32 %v907_v30  ;;  %v1000_v14 = vmul.f32 1.442695, %v998_v20  ;;  %v1706_v20 = vld [vmem:[%s9275_s12 + $0x2] sm:$0x1] }
 0x194   :  { %5277 = vpow2.f32 %v1000_v14  ;;  %v1728_v14 = vld [vmem:[%s9275_s12 + $0x3] sm:$0x1] }
 0x19c   :  { %v5276_v6 = vpop.eup %5275 }
 0x19d   :  { %v911_v21 = vadd.f32 1.0, %v5276_v6 }
 0x19e   :  { %v5278_v31 = vpop.eup %5277 }
 0x19f   :  { %5279 = vrcp.f32 %v911_v21  ;;  %v1004_v19 = vadd.f32 1.0, %v5278_v31  ;;  %v9360_v31 = vstv %s9348_s24  ;;  %s4739_s24 = sld [smem:[#allocation2 + $0xf4]] }
 0x1a1   :  { %5281 = vrcp.f32 %v1004_v19 }
 0x1a9   :  { %v5280_v1 = vpop.eup %5279 }
 0x1aa   :  { %v1011_v22 = vmul.f32 %v5280_v1, %v9332_v12  ;;  %v1022_v51 = vmul.f32 %v5280_v1, %v9334_v41  ;;  %v1033_v16 = vmul.f32 %v5280_v1, %v9336_v37  ;;  %v1044_v38 = vmul.f32 %v5280_v1, %v9337_v25 }
 0x1ab   :  { %v5282_v39 = vpop.eup %5281  ;;  %v1055_v54 = vmul.f32 %v5280_v1, %v9338_v43  ;;  %v1066_v13 = vmul.f32 %v5280_v1, %v9339_v28  ;;  %v1077_v9 = vmul.f32 %v5280_v1, %v9341_v7  ;;  %v1088_v36 = vmul.f32 %v5280_v1, %v9343_v26 }
 0x1ac   :  { %v1014_v24 = vadd.f32 %v9344_v48, %v1011_v22  ;;  %v1017_v33 = vmul.f32 %v5282_v39, %v9345_v18  ;;  %v1025_v5 = vadd.f32 %v9346_v10, %v1022_v51  ;;  %v1028_v45 = vmul.f32 %v5282_v39, %v9347_v62  ;;  %v1750_v22 = vld [vmem:[%s9275_s12 + $0x4] sm:$0x1] }
 0x1ad   :  { %v1036_v40 = vadd.f32 %v9349_v11, %v1033_v16  ;;  %v1039_v53 = vmul.f32 %v5282_v39, %v9351_v35  ;;  %v1047_v57 = vadd.f32 %v9352_v58, %v1044_v38  ;;  %v1050_v50 = vmul.f32 %v5282_v39, %v9353_v63 }
 0x1ae   :  { %v1019_v46 = vadd.f32 %v1017_v33, %v1014_v24  ;;  %v1030_v2 = vadd.f32 %v1028_v45, %v1025_v5  ;;  %v1058_v47 = vadd.f32 %v9357_v0, %v1055_v54  ;;  %v1061_v30 = vmul.f32 %v5282_v39, %v9359_v44  ;;  %v1772_v54 = vld [vmem:[%s9275_s12 + $0x5] sm:$0x1]  ;;  %v1794_v24 = vld [vmem:[%s9275_s12 + $0x6] sm:$0x1] }
 0x1af   :  { %v1041_v6 = vadd.f32 %v1039_v53, %v1036_v40  ;;  %v1052_v21 = vadd.f32 %v1050_v50, %v1047_v57  ;;  %v1069_v19 = vadd.f32 %v9360_v31, %v1066_v13  ;;  %v9361_v1 = vstv %s9350_s30  ;;  %s9368_s30 = sld [smem:[#allocation172_spill]] }
 0x1b0   :  { %v1072_v12 = vmul.f32 %v5282_v39, %v9361_v1  ;;  %v1063_v41 = vadd.f32 %v1061_v30, %v1058_v47  ;;  %v9362_v51 = vstv %s9354_s29  ;;  %v9363_v16 = vstv %s9355_s27  ;;  %s4733_s29 = sld [smem:[#allocation2 + $0xee]]  ;;  %s4728_s27 = sld [smem:[#allocation2 + $0xe9]] }
 0x1b1   :  { %v1080_v37 = vadd.f32 %v9362_v51, %v1077_v9  ;;  %v1083_v25 = vmul.f32 %v5282_v39, %v9363_v16  ;;  %v9364_v38 = vstv %s9356_s18  ;;  %v9365_v7 = vstv %s9358_s13  ;;  %s4729_s18 = sld [smem:[#allocation2 + $0xea]] }
 0x1b2   :  { %v1091_v43 = vadd.f32 %v9364_v38, %v1088_v36  ;;  %v1074_v28 = vadd.f32 %v1072_v12, %v1069_v19  ;;  %v1094_v13 = vmul.f32 %v5282_v39, %v9365_v7  ;;  %v1664_v26 = vmul.f32 %v1662_v49, %v1019_v46  ;;  %v1816_v36 = vld [vmem:[%s9275_s12 + $0x7] sm:$0x1]  ;;  %s4737_s13 = sld [smem:[#allocation2 + $0xf2]] }
 0x1b3   :  { %v1686_v48 = vmul.f32 %v1684_v15, %v1030_v2  ;;  %v1085_v18 = vadd.f32 %v1083_v25, %v1080_v37  ;;  %v1708_v33 = vmul.f32 %v1706_v20, %v1041_v6  ;;  %v1730_v9 = vmul.f32 %v1728_v14, %v1052_v21 }
 0x1b4   :  { %v1096_v10 = vadd.f32 %v1094_v13, %v1091_v43  ;;  %5283 = vtanh.f32 %v1664_v26  ;;  %v1752_v5 = vmul.f32 %v1750_v22, %v1063_v41  ;;  %v1774_v62 = vmul.f32 %v1772_v54, %v1074_v28 }
 0x1b5   :  { %5285 = vtanh.f32 %v1686_v48  ;;  %v1796_v39 = vmul.f32 %v1794_v24, %v1085_v18 }
 0x1b6   :  { %5287 = vtanh.f32 %v1708_v33  ;;  %v1818_v45 = vmul.f32 %v1816_v36, %v1096_v10 }
 0x1b7   :  { %5289 = vtanh.f32 %v1730_v9 }
 0x1b8   :  { %5291 = vtanh.f32 %v1752_v5  ;;  %v5366_v5 = vmov 0.0|0.0  }
 0x1b9   :  { %5293 = vtanh.f32 %v1774_v62  ;;  %v5368_v62 = vmov 0.0  }
 0x1ba   :  { %5295 = vtanh.f32 %v1796_v39  ;;  %v7746_v39 = vld [vmem:[%s9366_s5 + $0x4] sm:$0xf] }
 0x1bb   :  { %5297 = vtanh.f32 %v1818_v45  ;;  %v7751_v45 = vld [vmem:[%s9366_s5] sm:$0xf]  ;;  %s4724_s5 = sld [smem:[#allocation2 + $0xe5]] }
 0x1be   :  { %v5284_v11 = vpop.eup %5283 }
 0x1bf   :  { %v5286_v40 = vpop.eup %5285  ;;  %v1672_v35 = vmul.f32 %v5284_v11, %v7485_v52  ;;  %v4768_v11 = vld [vmem:[%s9367_s3] ss:$0 sm:$0xff] }
 0x1c0   :  { %v5288_v53 = vpop.eup %5287  ;;  %v1694_v58 = vmul.f32 %v5286_v40, %v7491_v29  ;;  %v3242_v40 = vld [vmem:[%s9368_s30] sm:$0xf]  ;;  %3230 = vbcast.lane.b32.xlu1 %v4768_v11, 256 }
 0x1c1   :  { %v5290_v57 = vpop.eup %5289  ;;  %v1716_v63 = vmul.f32 %v5288_v53, %v7497_v4  ;;  %5299 = vtanh.f32 %v1672_v35  ;;  %v3243_v35 = vmul.f32 %v3242_v40, %v7751_v45  ;;  %v3244_v53 = vmul.f32 %v3242_v40, %v7746_v39 }
 0x1c2   :  { %v5292_v50 = vpop.eup %5291  ;;  %v1738_v49 = vmul.f32 %v5290_v57, %v7503_v17  ;;  %5301 = vtanh.f32 %v1694_v58 }
 0x1c3   :  { %v5294_v15 = vpop.eup %5293  ;;  %v1760_v46 = vmul.f32 %v5292_v50, %v7509_v8  ;;  %5303 = vtanh.f32 %v1716_v63  ;;  %v3245_v58 = vsel %vm2845_vm10, %v3243_v35, 0.0  ;;  %v3252_v57 = vsel %vm2845_vm10, %v3244_v53, 0.0  ;;  %v4770_v35 = vld [vmem:[%s9368_s30 + $0x10] sm:$0xf] }
 0x1c4   :  { %v5296_v2 = vpop.eup %5295  ;;  %v1782_v0 = vmul.f32 %v5294_v15, %v7512_v55  ;;  %5305 = vtanh.f32 %v1738_v49  ;;  %v3246_v63 = vrot.slane %v3245_v58, 4  ;;  %v3253_v50 = vrot.slane %v3252_v57, 4  ;;  %3234 = vbcast.lane.b32.xlu1 %v4768_v11, 264 }
 0x1c5   :  { %v5298_v52 = vpop.eup %5297  ;;  %v1804_v47 = vmul.f32 %v5296_v2, %v7515_v56  ;;  %5307 = vtanh.f32 %v1760_v46 }
 0x1c6   :  { %v1826_v29 = vmul.f32 %v5298_v52, %v7518_v59  ;;  %5309 = vtanh.f32 %v1782_v0  ;;  %v3247_v49 = vadd.f32 %v3246_v63, %v3245_v58  ;;  %v3254_v15 = vadd.f32 %v3253_v50, %v3252_v57  ;;  %v4777_v57 = vld [vmem:[%s9368_s30 + $0x14] sm:$0xf] }
 0x1c7   :  { %5311 = vtanh.f32 %v1804_v47 }
 0x1c8   :  { %5313 = vtanh.f32 %v1826_v29  ;;  %v3248_v46 = vrot.slane %v3247_v49, 2  ;;  %v3255_v2 = vrot.slane %v3254_v15, 2 }
 0x1ca   :  { %v3249_v0 = vadd.f32 %v3248_v46, %v3247_v49  ;;  %v3256_v52 = vadd.f32 %v3255_v2, %v3254_v15 }
 0x1cb   :  { %v5300_v4 = vpop.eup %5299 }
 0x1cc   :  { %v5302_v17 = vpop.eup %5301  ;;  %v1680_v44 = vmul.f32 %v5300_v4, %v7571_v32  ;;  %v3250_v47 = vrot.slane %v3249_v0, 1  ;;  %v3257_v29 = vrot.slane %v3256_v52, 1 }
 0x1cd   :  { %v5304_v30 = vpop.eup %5303  ;;  %v1702_v8 = vmul.f32 %v5302_v17, %v7573_v60 }
 0x1ce   :  { %v5306_v20 = vpop.eup %5305  ;;  %5315 = vtanh.f32 %v1680_v44  ;;  %v1724_v55 = vmul.f32 %v5304_v30, %v7575_v3  ;;  %v3251_v4 = vadd.f32 %v3250_v47, %v3249_v0  ;;  %v3258_v17 = vadd.f32 %v3257_v29, %v3256_v52 }
 0x1cf   :  { %v5308_v14 = vpop.eup %5307  ;;  %5317 = vtanh.f32 %v1702_v8  ;;  %v1746_v56 = vmul.f32 %v5306_v20, %v7577_v27 }
 0x1d0   :  { %v5310_v6 = vpop.eup %5309  ;;  %5319 = vtanh.f32 %v1724_v55  ;;  %v1768_v59 = vmul.f32 %v5308_v14, %v7593_v42  ;;  %3262 = vbcast.lane.b32.xlu1 %v3251_v4, 256 }
 0x1d1   :  { %v5312_v21 = vpop.eup %5311  ;;  %5321 = vtanh.f32 %v1746_v56  ;;  %v1790_v31 = vmul.f32 %v5310_v6, %v7595_v23 }
 0x1d2   :  { %v5314_v32 = vpop.eup %5313  ;;  %5323 = vtanh.f32 %v1768_v59  ;;  %v1812_v60 = vmul.f32 %v5312_v21, %v7603_v61 }
 0x1d3   :  { %5325 = vtanh.f32 %v1790_v31  ;;  %v1834_v19 = vmul.f32 %v5314_v32, %v7607_v34  ;;  %v4774_v32 = vld [vmem:[%s9367_s3 + $0x1] ss:$0 sm:$0xff] }
 0x1d4   :  { %5327 = vtanh.f32 %v1812_v60  ;;  %3266 = vbcast.lane.b32.xlu1 %v3251_v4, 264  ;;  %v4775_v60 = vld [vmem:[%s9368_s30 + $0x4] sm:$0xf] }
 0x1d5   :  { %5329 = vtanh.f32 %v1834_v19  ;;  %v3565_v19 = vmul.f32 %v4775_v60, %v7751_v45 }
 0x1d8   :  { %v5316_v3 = vpop.eup %5315  ;;  %3269 = vbcast.lane.b32.xlu1 %v3258_v17, 256 }
 0x1d9   :  { %v5318_v1 = vpop.eup %5317 }
 0x1da   :  { %v5320_v27 = vpop.eup %5319  ;;  %v1840_v12 = vrot.slane %v5318_v1, 7 }
 0x1db   :  { %v5322_v22 = vpop.eup %5321  ;;  %v1846_v41 = vrot.slane %v5320_v27, 6 }
 0x1dc   :  { %v5324_v42 = vpop.eup %5323  ;;  %v1852_v51 = vrot.slane %v5322_v22, 5  ;;  %v1881_v37 = vsel %vm1880_vm0, %v5316_v3, %v1840_v12  ;;  %3555 = vbcast.lane.b32.xlu1 %v4774_v32, 264  ;;  %v3567_v3 = vsel %vm2845_vm10, %v3565_v19, 0.0 }
 0x1dd   :  { %v5326_v23 = vpop.eup %5325  ;;  %v1858_v16 = vrot.slane %v5324_v42, 4  ;;  %v1884_v25 = vsel %vm1883_vm1, %v1881_v37, %v1846_v41  ;;  %v3568_v1 = vrot.slane %v3567_v3, 4  ;;  %vm2803_vm1 = vcmask 1041409  }
 0x1de   :  { %v5328_v61 = vpop.eup %5327  ;;  %v1864_v38 = vrot.slane %v5326_v23, 3  ;;  %v1887_v34 = vsel %vm1886_vm2, %v1884_v25, %v1852_v51  ;;  %v3566_v51 = vmul.f32 %v4775_v60, %v7746_v39  ;;  %vm2806_vm2 = vcmask 123904  }
 0x1df   :  { %v5330_v43 = vpop.eup %5329  ;;  %v1870_v54 = vrot.slane %v5328_v61, 2  ;;  %v1890_v28 = vsel %vm1889_vm3, %v1887_v34, %v1858_v16  ;;  %v3569_v27 = vadd.f32 %v3568_v1, %v3567_v3  ;;  %v7810_v34 = vld [vmem:[%s9368_s30 + $0x8] sm:$0xf] }
 0x1e0   :  { %v1876_v7 = vrot.slane %v5330_v43, 1  ;;  %v1893_v13 = vsel %vm1892_vm4, %v1890_v28, %v1864_v38  ;;  %v3574_v37 = vsel %vm2845_vm10, %v3566_v51, 0.0 }
 0x1e1   :  { %v1896_v26 = vsel %vm1895_vm5, %v1893_v13, %v1870_v54  ;;  %v3570_v12 = vrot.slane %v3569_v27, 2  ;;  %v3575_v23 = vrot.slane %v3574_v37, 4  ;;  %v3884_v54 = vmul.f32 %v7810_v34, %v7751_v45  ;;  %v4782_v13 = vld [vmem:[%s9367_s3 + $0x2] ss:$0 sm:$0xff] }
 0x1e2   :  { %v1899_v48 = vsel %vm1898_vm6, %v1896_v26, %v1876_v7 }
 0x1e3   :  { %1901 = vxpose.xlu0.b32.start.end [1/1] (short) (narrow) %v1899_v48, 16  ;;  %v3571_v22 = vadd.f32 %v3570_v12, %v3569_v27  ;;  %v3576_v16 = vadd.f32 %v3575_v23, %v3574_v37  ;;  %v3886_v28 = vsel %vm2845_vm10, %v3884_v54, 0.0  ;;  %v4790_v48 = vld [vmem:[%s9367_s3 + $0x3] ss:$0 sm:$0xff]  ;;  %s4731_s3 = sld [smem:[#allocation2 + $0xec]] }
 0x1e4   :  { %v3887_v7 = vrot.slane %v3886_v28, 4 }
 0x1e5   :  { %v3572_v41 = vrot.slane %v3571_v22, 1  ;;  %v3577_v25 = vrot.slane %v3576_v16, 2 }
 0x1e6   :  { %v3888_v26 = vadd.f32 %v3887_v7, %v3886_v28 }
 0x1e7   :  { %v3573_v42 = vadd.f32 %v3572_v41, %v3571_v22  ;;  %v3578_v61 = vadd.f32 %v3577_v25, %v3576_v16 }
 0x1e9   :  { %3588 = vbcast.lane.b32.xlu1 %v3573_v42, 264  ;;  %v3579_v38 = vrot.slane %v3578_v61, 1 }
 0x1eb   :  { %v3580_v43 = vadd.f32 %v3579_v38, %v3578_v61  ;;  %v4772_v38 = vld [vmem:[%s9368_s30 + $0x20] sm:$0xf] }
 0x1ed   :  { %3595 = vbcast.lane.b32.xlu1 %v3580_v43, 264 }
 0x1f1   :  { %3870 = vbcast.lane.b32.xlu1 %v4782_v13, 256 }
 0x1f5   :  { %4189 = vbcast.lane.b32.xlu1 %v4790_v48, 256 }
 0x20a   :  { %v1949_v24 = vpop.trf.xlu0 }
 0x20b   :  { %4841 = vmatprep.mubr.msk.f32.mxu1 %vm1965_vm7, %v1949_v24 }
 0x20e   :  { %v1950_v18 = vpop.trf.xlu0 }
 0x20f   :  { %v4906_v33 = vpack.c.bf16 %v1950_v18, %v1949_v24  ;;  %v3889_v24 = vrot.slane %v3888_v26, 2 }
 0x210   :  { %3273 = vbcast.lane.b32.xlu0 %v3258_v17, 264 }
 0x211   :  { %4908 = vmatprep.subr.msk.bf16.mxu1 %vm4901_vm8, %v4906_v33 }
 0x212   :  { %4911 = vmatpush3.bf16.xpose.msk.msra.mxu1 %vm4901_vm8, %v4906_v33 }
 0x213   :  { %4916 = vmatprep.subr.bf16.mxu1 %v5366_v5 }
 0x214   :  { %3551 = vbcast.lane.b32.xlu0 %v4774_v32, 256 }
 0x218   :  { %3584 = vbcast.lane.b32.xlu0 %v3573_v42, 256 }
 0x219   :  { %4842 = vmatmul.mubr.msk.f32.vlgmr.msra.gmra.mrb[0].mxu1 %vm1965_vm7, %v1950_v18  ;;  %v3890_v18 = vadd.f32 %v3889_v24, %v3888_v26 }
 0x21a   :  { %4855 = vmatprep.mubr.msk.f32.mxu1 %vm5367_vm9, %v5368_v62 }
 0x21b   :  { %v3891_v33 = vrot.slane %v3890_v18, 1 }
 0x21c   :  { %3591 = vbcast.lane.b32.xlu0 %v3580_v43, 256  ;;  %v4769_v43 = vld [vmem:[%s9368_s30 + $0x30] sm:$0xf] }
 0x220   :  { %3874 = vbcast.lane.b32.xlu0 %v4782_v13, 264 }
 0x224   :  { %4193 = vbcast.lane.b32.xlu0 %v4790_v48, 264 }
 0x263   :  { %v1917_v9 = vpop.trf.xlu0 }
 0x264   :  { %4834 = vmatprep.mubr.msk.f32.mxu0 %vm1965_vm7, %v1917_v9 }
 0x267   :  { %v1918_v36 = vpop.trf.xlu0 }
 0x268   :  { %v4900_v10 = vpack.c.bf16 %v1918_v36, %v1917_v9  ;;  %v3892_v9 = vadd.f32 %v3891_v33, %v3890_v18 }
 0x26a   :  { %4902 = vmatprep.subr.msk.bf16.mxu0 %vm4901_vm8, %v4900_v10  ;;  %3903 = vbcast.lane.b32.xlu1 %v3892_v9, 256 }
 0x26b   :  { %4905 = vmatpush3.bf16.xpose.msk.msra.mxu0 %vm4901_vm8, %v4900_v10  ;;  %3907 = vbcast.lane.b32.xlu0 %v3892_v9, 264 }
 0x26c   :  { %4912 = vmatprep.subr.bf16.mxu0 %v5366_v5 }
 0x272   :  { %4835 = vmatmul.mubr.msk.f32.vlgmr.msra.gmra.mrb[0].mxu0 %vm1965_vm7, %v1918_v36  ;;  %vm3520_vm7 = vcmask 130112  }
 0x273   :  { %4848 = vmatprep.mubr.msk.f32.mxu0 %vm5367_vm9, %v5368_v62 }
 0x2ec   :  { %v4843_v44 = vpop.f32.mrb[0].mxu1 }
 0x2ed   :  { %v2131_v30 = vmax.f32 %v4843_v44, 0.0  ;;  %v2119_v8 = vpop.f32.mrb[1].mxu1 }
 0x2ee   :  { %v2130_v20 = vmax.f32 %v2119_v8, 0.0 }
 0x2f0   :  { %v7769_v14 = vpack.c.bf16 %v2131_v30, %v2130_v20 }
 0x2f2   :  { %4919 = vmatpush3.bf16.xpose.msk.msra.mxu1 %vm7765_vm12, %v7769_v14 }
 0x2f3   :  { %4924 = vmatprep.subr.bf16.mxu1 %v5366_v5 }
 0x2f9   :  { %4856 = vmatmul.mubr.msk.f32.vlgmr.msra.gmra.mrb[2].mxu1 %vm2134_vm11, %v7746_v39 }
 0x2fa   :  { %4927 = vmatpush3.bf16.xpose.msk.msra.mxu1 %vm7765_vm12, %v7769_v14  ;;  %4869 = vmatprep.mubr.msk.f32.mxu1 %vm5367_vm9, %v5368_v62 }
 0x2fb   :  { %4931 = vmatprep.subr.bf16.mxu1 %v5366_v5 }
 0x345   :  { %v4836_v56 = vpop.f32.mrb[0].mxu0 }
 0x346   :  { %v2129_v6 = vmax.f32 %v4836_v56, 0.0  ;;  %v2038_v59 = vpop.f32.mrb[1].mxu0 }
 0x347   :  { %v2128_v21 = vmax.f32 %v2038_v59, 0.0 }
 0x349   :  { %v7783_v31 = vpack.c.bf16 %v2129_v6, %v2128_v21 }
 0x34b   :  { %4915 = vmatpush3.bf16.xpose.msk.msra.mxu0 %vm7765_vm12, %v7783_v31 }
 0x34c   :  { %4920 = vmatprep.subr.bf16.mxu0 %v5366_v5 }
 0x352   :  { %4849 = vmatmul.mubr.msk.f32.vlgmr.msra.gmra.mrb[2].mxu0 %vm2134_vm11, %v7751_v45 }
 0x353   :  { %4923 = vmatpush3.bf16.xpose.msk.msra.mxu0 %vm7765_vm12, %v7783_v31  ;;  %4862 = vmatprep.mubr.msk.f32.mxu0 %vm5367_vm9, %v5368_v62 }
 0x354   :  { %4928 = vmatprep.subr.bf16.mxu0 %v5366_v5 }
 0x3cc   :  { %v2289_v36 = vpop.f32.mrb[2].mxu1 }
 0x3cd   :  { %vm2294_vm13 = vcmp.gt.f32.partialorder %v2289_v36, 0.0  ;;  %v2296_v10 = vmul.f32 0.01, %v2289_v36  ;;  %v4857_v11 = vpop.f32.mrb[3].mxu1 }
 0x3cf   :  { %v7821_v40 = vsel %vm2294_vm13, %v2289_v36, %v2296_v10 }
 0x3d0   :  { %4870 = vmatmul.mubr.msk.f32.vlgmr.msra.gmra.mrb[4].mxu1 %vm2134_vm11, %v7821_v40  ;;  %v3328_v53 = vmul.f32 %v4770_v35, %v7821_v40  ;;  %v3650_v46 = vmul.f32 %v4777_v57, %v7821_v40 }
 0x3d1   :  { %4933 = vmatpush3.bf16.msra.mxu1 %v7769_v14  ;;  %4883 = vmatprep.mubr.msk.f32.mxu1 %vm5367_vm9, %v5368_v62 }
 0x3d2   :  { %4937 = vmatprep.subr.bf16.mxu1 %v5366_v5  ;;  %v3336_v58 = vsel %vm2845_vm10, %v3328_v53, 0.0  ;;  %v3658_v17 = vsel %vm2845_vm10, %v3650_v46, 0.0 }
 0x3d3   :  { %v3337_v15 = vrot.slane %v3336_v58, 4  ;;  %v3659_v56 = vrot.slane %v3658_v17, 4 }
 0x3d5   :  { %v3338_v47 = vadd.f32 %v3337_v15, %v3336_v58  ;;  %v3660_v60 = vadd.f32 %v3659_v56, %v3658_v17 }
 0x3d7   :  { %v3339_v20 = vrot.slane %v3338_v47, 2  ;;  %v3661_v12 = vrot.slane %v3660_v60, 2 }
 0x3d9   :  { %v3340_v21 = vadd.f32 %v3339_v20, %v3338_v47  ;;  %v3662_v41 = vadd.f32 %v3661_v12, %v3660_v60 }
 0x3db   :  { %v3341_v1 = vrot.slane %v3340_v21, 1  ;;  %v3663_v51 = vrot.slane %v3662_v41, 1 }
 0x3dd   :  { %v3342_v22 = vadd.f32 %v3341_v1, %v3340_v21  ;;  %v3664_v37 = vadd.f32 %v3663_v51, %v3662_v41 }
 0x425   :  { %v2210_v63 = vpop.f32.mrb[2].mxu0 }
 0x426   :  { %vm2293_vm14 = vcmp.gt.f32.partialorder %v2210_v63, 0.0  ;;  %v2295_v50 = vmul.f32 0.01, %v2210_v63  ;;  %v4850_v49 = vpop.f32.mrb[3].mxu0 }
 0x428   :  { %v7838_v2 = vsel %vm2293_vm14, %v2210_v63, %v2295_v50 }
 0x429   :  { %4863 = vmatmul.mubr.msk.f32.vlgmr.msra.gmra.mrb[4].mxu0 %vm2134_vm11, %v7838_v2  ;;  %v3327_v0 = vmul.f32 %v4770_v35, %v7838_v2  ;;  %v3649_v52 = vmul.f32 %v4777_v57, %v7838_v2  ;;  %v4779_v57 = vld [vmem:[%s9368_s30 + $0x24] sm:$0xf] }
 0x42a   :  { %4930 = vmatpush3.bf16.msra.mxu0 %v7783_v31  ;;  %4876 = vmatprep.mubr.msk.f32.mxu0 %vm5367_vm9, %v5368_v62 }
 0x42b   :  { %v3329_v29 = vsel %vm2845_vm10, %v3327_v0, 0.0  ;;  %v3651_v4 = vsel %vm2845_vm10, %v3649_v52, 0.0  ;;  %4934 = vmatprep.subr.bf16.mxu0 %v5366_v5 }
 0x42c   :  { %v3330_v44 = vrot.slane %v3329_v29, 4  ;;  %v3652_v30 = vrot.slane %v3651_v4, 4 }
 0x42e   :  { %v3331_v8 = vadd.f32 %v3330_v44, %v3329_v29  ;;  %v3653_v55 = vadd.f32 %v3652_v30, %v3651_v4 }
 0x430   :  { %v3332_v6 = vrot.slane %v3331_v8, 2  ;;  %v3654_v32 = vrot.slane %v3653_v55, 2 }
 0x432   :  { %v3333_v59 = vadd.f32 %v3332_v6, %v3331_v8  ;;  %v3655_v27 = vadd.f32 %v3654_v32, %v3653_v55 }
 0x434   :  { %v3334_v19 = vrot.slane %v3333_v59, 1  ;;  %v3656_v5 = vrot.slane %v3655_v27, 1 }
 0x436   :  { %v3335_v3 = vadd.f32 %v3334_v19, %v3333_v59  ;;  %v3657_v42 = vadd.f32 %v3656_v5, %v3655_v27 }
 0x438   :  { %3350 = vbcast.lane.b32.xlu0 %v3335_v3, 264  ;;  %3346 = vbcast.lane.b32.xlu1 %v3335_v3, 256 }
 0x43c   :  { %3357 = vbcast.lane.b32.xlu0 %v3342_v22, 264  ;;  %3353 = vbcast.lane.b32.xlu1 %v3342_v22, 256 }
 0x440   :  { %3668 = vbcast.lane.b32.xlu0 %v3657_v42, 256  ;;  %3672 = vbcast.lane.b32.xlu1 %v3657_v42, 264 }
 0x444   :  { %3675 = vbcast.lane.b32.xlu0 %v3664_v37, 256  ;;  %3679 = vbcast.lane.b32.xlu1 %v3664_v37, 264 }
 0x4a3   :  { %v2441_v23 = vpop.f32.mrb[4].mxu1 }
 0x4a4   :  { %vm2446_vm15 = vcmp.gt.f32.partialorder %v2441_v23, 0.0  ;;  %v2448_v16 = vmul.f32 0.01, %v2441_v23  ;;  %v4871_v25 = vpop.f32.mrb[5].mxu1 }
 0x4a6   :  { %v7851_v61 = vsel %vm2446_vm15, %v2441_v23, %v2448_v16 }
 0x4a7   :  { %4884 = vmatmul.mubr.msk.f32.vlgmr.msra.gmra.mrb[6].mxu1 %vm2134_vm11, %v7851_v61  ;;  %v3412_v54 = vmul.f32 %v4772_v38, %v7851_v61  ;;  %v3286_v28 = vmul.f32 %v4769_v43, %v7851_v61  ;;  %v3734_v4 = vmul.f32 %v4779_v57, %v7851_v61 }
 0x4a8   :  { %4939 = vmatpush3.bf16.msra.mxu1 %v7769_v14  ;;  %4897 = vmatprep.mubr.msk.f32.mxu1 %vm5367_vm9, %v5368_v62  ;;  %v4776_v14 = vld [vmem:[%s9368_s30 + $0x34] sm:$0xf] }
 0x4a9   :  { %v3420_v7 = vsel %vm2845_vm10, %v3412_v54, 0.0  ;;  %v3294_v48 = vsel %vm2845_vm10, %v3286_v28, 0.0  ;;  %v3608_v33 = vmul.f32 %v4776_v14, %v7851_v61  ;;  %v3742_v59 = vsel %vm2845_vm10, %v3734_v4, 0.0 }
 0x4aa   :  { %v3421_v26 = vrot.slane %v3420_v7, 4  ;;  %v3295_v36 = vrot.slane %v3294_v48, 4  ;;  %v3743_v5 = vrot.slane %v3742_v59, 4  ;;  %v7917_v4 = vstv %s4726_s1 }
 0x4ab   :  { %v3616_v58 = vsel %vm2845_vm10, %v3608_v33, 0.0 }
 0x4ac   :  { %v3422_v35 = vadd.f32 %v3421_v26, %v3420_v7  ;;  %v3296_v47 = vadd.f32 %v3295_v36, %v3294_v48  ;;  %v3617_v29 = vrot.slane %v3616_v58, 4  ;;  %v3744_v16 = vadd.f32 %v3743_v5, %v3742_v59 }
 0x4ae   :  { %v3423_v52 = vrot.slane %v3422_v35, 2  ;;  %v3297_v56 = vrot.slane %v3296_v47, 2  ;;  %v3618_v6 = vadd.f32 %v3617_v29, %v3616_v58  ;;  %v3745_v28 = vrot.slane %v3744_v16, 2 }
 0x4b0   :  { %v3424_v55 = vadd.f32 %v3423_v52, %v3422_v35  ;;  %v3298_v12 = vadd.f32 %v3297_v56, %v3296_v47  ;;  %v3619_v22 = vrot.slane %v3618_v6, 2  ;;  %v2755_v35 = vadd.f32 %v7838_v2, %v7751_v45 }
 0x4b2   :  { %v3425_v27 = vrot.slane %v3424_v55, 1  ;;  %v3620_v23 = vadd.f32 %v3619_v22, %v3618_v6  ;;  %v7936_v22 = vpop.permute.xlu1 %3230 }
 0x4b4   :  { %v3426_v25 = vadd.f32 %v3425_v27, %v3424_v55 }
 0x4fc   :  { %v2368_v13 = vpop.f32.mrb[4].mxu0 }
 0x4fd   :  { %vm2445_vm0 = vcmp.gt.f32.partialorder %v2368_v13, 0.0  ;;  %v2447_v24 = vmul.f32 0.01, %v2368_v13  ;;  %v4864_v18 = vpop.f32.mrb[5].mxu0 }
 0x4fe   :  { %v3746_v18 = vadd.f32 %v3745_v28, %v3744_v16 }
 0x4ff   :  { %v7872_v9 = vsel %vm2445_vm0, %v2368_v13, %v2447_v24  ;;  %v3621_v13 = vrot.slane %v3620_v23, 1 }
 0x500   :  { %4877 = vmatmul.mubr.msk.f32.vlgmr.msra.gmra.mrb[6].mxu0 %vm2134_vm11, %v7872_v9  ;;  %v3411_v10 = vmul.f32 %v4772_v38, %v7872_v9  ;;  %v3285_v11 = vmul.f32 %v4769_v43, %v7872_v9  ;;  %v3607_v53 = vmul.f32 %v4776_v14, %v7872_v9  ;;  %v3733_v15 = vmul.f32 %v4779_v57, %v7872_v9 }
 0x501   :  { %4936 = vmatpush3.bf16.msra.mxu0 %v7783_v31  ;;  %4890 = vmatprep.mubr.msk.f32.mxu0 %vm5367_vm9, %v5368_v62  ;;  %v3299_v43 = vrot.slane %v3298_v12, 1  ;;  %v3622_v48 = vadd.f32 %v3621_v13, %v3620_v23  ;;  %v3747_v36 = vrot.slane %v3746_v18, 1  ;;  %v2757_v58 = vadd.f32 %v2755_v35, %v7872_v9 }
 0x502   :  { %v3413_v63 = vsel %vm2845_vm10, %v3411_v10, 0.0  ;;  %v3287_v50 = vsel %vm2845_vm10, %v3285_v11, 0.0  ;;  %v3609_v49 = vsel %vm2845_vm10, %v3607_v53, 0.0  ;;  %v3735_v62 = vsel %vm2845_vm10, %v3733_v15, 0.0 }
 0x503   :  { %v3414_v46 = vrot.slane %v3413_v63, 4  ;;  %v3288_v0 = vrot.slane %v3287_v50, 4  ;;  %v3610_v31 = vrot.slane %v3609_v49, 4  ;;  %v3736_v19 = vrot.slane %v3735_v62, 4 }
 0x504   :  { %v3300_v14 = vadd.f32 %v3299_v43, %v3298_v12  ;;  %v3748_v10 = vadd.f32 %v3747_v36, %v3746_v18  ;;  %v2756_v11 = vadd.f32 %v7821_v40, %v7746_v39 }
 0x505   :  { %v3415_v17 = vadd.f32 %v3414_v46, %v3413_v63  ;;  %v3289_v44 = vadd.f32 %v3288_v0, %v3287_v50  ;;  %v3611_v30 = vadd.f32 %v3610_v31, %v3609_v49  ;;  %v3737_v37 = vadd.f32 %v3736_v19, %v3735_v62 }
 0x506   :  { %v2758_v53 = vadd.f32 %v2756_v11, %v7851_v61  ;;  %v7901_v63 = vstv %s4724_s5  ;;  %v7903_v50 = vmul.f32 0.33333334, %v2757_v58  ;;  %v7909_v46 = vstv %s4723_s22 }
 0x507   :  { %v3416_v8 = vrot.slane %v3415_v17, 2  ;;  %v3290_v20 = vrot.slane %v3289_v44, 2  ;;  %v3612_v60 = vrot.slane %v3611_v30, 2  ;;  %v3738_v54 = vrot.slane %v3737_v37, 2 }
 0x508   :  { %v7899_v57 = vmul.f32 0.33333334, %v2758_v53  ;;  %v2765_v15 = vmul.f32 %v7901_v63, %v7903_v50  ;;  %v7911_v0 = vstv %s4725_s20  ;;  %v2787_v6 = vmul.f32 %v7917_v4, %v7903_v50 }
 0x509   :  { %v3417_v21 = vadd.f32 %v3416_v8, %v3415_v17  ;;  %v3291_v32 = vadd.f32 %v3290_v20, %v3289_v44  ;;  %v3613_v51 = vadd.f32 %v3612_v60, %v3611_v30  ;;  %v3739_v26 = vadd.f32 %v3738_v54, %v3737_v37 }
 0x50a   :  { %v2766_v49 = vmul.f32 %v7901_v63, %v7899_v57  ;;  %v2763_v52 = vmul.f32 %v7909_v46, %v7899_v57  ;;  %v2769_v47 = vrot.slane %v2765_v15, 1  ;;  %v2777_v29 = vmul.f32 %v7911_v0, %v7899_v57 }
 0x50b   :  { %v3418_v3 = vrot.slane %v3417_v21, 1  ;;  %v3292_v1 = vrot.slane %v3291_v32, 1  ;;  %v3614_v38 = vrot.slane %v3613_v51, 1  ;;  %v3740_v24 = vrot.slane %v3739_v26, 1 }
 0x50c   :  { %v2770_v31 = vrot.slane %v2766_v49, 1  ;;  %v2762_v17 = vmul.f32 %v7909_v46, %v7903_v50  ;;  %v2776_v30 = vmul.f32 %v7911_v0, %v7903_v50  ;;  %v2781_v8 = vrot.slane %v2777_v29, 2  ;;  %v4771_v49 = vld [vmem:[%s9368_s30 + $0x40] sm:$0xf] }
 0x50d   :  { %v3419_v41 = vadd.f32 %v3418_v3, %v3417_v21  ;;  %v3293_v42 = vadd.f32 %v3292_v1, %v3291_v32  ;;  %v3615_v7 = vadd.f32 %v3614_v38, %v3613_v51  ;;  %v3741_v33 = vadd.f32 %v3740_v24, %v3739_v26 }
 0x50e   :  { %v2774_v44 = vadd.f32 %v2770_v31, %v2763_v52  ;;  %v2773_v62 = vadd.f32 %v2769_v47, %v2762_v17  ;;  %v2788_v20 = vmul.f32 %v7917_v4, %v7899_v57  ;;  %v2780_v55 = vrot.slane %v2776_v30, 2  ;;  %v4778_v47 = vld [vmem:[%s9368_s30 + $0x44] sm:$0xf] }
 0x50f   :  { %3434 = vbcast.lane.b32.xlu0 %v3419_v41, 264  ;;  %3304 = vbcast.lane.b32.xlu1 %v3293_v42, 256  ;;  %v2791_v32 = vrot.slane %v2787_v6, 3  ;;  %v7927_v19 = vstv %s4727_s4 }
 0x510   :  { %v2785_v56 = vadd.f32 %v2781_v8, %v2774_v44  ;;  %v2784_v59 = vadd.f32 %v2780_v55, %v2773_v62  ;;  %v2792_v21 = vrot.slane %v2788_v20, 3 }
 0x512   :  { %v2796_v60 = vadd.f32 %v2792_v21, %v2785_v56  ;;  %v2795_v3 = vadd.f32 %v2791_v32, %v2784_v59 }
 0x513   :  { %3441 = vbcast.lane.b32.xlu0 %v3426_v25, 264  ;;  %3308 = vbcast.lane.b32.xlu1 %v3293_v42, 264  ;;  %v7941_v42 = vpop.permute.xlu1 %3234 }
 0x514   :  { %v7930_v1 = vadd.f32 %v7927_v19, %v2796_v60  ;;  %v7933_v27 = vadd.f32 %v7927_v19, %v2795_v3 }
 0x516   :  { %v2802_v12 = vrot.slane %v7930_v1, 7 }
 0x517   :  { %3626 = vbcast.lane.b32.xlu0 %v3615_v7, 256  ;;  %3311 = vbcast.lane.b32.xlu1 %v3300_v14, 256  ;;  %v7943_v51 = vpop.permute.xlu1 %3262 }
 0x518   :  { %v2804_v5 = vsel %vm2803_vm1, %v2802_v12, %v7933_v27 }
 0x51b   :  { %3633 = vbcast.lane.b32.xlu0 %v3622_v48, 256  ;;  %3315 = vbcast.lane.b32.xlu1 %v3300_v14, 264  ;;  %v7945_v37 = vpop.permute.xlu1 %3266 }
 0x51f   :  { %3752 = vbcast.lane.b32.xlu0 %v3741_v33, 256  ;;  %3430 = vbcast.lane.b32.xlu1 %v3419_v41, 256  ;;  %v2807_v41 = vsel %vm2806_vm2, %v2804_v5, -inf  ;;  %v7947_v23 = vpop.permute.xlu1 %3269 }
 0x520   :  { %9371 = vst [vmem:[#allocation8_spill] sm:$0xff] %v7947_v23  ;;  %v8393_v23 = vstv %s4731_s3 }
 0x523   :  { %3759 = vbcast.lane.b32.xlu0 %v3748_v10, 256  ;;  %3437 = vbcast.lane.b32.xlu1 %v3426_v25, 256  ;;  %v7949_v16 = vpop.permute.xlu1 %3555 }
 0x527   :  { %3630 = vbcast.lane.b32.xlu1 %v3615_v7, 264  ;;  %v7951_v25 = vpop.permute.xlu1 %3588 }
 0x52b   :  { %3637 = vbcast.lane.b32.xlu1 %v3622_v48, 264  ;;  %v7953_v38 = vpop.permute.xlu1 %3595 }
 0x52c   :  { %9372 = vst [vmem:[#allocation19_spill] sm:$0xff] %v7953_v38 }
 0x52f   :  { %3756 = vbcast.lane.b32.xlu1 %v3741_v33, 264  ;;  %v7959_v14 = vpop.permute.xlu1 %3870 }
 0x530   :  { %9373 = vst [vmem:[#allocation21_spill] sm:$0xff] %v7959_v14 }
 0x533   :  { %3763 = vbcast.lane.b32.xlu1 %v3748_v10, 264  ;;  %v7961_v13 = vpop.permute.xlu1 %4189 }
 0x537   :  { %v7963_v26 = vpop.permute.xlu1 %3903 }
 0x538   :  { %9374 = vst [vmem:[#allocation7_spill] sm:$0xff] %v7963_v26 }
 0x53b   :  { %v7965_v48 = vpop.permute.xlu1 %3346 }
 0x53c   :  { %9375 = vst [vmem:[#allocation16_spill] sm:$0xff] %v7965_v48 }
 0x53f   :  { %v7967_v24 = vpop.permute.xlu1 %3353 }
 0x540   :  { %9376 = vst [vmem:[#allocation18_spill] sm:$0xff] %v7967_v24 }
 0x543   :  { %v7969_v18 = vpop.permute.xlu1 %3672 }
 0x544   :  { %9377 = vst [vmem:[#allocation20_spill] sm:$0xff] %v7969_v18 }
 0x547   :  { %v7971_v33 = vpop.permute.xlu1 %3679 }
 0x548   :  { %9378 = vst [vmem:[#allocation12_spill] sm:$0xff] %v7971_v33 }
 0x557   :  { %2808 = vmax.xlane.f32.xlu1 %v2807_v41 }
 0x57a   :  { %v2593_v43 = vpop.f32.mrb[6].mxu1 }
 0x57b   :  { %vm2598_vm3 = vcmp.gt.f32.partialorder %v2593_v43, 0.0  ;;  %v2600_v54 = vmul.f32 0.01, %v2593_v43  ;;  %v4885_v28 = vpop.f32.mrb[7].mxu1 }
 0x57d   :  { %v7955_v7 = vsel %vm2598_vm3, %v2593_v43, %v2600_v54 }
 0x57e   :  { %4898 = vmatmul.mubr.msk.f32.vlgmr.msra.gmra.mrb[8].mxu1 %vm2134_vm11, %v7955_v7  ;;  %v3370_v15 = vmul.f32 %v4771_v49, %v7955_v7  ;;  %v3692_v8 = vmul.f32 %v4778_v47, %v7955_v7 }
 0x580   :  { %v3378_v52 = vsel %vm2845_vm10, %v3370_v15, 0.0  ;;  %v3700_v32 = vsel %vm2845_vm10, %v3692_v8, 0.0 }
 0x581   :  { %v7973_v36 = vpop.permute.xlu1 %3304  ;;  %v3379_v62 = vrot.slane %v3378_v52, 4  ;;  %v3701_v54 = vrot.slane %v3700_v32, 4 }
 0x583   :  { %v3380_v6 = vadd.f32 %v3379_v62, %v3378_v52 }
 0x585   :  { %v7975_v10 = vpop.permute.xlu1 %3308  ;;  %v3381_v41 = vrot.slane %v3380_v6, 2 }
 0x589   :  { %v7977_v11 = vpop.permute.xlu1 %3311 }
 0x58a   :  { %9379 = vst [vmem:[#allocation10_spill] sm:$0xff] %v7977_v11 }
 0x58d   :  { %v7979_v35 = vpop.permute.xlu1 %3315 }
 0x58e   :  { %9380 = vst [vmem:[#allocation11_spill] sm:$0xff] %v7979_v35 }
 0x591   :  { %v7981_v53 = vpop.permute.xlu1 %3430 }
 0x592   :  { %9381 = vst [vmem:[#allocation17_spill] sm:$0xff] %v7981_v53 }
 0x595   :  { %v7983_v58 = vpop.permute.xlu1 %3437 }
 0x596   :  { %9382 = vst [vmem:[#allocation13_spill] sm:$0xff] %v7983_v58 }
 0x599   :  { %v7989_v31 = vpop.permute.xlu1 %3630 }
 0x59a   :  { %9383 = vst [vmem:[#allocation92_spill] sm:$0xff] %v7989_v31 }
 0x59d   :  { %v7995_v17 = vpop.permute.xlu1 %3637 }
 0x59e   :  { %9384 = vst [vmem:[#allocation93_spill] sm:$0xff] %v7995_v17 }
 0x5a1   :  { %v8007_v60 = vpop.permute.xlu1 %3756 }
 0x5a2   :  { %9385 = vst [vmem:[#allocation94_spill] sm:$0xff] %v8007_v60 }
 0x5a5   :  { %v8009_v15 = vpop.permute.xlu1 %3763 }
 0x5a6   :  { %9386 = vst [vmem:[#allocation95_spill] sm:$0xff] %v8009_v15 }
 0x5d3   :  { %v2520_v29 = vpop.f32.mrb[6].mxu0 }
 0x5d4   :  { %vm2597_vm4 = vcmp.gt.f32.partialorder %v2520_v29, 0.0  ;;  %v2599_v44 = vmul.f32 0.01, %v2520_v29  ;;  %v4878_v30 = vpop.f32.mrb[7].mxu0 }
 0x5d6   :  { %v7998_v20 = vsel %vm2597_vm4, %v2520_v29, %v2599_v44  ;;  %v3702_v29 = vadd.f32 %v3701_v54, %v3700_v32 }
 0x5d7   :  { %4891 = vmatmul.mubr.msk.f32.vlgmr.msra.gmra.mrb[8].mxu0 %vm2134_vm11, %v7998_v20  ;;  %v3369_v55 = vmul.f32 %v4771_v49, %v7998_v20  ;;  %v3691_v56 = vmul.f32 %v4778_v47, %v7998_v20  ;;  %v3382_v47 = vadd.f32 %v3381_v41, %v3380_v6 }
 0x5d9   :  { %v3371_v59 = vsel %vm2845_vm10, %v3369_v55, 0.0  ;;  %v3693_v21 = vsel %vm2845_vm10, %v3691_v56, 0.0  ;;  %v3383_v55 = vrot.slane %v3382_v47, 1  ;;  %v3703_v56 = vrot.slane %v3702_v29, 2 }
 0x5da   :  { %v3372_v3 = vrot.slane %v3371_v59, 4  ;;  %v3694_v12 = vrot.slane %v3693_v21, 4 }
 0x5dc   :  { %v3373_v5 = vadd.f32 %v3372_v3, %v3371_v59  ;;  %v3695_v43 = vadd.f32 %v3694_v12, %v3693_v21  ;;  %v3384_v21 = vadd.f32 %v3383_v55, %v3382_v47  ;;  %v3704_v12 = vadd.f32 %v3703_v56, %v3702_v29 }
 0x5de   :  { %v3374_v28 = vrot.slane %v3373_v5, 2  ;;  %v3696_v52 = vrot.slane %v3695_v43, 2  ;;  %v3705_v32 = vrot.slane %v3704_v12, 1 }
 0x5e0   :  { %v3375_v49 = vadd.f32 %v3374_v28, %v3373_v5  ;;  %v3697_v8 = vadd.f32 %v3696_v52, %v3695_v43  ;;  %v3706_v41 = vadd.f32 %v3705_v32, %v3704_v12 }
 0x5e2   :  { %v3376_v44 = vrot.slane %v3375_v49, 1  ;;  %v3698_v3 = vrot.slane %v3697_v8, 1 }
 0x5e4   :  { %v2809_v30 = vpop.xlane.xlu1 %2808  ;;  %v3377_v62 = vadd.f32 %v3376_v44, %v3375_v49  ;;  %v3699_v6 = vadd.f32 %v3698_v3, %v3697_v8  ;;  %v8951_v44 = vlaneseq }
 0x5e5   :  { %v2811_v58 = vrot.slane %v2809_v30, 1  ;;  %v2814_v33 = vsub.f32 %v7933_v27, %v2809_v30 }
 0x5e6   :  { %3392 = vbcast.lane.b32.xlu0 %v3377_v62, 264  ;;  %v8023_v30 = vshrl.u32 %v8951_v44, 7 }
 0x5e7   :  { %v2815_v59 = vsub.f32 %v7930_v1, %v2811_v58  ;;  %v2816_v15 = vmul.f32 1.442695, %v2814_v33 }
 0x5e8   :  { %9387 = vst [vmem:[#allocation96_spill] sm:$0xff] %v8023_v30 }
 0x5e9   :  { %v2818_v5 = vmul.f32 1.442695, %v2815_v59 }
 0x5ea   :  { %3399 = vbcast.lane.b32.xlu0 %v3384_v21, 264 }
 0x5eb   :  { %5331 = vpow2.f32 %v2818_v5 }
 0x5ec   :  { %5333 = vpow2.f32 %v2816_v15  ;;  %v2997_v15 = vadd.f32 %v7955_v7, %v7851_v61 }
 0x5ee   :  { %3710 = vbcast.lane.b32.xlu0 %v3699_v6, 256 }
 0x5f2   :  { %3717 = vbcast.lane.b32.xlu0 %v3706_v41, 256 }
 0x5f5   :  { %v5332_v43 = vpop.eup %5331 }
 0x5f6   :  { %v2822_v54 = vrot.slane %v5332_v43, 7  ;;  %v5334_v28 = vpop.eup %5333 }
 0x5f8   :  { %v2823_v27 = vsel %vm2803_vm1, %v2822_v54, %v5334_v28 }
 0x5f9   :  { %v2825_v1 = vsel %vm2806_vm2, %v2823_v27, 0.0 }
 0x5fa   :  { %2826 = vadd.xlane.f32.xlu1 %v2825_v1 }
 0x60b   :  { %3388 = vbcast.lane.b32.xlu1 %v3377_v62, 256  ;;  %v8026_v62 = vsub.s32 0, %v8023_v30 }
 0x60f   :  { %3395 = vbcast.lane.b32.xlu1 %v3384_v21, 256 }
 0x613   :  { %3714 = vbcast.lane.b32.xlu1 %v3699_v6, 264 }
 0x617   :  { %3721 = vbcast.lane.b32.xlu1 %v3706_v41, 264  ;;  %v4773_v41 = vld [vmem:[%s9368_s30 + $0x50] sm:$0xf] }
 0x651   :  { %v2745_v33 = vpop.f32.mrb[8].mxu1 }
 0x652   :  { %vm2750_vm5 = vcmp.gt.f32.partialorder %v2745_v33, 0.0  ;;  %v2752_v58 = vmul.f32 0.01, %v2745_v33  ;;  %v4899_v49 = vpop.f32.mrb[9].mxu1 }
 0x654   :  { %v8017_v47 = vsel %vm2750_vm5, %v2745_v33, %v2752_v58  ;;  %v2996_v33 = vadd.f32 %v7998_v20, %v7872_v9 }
 0x655   :  { %v8020_v52 = vadd.f32 %v2997_v15, %v8017_v47  ;;  %v3454_v54 = vmul.f32 %v4773_v41, %v8017_v47 }
 0x687   :  { %v2827_v29 = vpop.xlane.xlu1 %2826 }
 0x688   :  { %5335 = vrcp.f32 %v2827_v29 }
 0x692   :  { %v5336_v55 = vpop.eup %5335 }
 0x693   :  { %v2833_v8 = vmul.f32 %v5336_v55, %v5334_v28  ;;  %v2830_v56 = vrot.slane %v5336_v55, 1  ;;  %v3885_v55 = vmul.f32 %v7810_v34, %v7746_v39 }
 0x695   :  { %v2838_v59 = vrot.slane %v2833_v8, %v8026_v62  ;;  %v2834_v21 = vmul.f32 %v5332_v43, %v2830_v56  ;;  %v3462_v43 = vsel %vm2845_vm10, %v3454_v54, 0.0 }
 0x696   :  { %v3463_v1 = vrot.slane %v3462_v43, 4 }
 0x697   :  { %v2843_v3 = vmul.f32 %v2838_v59, %v7903_v50  ;;  %v2842_v12 = vrot.slane %v2834_v21, %v8026_v62  ;;  %v4780_v50 = vld [vmem:[%s9368_s30 + $0x54] sm:$0xf]  ;;  %v4791_v59 = vld [vmem:[%s9368_s30 + $0xc] sm:$0xf] }
 0x698   :  { %v3776_v58 = vmul.f32 %v4780_v50, %v8017_v47  ;;  %v3464_v8 = vadd.f32 %v3463_v1, %v3462_v43  ;;  %v4204_v1 = vmul.f32 %v4791_v59, %v7746_v39 }
 0x699   :  { %v2846_v5 = vsel %vm2845_vm10, %v2843_v3, 0.0  ;;  %v2844_v6 = vmul.f32 %v2842_v12, %v7899_v57 }
 0x69a   :  { %2847 = vadd.xlane.f32.xlu0 %v2846_v5  ;;  %v3784_v3 = vsel %vm2845_vm10, %v3776_v58, 0.0  ;;  %v3465_v54 = vrot.slane %v3464_v8, 2 }
 0x69b   :  { %v2849_v32 = vsel %vm2845_vm10, %v2844_v6, 0.0  ;;  %v3785_v43 = vrot.slane %v3784_v3, 4 }
 0x69c   :  { %2850 = vadd.xlane.f32.xlu1 %v2849_v32  ;;  %v3893_v32 = vsel %vm2845_vm10, %v3885_v55, 0.0  ;;  %v3466_v58 = vadd.f32 %v3465_v54, %v3464_v8  ;;  %v4212_v55 = vsel %vm2845_vm10, %v4204_v1, 0.0  ;;  %v4792_v1 = vld [vmem:[%s9368_s30 + $0x3c] sm:$0xf] }
 0x69d   :  { %v3786_v44 = vadd.f32 %v3785_v43, %v3784_v3 }
 0x69f   :  { %v3787_v17 = vrot.slane %v3786_v44, 2 }
 0x6aa   :  { %v2672_v28 = vpop.f32.mrb[8].mxu0 }
 0x6ab   :  { %vm2749_vm6 = vcmp.gt.f32.partialorder %v2672_v28, 0.0  ;;  %v2751_v27 = vmul.f32 0.01, %v2672_v28  ;;  %v4892_v57 = vpop.f32.mrb[9].mxu0 }
 0x6ad   :  { %v8045_v49 = vsel %vm2749_vm6, %v2672_v28, %v2751_v27  ;;  %v3894_v27 = vrot.slane %v3893_v32, 4 }
 0x6ae   :  { %v8048_v15 = vadd.f32 %v2996_v33, %v8045_v49  ;;  %v3453_v29 = vmul.f32 %v4773_v41, %v8045_v49  ;;  %v3775_v56 = vmul.f32 %v4780_v50, %v8045_v49  ;;  %v4203_v41 = vmul.f32 %v4791_v59, %v7751_v45 }
 0x6af   :  { %v3895_v30 = vadd.f32 %v3894_v27, %v3893_v32  ;;  %v4213_v59 = vrot.slane %v4212_v55, 4 }
 0x6b0   :  { %v3455_v21 = vsel %vm2845_vm10, %v3453_v29, 0.0  ;;  %v3777_v5 = vsel %vm2845_vm10, %v3775_v56, 0.0  ;;  %v4205_v57 = vsel %vm2845_vm10, %v4203_v41, 0.0 }
 0x6b1   :  { %v3456_v12 = vrot.slane %v3455_v21, 4  ;;  %v3778_v6 = vrot.slane %v3777_v5, 4  ;;  %v4206_v24 = vrot.slane %v4205_v57, 4  ;;  %v3896_v39 = vrot.slane %v3895_v30, 2 }
 0x6b3   :  { %v3457_v34 = vadd.f32 %v3456_v12, %v3455_v21  ;;  %v3779_v50 = vadd.f32 %v3778_v6, %v3777_v5  ;;  %v3467_v21 = vrot.slane %v3466_v58, 1  ;;  %v4784_v5 = vld [vmem:[%s9368_s30 + $0x38] sm:$0xf]  ;;  %v4207_v8 = vadd.f32 %v4206_v24, %v4205_v57 }
 0x6b4   :  { %v3926_v6 = vmul.f32 %v4784_v5, %v7872_v9  ;;  %v3927_v3 = vmul.f32 %v4784_v5, %v7851_v61  ;;  %v3897_v43 = vadd.f32 %v3896_v39, %v3895_v30 }
 0x6b5   :  { %v3458_v28 = vrot.slane %v3457_v34, 2  ;;  %v3780_v29 = vrot.slane %v3779_v50, 2  ;;  %v3468_v32 = vadd.f32 %v3467_v21, %v3466_v58  ;;  %v4245_v58 = vmul.f32 %v4792_v1, %v7872_v9 }
 0x6b6   :  { %v3928_v54 = vsel %vm2845_vm10, %v3926_v6, 0.0  ;;  %v3935_v27 = vsel %vm2845_vm10, %v3927_v3, 0.0  ;;  %v4246_v21 = vmul.f32 %v4792_v1, %v7851_v61  ;;  %v8084_v3 = vmul.f32 0.33333334, %v8020_v52 }
 0x6b7   :  { %v3459_v33 = vadd.f32 %v3458_v28, %v3457_v34  ;;  %v3781_v12 = vadd.f32 %v3780_v29, %v3779_v50  ;;  %v3788_v34 = vadd.f32 %v3787_v17, %v3786_v44  ;;  %v4208_v50 = vrot.slane %v4207_v8, 2 }
 0x6b8   :  { %v4214_v28 = vadd.f32 %v4213_v59, %v4212_v55  ;;  %v3898_v17 = vrot.slane %v3897_v43, 1  ;;  %v4247_v55 = vsel %vm2845_vm10, %v4245_v58, 0.0 }
 0x6b9   :  { %v3460_v56 = vrot.slane %v3459_v33, 1  ;;  %v3782_v41 = vrot.slane %v3781_v12, 1  ;;  %v3789_v57 = vrot.slane %v3788_v34, 1  ;;  %v4209_v44 = vadd.f32 %v4208_v50, %v4207_v8  ;;  %v4785_v8 = vld [vmem:[%s9368_s30 + $0x18] sm:$0xf] }
 0x6ba   :  { %v4215_v29 = vrot.slane %v4214_v28, 2  ;;  %v8078_v5 = vadd.f32 %v3898_v17, %v3897_v43  ;;  %v4248_v59 = vrot.slane %v4247_v55, 4 }
 0x6bb   :  { %v3461_v45 = vadd.f32 %v3460_v56, %v3459_v33  ;;  %v3783_v24 = vadd.f32 %v3782_v41, %v3781_v12  ;;  %v3929_v33 = vrot.slane %v3928_v54, 4  ;;  %v3936_v56 = vrot.slane %v3935_v27, 4 }
 0x6bc   :  { %v3790_v30 = vadd.f32 %v3789_v57, %v3788_v34  ;;  %v4210_v12 = vrot.slane %v4209_v44, 1  ;;  %v4216_v6 = vadd.f32 %v4215_v29, %v4214_v28  ;;  %v4254_v41 = vsel %vm2845_vm10, %v4246_v21, 0.0 }
 0x6bd   :  { %3476 = vbcast.lane.b32.xlu0 %v3461_v45, 264  ;;  %3472 = vbcast.lane.b32.xlu1 %v3461_v45, 256  ;;  %v3930_v45 = vadd.f32 %v3929_v33, %v3928_v54  ;;  %v3937_v39 = vadd.f32 %v3936_v56, %v3935_v27  ;;  %v3968_v34 = vmul.f32 %v4785_v8, %v7838_v2  ;;  %v8089_v54 = vmul.f32 0.33333334, %v8048_v15  ;;  %v4793_v15 = vld [vmem:[%s9368_s30 + $0x1c] sm:$0xf] }
 0x6be   :  { %v8092_v43 = vadd.f32 %v4210_v12, %v4209_v44  ;;  %v4217_v50 = vrot.slane %v4216_v6, 1  ;;  %v3969_v28 = vmul.f32 %v4785_v8, %v7821_v40  ;;  %v4249_v1 = vadd.f32 %v4248_v59, %v4247_v55 }
 0x6bf   :  { %v3938_v27 = vrot.slane %v3937_v39, 2  ;;  %v3970_v57 = vsel %vm2845_vm10, %v3968_v34, 0.0  ;;  %v3005_v33 = vmul.f32 %v8084_v3, %v7901_v63  ;;  %v3004_v44 = vmul.f32 %v8089_v54, %v7901_v63 }
 0x6c0   :  { %v8102_v58 = vadd.f32 %v4217_v50, %v4216_v6  ;;  %v3977_v17 = vsel %vm2845_vm10, %v3969_v28, 0.0  ;;  %v4287_v29 = vmul.f32 %v4793_v15, %v7838_v2  ;;  %v3971_v55 = vrot.slane %v3970_v57, 4 }
 0x6c1   :  { %3483 = vbcast.lane.b32.xlu0 %v3468_v32, 264  ;;  %3479 = vbcast.lane.b32.xlu1 %v3468_v32, 256  ;;  %v3931_v32 = vrot.slane %v3930_v45, 2  ;;  %v3939_v56 = vadd.f32 %v3938_v27, %v3937_v39  ;;  %v3009_v12 = vrot.slane %v3005_v33, 1  ;;  %v3978_v59 = vrot.slane %v3977_v17, 4 }
 0x6c2   :  { %v4288_v8 = vmul.f32 %v4793_v15, %v7821_v40  ;;  %v3003_v6 = vmul.f32 %v8084_v3, %v7909_v46  ;;  %v3015_v63 = vmul.f32 %v8084_v3, %v7911_v0  ;;  %v4289_v2 = vsel %vm2845_vm10, %v4287_v29, 0.0 }
 0x6c3   :  { %v3932_v52 = vadd.f32 %v3931_v32, %v3930_v45  ;;  %v3008_v32 = vrot.slane %v3004_v44, 1  ;;  %v3940_v39 = vrot.slane %v3939_v56, 1  ;;  %v3972_v50 = vadd.f32 %v3971_v55, %v3970_v57 }
 0x6c4   :  { %v3002_v40 = vmul.f32 %v8089_v54, %v7909_v46  ;;  %v3013_v27 = vadd.f32 %v3009_v12, %v3003_v6  ;;  %v4296_v33 = vsel %vm2845_vm10, %v4288_v8, 0.0  ;;  %v3979_v15 = vadd.f32 %v3978_v59, %v3977_v17  ;;  %v4786_v17 = vld [vmem:[%s9368_s30 + $0x48] sm:$0xf] }
 0x6c5   :  { %3794 = vbcast.lane.b32.xlu0 %v3783_v24, 256  ;;  %3798 = vbcast.lane.b32.xlu1 %v3783_v24, 264  ;;  %v4255_v24 = vrot.slane %v4254_v41, 4  ;;  %v3933_v21 = vrot.slane %v3932_v52, 1  ;;  %v3019_v29 = vrot.slane %v3015_v63, 2  ;;  %v8125_v57 = vadd.f32 %v3940_v39, %v3939_v56 }
 0x6c6   :  { %v3012_v44 = vadd.f32 %v3008_v32, %v3002_v40  ;;  %v4290_v55 = vrot.slane %v4289_v2, 4  ;;  %v4010_v59 = vmul.f32 %v4786_v17, %v7998_v20  ;;  %v4297_v63 = vrot.slane %v4296_v33, 4 }
 0x6c7   :  { %v4256_v45 = vadd.f32 %v4255_v24, %v4254_v41  ;;  %v8115_v28 = vadd.f32 %v3933_v21, %v3932_v52  ;;  %v3014_v24 = vmul.f32 %v8089_v54, %v7911_v0  ;;  %v3023_v12 = vadd.f32 %v3019_v29, %v3013_v27 }
 0x6c8   :  { %v3024_v0 = vmul.f32 %v8089_v54, %v7917_v4  ;;  %v4291_v32 = vadd.f32 %v4290_v55, %v4289_v2 }
 0x6c9   :  { %3801 = vbcast.lane.b32.xlu0 %v3790_v30, 256  ;;  %3805 = vbcast.lane.b32.xlu1 %v3790_v30, 264  ;;  %v4250_v30 = vrot.slane %v4249_v1, 2  ;;  %v4257_v41 = vrot.slane %v4256_v45, 2  ;;  %v3018_v21 = vrot.slane %v3014_v24, 2  ;;  %v4011_v24 = vmul.f32 %v4786_v17, %v7955_v7 }
 0x6ca   :  { %v3028_v40 = vrot.slane %v3024_v0, 3  ;;  %v4292_v11 = vrot.slane %v4291_v32, 2 }
 0x6cb   :  { %v4251_v34 = vadd.f32 %v4250_v30, %v4249_v1  ;;  %v3025_v1 = vmul.f32 %v8084_v3, %v7917_v4  ;;  %v4258_v52 = vadd.f32 %v4257_v41, %v4256_v45  ;;  %v3973_v30 = vrot.slane %v3972_v50, 2 }
 0x6cc   :  { %v3022_v8 = vadd.f32 %v3018_v21, %v3012_v44  ;;  %v3980_v45 = vrot.slane %v3979_v15, 2  ;;  %v4012_v4 = vsel %vm2845_vm10, %v4010_v59, 0.0  ;;  %v4298_v44 = vadd.f32 %v4297_v63, %v4296_v33 }
 0x6cd   :  { %3914 = vbcast.lane.b32.xlu0 %v8078_v5, 264  ;;  %v4252_v46 = vrot.slane %v4251_v34, 1  ;;  %v3029_v56 = vrot.slane %v3025_v1, 3  ;;  %v3974_v6 = vadd.f32 %v3973_v30, %v3972_v50  ;;  %v4259_v41 = vrot.slane %v4258_v52, 1  ;;  %v4794_v30 = vld [vmem:[%s9368_s30 + $0x4c] sm:$0xf] }
 0x6ce   :  { %v3032_v29 = vadd.f32 %v3028_v40, %v3022_v8  ;;  %v3981_v35 = vadd.f32 %v3980_v45, %v3979_v15  ;;  %v4019_v55 = vsel %vm2845_vm10, %v4011_v24, 0.0  ;;  %v4299_v21 = vrot.slane %v4298_v44, 2 }
 0x6cf   :  { %v8134_v39 = vadd.f32 %v4252_v46, %v4251_v34  ;;  %v3033_v27 = vadd.f32 %v3029_v56, %v3023_v12  ;;  %v8139_v1 = vadd.f32 %v4259_v41, %v4258_v52  ;;  %v3975_v50 = vrot.slane %v3974_v6, 1 }
 0x6d0   :  { %v4013_v34 = vrot.slane %v4012_v4, 4  ;;  %v4329_v46 = vmul.f32 %v4794_v30, %v7998_v20  ;;  %v8151_v15 = vadd.f32 %v3032_v29, %v7927_v19  ;;  %v3982_v33 = vrot.slane %v3981_v35, 1 }
 0x6d1   :  { %4226 = vbcast.lane.b32.xlu0 %v8092_v43, 264  ;;  %v8142_v2 = vadd.f32 %v3033_v27, %v7927_v19  ;;  %v4293_v52 = vadd.f32 %v4292_v11, %v4291_v32  ;;  %v8153_v12 = vadd.f32 %v3975_v50, %v3974_v6  ;;  %v4020_v59 = vrot.slane %v4019_v55, 4  ;;  %v4787_v19 = vld [vmem:[%s9368_s30 + $0x28] sm:$0xf] }
 0x6d2   :  { %v4014_v17 = vadd.f32 %v4013_v34, %v4012_v4  ;;  %v4331_v8 = vsel %vm2845_vm10, %v4329_v46, 0.0  ;;  %v4330_v56 = vmul.f32 %v4794_v30, %v7955_v7  ;;  %v4300_v6 = vadd.f32 %v4299_v21, %v4298_v44 }
 0x6d3   :  { %v3038_v0 = vrot.slane %v8142_v2, 7  ;;  %v4294_v11 = vrot.slane %v4293_v52, 1  ;;  %v4052_v45 = vmul.f32 %v4787_v19, %v7872_v9  ;;  %v8165_v32 = vadd.f32 %v3982_v33, %v3981_v35 }
 0x6d4   :  { %v4015_v63 = vrot.slane %v4014_v17, 2  ;;  %v4021_v41 = vadd.f32 %v4020_v59, %v4019_v55  ;;  %v4332_v40 = vrot.slane %v4331_v8, 4  ;;  %v4338_v27 = vsel %vm2845_vm10, %v4330_v56, 0.0  ;;  %v4795_v55 = vld [vmem:[%s9368_s30 + $0x2c] sm:$0xf] }
 0x6d5   :  { %4233 = vbcast.lane.b32.xlu0 %v8102_v58, 264  ;;  %v3039_v20 = vsel %vm2803_vm1, %v3038_v0, %v8151_v15  ;;  %v8170_v4 = vadd.f32 %v4294_v11, %v4293_v52  ;;  %v4301_v24 = vrot.slane %v4300_v6, 1  ;;  %v4054_v29 = vsel %vm2845_vm10, %v4052_v45, 0.0 }
 0x6d6   :  { %v3041_v7 = vsel %vm2806_vm2, %v3039_v20, -inf  ;;  %v4053_v44 = vmul.f32 %v4787_v19, %v7851_v61  ;;  %v4016_v50 = vadd.f32 %v4015_v63, %v4014_v17  ;;  %v4022_v35 = vrot.slane %v4021_v41, 2 }
 0x6d7   :  { %v4333_v34 = vadd.f32 %v4332_v40, %v4331_v8  ;;  %v4339_v30 = vrot.slane %v4338_v27, 4  ;;  %v8178_v46 = vadd.f32 %v4301_v24, %v4300_v6  ;;  %v4055_v33 = vrot.slane %v4054_v29, 4 }
 0x6d8   :  { %v4061_v52 = vsel %vm2845_vm10, %v4053_v44, 0.0  ;;  %v4371_v21 = vmul.f32 %v4795_v55, %v7872_v9  ;;  %v4017_v0 = vrot.slane %v4016_v50, 1  ;;  %v4023_v59 = vadd.f32 %v4022_v35, %v4021_v41 }
 0x6d9   :  { %3949 = vbcast.lane.b32.xlu0 %v8115_v28, 264  ;;  %v4334_v56 = vrot.slane %v4333_v34, 2  ;;  %v4340_v17 = vadd.f32 %v4339_v30, %v4338_v27  ;;  %v4056_v8 = vadd.f32 %v4055_v33, %v4054_v29  ;;  %v4062_v20 = vrot.slane %v4061_v52, 4  ;;  %v4788_v27 = vld [vmem:[%s9368_s30 + $0x58] sm:$0xf] }
 0x6da   :  { %v4373_v19 = vsel %vm2845_vm10, %v4371_v21, 0.0  ;;  %v4372_v11 = vmul.f32 %v4795_v55, %v7851_v61  ;;  %v8185_v45 = vadd.f32 %v4017_v0, %v4016_v50  ;;  %v4024_v6 = vrot.slane %v4023_v59, 1 }
 0x6db   :  { %v4335_v63 = vadd.f32 %v4334_v56, %v4333_v34  ;;  %v4341_v40 = vrot.slane %v4340_v17, 2  ;;  %v4063_v9 = vadd.f32 %v4062_v20, %v4061_v52  ;;  %v4057_v61 = vrot.slane %v4056_v8, 2 }
 0x6dc   :  { %v4380_v41 = vsel %vm2845_vm10, %v4372_v11, 0.0  ;;  %v8192_v24 = vadd.f32 %v4024_v6, %v4023_v59  ;;  %v4094_v50 = vmul.f32 %v4788_v27, %v8045_v49  ;;  %v4095_v21 = vmul.f32 %v4788_v27, %v8017_v47 }
 0x6dd   :  { %3956 = vbcast.lane.b32.xlu0 %v8125_v57, 264  ;;  %v4336_v29 = vrot.slane %v4335_v63, 1  ;;  %v4342_v44 = vadd.f32 %v4341_v40, %v4340_v17  ;;  %v4381_v34 = vrot.slane %v4380_v41, 4  ;;  %v4058_v33 = vadd.f32 %v4057_v61, %v4056_v8 }
 0x6de   :  { %v4064_v52 = vrot.slane %v4063_v9, 2  ;;  %v4096_v0 = vsel %vm2845_vm10, %v4094_v50, 0.0  ;;  %v4103_v6 = vsel %vm2845_vm10, %v4095_v21, 0.0 }
 0x6df   :  { %v8197_v30 = vadd.f32 %v4336_v29, %v4335_v63  ;;  %v4343_v55 = vrot.slane %v4342_v44, 1  ;;  %v4382_v56 = vadd.f32 %v4381_v34, %v4380_v41  ;;  %v4059_v20 = vrot.slane %v4058_v33, 1 }
 0x6e0   :  { %v4097_v8 = vrot.slane %v4096_v0, 4  ;;  %v4104_v27 = vrot.slane %v4103_v6, 4 }
 0x6e1   :  { %4268 = vbcast.lane.b32.xlu0 %v8134_v39, 264  ;;  %v8206_v17 = vadd.f32 %v4343_v55, %v4342_v44  ;;  %v4383_v63 = vrot.slane %v4382_v56, 2  ;;  %v8212_v40 = vadd.f32 %v4059_v20, %v4058_v33 }
 0x6e2   :  { %v4098_v41 = vadd.f32 %v4097_v8, %v4096_v0  ;;  %v4105_v50 = vadd.f32 %v4104_v27, %v4103_v6 }
 0x6e3   :  { %v4384_v44 = vadd.f32 %v4383_v63, %v4382_v56 }
 0x6e5   :  { %4275 = vbcast.lane.b32.xlu0 %v8139_v1, 264  ;;  %v4385_v55 = vrot.slane %v4384_v44, 1 }
 0x6e9   :  { %3991 = vbcast.lane.b32.xlu0 %v8153_v12, 264 }
 0x6ed   :  { %3998 = vbcast.lane.b32.xlu0 %v8165_v32, 264  ;;  %3042 = vmax.xlane.f32.xlu1 %v3041_v7  ;;  %v4374_v7 = vrot.slane %v4373_v19, 4 }
 0x6ef   :  { %v4375_v35 = vadd.f32 %v4374_v7, %v4373_v19  ;;  %v4065_v19 = vadd.f32 %v4064_v52, %v4063_v9  ;;  %v4106_v52 = vrot.slane %v4105_v50, 2 }
 0x6f1   :  { %4310 = vbcast.lane.b32.xlu0 %v8170_v4, 264  ;;  %v4376_v59 = vrot.slane %v4375_v35, 2  ;;  %v4066_v7 = vrot.slane %v4065_v19, 1  ;;  %v4107_v56 = vadd.f32 %v4106_v52, %v4105_v50 }
 0x6f3   :  { %v8218_v61 = vadd.f32 %v4066_v7, %v4065_v19  ;;  %v4108_v8 = vrot.slane %v4107_v56, 1 }
 0x6f5   :  { %4317 = vbcast.lane.b32.xlu0 %v8178_v46, 264  ;;  %v4109_v6 = vadd.f32 %v4108_v8, %v4107_v56 }
 0x6f9   :  { %4033 = vbcast.lane.b32.xlu0 %v8185_v45, 264 }
 0x6fd   :  { %4040 = vbcast.lane.b32.xlu0 %v8192_v24, 264 }
 0x6fe   :  { %3910 = vbcast.lane.b32.xlu1 %v8078_v5, 256  ;;  %v4796_v5 = vld [vmem:[%s9368_s30 + $0x5c] sm:$0xf]  ;;  %s4735_s30 = sld [smem:[#allocation2 + $0xf0]] }
 0x6ff   :  { %v4413_v11 = vmul.f32 %v4796_v5, %v8045_v49  ;;  %v4414_v29 = vmul.f32 %v4796_v5, %v8017_v47 }
 0x701   :  { %4352 = vbcast.lane.b32.xlu0 %v8197_v30, 264  ;;  %v4415_v9 = vsel %vm2845_vm10, %v4413_v11, 0.0  ;;  %v4422_v34 = vsel %vm2845_vm10, %v4414_v29, 0.0 }
 0x702   :  { %4222 = vbcast.lane.b32.xlu1 %v8092_v43, 256  ;;  %v4377_v43 = vadd.f32 %v4376_v59, %v4375_v35  ;;  %v4416_v35 = vrot.slane %v4415_v9, 4  ;;  %v4423_v0 = vrot.slane %v4422_v34, 4 }
 0x704   :  { %v4378_v49 = vrot.slane %v4377_v43, 1  ;;  %v4417_v21 = vadd.f32 %v4416_v35, %v4415_v9  ;;  %v4424_v20 = vadd.f32 %v4423_v0, %v4422_v34 }
 0x705   :  { %4359 = vbcast.lane.b32.xlu0 %v8206_v17, 264 }
 0x706   :  { %4229 = vbcast.lane.b32.xlu1 %v8102_v58, 256  ;;  %v4099_v58 = vrot.slane %v4098_v41, 2  ;;  %v4379_v47 = vadd.f32 %v4378_v49, %v4377_v43  ;;  %v4418_v5 = vrot.slane %v4417_v21, 2  ;;  %v4425_v11 = vrot.slane %v4424_v20, 2 }
 0x708   :  { %v4100_v33 = vadd.f32 %v4099_v58, %v4098_v41  ;;  %v4426_v63 = vadd.f32 %v4425_v11, %v4424_v20 }
 0x709   :  { %4075 = vbcast.lane.b32.xlu0 %v8212_v40, 264 }
 0x70a   :  { %3945 = vbcast.lane.b32.xlu1 %v8115_v28, 256  ;;  %v4386_v28 = vadd.f32 %v4385_v55, %v4384_v44  ;;  %v4101_v59 = vrot.slane %v4100_v33, 1  ;;  %v4427_v7 = vrot.slane %v4426_v63, 1 }
 0x70c   :  { %v4102_v19 = vadd.f32 %v4101_v59, %v4100_v33 }
 0x70d   :  { %4082 = vbcast.lane.b32.xlu0 %v8218_v61, 264 }
 0x70e   :  { %3952 = vbcast.lane.b32.xlu1 %v8125_v57, 256  ;;  %v4419_v57 = vadd.f32 %v4418_v5, %v4417_v21 }
 0x710   :  { %v4420_v43 = vrot.slane %v4419_v57, 1 }
 0x711   :  { %4394 = vbcast.lane.b32.xlu0 %v4379_v47, 264 }
 0x712   :  { %4264 = vbcast.lane.b32.xlu1 %v8134_v39, 256  ;;  %v8227_v39 = vadd.f32 %v4420_v43, %v4419_v57 }
 0x715   :  { %4401 = vbcast.lane.b32.xlu0 %v4386_v28, 264 }
 0x716   :  { %4271 = vbcast.lane.b32.xlu1 %v8139_v1, 256  ;;  %v8231_v1 = vadd.f32 %v4427_v7, %v4426_v63 }
 0x719   :  { %4117 = vbcast.lane.b32.xlu0 %v4102_v19, 264 }
 0x71a   :  { %3987 = vbcast.lane.b32.xlu1 %v8153_v12, 256  ;;  %v8235_v12 = vpop.permute.xlu1 %3388 }
 0x71b   :  { %9388 = vst [vmem:[#allocation97_spill] sm:$0xff] %v8235_v12 }
 0x71d   :  { %4124 = vbcast.lane.b32.xlu0 %v4109_v6, 264 }
 0x71e   :  { %3994 = vbcast.lane.b32.xlu1 %v8165_v32, 256  ;;  %v8237_v41 = vpop.permute.xlu1 %3395 }
 0x71f   :  { %9389 = vst [vmem:[#allocation98_spill] sm:$0xff] %v8237_v41 }
 0x721   :  { %4436 = vbcast.lane.b32.xlu0 %v8227_v39, 264 }
 0x722   :  { %4306 = vbcast.lane.b32.xlu1 %v8170_v4, 256  ;;  %v8239_v27 = vpop.permute.xlu1 %3714 }
 0x723   :  { %9390 = vst [vmem:[#allocation99_spill] sm:$0xff] %v8239_v27 }
 0x725   :  { %4443 = vbcast.lane.b32.xlu0 %v8231_v1, 264 }
 0x726   :  { %4313 = vbcast.lane.b32.xlu1 %v8178_v46, 256  ;;  %v8241_v32 = vpop.permute.xlu1 %3721 }
 0x727   :  { %9391 = vst [vmem:[#allocation100_spill] sm:$0xff] %v8241_v32 }
 0x72a   :  { %v8243_v29 = vpop.xlane.xlu1 %2850 }
 0x72f   :  { %v8245_v9 = vpop.permute.xlu1 %3472 }
 0x730   :  { %9392 = vst [vmem:[#allocation101_spill] sm:$0xff] %v8245_v9  ;;  %v8429_v9 = vstv %s4742_s6 }
 0x733   :  { %v8247_v49 = vpop.permute.xlu1 %3479 }
 0x734   :  { %9393 = vst [vmem:[#allocation102_spill] sm:$0xff] %v8247_v49 }
 0x737   :  { %v8249_v4 = vpop.permute.xlu1 %3798 }
 0x738   :  { %9394 = vst [vmem:[#allocation103_spill] sm:$0xff] %v8249_v4 }
 0x73b   :  { %v8251_v44 = vpop.permute.xlu1 %3805 }
 0x73c   :  { %9395 = vst [vmem:[#allocation104_spill] sm:$0xff] %v8251_v44 }
 0x77a   :  { %v3043_v58 = vpop.xlane.xlu1 %3042 }
 0x77b   :  { %v3045_v46 = vrot.slane %v3043_v58, 1  ;;  %v3048_v50 = vsub.f32 %v8151_v15, %v3043_v58 }
 0x77d   :  { %v3049_v35 = vsub.f32 %v8142_v2, %v3045_v46  ;;  %v3050_v34 = vmul.f32 1.442695, %v3048_v50  ;;  %v8263_v2 = vpop.permute.xlu0 %3273 }
 0x77e   :  { %9396 = vst [vmem:[#allocation105_spill] sm:$0xff] %v8263_v2  ;;  %v8267_v56 = vpop.permute.xlu1 %3910  ;;  %v8391_v2 = vstv %s4734_s23 }
 0x77f   :  { %v3052_v55 = vmul.f32 1.442695, %v3049_v35  ;;  %9397 = vst [vmem:[#allocation106_spill] sm:$0xff] %v8267_v56 }
 0x781   :  { %5337 = vpow2.f32 %v3052_v55  ;;  %v8265_v15 = vpop.permute.xlu0 %3551 }
 0x782   :  { %5339 = vpow2.f32 %v3050_v34 }
 0x78b   :  { %v5338_v33 = vpop.eup %5337 }
 0x78c   :  { %v3056_v52 = vrot.slane %v5338_v33, 7  ;;  %v5340_v21 = vpop.eup %5339 }
 0x78e   :  { %v3057_v0 = vsel %vm2803_vm1, %v3056_v52, %v5340_v21 }
 0x78f   :  { %v3059_v59 = vsel %vm2806_vm2, %v3057_v0, 0.0 }
 0x790   :  { %3060 = vadd.xlane.f32.xlu1 %v3059_v59 }
 0x7a1   :  { %4029 = vbcast.lane.b32.xlu1 %v8185_v45, 256  ;;  %v8269_v45 = vpop.permute.xlu0 %3584 }
 0x7a5   :  { %4036 = vbcast.lane.b32.xlu1 %v8192_v24, 256  ;;  %v8271_v24 = vpop.permute.xlu1 %4222 }
 0x7a9   :  { %4348 = vbcast.lane.b32.xlu1 %v8197_v30, 256  ;;  %v8273_v30 = vpop.permute.xlu0 %3591 }
 0x7aa   :  { %9398 = vst [vmem:[#allocation107_spill] sm:$0xff] %v8273_v30  ;;  %v8405_v30 = vstv %s4736_s0 }
 0x7ab   :  { %9445 = vst [vmem:[#allocation154_spill] sm:$0xff] %v8405_v30 }
 0x7ad   :  { %4355 = vbcast.lane.b32.xlu1 %v8206_v17, 256  ;;  %v8275_v17 = vpop.permute.xlu1 %4229 }
 0x7ae   :  { %9399 = vst [vmem:[#allocation108_spill] sm:$0xff] %v8275_v17  ;;  %v8401_v17 = vstv %s4743_s2 }
 0x7b1   :  { %4071 = vbcast.lane.b32.xlu1 %v8212_v40, 256  ;;  %v8277_v40 = vpop.permute.xlu0 %3874 }
 0x7b2   :  { %9400 = vst [vmem:[#allocation109_spill] sm:$0xff] %v8277_v40 }
 0x7b5   :  { %4078 = vbcast.lane.b32.xlu1 %v8218_v61, 256  ;;  %v8279_v61 = vpop.permute.xlu1 %3945 }
 0x7b6   :  { %9401 = vst [vmem:[#allocation110_spill] sm:$0xff] %v8279_v61  ;;  %v8423_v61 = vstv %s4738_s17 }
 0x7b9   :  { %4390 = vbcast.lane.b32.xlu1 %v4379_v47, 256  ;;  %v8281_v47 = vpop.permute.xlu0 %4193 }
 0x7bd   :  { %4397 = vbcast.lane.b32.xlu1 %v4386_v28, 256  ;;  %v8283_v28 = vpop.permute.xlu1 %3952  ;;  %v8285_v5 = vpop.permute.xlu0 %3907 }
 0x7be   :  { %9402 = vst [vmem:[#allocation111_spill] sm:$0xff] %v8283_v28  ;;  %9403 = vst [vmem:[#allocation112_spill] sm:$0xff] %v8285_v5 }
 0x7c1   :  { %4113 = vbcast.lane.b32.xlu1 %v4102_v19, 256  ;;  %v8287_v20 = vpop.permute.xlu1 %4264  ;;  %v8289_v19 = vpop.permute.xlu0 %3350 }
 0x7c2   :  { %9404 = vst [vmem:[#allocation113_spill] sm:$0xff] %v8289_v19 }
 0x7c5   :  { %4120 = vbcast.lane.b32.xlu1 %v4109_v6, 256  ;;  %v8291_v8 = vpop.permute.xlu1 %4271  ;;  %v8293_v57 = vpop.permute.xlu0 %3357 }
 0x7c6   :  { %9405 = vst [vmem:[#allocation114_spill] sm:$0xff] %v8291_v8  ;;  %9406 = vst [vmem:[#allocation115_spill] sm:$0xff] %v8293_v57  ;;  %v8387_v8 = vstv %s4733_s29 }
 0x7c9   :  { %v8295_v11 = vpop.permute.xlu1 %3987  ;;  %v8297_v6 = vpop.permute.xlu0 %3668 }
 0x7ca   :  { %9407 = vst [vmem:[#allocation116_spill] sm:$0xff] %v8295_v11  ;;  %9408 = vst [vmem:[#allocation117_spill] sm:$0xff] %v8297_v6 }
 0x7cd   :  { %v8299_v43 = vpop.permute.xlu1 %3994  ;;  %v8301_v63 = vpop.permute.xlu0 %3675 }
 0x7ce   :  { %9409 = vst [vmem:[#allocation118_spill] sm:$0xff] %v8299_v43  ;;  %9410 = vst [vmem:[#allocation119_spill] sm:$0xff] %v8301_v63 }
 0x7d1   :  { %v8303_v7 = vpop.permute.xlu0 %3434  ;;  %v8305_v58 = vpop.permute.xlu1 %4306 }
 0x7d2   :  { %9411 = vst [vmem:[#allocation120_spill] sm:$0xff] %v8303_v7 }
 0x7d5   :  { %v8307_v46 = vpop.permute.xlu0 %3441  ;;  %v8309_v50 = vpop.permute.xlu1 %4313 }
 0x7d6   :  { %9412 = vst [vmem:[#allocation121_spill] sm:$0xff] %v8307_v46  ;;  %9413 = vst [vmem:[#allocation122_spill] sm:$0xff] %v8309_v50 }
 0x7d9   :  { %v8311_v34 = vpop.permute.xlu0 %3626 }
 0x7da   :  { %9414 = vst [vmem:[#allocation123_spill] sm:$0xff] %v8311_v34 }
 0x7dd   :  { %v8313_v55 = vpop.permute.xlu0 %3633 }
 0x7de   :  { %9415 = vst [vmem:[#allocation124_spill] sm:$0xff] %v8313_v55  ;;  %v8403_v55 = vstv %s4728_s27 }
 0x7df   :  { %9444 = vst [vmem:[#allocation153_spill] sm:$0xff] %v8403_v55 }
 0x7e1   :  { %v8315_v44 = vpop.permute.xlu0 %3752 }
 0x7e2   :  { %9416 = vst [vmem:[#allocation125_spill] sm:$0xff] %v8315_v44 }
 0x7e5   :  { %v8322_v28 = vpop.permute.xlu0 %3759 }
 0x7e6   :  { %9417 = vst [vmem:[#allocation126_spill] sm:$0xff] %v8322_v28 }
 0x81d   :  { %v3061_v35 = vpop.xlane.xlu1 %3060 }
 0x81e   :  { %5341 = vrcp.f32 %v3061_v35 }
 0x828   :  { %v5342_v52 = vpop.eup %5341 }
 0x829   :  { %v3067_v0 = vmul.f32 %v5342_v52, %v5340_v21  ;;  %v3064_v59 = vrot.slane %v5342_v52, 1  ;;  %v8325_v21 = vpop.permute.xlu0 %3392 }
 0x82a   :  { %9418 = vst [vmem:[#allocation127_spill] sm:$0xff] %v8325_v21 }
 0x82b   :  { %v3072_v32 = vrot.slane %v3067_v0, %v8026_v62  ;;  %v3068_v49 = vmul.f32 %v5338_v33, %v3064_v59  ;;  %v5369_v33 = vmov 0  }
 0x82c   :  { %4945 = vset.pattern.permute.xlu1 %v5369_v33  ;;  %4946 = vset.pattern.permute.xlu0 %v5369_v33 }
 0x82d   :  { %v3077_v43 = vmul.f32 %v3072_v32, %v8089_v54  ;;  %v3076_v46 = vrot.slane %v3068_v49, %v8026_v62  ;;  %v8327_v52 = vpop.permute.xlu0 %3399 }
 0x82e   :  { %9419 = vst [vmem:[#allocation128_spill] sm:$0xff] %v8327_v52 }
 0x82f   :  { %v3079_v41 = vsel %vm2845_vm10, %v3077_v43, 0.0  ;;  %v3078_v35 = vmul.f32 %v3076_v46, %v8084_v3 }
 0x830   :  { %3080 = vadd.xlane.f32.xlu1 %v3079_v41 }
 0x831   :  { %v3082_v50 = vsel %vm2845_vm10, %v3078_v35, 0.0  ;;  %v8329_v0 = vpop.permute.xlu0 %3710  ;;  %v8355_v35 = vpop.permute.xlu1 %4029 }
 0x832   :  { %9420 = vst [vmem:[#allocation129_spill] sm:$0xff] %v8329_v0  ;;  %9430 = vst [vmem:[#allocation139_spill] sm:$0xff] %v8355_v35  ;;  %v8411_v35 = vstv %s4740_s10 }
 0x833   :  { %9447 = vst [vmem:[#allocation156_spill] sm:$0xff] %v8411_v35 }
 0x834   :  { %3083 = vadd.xlane.f32.xlu1 %v3082_v50 }
 0x835   :  { %v8332_v54 = vpop.permute.xlu0 %3717  ;;  %v8359_v52 = vpop.permute.xlu1 %4036 }
 0x836   :  { %9421 = vst [vmem:[#allocation130_spill] sm:$0xff] %v8332_v54  ;;  %9431 = vst [vmem:[#allocation140_spill] sm:$0xff] %v8359_v52  ;;  %v8381_v52 = vstv %s4735_s30  ;;  %v8395_v54 = vstv %s4739_s24 }
 0x837   :  { %v2965_v38 = vmul.f32 %v8381_v52, %v8243_v29  ;;  %v2976_v27 = vmul.f32 %v8395_v54, %v8243_v29 }
 0x839   :  { %v8335_v32 = vpop.xlane.xlu0 %2847  ;;  %v8363_v33 = vpop.permute.xlu1 %4348  ;;  %v2969_v60 = vrot.slane %v2965_v38, 1  ;;  %v2980_v34 = vrot.slane %v2976_v27, 2 }
 0x83a   :  { %9433 = vst [vmem:[#allocation142_spill] sm:$0xff] %v8363_v33  ;;  %v2928_v11 = vmul.f32 %v8391_v2, %v8335_v32  ;;  %v2975_v5 = vmul.f32 %v8395_v54, %v8335_v32  ;;  %v2853_v26 = vmul.f32 %v8403_v55, %v8335_v32  ;;  %v2867_v38 = vmul.f32 %v8405_v30, %v8335_v32 }
 0x83b   :  { %v2878_v21 = vmul.f32 %v8411_v35, %v8335_v32 }
 0x83d   :  { %v8337_v3 = vpop.permute.xlu0 %3476 }
 0x83e   :  { %9422 = vst [vmem:[#allocation131_spill] sm:$0xff] %v8337_v3 }
 0x841   :  { %v8339_v41 = vpop.permute.xlu0 %3483 }
 0x842   :  { %9423 = vst [vmem:[#allocation132_spill] sm:$0xff] %v8339_v41 }
 0x845   :  { %4432 = vbcast.lane.b32.xlu1 %v8227_v39, 256  ;;  %v8341_v49 = vpop.permute.xlu0 %3794 }
 0x846   :  { %9424 = vst [vmem:[#allocation133_spill] sm:$0xff] %v8341_v49  ;;  %v8413_v49 = vstv %s4729_s18 }
 0x847   :  { %v2889_v53 = vmul.f32 %v8413_v49, %v8335_v32  ;;  %v2890_v27 = vmul.f32 %v8413_v49, %v8243_v29 }
 0x849   :  { %4439 = vbcast.lane.b32.xlu1 %v8231_v1, 256  ;;  %v8343_v43 = vpop.permute.xlu0 %3801 }
 0x84a   :  { %9425 = vst [vmem:[#allocation134_spill] sm:$0xff] %v8343_v43 }
 0x84d   :  { %v8345_v46 = vpop.permute.xlu0 %3914 }
 0x84e   :  { %9426 = vst [vmem:[#allocation135_spill] sm:$0xff] %v8345_v46  ;;  %v8367_v46 = vpop.permute.xlu1 %4355 }
 0x84f   :  { %9435 = vst [vmem:[#allocation144_spill] sm:$0xff] %v8367_v46 }
 0x851   :  { %v8347_v39 = vpop.permute.xlu0 %4226 }
 0x855   :  { %v8349_v50 = vpop.permute.xlu0 %4233 }
 0x856   :  { %9427 = vst [vmem:[#allocation136_spill] sm:$0xff] %v8349_v50  ;;  %v8371_v50 = vpop.permute.xlu1 %4071 }
 0x857   :  { %9437 = vst [vmem:[#allocation146_spill] sm:$0xff] %v8371_v50  ;;  %v2892_v50 = vmul.f32 %v8387_v8, %v8335_v32 }
 0x859   :  { %v8351_v1 = vpop.permute.xlu0 %3949  ;;  %v2896_v0 = vrot.slane %v2892_v50, 1  ;;  %v2893_v50 = vmul.f32 %v8387_v8, %v8243_v29 }
 0x85a   :  { %9428 = vst [vmem:[#allocation137_spill] sm:$0xff] %v8351_v1  ;;  %v8421_v1 = vstv %s4730_s19 }
 0x85b   :  { %v2925_v18 = vmul.f32 %v8421_v1, %v8335_v32  ;;  %v2900_v12 = vadd.f32 %v2896_v0, %v2889_v53  ;;  %v2897_v19 = vrot.slane %v2893_v50, 1  ;;  %v2950_v53 = vmul.f32 %v8429_v9, %v8335_v32 }
 0x85d   :  { %v8353_v59 = vpop.permute.xlu0 %3956 }
 0x85e   :  { %9429 = vst [vmem:[#allocation138_spill] sm:$0xff] %v8353_v59  ;;  %v8375_v59 = vpop.permute.xlu1 %4078 }
 0x85f   :  { %9439 = vst [vmem:[#allocation148_spill] sm:$0xff] %v8375_v59  ;;  %v8383_v59 = vstv %s4732_s9 }
 0x860   :  { %9442 = vst [vmem:[#allocation151_spill] sm:$0xff] %v8383_v59  ;;  %v2856_v63 = vmul.f32 %v8383_v59, %v8335_v32 }
 0x861   :  { %v8357_v41 = vpop.permute.xlu0 %4268 }
 0x862   :  { %v2860_v3 = vrot.slane %v2856_v63, 1  ;;  %v2932_v63 = vrot.slane %v2928_v11, 1  ;;  %v2939_v11 = vmul.f32 %v8423_v61, %v8335_v32 }
 0x864   :  { %v2864_v6 = vadd.f32 %v2860_v3, %v2853_v26  ;;  %v2936_v26 = vadd.f32 %v2932_v63, %v2925_v18  ;;  %v2943_v48 = vrot.slane %v2939_v11, 2  ;;  %v2857_v18 = vmul.f32 %v8383_v59, %v8243_v29 }
 0x865   :  { %v8361_v57 = vpop.permute.xlu0 %4275  ;;  %v2882_v63 = vrot.slane %v2878_v21, 3 }
 0x866   :  { %9432 = vst [vmem:[#allocation141_spill] sm:$0xff] %v8361_v57  ;;  %v2861_v21 = vrot.slane %v2857_v18, 1  ;;  %v8504_v18 = vmul.f32 %v8391_v2, %v8243_v29 }
 0x869   :  { %v8365_v43 = vpop.permute.xlu0 %3991 }
 0x86a   :  { %9434 = vst [vmem:[#allocation143_spill] sm:$0xff] %v8365_v43  ;;  %v8415_v43 = vstv %s4737_s13 }
 0x86d   :  { %v8369_v56 = vpop.permute.xlu0 %3998 }
 0x86e   :  { %9436 = vst [vmem:[#allocation145_spill] sm:$0xff] %v8369_v56  ;;  %v8379_v56 = vpop.permute.xlu1 %4390 }
 0x86f   :  { %9441 = vst [vmem:[#allocation150_spill] sm:$0xff] %v8379_v56  ;;  %v8419_v56 = vstv %s4741_s14 }
 0x870   :  { %v2914_v31 = vmul.f32 %v8419_v56, %v8335_v32 }
 0x871   :  { %v8373_v28 = vpop.permute.xlu0 %4310 }
 0x872   :  { %9438 = vst [vmem:[#allocation147_spill] sm:$0xff] %v8373_v28  ;;  %v2903_v28 = vmul.f32 %v8415_v43, %v8335_v32 }
 0x874   :  { %v2907_v3 = vrot.slane %v2903_v28, 2 }
 0x875   :  { %v8377_v57 = vpop.permute.xlu0 %4317 }
 0x876   :  { %9440 = vst [vmem:[#allocation149_spill] sm:$0xff] %v8377_v57  ;;  %v2964_v57 = vmul.f32 %v8381_v52, %v8335_v32  ;;  %v2911_v0 = vadd.f32 %v2907_v3, %v2900_v12  ;;  %v8477_v12 = vmul.f32 %v8405_v30, %v8243_v29  ;;  %v2954_v3 = vrot.slane %v2950_v53, 3 }
 0x878   :  { %v2968_v4 = vrot.slane %v2964_v57, 1  ;;  %v2986_v57 = vmul.f32 %v8401_v17, %v8335_v32  ;;  %9452 = vst [vmem:[#allocation161_spill] sm:$0xff] %v8477_v12 }
 0x879   :  { %v8385_v46 = vpop.permute.xlu0 %4033 }
 0x87a   :  { %9443 = vst [vmem:[#allocation152_spill] sm:$0xff] %v8385_v46  ;;  %v8409_v46 = vpop.permute.xlu1 %4397 }
 0x87b   :  { %9446 = vst [vmem:[#allocation155_spill] sm:$0xff] %v8409_v46  ;;  %v2961_v46 = vmul.f32 %v8393_v23, %v8335_v32  ;;  %v2901_v32 = vadd.f32 %v2897_v19, %v2890_v27  ;;  %v8491_v27 = vmul.f32 %v8411_v35, %v8243_v29 }
 0x87d   :  { %v8425_v44 = vpop.permute.xlu0 %4040  ;;  %v2972_v7 = vadd.f32 %v2968_v4, %v2961_v46  ;;  %v2979_v4 = vrot.slane %v2975_v5, 2  ;;  %v2990_v46 = vrot.slane %v2986_v57, 3  ;;  %9455 = vst [vmem:[#allocation164_spill] sm:$0xff] %v8491_v27 }
 0x87e   :  { %9448 = vst [vmem:[#allocation157_spill] sm:$0xff] %v8425_v44  ;;  %v2962_v44 = vmul.f32 %v8393_v23, %v8243_v29  ;;  %v8449_v40 = vpop.permute.xlu1 %4113 }
 0x87f   :  { %9449 = vst [vmem:[#allocation158_spill] sm:$0xff] %v8449_v40  ;;  %v2987_v40 = vmul.f32 %v8401_v17, %v8243_v29 }
 0x880   :  { %v2973_v14 = vadd.f32 %v2969_v60, %v2962_v44  ;;  %v2871_v60 = vrot.slane %v2867_v38, 2  ;;  %v2983_v44 = vadd.f32 %v2979_v4, %v2972_v7  ;;  %v2904_v38 = vmul.f32 %v8415_v43, %v8243_v29 }
 0x881   :  { %v8457_v33 = vpop.permute.xlu0 %4352  ;;  %v2991_v7 = vrot.slane %v2987_v40, 3 }
 0x882   :  { %9450 = vst [vmem:[#allocation159_spill] sm:$0xff] %v8457_v33  ;;  %v2984_v5 = vadd.f32 %v2980_v34, %v2973_v14  ;;  %v2875_v57 = vadd.f32 %v2871_v60, %v2864_v6  ;;  %v8471_v28 = vpop.permute.xlu1 %4120  ;;  %v2947_v14 = vadd.f32 %v2943_v48, %v2936_v26  ;;  %v2915_v6 = vmul.f32 %v8419_v56, %v8243_v29 }
 0x883   :  { %9451 = vst [vmem:[#allocation160_spill] sm:$0xff] %v8471_v28  ;;  %v2918_v34 = vrot.slane %v2914_v31, 3  ;;  %v2994_v11 = vadd.f32 %v2990_v46, %v2983_v44  ;;  %v2908_v40 = vrot.slane %v2904_v38, 2  ;;  %v2854_v48 = vmul.f32 %v8403_v55, %v8243_v29 }
 0x884   :  { %v8481_v4 = vadd.f32 %v2991_v7, %v2984_v5  ;;  %v2886_v60 = vadd.f32 %v2882_v63, %v2875_v57  ;;  %v8487_v19 = vadd.f32 %v2954_v3, %v2947_v14  ;;  %v2919_v26 = vrot.slane %v2915_v6, 3 }
 0x885   :  { %v8479_v50 = vpop.permute.xlu0 %4359  ;;  %v8483_v28 = vadd.f32 %v2918_v34, %v2911_v0  ;;  %v8495_v46 = vmul.f32 %v8421_v1, %v8243_v29  ;;  %v2912_v57 = vadd.f32 %v2908_v40, %v2901_v32  ;;  %v8508_v7 = vmul.f32 %v8423_v61, %v8243_v29 }
 0x886   :  { %9453 = vst [vmem:[#allocation162_spill] sm:$0xff] %v8479_v50  ;;  %9454 = vst [vmem:[#allocation163_spill] sm:$0xff] %v8481_v4  ;;  %v8512_v34 = vadd.f32 %v2861_v21, %v2854_v48 }
 0x887   :  { %9456 = vst [vmem:[#allocation165_spill] sm:$0xff] %v8495_v46  ;;  %9457 = vst [vmem:[#allocation166_spill] sm:$0xff] %v8508_v7 }
 0x888   :  { %9458 = vst [vmem:[#allocation167_spill] sm:$0xff] %v8512_v34 }
 0x889   :  { %v8514_v32 = vpop.permute.xlu0 %4075 }
 0x88a   :  { %9459 = vst [vmem:[#allocation168_spill] sm:$0xff] %v8514_v32 }
 0x8bd   :  { %v3081_v31 = vpop.xlane.xlu1 %3080 }
 0x8be   :  { %v3183_v44 = vmul.f32 %v3081_v31, %v8381_v52  ;;  %v3193_v5 = vmul.f32 %v3081_v31, %v8395_v54  ;;  %v3087_v0 = vmul.f32 %v3081_v31, %v8383_v59  ;;  %v3097_v38 = vmul.f32 %v3081_v31, %v8405_v30 }
 0x8bf   :  { %v3181_v63 = vmul.f32 %v3081_v31, %v8393_v23  ;;  %v3203_v6 = vmul.f32 %v3081_v31, %v8401_v17  ;;  %v3085_v40 = vmul.f32 %v3081_v31, %v8403_v55  ;;  %v3107_v50 = vmul.f32 %v3081_v31, %v8411_v35 }
 0x8c0   :  { %v3187_v14 = vrot.slane %v3183_v44, 1  ;;  %v3091_v53 = vrot.slane %v3087_v0, 1  ;;  %v3119_v27 = vmul.f32 %v3081_v31, %v8387_v8  ;;  %v3197_v59 = vrot.slane %v3193_v5, 2 }
 0x8c1   :  { %v8516_v3 = vpop.xlane.xlu1 %3083  ;;  %v3117_v46 = vmul.f32 %v3081_v31, %v8413_v49  ;;  %v3101_v21 = vrot.slane %v3097_v38, 2  ;;  %v3129_v32 = vmul.f32 %v3081_v31, %v8415_v43  ;;  %v3207_v33 = vrot.slane %v3203_v6, 3 }
 0x8c2   :  { %v3191_v30 = vadd.f32 %v3187_v14, %v3181_v63  ;;  %v3184_v44 = vmul.f32 %v8516_v3, %v8381_v52  ;;  %v3095_v48 = vadd.f32 %v3091_v53, %v3085_v40  ;;  %v3123_v12 = vrot.slane %v3119_v27, 1  ;;  %v8532_v27 = vpop.permute.xlu0 %4082 }
 0x8c3   :  { %v3139_v0 = vmul.f32 %v3081_v31, %v8419_v56  ;;  %v8528_v35 = vmul.f32 %v8429_v9, %v8243_v29  ;;  %v3111_v5 = vrot.slane %v3107_v50, 3  ;;  %v3133_v55 = vrot.slane %v3129_v32, 2 }
 0x8c4   :  { %v3201_v34 = vadd.f32 %v3197_v59, %v3191_v30  ;;  %v3105_v63 = vadd.f32 %v3101_v21, %v3095_v48  ;;  %v3127_v14 = vadd.f32 %v3123_v12, %v3117_v46  ;;  %v3188_v7 = vrot.slane %v3184_v44, 1 }
 0x8c5   :  { %v3143_v4 = vrot.slane %v3139_v0, 3  ;;  %v8530_v53 = vadd.f32 %v2919_v26, %v2912_v57  ;;  %v3151_v59 = vmul.f32 %v3081_v31, %v8391_v2  ;;  %v3161_v6 = vmul.f32 %v3081_v31, %v8423_v61 }
 0x8c6   :  { %v3211_v52 = vadd.f32 %v3207_v33, %v3201_v34  ;;  %v3115_v38 = vadd.f32 %v3111_v5, %v3105_v63  ;;  %v3137_v30 = vadd.f32 %v3133_v55, %v3127_v14  ;;  %v3182_v29 = vmul.f32 %v8516_v3, %v8393_v23  ;;  %v8550_v0 = vpop.permute.xlu0 %4394 }
 0x8c7   :  { %v3194_v12 = vmul.f32 %v8516_v3, %v8395_v54  ;;  %v3204_v33 = vmul.f32 %v8516_v3, %v8401_v17  ;;  %v3149_v46 = vmul.f32 %v3081_v31, %v8421_v1  ;;  %v3155_v57 = vrot.slane %v3151_v59, 1 }
 0x8c8   :  { %v4172_v40 = vadd.f32 %v3211_v52, %v2994_v11  ;;  %v3213_v50 = vadd.f32 %v3115_v38, %v2886_v60  ;;  %v3147_v26 = vadd.f32 %v3143_v4, %v3137_v30  ;;  %v3192_v34 = vadd.f32 %v3188_v7, %v3182_v29 }
 0x8c9   :  { %v3171_v32 = vmul.f32 %v3081_v31, %v8429_v9  ;;  %v2933_v11 = vrot.slane %v8504_v18, 1  ;;  %v3159_v54 = vadd.f32 %v3155_v57, %v3149_v46  ;;  %v3165_v48 = vrot.slane %v3161_v6, 2 }
 0x8ca   :  { %v4178_v55 = vrot.slane %v4172_v40, %v8026_v62  ;;  %v3219_v23 = vrot.slane %v3213_v50, %v8026_v62  ;;  %v3534_v44 = vadd.f32 %v3147_v26, %v8483_v28  ;;  %v3198_v60 = vrot.slane %v3194_v12, 2 }
 0x8cb   :  { %v3208_v21 = vrot.slane %v3204_v33, 3  ;;  %v3169_v5 = vadd.f32 %v3165_v48, %v3159_v54  ;;  %v3175_v52 = vrot.slane %v3171_v32, 3  ;;  %v3118_v33 = vmul.f32 %v8516_v3, %v8413_v49  ;;  %v9460_v49 = vld [vmem:[#allocation16_spill] sm:$0xff]  ;;  %v9465_v48 = vld [vmem:[#allocation97_spill] sm:$0xff] }
 0x8cc   :  { %v4197_v17 = vadd.f32 %v7961_v13, %v4178_v55  ;;  %v4198_v4 = vadd.f32 %v8281_v47, %v4178_v55  ;;  %v3238_v7 = vadd.f32 %v7936_v22, %v3219_v23  ;;  %v3239_v31 = vadd.f32 %v7941_v42, %v3219_v23  ;;  %v8573_v55 = vpop.permute.xlu0 %4401 }
 0x8cd   :  { %v3540_v63 = vrot.slane %v3534_v44, %v8026_v62  ;;  %v3202_v28 = vadd.f32 %v3198_v60, %v3192_v34  ;;  %v3179_v12 = vadd.f32 %v3175_v52, %v3169_v5  ;;  %v9467_v60 = vld [vmem:[#allocation20_spill] sm:$0xff]  ;;  %v9471_v52 = vld [vmem:[#allocation109_spill] sm:$0xff] }
 0x8ce   :  { %v4239_v14 = vadd.f32 %v8271_v24, %v4197_v17  ;;  %v4240_v38 = vadd.f32 %v8347_v39, %v4198_v4  ;;  %v3279_v30 = vadd.f32 %v7943_v51, %v3238_v7  ;;  %v3280_v59 = vadd.f32 %v7945_v37, %v3239_v31  ;;  %v9466_v17 = vld [vmem:[#allocation127_spill] sm:$0xff]  ;;  %v9468_v7 = vld [vmem:[#allocation117_spill] sm:$0xff] }
 0x8cf   :  { %v3560_v6 = vadd.f32 %v7949_v16, %v3540_v63  ;;  %v3559_v40 = vadd.f32 %v8265_v15, %v3540_v63  ;;  %v3120_v24 = vmul.f32 %v8516_v3, %v8387_v8  ;;  %v3212_v46 = vadd.f32 %v3208_v21, %v3202_v28  ;;  %v9461_v8 = vld [vmem:[#allocation113_spill] sm:$0xff]  ;;  %v9469_v63 = vld [vmem:[#allocation163_spill] sm:$0xff] }
 0x8d0   :  { %v4281_v29 = vadd.f32 %v8287_v20, %v4239_v14  ;;  %v3321_v50 = vadd.f32 %v7973_v36, %v3279_v30  ;;  %v3322_v39 = vadd.f32 %v7975_v10, %v3280_v59  ;;  %v3853_v20 = vadd.f32 %v3179_v12, %v8487_v19  ;;  %v9462_v36 = vld [vmem:[#allocation92_spill] sm:$0xff]  ;;  %v9463_v10 = vld [vmem:[#allocation123_spill] sm:$0xff] }
 0x8d1   :  { %v3602_v51 = vadd.f32 %v7951_v25, %v3560_v6  ;;  %v3601_v37 = vadd.f32 %v8269_v45, %v3559_v40  ;;  %v4282_v57 = vadd.f32 %v8357_v41, %v4240_v38  ;;  %v9464_v25 = vld [vmem:[#allocation142_spill] sm:$0xff]  ;;  %v3130_v19 = vmul.f32 %v8516_v3, %v8415_v43  ;;  %v9470_v14 = vld [vmem:[#allocation21_spill] sm:$0xff] }
 0x8d2   :  { %v4323_v26 = vadd.f32 %v8305_v58, %v4281_v29  ;;  %v3363_v34 = vadd.f32 %v9460_v49, %v3321_v50  ;;  %v3364_v32 = vadd.f32 %v9461_v8, %v3322_v39  ;;  %v3859_v45 = vrot.slane %v3853_v20, %v8026_v62  ;;  %v9472_v30 = vld [vmem:[#allocation147_spill] sm:$0xff]  ;;  %v9474_v29 = vld [vmem:[#allocation120_spill] sm:$0xff]  ;;  %v9476_v50 = vld [vmem:[#allocation129_spill] sm:$0xff]  ;;  %v4118_v8 = vpop.permute.xlu0 %4117 }
 0x8d3   :  { %v3644_v23 = vadd.f32 %v9462_v36, %v3602_v51  ;;  %v3643_v44 = vadd.f32 %v9463_v10, %v3601_v37  ;;  %v3124_v58 = vrot.slane %v3120_v24, 1  ;;  %v4173_v5 = vadd.f32 %v3212_v46, %v9469_v63  ;;  %v9473_v6 = vld [vmem:[#allocation17_spill] sm:$0xff]  ;;  %v9477_v51 = vld [vmem:[#allocation7_spill] sm:$0xff]  ;;  %v9479_v46 = vld [vmem:[#allocation166_spill] sm:$0xff] }
 0x8d4   :  { %v4365_v54 = vadd.f32 %v9464_v25, %v4323_v26  ;;  %v3405_v41 = vadd.f32 %v9465_v48, %v3363_v34  ;;  %v3406_v4 = vadd.f32 %v9466_v17, %v3364_v32  ;;  %v3878_v28 = vadd.f32 %v9470_v14, %v3859_v45  ;;  %v9475_v12 = vld [vmem:[#allocation99_spill] sm:$0xff]  ;;  %v9478_v26 = vld [vmem:[#allocation112_spill] sm:$0xff]  ;;  %v9480_v32 = vld [vmem:[#allocation101_spill] sm:$0xff] }
 0x8d5   :  { %v3686_v21 = vadd.f32 %v9467_v60, %v3644_v23  ;;  %v3685_v31 = vadd.f32 %v9468_v7, %v3643_v44  ;;  %v3879_v38 = vadd.f32 %v9471_v52, %v3859_v45  ;;  %v4324_v59 = vadd.f32 %v9472_v30, %v4282_v57  ;;  %v9481_v23 = vld [vmem:[#allocation131_spill] sm:$0xff]  ;;  %v9482_v10 = vld [vmem:[#allocation94_spill] sm:$0xff]  ;;  %v9483_v25 = vld [vmem:[#allocation125_spill] sm:$0xff] }
 0x8d6   :  { %v3447_v40 = vadd.f32 %v9473_v6, %v3405_v41  ;;  %v3448_v43 = vadd.f32 %v9474_v29, %v3406_v4  ;;  %v3920_v37 = vadd.f32 %v9477_v51, %v3878_v28  ;;  %v3128_v49 = vadd.f32 %v3124_v58, %v3118_v33  ;;  %v9484_v48 = vld [vmem:[#allocation110_spill] sm:$0xff]  ;;  %v9485_v17 = vld [vmem:[#allocation137_spill] sm:$0xff]  ;;  %v9486_v60 = vld [vmem:[#allocation159_spill] sm:$0xff] }
 0x8d7   :  { %v3728_v24 = vadd.f32 %v9475_v12, %v3686_v21  ;;  %v3727_v39 = vadd.f32 %v9476_v50, %v3685_v31  ;;  %v3921_v20 = vadd.f32 %v9478_v26, %v3879_v38  ;;  %v2944_v34 = vrot.slane %v9479_v46, 2  ;;  %v9487_v7 = vld [vmem:[#allocation167_spill] sm:$0xff]  ;;  %v9488_v31 = vld [vmem:[#allocation161_spill] sm:$0xff]  ;;  %v9493_v12 = vld [vmem:[#allocation116_spill] sm:$0xff] }
 0x8d8   :  { %v3489_v36 = vadd.f32 %v9480_v32, %v3447_v40  ;;  %v3490_v57 = vadd.f32 %v9481_v23, %v3448_v43  ;;  %v3962_v41 = vadd.f32 %v9484_v48, %v3920_v37  ;;  %v4366_v21 = vadd.f32 %v9486_v60, %v4324_v59  ;;  %v9490_v30 = vld [vmem:[#allocation165_spill] sm:$0xff]  ;;  %v9491_v40 = vld [vmem:[#allocation150_spill] sm:$0xff]  ;;  %v9492_v59 = vld [vmem:[#allocation103_spill] sm:$0xff]  ;;  %v8628_v23 = vpop.permute.xlu0 %4124 }
 0x8d9   :  { %v3770_v44 = vadd.f32 %v9482_v10, %v3728_v24  ;;  %v3769_v45 = vadd.f32 %v9483_v25, %v3727_v39  ;;  %v3963_v4 = vadd.f32 %v9485_v17, %v3921_v20  ;;  %v9489_v33 = vrot.slane %v9488_v31, 2  ;;  %v9494_v50 = vld [vmem:[#allocation143_spill] sm:$0xff]  ;;  %v9498_v32 = vld [vmem:[#allocation152_spill] sm:$0xff]  ;;  %v9500_v10 = vld [vmem:[#allocation153_spill] sm:$0xff] }
 0x8da   :  { %v8609_v63 = vrot.slane %v4173_v5, %v8026_v62  ;;  %3498 = vperm.xlu1 %4945, %v3489_v36   ;;  %3501 = vperm.xlu0 %4946, %v3490_v57   ;;  %v3134_v28 = vrot.slane %v3130_v19, 2  ;;  %v3140_v38 = vmul.f32 %v8516_v3, %v8419_v56  ;;  %v2937_v6 = vadd.f32 %v2933_v11, %v9490_v30  ;;  %v9495_v5 = vld [vmem:[#allocation133_spill] sm:$0xff]  ;;  %v9496_v19 = vld [vmem:[#allocation151_spill] sm:$0xff]  ;;  %v9501_v25 = vld [vmem:[#allocation156_spill] sm:$0xff] }
 0x8db   :  { %v2876_v58 = vadd.f32 %v9489_v33, %v9487_v7  ;;  %v4407_v29 = vadd.f32 %v9491_v40, %v4365_v54  ;;  %v3812_v43 = vadd.f32 %v9492_v59, %v3770_v44  ;;  %v4004_v24 = vadd.f32 %v9493_v12, %v3962_v41  ;;  %v9497_v56 = vld [vmem:[#allocation139_spill] sm:$0xff]  ;;  %v9499_v54 = vld [vmem:[#allocation154_spill] sm:$0xff]  ;;  %v9503_v17 = vld [vmem:[#allocation168_spill] sm:$0xff] }
 0x8dc   :  { %v4005_v39 = vadd.f32 %v9494_v50, %v3963_v4  ;;  %v3811_v51 = vadd.f32 %v9495_v5, %v3769_v45  ;;  %v3138_v37 = vadd.f32 %v3134_v28, %v3128_v49  ;;  %v3144_v26 = vrot.slane %v3140_v38, 3  ;;  %v9502_v48 = vld [vmem:[#allocation146_spill] sm:$0xff]  ;;  %v4437_v5 = vpop.permute.xlu0 %4436 }
 0x8dd   :  { %v3088_v20 = vmul.f32 %v8516_v3, %v9496_v19  ;;  %v4046_v46 = vadd.f32 %v9497_v56, %v4004_v24  ;;  %v4408_v11 = vadd.f32 %v8550_v0, %v4366_v21  ;;  %v3098_v36 = vmul.f32 %v8516_v3, %v9499_v54  ;;  %v9504_v28 = vld [vmem:[#allocation158_spill] sm:$0xff]  ;;  %v9507_v54 = vld [vmem:[#allocation124_spill] sm:$0xff] }
 0x8de   :  { %v4047_v18 = vadd.f32 %v9498_v32, %v4005_v39  ;;  %3823 = vperm.xlu1 %4945, %v3812_v43   ;;  %3820 = vperm.xlu0 %4946, %v3811_v51   ;;  %v3148_v57 = vadd.f32 %v3144_v26, %v3138_v37  ;;  %v3086_v49 = vmul.f32 %v8516_v3, %v9500_v10  ;;  %v2955_v50 = vrot.slane %v8528_v35, 3  ;;  %v4433_v51 = vpop.permute.xlu1 %4432 }
 0x8df   :  { %v3092_v44 = vrot.slane %v3088_v20, 1  ;;  %v3108_v45 = vmul.f32 %v8516_v3, %v9501_v25  ;;  %v4088_v41 = vadd.f32 %v9502_v48, %v4046_v46  ;;  %v3150_v0 = vmul.f32 %v8516_v3, %v8421_v1  ;;  %v9505_v1 = vld [vmem:[#allocation164_spill] sm:$0xff]  ;;  %v9506_v46 = vld [vmem:[#allocation107_spill] sm:$0xff] }
 0x8e0   :  { %v4089_v4 = vadd.f32 %v9503_v17, %v4047_v18  ;;  %v3152_v60 = vmul.f32 %v8516_v3, %v8391_v2  ;;  %v3535_v21 = vadd.f32 %v3148_v57, %v8530_v53  ;;  %v3102_v31 = vrot.slane %v3098_v36, 2 }
 0x8e1   :  { %v3096_v7 = vadd.f32 %v3092_v44, %v3086_v49  ;;  %v3162_v33 = vmul.f32 %v8516_v3, %v8423_v61  ;;  %v4130_v38 = vadd.f32 %v9504_v28, %v4088_v41  ;;  %v3172_v59 = vmul.f32 %v8516_v3, %v8429_v9  ;;  %v9510_v44 = vld [vmem:[#allocation19_spill] sm:$0xff]  ;;  %v9516_v28 = vld [vmem:[#allocation10_spill] sm:$0xff] }
 0x8e2   :  { %v4131_v30 = vadd.f32 %v4118_v8, %v4089_v4  ;;  %v3156_v40 = vrot.slane %v3152_v60, 1  ;;  %v3544_v43 = vrot.slane %v3535_v21, %v8026_v62  ;;  %v2883_v12 = vrot.slane %v9505_v1, 3  ;;  %v9512_v41 = vld [vmem:[#allocation8_spill] sm:$0xff]  ;;  %v9514_v60 = vld [vmem:[#allocation114_spill] sm:$0xff] }
 0x8e3   :  { %v3106_v24 = vadd.f32 %v3102_v31, %v3096_v7  ;;  %v3112_v2 = vrot.slane %v3108_v45, 3  ;;  %4139 = vperm.xlu0 %4946, %v4130_v38   ;;  %v2948_v53 = vadd.f32 %v2944_v34, %v2937_v6  ;;  %v3166_v61 = vrot.slane %v3162_v33, 2  ;;  %v9511_v45 = vld [vmem:[#allocation130_spill] sm:$0xff]  ;;  %v9513_v4 = vld [vmem:[#allocation105_spill] sm:$0xff] }
 0x8e4   :  { %4142 = vperm.xlu1 %4945, %v4131_v30   ;;  %v3160_v39 = vadd.f32 %v3156_v40, %v3150_v0  ;;  %v4199_v8 = vadd.f32 %v7961_v13, %v8609_v63  ;;  %v3561_v9 = vadd.f32 %v8265_v15, %v3544_v43  ;;  %v2887_v3 = vadd.f32 %v2883_v12, %v2876_v58  ;;  %v9508_v15 = vld [vmem:[#allocation108_spill] sm:$0xff]  ;;  %v9518_v40 = vld [vmem:[#allocation93_spill] sm:$0xff]  ;;  %v9520_v12 = vld [vmem:[#allocation135_spill] sm:$0xff] }
 0x8e5   :  { %v3116_v37 = vadd.f32 %v3112_v2, %v3106_v24  ;;  %v4449_v26 = vadd.f32 %v4433_v51, %v4407_v29  ;;  %v4450_v19 = vadd.f32 %v4437_v5, %v4408_v11  ;;  %v3176_v56 = vrot.slane %v3172_v59, 3  ;;  %v9509_v29 = vld [vmem:[#allocation119_spill] sm:$0xff]  ;;  %v9521_v2 = vld [vmem:[#allocation134_spill] sm:$0xff]  ;;  %v9526_v51 = vld [vmem:[#allocation136_spill] sm:$0xff] }
 0x8e6   :  { %v3170_v20 = vadd.f32 %v3166_v61, %v3160_v39  ;;  %v3603_v32 = vadd.f32 %v9506_v46, %v3561_v9  ;;  %v3562_v35 = vadd.f32 %v7949_v16, %v3544_v43  ;;  %v2959_v6 = vadd.f32 %v2955_v50, %v2948_v53  ;;  %v9519_v43 = vld [vmem:[#allocation106_spill] sm:$0xff]  ;;  %v9522_v50 = vld [vmem:[#allocation18_spill] sm:$0xff]  ;;  %v9525_v61 = vld [vmem:[#allocation111_spill] sm:$0xff] }
 0x8e7   :  { %v3214_v34 = vadd.f32 %v3116_v37, %v2887_v3  ;;  %4458 = vperm.xlu0 %4946, %v4449_v26   ;;  %v4241_v58 = vadd.f32 %v9508_v15, %v4199_v8  ;;  %v4200_v7 = vadd.f32 %v8281_v47, %v8609_v63  ;;  %v9523_v63 = vld [vmem:[#allocation115_spill] sm:$0xff]  ;;  %v9524_v39 = vld [vmem:[#allocation122_spill] sm:$0xff]  ;;  %v9528_v37 = vld [vmem:[#allocation128_spill] sm:$0xff] }
 0x8e8   :  { %4461 = vperm.xlu1 %4945, %v4450_v19   ;;  %v3180_v18 = vadd.f32 %v3176_v56, %v3170_v20  ;;  %v3645_v36 = vadd.f32 %v9507_v54, %v3603_v32  ;;  %v3604_v25 = vadd.f32 %v9510_v44, %v3562_v35  ;;  %v9527_v9 = vld [vmem:[#allocation98_spill] sm:$0xff]  ;;  %v9529_v19 = vld [vmem:[#allocation12_spill] sm:$0xff]  ;;  %v9532_v35 = vld [vmem:[#allocation13_spill] sm:$0xff] }
 0x8e9   :  { %v3223_v13 = vrot.slane %v3214_v34, %v8026_v62  ;;  %v4283_v21 = vadd.f32 %v9514_v60, %v4241_v58  ;;  %v4242_v8 = vadd.f32 %v9526_v51, %v4200_v7  ;;  %v9530_v56 = vld [vmem:[#allocation138_spill] sm:$0xff]  ;;  %v9535_v15 = vld [vmem:[#allocation141_spill] sm:$0xff]  ;;  %v9543_v60 = vld [vmem:[#allocation132_spill] sm:$0xff] }
 0x8ea   :  { %v3854_v57 = vadd.f32 %v3180_v18, %v2959_v6  ;;  %v3687_v11 = vadd.f32 %v9509_v29, %v3645_v36  ;;  %v3646_v59 = vadd.f32 %v9518_v40, %v3604_v25  ;;  %v9531_v32 = vld [vmem:[#allocation118_spill] sm:$0xff]  ;;  %v9533_v18 = vld [vmem:[#allocation144_spill] sm:$0xff]  ;;  %v9539_v25 = vld [vmem:[#allocation145_spill] sm:$0xff] }
 0x8eb   :  { %v3240_v10 = vadd.f32 %v7936_v22, %v3223_v13  ;;  %v3241_v49 = vadd.f32 %v7941_v42, %v3223_v13  ;;  %v9515_v42 = vld [vmem:[#allocation126_spill] sm:$0xff]  ;;  %v9534_v36 = vld [vmem:[#allocation140_spill] sm:$0xff]  ;;  %v4284_v58 = vadd.f32 %v9535_v15, %v4242_v8  ;;  %v9544_v7 = vld [vmem:[#allocation95_spill] sm:$0xff] }
 0x8ec   :  { %v3863_v16 = vrot.slane %v3854_v57, %v8026_v62  ;;  %v3729_v48 = vadd.f32 %v9511_v45, %v3687_v11  ;;  %v9517_v62 = vld [vmem:[#allocation11_spill] sm:$0xff]  ;;  %v3688_v20 = vadd.f32 %v9529_v19, %v3646_v59  ;;  %v9536_v57 = vld [vmem:[#allocation102_spill] sm:$0xff]  ;;  %v9537_v11 = vld [vmem:[#allocation121_spill] sm:$0xff] }
 0x8ed   :  { %v3281_v17 = vadd.f32 %v9512_v41, %v3240_v10  ;;  %v3282_v0 = vadd.f32 %v9513_v4, %v3241_v49  ;;  %v9538_v49 = vld [vmem:[#allocation100_spill] sm:$0xff]  ;;  %v9541_v41 = vld [vmem:[#allocation155_spill] sm:$0xff] }
 0x8ee   :  { %v3880_v31 = vadd.f32 %v9470_v14, %v3863_v16  ;;  %v3881_v22 = vadd.f32 %v9471_v52, %v3863_v16  ;;  %v3771_v33 = vadd.f32 %v9515_v42, %v3729_v48  ;;  %v4325_v52 = vadd.f32 %v9524_v39, %v4283_v21  ;;  %v9540_v45 = vld [vmem:[#allocation148_spill] sm:$0xff] }
 0x8ef   :  { %v3323_v38 = vadd.f32 %v9516_v28, %v3281_v17  ;;  %v3324_v30 = vadd.f32 %v9517_v62, %v3282_v0  ;;  %v3730_v44 = vadd.f32 %v9538_v49, %v3688_v20  ;;  %v9542_v4 = vld [vmem:[#allocation160_spill] sm:$0xff] }
 0x8f0   :  { %v3922_v1 = vadd.f32 %v9519_v43, %v3880_v31  ;;  %v3923_v24 = vadd.f32 %v9520_v12, %v3881_v22  ;;  %v3813_v53 = vadd.f32 %v9521_v2, %v3771_v33  ;;  %v4367_v54 = vadd.f32 %v9533_v18, %v4325_v52  ;;  %v9545_v22 = vld [vmem:[#allocation157_spill] sm:$0xff]  ;;  %v9548_v43 = vld [vmem:[#allocation162_spill] sm:$0xff]  ;;  %v4444_v2 = vpop.permute.xlu0 %4443 }
 0x8f1   :  { %v3365_v47 = vadd.f32 %v9522_v50, %v3323_v38  ;;  %v3366_v14 = vadd.f32 %v9523_v63, %v3324_v30  ;;  %v3772_v31 = vadd.f32 %v9544_v7, %v3730_v44  ;;  %v9546_v33 = vld [vmem:[#allocation149_spill] sm:$0xff]  ;;  %v4440_v38 = vpop.permute.xlu1 %4439  ;;  %v9547_v30 = vld [vmem:[#allocation104_spill] sm:$0xff] }
 0x8f2   :  { %v3964_v5 = vadd.f32 %v9525_v61, %v3922_v1  ;;  %3826 = vperm.xlu0 %4946, %v3813_v53   ;;  %v3965_v46 = vadd.f32 %v9530_v56, %v3923_v24  ;;  %v4409_v17 = vadd.f32 %v9541_v41, %v4367_v54  ;;  %v4326_v28 = vadd.f32 %v9546_v33, %v4284_v58 }
 0x8f3   :  { %v3407_v3 = vadd.f32 %v9527_v9, %v3365_v47  ;;  %v3408_v26 = vadd.f32 %v9528_v37, %v3366_v14  ;;  %v3814_v40 = vadd.f32 %v9547_v30, %v3772_v31  ;;  %v9549_v61 = vlaneseq  ;;  %v9550_v9 = vld [vmem:[#allocation96_spill] sm:$0xff] }
 0x8f4   :  { %v4006_v34 = vadd.f32 %v9531_v32, %v3964_v5  ;;  %v4007_v16 = vadd.f32 %v9539_v25, %v3965_v46  ;;  %v4451_v62 = vadd.f32 %v4440_v38, %v4409_v17  ;;  %v4368_v1 = vadd.f32 %v9548_v43, %v4326_v28 }
 0x8f5   :  { %v3449_v6 = vadd.f32 %v9532_v35, %v3407_v3  ;;  %v3450_v10 = vadd.f32 %v9537_v11, %v3408_v26 }
 0x8f6   :  { %v4048_v13 = vadd.f32 %v9534_v36, %v4006_v34  ;;  %v4049_v42 = vadd.f32 %v9545_v22, %v4007_v16  ;;  %v4410_v24 = vadd.f32 %v8573_v55, %v4368_v1 }
 0x8f7   :  { %v3491_v29 = vadd.f32 %v9536_v57, %v3449_v6  ;;  %v3492_v21 = vadd.f32 %v9543_v60, %v3450_v10 }
 0x8f8   :  { %v4090_v48 = vadd.f32 %v9540_v45, %v4048_v13  ;;  %v4091_v59 = vadd.f32 %v8532_v27, %v4049_v42  ;;  %v4452_v53 = vadd.f32 %v4444_v2, %v4410_v24  ;;  %v3510_v27 = vand.u32 127, %v9549_v61 }
 0x8f9   :  { %3504 = vperm.xlu1 %4945, %v3491_v29  }
 0x8fa   :  { %v4132_v0 = vadd.f32 %v9542_v4, %v4090_v48  ;;  %v4133_v12 = vadd.f32 %v8628_v23, %v4091_v59  ;;  %v3515_v51 = vadd.s32 4294967288, %v3510_v27  ;;  %v3513_v3 = vsub.s32 %v3510_v27, %v9550_v9 }
 0x8fc   :  { %4145 = vperm.xlu0 %4946, %v4132_v0   ;;  %v3518_v23 = vsub.s32 %v3515_v51, %v9550_v9 }
 0x8fd   :  { %3507 = vperm.xlu1 %4945, %v3492_v21  }
 0x900   :  { %4464 = vperm.xlu0 %4946, %v4451_v62  }
 0x901   :  { %3829 = vperm.xlu1 %4945, %v3814_v40  }
 0x905   :  { %4148 = vperm.xlu1 %4945, %v4133_v12  }
 0x909   :  { %4467 = vperm.xlu1 %4945, %v4452_v53  }
 0x959   :  { %v3499_v50 = vpop.permute.xlu1 %3498  ;;  %v3502_v47 = vpop.permute.xlu0 %3501 }
 0x95a   :  { %v3514_v26 = vrot.slane %v3499_v50, %v3513_v3  ;;  %v3519_v19 = vrot.slane %v3502_v47, %v3518_v23 }
 0x95c   :  { %v3521_v32 = vsel %vm3520_vm7, %v3519_v19, %v3514_v26 }
 0x95d   :  { %v3824_v63 = vpop.permute.xlu1 %3823  ;;  %v3821_v14 = vpop.permute.xlu0 %3820 }
 0x95e   :  { %v3838_v34 = vrot.slane %v3824_v63, %v3518_v23  ;;  %v3834_v35 = vrot.slane %v3821_v14, %v3513_v3 }
 0x960   :  { %v3839_v58 = vsel %vm3520_vm7, %v3838_v34, %v3834_v35 }
 0x962   :  { %v4140_v52 = vpop.permute.xlu0 %4139 }
 0x963   :  { %v4143_v39 = vpop.permute.xlu1 %4142  ;;  %v4153_v29 = vrot.slane %v4140_v52, %v3513_v3 }
 0x964   :  { %v4157_v57 = vrot.slane %v4143_v39, %v3518_v23 }
 0x966   :  { %v4459_v8 = vpop.permute.xlu0 %4458  ;;  %v4158_v45 = vsel %vm3520_vm7, %v4157_v57, %v4153_v29 }
 0x967   :  { %v4462_v5 = vpop.permute.xlu1 %4461  ;;  %v4472_v41 = vrot.slane %v4459_v8, %v3513_v3 }
 0x968   :  { %v4476_v48 = vrot.slane %v4462_v5, %v3518_v23 }
 0x96a   :  { %v4477_v7 = vsel %vm3520_vm7, %v4476_v48, %v4472_v41 }
 0x971   :  { %v3827_v37 = vpop.permute.xlu0 %3826 }
 0x972   :  { %v3843_v13 = vrot.slane %v3827_v37, %v3513_v3 }
 0x978   :  { %v3505_v55 = vpop.permute.xlu1 %3504 }
 0x979   :  { %v3525_v56 = vrot.slane %v3505_v55, %v3513_v3 }
 0x97b   :  { %v4146_v54 = vpop.permute.xlu0 %4145 }
 0x97c   :  { %v3508_v20 = vpop.permute.xlu1 %3507  ;;  %v4162_v44 = vrot.slane %v4146_v54, %v3513_v3 }
 0x97d   :  { %v3529_v46 = vrot.slane %v3508_v20, %v3518_v23 }
 0x97f   :  { %v3530_v6 = vsel %vm3520_vm7, %v3529_v46, %v3525_v56  ;;  %v4465_v16 = vpop.permute.xlu0 %4464 }
 0x980   :  { %v3531_v18 = vsel %vm2803_vm1, %v3530_v6, %v3521_v32  ;;  %v3830_v36 = vpop.permute.xlu1 %3829  ;;  %v4481_v60 = vrot.slane %v4465_v16, %v3513_v3 }
 0x981   :  { %3533 = vst.msk [vmem:[%s9551_s8] sm:$0x3] %vm2806_vm2, %v3531_v18  ;;  %v3847_v15 = vrot.slane %v3830_v36, %v3518_v23 }
 0x983   :  { %v3848_v11 = vsel %vm3520_vm7, %v3847_v15, %v3843_v13 }
 0x984   :  { %v3849_v10 = vsel %vm2803_vm1, %v3848_v11, %v3839_v58  ;;  %v4149_v49 = vpop.permute.xlu1 %4148 }
 0x985   :  { %4781 = vst.msk [vmem:[%s9551_s8 + $0x2] sm:$0x3] %vm2806_vm2, %v3849_v10  ;;  %v4166_v25 = vrot.slane %v4149_v49, %v3518_v23 }
 0x987   :  { %v4167_v17 = vsel %vm3520_vm7, %v4166_v25, %v4162_v44 }
 0x988   :  { %v4168_v4 = vsel %vm2803_vm1, %v4167_v17, %v4158_v45  ;;  %v4468_v0 = vpop.permute.xlu1 %4467 }
 0x989   :  { %4789 = vst.msk [vmem:[%s9551_s8 + $0x4] sm:$0x3] %vm2806_vm2, %v4168_v4  ;;  %v4485_v21 = vrot.slane %v4468_v0, %v3518_v23 }
 0x98b   :  { %v4486_v31 = vsel %vm3520_vm7, %v4485_v21, %v4481_v60 }
 0x98c   :  { %v4487_v22 = vsel %vm2803_vm1, %v4486_v31, %v4477_v7 }
 0x98d   :  { %4797 = vst.msk [vmem:[%s9551_s8 + $0x6] sm:$0x3] %vm2806_vm2, %v4487_v22 }
 0x98e   :  { %4495 = vsyncpa [#allocation3], 1 }

</bundles_post_ra>
